<compile_context>
chip_gen: v7x
topology: tpu7x:2x2x1
jax: 0.10.0
libtpu: 0.0.40
codegen_flags: <defaults>
</compile_context>

<pallas_src>
import jax
import jax.numpy as jnp
from jax.experimental import pallas as pl
from jax.experimental.pallas import tpu as pltpu

SELU_ALPHA = 1.6732632423543772848170429916717
SELU_SCALE = 1.0507009873554804934193349852946
BN_EPS = 1e-5
LANES = 128   # all conv channel dims are padded to one full lane width
S3 = 8        # conv3 output spatial edge (8x8); network expects 64x64 input


# ----------------------------- fused kernel --------------------------------

def _fused_kernel(col1_ref, w1_ref, b1_ref, g1_ref, be1_ref,
                  w2_ref, b2_ref, g2_ref, be2_ref,
                  w3_ref, b3_ref, g3_ref, be3_ref,
                  wf1_hbm, bf1_ref, wf2_hbm, bf2_ref,
                  o_ref,
                  wf1_vmem, wf2_vmem, dma_sem):
    """Whole forward pass; every intermediate activation stays in VMEM."""
    B = o_ref.shape[0]

    # Start the fc weight DMAs immediately so they stream in behind the conv
    # MXU work instead of sitting serialized on the critical path.
    cp_wf1 = pltpu.make_async_copy(wf1_hbm, wf1_vmem, dma_sem.at[0])
    cp_wf2 = pltpu.make_async_copy(wf2_hbm, wf2_vmem, dma_sem.at[1])
    cp_wf1.start()
    cp_wf2.start()

    def conv_bn(blocks, w_ref, b_ref, g_ref, be_ref):
        # y = relu(sum_t blocks[t] @ w[t*128:(t+1)*128] + b), then BatchNorm
        # over the row axis (== N*H*W) with batch statistics (training mode,
        # biased variance), matching torch BatchNorm2d's training forward.
        y = None
        for t, blk in enumerate(blocks):
            part = jnp.dot(blk, w_ref[t * LANES:(t + 1) * LANES, :],
                           preferred_element_type=jnp.float32)
            y = part if y is None else y + part
        y = jnp.maximum(y + b_ref[...], 0.0)
        inv_m = 1.0 / y.shape[0]
        mean = jnp.sum(y, axis=0, keepdims=True) * inv_m
        var = jnp.sum(y * y, axis=0, keepdims=True) * inv_m - mean * mean
        scale = jax.lax.rsqrt(var + BN_EPS) * g_ref[...]
        return (y - mean) * scale + be_ref[...]

    def quarters(h):
        m = h.shape[0] // 4
        return [h[t * m:(t + 1) * m, :] for t in range(4)]

    # conv1 (+ReLU+BN1).  col1 rows are ordered (kh2,kw2,kh3,kw3,w3,h3,b), so
    # every later layer's 2x2/s2 patch gather is a contiguous row-block K-split.
    h1 = conv_bn([col1_ref[...]], w1_ref, b1_ref, g1_ref, be1_ref)
    h1 = h1.astype(jnp.bfloat16)                      # [1024*B, 128]

    # conv2 (+ReLU+BN2): the 4 patch taps are the 4 row quarters of h1.
    h2 = conv_bn(quarters(h1), w2_ref, b2_ref, g2_ref, be2_ref)
    h2 = h2.astype(jnp.bfloat16)                      # [256*B, 128]

    # conv3 (+ReLU+BN3): rows ordered (w3, h3, b); channels in lanes [0, 16).
    h3 = conv_bn(quarters(h2), w3_ref, b3_ref, g3_ref, be3_ref)
    h3 = h3.astype(jnp.bfloat16)                      # [64*B, 128]

    # In-VMEM flatten / pad-drop: place the 16 valid channels of the 8 w3
    # positions into one 128-lane block (lane -> w3*16 + c) with tiny 0/1
    # placement matmuls; pad lanes are zeroed by the placement matrix.
    row_id = jax.lax.broadcasted_iota(jnp.int32, (LANES, LANES), 0)
    col_id = jax.lax.broadcasted_iota(jnp.int32, (LANES, LANES), 1)
    rows_w = S3 * B
    packed = None
    for w3 in range(S3):
        place = ((col_id - row_id == w3 * 16)
                 & (row_id < 16)).astype(jnp.bfloat16)
        part = jnp.dot(h3[w3 * rows_w:(w3 + 1) * rows_w, :], place,
                       preferred_element_type=jnp.float32)
        packed = part if packed is None else packed + part
    packed = packed.astype(jnp.bfloat16)              # [8*B,128] rows (h3,b)

    # fc1 (SELU) + fc2.  wf1 rows were permuted to (h3, w3, c) order at
    # prepare time, so fc1 is a K-split over the h3 row groups of `packed`.
    cp_wf1.wait()
    f1 = None
    for h_ in range(S3):
        part = jnp.dot(packed[h_ * B:(h_ + 1) * B, :],
                       wf1_vmem[h_ * LANES:(h_ + 1) * LANES, :],
                       preferred_element_type=jnp.float32)
        f1 = part if f1 is None else f1 + part
    f1 = f1 + bf1_ref[...]
    f1 = SELU_SCALE * jnp.where(f1 > 0, f1, SELU_ALPHA * (jnp.exp(f1) - 1.0))

    cp_wf2.wait()
    out = jnp.dot(f1.astype(jnp.bfloat16), wf2_vmem[...],
                  preferred_element_type=jnp.float32)
    o_ref[...] = out + bf2_ref[...]


def _block_spec(shape):
    return pl.BlockSpec(shape, lambda *_: (0,) * len(shape))


# ------------------------------- JAX glue ----------------------------------

def _conv1_cols(x_nchw):
    """im2col for conv1 (k=4, s=2, p=1); K zero-padded 16 -> 128 lanes.
    Rows are emitted in (kh2, kw2, kh3, kw3, w3, h3, b) order (nested
    space-to-depth) so every later layer's patch gather inside the kernel is a
    contiguous row-block K-split."""
    B = x_nchw.shape[0]
    x = x_nchw.reshape(B, 64, 64).astype(jnp.bfloat16)
    xp = jnp.pad(x, ((0, 0), (1, 1), (1, 1)))
    taps = [xp[:, kh:kh + 63:2, kw:kw + 63:2]
            for kh in range(4) for kw in range(4)]     # each [B, 32, 32]
    col = jnp.stack(taps, axis=-1)                     # [B, 32, 32, 16]
    # h1 = 4*h3 + 2*a3 + a2 ; w1 = 4*w3 + 2*b3 + b2
    col = col.reshape(B, 8, 2, 2, 8, 2, 2, 16)         # (b,h3,a3,a2,w3,b3,b2,k)
    col = col.transpose(3, 6, 2, 5, 4, 1, 0, 7)        # (a2,b2,a3,b3,w3,h3,b,k)
    col = col.reshape(16 * 64 * B, 16)
    return jnp.pad(col, ((0, 0), (0, LANES - 16)))     # -> [1024*B, 128] bf16


def prepare_params(p):
    """One-time weight re-layout (outside the hot path): matmul-shaped conv
    weights with channels padded to 128 lanes, bf16 casts, BN vectors padded,
    and fc1 row permutation (torch NCHW flatten -> our (h, w, c) flatten)."""
    def conv_w_mat(w, cin_pad):
        cout, cin, kh, kw = w.shape
        wm = jnp.zeros((kh, kw, cin_pad, LANES), jnp.float32)
        wm = wm.at[:, :, :cin, :cout].set(jnp.transpose(w, (2, 3, 1, 0)))
        return wm.reshape(kh * kw * cin_pad, LANES).astype(jnp.bfloat16)

    def pad_vec(v, fill):
        c = v.shape[0]
        out = jnp.full((LANES,), fill, jnp.float32).at[:c].set(
            v.astype(jnp.float32))
        return out.reshape(1, LANES)

    q = {}
    w1m = conv_w_mat(p["w1"], cin_pad=1)                         # [16, 128]
    q["w1"] = jnp.pad(w1m, ((0, LANES - w1m.shape[0]), (0, 0)))  # K -> 128
    q["w2"] = conv_w_mat(p["w2"], cin_pad=LANES)                 # [512, 128]
    q["w3"] = conv_w_mat(p["w3"], cin_pad=LANES)                 # [512, 128]
    for i in (1, 2, 3):
        q[f"b{i}"] = pad_vec(p[f"b{i}"], 0.0)
        q[f"g{i}"] = pad_vec(p[f"g{i}"], 1.0)
        q[f"be{i}"] = pad_vec(p[f"be{i}"], 0.0)
    # fc1 rows: torch flattens conv3 NCHW as (c, h, w); the kernel produces
    # (h, w, c) lanes -- permute once so the matmul is exactly equivalent.
    wf1 = p["wf1"].reshape(16, 8, 8, 512).transpose(1, 2, 0, 3).reshape(1024, 512)
    q["wf1"] = wf1.astype(jnp.bfloat16)
    q["bf1"] = p["bf1"].astype(jnp.float32).reshape(1, 512)
    q["wf2"] = p["wf2"].astype(jnp.bfloat16)
    q["bf2"] = p["bf2"].astype(jnp.float32).reshape(1, 128)
    return q


def conv_reducer_forward(x_nchw, q):
    B, Cin, H, W = x_nchw.shape
    assert Cin == 1 and H == 64 and W == 64
    col1 = _conv1_cols(x_nchw)                         # [1024*B, 128] bf16
    M1 = col1.shape[0]

    in_specs = [
        _block_spec((M1, LANES)),                                  # col1
        _block_spec((LANES, LANES)),                               # w1
        _block_spec((1, LANES)), _block_spec((1, LANES)), _block_spec((1, LANES)),
        _block_spec((4 * LANES, LANES)),                           # w2
        _block_spec((1, LANES)), _block_spec((1, LANES)), _block_spec((1, LANES)),
        _block_spec((4 * LANES, LANES)),                           # w3
        _block_spec((1, LANES)), _block_spec((1, LANES)), _block_spec((1, LANES)),
        pl.BlockSpec(memory_space=pl.ANY),                         # wf1 (manual DMA)
        _block_spec((1, 512)),                                     # bf1
        pl.BlockSpec(memory_space=pl.ANY),                         # wf2 (manual DMA)
        _block_spec((1, LANES)),                                   # bf2
    ]

    flops = 2 * (M1 * LANES * LANES                      # conv1
                 + (M1 // 4) * 4 * LANES * LANES         # conv2
                 + (M1 // 16) * 4 * LANES * LANES        # conv3
                 + B * 1024 * 512 + B * 512 * 128)       # fc1 + fc2
    bytes_accessed = (M1 * LANES * 2 + 9 * LANES * LANES * 2
                      + 1024 * 512 * 2 + 512 * 128 * 2 + B * 128 * 4)

    return pl.pallas_call(
        _fused_kernel,
        grid=(1,),
        in_specs=in_specs,
        out_specs=_block_spec((B, LANES)),
        out_shape=jax.ShapeDtypeStruct((B, LANES), jnp.float32),
        scratch_shapes=[
            pltpu.VMEM((1024, 512), jnp.bfloat16),       # wf1 staging buffer
            pltpu.VMEM((512, LANES), jnp.bfloat16),      # wf2 staging buffer
            pltpu.SemaphoreType.DMA((2,)),
        ],
        compiler_params=pltpu.CompilerParams(
            dimension_semantics=("arbitrary",),
            vmem_limit_bytes=32 * 1024 * 1024,           # v7x-safe (<64 MiB phys)
        ),
        cost_estimate=pl.CostEstimate(
            flops=flops, transcendentals=B * 512, bytes_accessed=bytes_accessed),
    )(col1, q["w1"], q["b1"], q["g1"], q["be1"],
      q["w2"], q["b2"], q["g2"], q["be2"],
      q["w3"], q["b3"], q["g3"], q["be3"],
      q["wf1"], q["bf1"], q["wf2"], q["bf2"])


def init_params(key):
    ks = jax.random.split(key, 10)

    def w(k, shape, scale=0.05):
        return scale * jax.random.normal(k, shape, dtype=jnp.float32)

    return {
        # conv weights in PyTorch layout [Cout, Cin, kh, kw]
        "w1": w(ks[0], (64, 1, 4, 4)),  "b1": w(ks[1], (64,), 0.01),
        "g1": jnp.ones((64,), jnp.float32),  "be1": jnp.zeros((64,), jnp.float32),
        "w2": w(ks[2], (32, 64, 2, 2)), "b2": w(ks[3], (32,), 0.01),
        "g2": jnp.ones((32,), jnp.float32),  "be2": jnp.zeros((32,), jnp.float32),
        "w3": w(ks[4], (16, 32, 2, 2)), "b3": w(ks[5], (16,), 0.01),
        "g3": jnp.ones((16,), jnp.float32),  "be3": jnp.zeros((16,), jnp.float32),
        # fc weights stored as [in, out] (== torch weight.T); wf1's in-index
        # follows torch's NCHW flatten order (permuted in prepare_params).
        "wf1": w(ks[6], (16 * 8 * 8, 512)), "bf1": w(ks[7], (512,), 0.01),
        "wf2": w(ks[8], (512, 128)),        "bf2": w(ks[9], (128,), 0.01),
    }


if __name__ == "__main__":
    key = jax.random.PRNGKey(0)
    pkey, xkey = jax.random.split(key)
    params = init_params(pkey)
    prep = prepare_params(params)          # one-time weight re-layout
    # Spatial must be 64x64 so conv3's output is 8x8 (fc1 expects 16*8*8).
    x = jax.random.normal(xkey, (2, 1, 64, 64), dtype=jnp.float32)

    fwd = jax.jit(conv_reducer_forward)
    out = jax.block_until_ready(fwd(x, prep))

    assert out.shape == (2, 128), out.shape
    assert out.dtype == jnp.float32
    assert bool(jnp.all(jnp.isfinite(out)))
    print("KERNEL_OK")
</pallas_src>

<mosaic_0001>
module attributes {stable_mosaic.version = 11 : i64} {
  func.func @_fused_kernel(%arg0: i32, %arg1: memref<2048x128xbf16, #tpu.memory_space<vmem>>, %arg2: memref<128x128xbf16, #tpu.memory_space<vmem>>, %arg3: memref<1x128xf32, #tpu.memory_space<vmem>>, %arg4: memref<1x128xf32, #tpu.memory_space<vmem>>, %arg5: memref<1x128xf32, #tpu.memory_space<vmem>>, %arg6: memref<512x128xbf16, #tpu.memory_space<vmem>>, %arg7: memref<1x128xf32, #tpu.memory_space<vmem>>, %arg8: memref<1x128xf32, #tpu.memory_space<vmem>>, %arg9: memref<1x128xf32, #tpu.memory_space<vmem>>, %arg10: memref<512x128xbf16, #tpu.memory_space<vmem>>, %arg11: memref<1x128xf32, #tpu.memory_space<vmem>>, %arg12: memref<1x128xf32, #tpu.memory_space<vmem>>, %arg13: memref<1x128xf32, #tpu.memory_space<vmem>>, %arg14: memref<1024x512xbf16, #tpu.memory_space<any>>, %arg15: memref<1x512xf32, #tpu.memory_space<vmem>>, %arg16: memref<512x128xbf16, #tpu.memory_space<any>>, %arg17: memref<1x128xf32, #tpu.memory_space<vmem>>, %arg18: memref<2x128xf32, #tpu.memory_space<vmem>>, %arg19: memref<1024x512xbf16, #tpu.memory_space<vmem>>, %arg20: memref<512x128xbf16, #tpu.memory_space<vmem>>, %arg21: memref<2x!tpu.dma_semaphore, #tpu.memory_space<semaphore_mem>>) attributes {dimension_semantics = [#tpu.dimension_semantics<arbitrary>], iteration_bounds = array<i64: 1>, scalar_prefetch = 0 : i64, scratch_operands = 3 : i64, tpu.core_type = #tpu.core_type<tc>, window_params = [{pipeline_mode = #tpu.pipeline_mode<synchronous>, transform_indices = @transform_0, window_bounds = array<i64: 2048, 128>}, {pipeline_mode = #tpu.pipeline_mode<synchronous>, transform_indices = @transform_1, window_bounds = array<i64: 128, 128>}, {pipeline_mode = #tpu.pipeline_mode<synchronous>, transform_indices = @transform_2, window_bounds = array<i64: 1, 128>}, {pipeline_mode = #tpu.pipeline_mode<synchronous>, transform_indices = @transform_3, window_bounds = array<i64: 1, 128>}, {pipeline_mode = #tpu.pipeline_mode<synchronous>, transform_indices = @transform_4, window_bounds = array<i64: 1, 128>}, {pipeline_mode = #tpu.pipeline_mode<synchronous>, transform_indices = @transform_5, window_bounds = array<i64: 512, 128>}, {pipeline_mode = #tpu.pipeline_mode<synchronous>, transform_indices = @transform_6, window_bounds = array<i64: 1, 128>}, {pipeline_mode = #tpu.pipeline_mode<synchronous>, transform_indices = @transform_7, window_bounds = array<i64: 1, 128>}, {pipeline_mode = #tpu.pipeline_mode<synchronous>, transform_indices = @transform_8, window_bounds = array<i64: 1, 128>}, {pipeline_mode = #tpu.pipeline_mode<synchronous>, transform_indices = @transform_9, window_bounds = array<i64: 512, 128>}, {pipeline_mode = #tpu.pipeline_mode<synchronous>, transform_indices = @transform_10, window_bounds = array<i64: 1, 128>}, {pipeline_mode = #tpu.pipeline_mode<synchronous>, transform_indices = @transform_11, window_bounds = array<i64: 1, 128>}, {pipeline_mode = #tpu.pipeline_mode<synchronous>, transform_indices = @transform_12, window_bounds = array<i64: 1, 128>}, {}, {pipeline_mode = #tpu.pipeline_mode<synchronous>, transform_indices = @transform_14, window_bounds = array<i64: 1, 512>}, {}, {pipeline_mode = #tpu.pipeline_mode<synchronous>, transform_indices = @transform_16, window_bounds = array<i64: 1, 128>}, {pipeline_mode = #tpu.pipeline_mode<synchronous>, transform_indices = @transform_17, window_bounds = array<i64: 2, 128>}]} {
    %c0_i32 = arith.constant 0 : i32
    %0 = tpu.memref_slice %arg21[%c0_i32] : memref<2x!tpu.dma_semaphore, #tpu.memory_space<semaphore_mem>> -> memref<1x!tpu.dma_semaphore, #tpu.memory_space<semaphore_mem>>
    %1 = tpu.memref_squeeze %0 : memref<1x!tpu.dma_semaphore, #tpu.memory_space<semaphore_mem>> -> memref<!tpu.dma_semaphore, #tpu.memory_space<semaphore_mem>>
    tpu.enqueue_dma source(%arg14 : memref<1024x512xbf16, #tpu.memory_space<any>>) target(%arg19 : memref<1024x512xbf16, #tpu.memory_space<vmem>>) target_semaphore(%1 : memref<!tpu.dma_semaphore, #tpu.memory_space<semaphore_mem>>)
    %c1_i32 = arith.constant 1 : i32
    %2 = tpu.memref_slice %arg21[%c1_i32] : memref<2x!tpu.dma_semaphore, #tpu.memory_space<semaphore_mem>> -> memref<1x!tpu.dma_semaphore, #tpu.memory_space<semaphore_mem>>
    %3 = tpu.memref_squeeze %2 : memref<1x!tpu.dma_semaphore, #tpu.memory_space<semaphore_mem>> -> memref<!tpu.dma_semaphore, #tpu.memory_space<semaphore_mem>>
    tpu.enqueue_dma source(%arg16 : memref<512x128xbf16, #tpu.memory_space<any>>) target(%arg20 : memref<512x128xbf16, #tpu.memory_space<vmem>>) target_semaphore(%3 : memref<!tpu.dma_semaphore, #tpu.memory_space<semaphore_mem>>)
    %c0 = arith.constant 0 : index
    %c0_0 = arith.constant 0 : index
    %4 = vector.load %arg1[%c0, %c0_0] : memref<2048x128xbf16, #tpu.memory_space<vmem>>, vector<2048x128xbf16>
    %c0_1 = arith.constant 0 : index
    %c0_2 = arith.constant 0 : index
    %5 = vector.load %arg2[%c0_1, %c0_2] : memref<128x128xbf16, #tpu.memory_space<vmem>>, vector<128x128xbf16>
    %cst = arith.constant dense<0.000000e+00> : vector<2048x128xf32>
    %6 = tpu.matmul %4, %5, %cst {dimension_numbers = #tpu.dot_dimension_numbers<[1], [0], [0], [1], [0, 0, 1, 1], [], []>} : vector<2048x128xbf16>, vector<128x128xbf16>, vector<2048x128xf32> -> vector<2048x128xf32>
    %c0_3 = arith.constant 0 : index
    %c0_4 = arith.constant 0 : index
    %7 = vector.load %arg3[%c0_3, %c0_4] : memref<1x128xf32, #tpu.memory_space<vmem>>, vector<1x128xf32>
    %8 = vector.broadcast %7 : vector<1x128xf32> to vector<2048x128xf32>
    %9 = arith.addf %6, %8 : vector<2048x128xf32>
    %cst_5 = arith.constant 0.000000e+00 : f32
    %10 = vector.broadcast %cst_5 : f32 to vector<2048x128xf32>
    %11 = arith.maximumf %9, %10 : vector<2048x128xf32>
    %cst_6 = arith.constant dense<0.000000e+00> : vector<128xf32>
    %12 = vector.multi_reduction <add>, %11, %cst_6 [0] : vector<2048x128xf32> to vector<128xf32>
    %13 = vector.shape_cast %12 : vector<128xf32> to vector<1x128xf32>
    %cst_7 = arith.constant 4.8828125E-4 : f32
    %14 = vector.broadcast %cst_7 : f32 to vector<1x128xf32>
    %15 = arith.mulf %13, %14 : vector<1x128xf32>
    %16 = arith.mulf %11, %11 : vector<2048x128xf32>
    %cst_8 = arith.constant dense<0.000000e+00> : vector<128xf32>
    %17 = vector.multi_reduction <add>, %16, %cst_8 [0] : vector<2048x128xf32> to vector<128xf32>
    %18 = vector.shape_cast %17 : vector<128xf32> to vector<1x128xf32>
    %cst_9 = arith.constant 4.8828125E-4 : f32
    %19 = vector.broadcast %cst_9 : f32 to vector<1x128xf32>
    %20 = arith.mulf %18, %19 : vector<1x128xf32>
    %21 = arith.mulf %15, %15 : vector<1x128xf32>
    %22 = arith.subf %20, %21 : vector<1x128xf32>
    %cst_10 = arith.constant 9.99999974E-6 : f32
    %23 = vector.broadcast %cst_10 : f32 to vector<1x128xf32>
    %24 = arith.addf %22, %23 : vector<1x128xf32>
    %25 = math.rsqrt %24 : vector<1x128xf32>
    %c0_11 = arith.constant 0 : index
    %c0_12 = arith.constant 0 : index
    %26 = vector.load %arg4[%c0_11, %c0_12] : memref<1x128xf32, #tpu.memory_space<vmem>>, vector<1x128xf32>
    %27 = arith.mulf %25, %26 : vector<1x128xf32>
    %28 = vector.broadcast %15 : vector<1x128xf32> to vector<2048x128xf32>
    %29 = arith.subf %11, %28 : vector<2048x128xf32>
    %30 = vector.broadcast %27 : vector<1x128xf32> to vector<2048x128xf32>
    %31 = arith.mulf %29, %30 : vector<2048x128xf32>
    %c0_13 = arith.constant 0 : index
    %c0_14 = arith.constant 0 : index
    %32 = vector.load %arg5[%c0_13, %c0_14] : memref<1x128xf32, #tpu.memory_space<vmem>>, vector<1x128xf32>
    %33 = vector.broadcast %32 : vector<1x128xf32> to vector<2048x128xf32>
    %34 = arith.addf %31, %33 : vector<2048x128xf32>
    %35 = arith.truncf %34 : vector<2048x128xf32> to vector<2048x128xbf16>
    %36 = vector.extract_strided_slice %35 {offsets = [0, 0], sizes = [512, 128], strides = [1, 1]} : vector<2048x128xbf16> to vector<512x128xbf16>
    %37 = vector.extract_strided_slice %35 {offsets = [512, 0], sizes = [512, 128], strides = [1, 1]} : vector<2048x128xbf16> to vector<512x128xbf16>
    %38 = vector.extract_strided_slice %35 {offsets = [1024, 0], sizes = [512, 128], strides = [1, 1]} : vector<2048x128xbf16> to vector<512x128xbf16>
    %39 = vector.extract_strided_slice %35 {offsets = [1536, 0], sizes = [512, 128], strides = [1, 1]} : vector<2048x128xbf16> to vector<512x128xbf16>
    %c0_15 = arith.constant 0 : index
    %c0_16 = arith.constant 0 : index
    %40 = vector.load %arg6[%c0_15, %c0_16] : memref<512x128xbf16, #tpu.memory_space<vmem>>, vector<128x128xbf16>
    %cst_17 = arith.constant dense<0.000000e+00> : vector<512x128xf32>
    %41 = tpu.matmul %36, %40, %cst_17 {dimension_numbers = #tpu.dot_dimension_numbers<[1], [0], [0], [1], [0, 0, 1, 1], [], []>} : vector<512x128xbf16>, vector<128x128xbf16>, vector<512x128xf32> -> vector<512x128xf32>
    %c128 = arith.constant 128 : index
    %c0_18 = arith.constant 0 : index
    %42 = vector.load %arg6[%c128, %c0_18] : memref<512x128xbf16, #tpu.memory_space<vmem>>, vector<128x128xbf16>
    %cst_19 = arith.constant dense<0.000000e+00> : vector<512x128xf32>
    %43 = tpu.matmul %37, %42, %cst_19 {dimension_numbers = #tpu.dot_dimension_numbers<[1], [0], [0], [1], [0, 0, 1, 1], [], []>} : vector<512x128xbf16>, vector<128x128xbf16>, vector<512x128xf32> -> vector<512x128xf32>
    %44 = arith.addf %41, %43 : vector<512x128xf32>
    %c256 = arith.constant 256 : index
    %c0_20 = arith.constant 0 : index
    %45 = vector.load %arg6[%c256, %c0_20] : memref<512x128xbf16, #tpu.memory_space<vmem>>, vector<128x128xbf16>
    %cst_21 = arith.constant dense<0.000000e+00> : vector<512x128xf32>
    %46 = tpu.matmul %38, %45, %cst_21 {dimension_numbers = #tpu.dot_dimension_numbers<[1], [0], [0], [1], [0, 0, 1, 1], [], []>} : vector<512x128xbf16>, vector<128x128xbf16>, vector<512x128xf32> -> vector<512x128xf32>
    %47 = arith.addf %44, %46 : vector<512x128xf32>
    %c384 = arith.constant 384 : index
    %c0_22 = arith.constant 0 : index
    %48 = vector.load %arg6[%c384, %c0_22] : memref<512x128xbf16, #tpu.memory_space<vmem>>, vector<128x128xbf16>
    %cst_23 = arith.constant dense<0.000000e+00> : vector<512x128xf32>
    %49 = tpu.matmul %39, %48, %cst_23 {dimension_numbers = #tpu.dot_dimension_numbers<[1], [0], [0], [1], [0, 0, 1, 1], [], []>} : vector<512x128xbf16>, vector<128x128xbf16>, vector<512x128xf32> -> vector<512x128xf32>
    %50 = arith.addf %47, %49 : vector<512x128xf32>
    %c0_24 = arith.constant 0 : index
    %c0_25 = arith.constant 0 : index
    %51 = vector.load %arg7[%c0_24, %c0_25] : memref<1x128xf32, #tpu.memory_space<vmem>>, vector<1x128xf32>
    %52 = vector.broadcast %51 : vector<1x128xf32> to vector<512x128xf32>
    %53 = arith.addf %50, %52 : vector<512x128xf32>
    %cst_26 = arith.constant 0.000000e+00 : f32
    %54 = vector.broadcast %cst_26 : f32 to vector<512x128xf32>
    %55 = arith.maximumf %53, %54 : vector<512x128xf32>
    %cst_27 = arith.constant dense<0.000000e+00> : vector<128xf32>
    %56 = vector.multi_reduction <add>, %55, %cst_27 [0] : vector<512x128xf32> to vector<128xf32>
    %57 = vector.shape_cast %56 : vector<128xf32> to vector<1x128xf32>
    %cst_28 = arith.constant 0.001953125 : f32
    %58 = vector.broadcast %cst_28 : f32 to vector<1x128xf32>
    %59 = arith.mulf %57, %58 : vector<1x128xf32>
    %60 = arith.mulf %55, %55 : vector<512x128xf32>
    %cst_29 = arith.constant dense<0.000000e+00> : vector<128xf32>
    %61 = vector.multi_reduction <add>, %60, %cst_29 [0] : vector<512x128xf32> to vector<128xf32>
    %62 = vector.shape_cast %61 : vector<128xf32> to vector<1x128xf32>
    %cst_30 = arith.constant 0.001953125 : f32
    %63 = vector.broadcast %cst_30 : f32 to vector<1x128xf32>
    %64 = arith.mulf %62, %63 : vector<1x128xf32>
    %65 = arith.mulf %59, %59 : vector<1x128xf32>
    %66 = arith.subf %64, %65 : vector<1x128xf32>
    %cst_31 = arith.constant 9.99999974E-6 : f32
    %67 = vector.broadcast %cst_31 : f32 to vector<1x128xf32>
    %68 = arith.addf %66, %67 : vector<1x128xf32>
    %69 = math.rsqrt %68 : vector<1x128xf32>
    %c0_32 = arith.constant 0 : index
    %c0_33 = arith.constant 0 : index
    %70 = vector.load %arg8[%c0_32, %c0_33] : memref<1x128xf32, #tpu.memory_space<vmem>>, vector<1x128xf32>
    %71 = arith.mulf %69, %70 : vector<1x128xf32>
    %72 = vector.broadcast %59 : vector<1x128xf32> to vector<512x128xf32>
    %73 = arith.subf %55, %72 : vector<512x128xf32>
    %74 = vector.broadcast %71 : vector<1x128xf32> to vector<512x128xf32>
    %75 = arith.mulf %73, %74 : vector<512x128xf32>
    %c0_34 = arith.constant 0 : index
    %c0_35 = arith.constant 0 : index
    %76 = vector.load %arg9[%c0_34, %c0_35] : memref<1x128xf32, #tpu.memory_space<vmem>>, vector<1x128xf32>
    %77 = vector.broadcast %76 : vector<1x128xf32> to vector<512x128xf32>
    %78 = arith.addf %75, %77 : vector<512x128xf32>
    %79 = arith.truncf %78 : vector<512x128xf32> to vector<512x128xbf16>
    %80 = vector.extract_strided_slice %79 {offsets = [0, 0], sizes = [128, 128], strides = [1, 1]} : vector<512x128xbf16> to vector<128x128xbf16>
    %81 = vector.extract_strided_slice %79 {offsets = [128, 0], sizes = [128, 128], strides = [1, 1]} : vector<512x128xbf16> to vector<128x128xbf16>
    %82 = vector.extract_strided_slice %79 {offsets = [256, 0], sizes = [128, 128], strides = [1, 1]} : vector<512x128xbf16> to vector<128x128xbf16>
    %83 = vector.extract_strided_slice %79 {offsets = [384, 0], sizes = [128, 128], strides = [1, 1]} : vector<512x128xbf16> to vector<128x128xbf16>
    %c0_36 = arith.constant 0 : index
    %c0_37 = arith.constant 0 : index
    %84 = vector.load %arg10[%c0_36, %c0_37] : memref<512x128xbf16, #tpu.memory_space<vmem>>, vector<128x128xbf16>
    %cst_38 = arith.constant dense<0.000000e+00> : vector<128x128xf32>
    %85 = tpu.matmul %80, %84, %cst_38 {dimension_numbers = #tpu.dot_dimension_numbers<[1], [0], [0], [1], [0, 0, 1, 1], [], []>} : vector<128x128xbf16>, vector<128x128xbf16>, vector<128x128xf32> -> vector<128x128xf32>
    %c128_39 = arith.constant 128 : index
    %c0_40 = arith.constant 0 : index
    %86 = vector.load %arg10[%c128_39, %c0_40] : memref<512x128xbf16, #tpu.memory_space<vmem>>, vector<128x128xbf16>
    %cst_41 = arith.constant dense<0.000000e+00> : vector<128x128xf32>
    %87 = tpu.matmul %81, %86, %cst_41 {dimension_numbers = #tpu.dot_dimension_numbers<[1], [0], [0], [1], [0, 0, 1, 1], [], []>} : vector<128x128xbf16>, vector<128x128xbf16>, vector<128x128xf32> -> vector<128x128xf32>
    %88 = arith.addf %85, %87 : vector<128x128xf32>
    %c256_42 = arith.constant 256 : index
    %c0_43 = arith.constant 0 : index
    %89 = vector.load %arg10[%c256_42, %c0_43] : memref<512x128xbf16, #tpu.memory_space<vmem>>, vector<128x128xbf16>
    %cst_44 = arith.constant dense<0.000000e+00> : vector<128x128xf32>
    %90 = tpu.matmul %82, %89, %cst_44 {dimension_numbers = #tpu.dot_dimension_numbers<[1], [0], [0], [1], [0, 0, 1, 1], [], []>} : vector<128x128xbf16>, vector<128x128xbf16>, vector<128x128xf32> -> vector<128x128xf32>
    %91 = arith.addf %88, %90 : vector<128x128xf32>
    %c384_45 = arith.constant 384 : index
    %c0_46 = arith.constant 0 : index
    %92 = vector.load %arg10[%c384_45, %c0_46] : memref<512x128xbf16, #tpu.memory_space<vmem>>, vector<128x128xbf16>
    %cst_47 = arith.constant dense<0.000000e+00> : vector<128x128xf32>
    %93 = tpu.matmul %83, %92, %cst_47 {dimension_numbers = #tpu.dot_dimension_numbers<[1], [0], [0], [1], [0, 0, 1, 1], [], []>} : vector<128x128xbf16>, vector<128x128xbf16>, vector<128x128xf32> -> vector<128x128xf32>
    %94 = arith.addf %91, %93 : vector<128x128xf32>
    %c0_48 = arith.constant 0 : index
    %c0_49 = arith.constant 0 : index
    %95 = vector.load %arg11[%c0_48, %c0_49] : memref<1x128xf32, #tpu.memory_space<vmem>>, vector<1x128xf32>
    %96 = vector.broadcast %95 : vector<1x128xf32> to vector<128x128xf32>
    %97 = arith.addf %94, %96 : vector<128x128xf32>
    %cst_50 = arith.constant 0.000000e+00 : f32
    %98 = vector.broadcast %cst_50 : f32 to vector<128x128xf32>
    %99 = arith.maximumf %97, %98 : vector<128x128xf32>
    %cst_51 = arith.constant dense<0.000000e+00> : vector<128xf32>
    %100 = vector.multi_reduction <add>, %99, %cst_51 [0] : vector<128x128xf32> to vector<128xf32>
    %101 = vector.shape_cast %100 : vector<128xf32> to vector<1x128xf32>
    %cst_52 = arith.constant 7.812500e-03 : f32
    %102 = vector.broadcast %cst_52 : f32 to vector<1x128xf32>
    %103 = arith.mulf %101, %102 : vector<1x128xf32>
    %104 = arith.mulf %99, %99 : vector<128x128xf32>
    %cst_53 = arith.constant dense<0.000000e+00> : vector<128xf32>
    %105 = vector.multi_reduction <add>, %104, %cst_53 [0] : vector<128x128xf32> to vector<128xf32>
    %106 = vector.shape_cast %105 : vector<128xf32> to vector<1x128xf32>
    %cst_54 = arith.constant 7.812500e-03 : f32
    %107 = vector.broadcast %cst_54 : f32 to vector<1x128xf32>
    %108 = arith.mulf %106, %107 : vector<1x128xf32>
    %109 = arith.mulf %103, %103 : vector<1x128xf32>
    %110 = arith.subf %108, %109 : vector<1x128xf32>
    %cst_55 = arith.constant 9.99999974E-6 : f32
    %111 = vector.broadcast %cst_55 : f32 to vector<1x128xf32>
    %112 = arith.addf %110, %111 : vector<1x128xf32>
    %113 = math.rsqrt %112 : vector<1x128xf32>
    %c0_56 = arith.constant 0 : index
    %c0_57 = arith.constant 0 : index
    %114 = vector.load %arg12[%c0_56, %c0_57] : memref<1x128xf32, #tpu.memory_space<vmem>>, vector<1x128xf32>
    %115 = arith.mulf %113, %114 : vector<1x128xf32>
    %116 = vector.broadcast %103 : vector<1x128xf32> to vector<128x128xf32>
    %117 = arith.subf %99, %116 : vector<128x128xf32>
    %118 = vector.broadcast %115 : vector<1x128xf32> to vector<128x128xf32>
    %119 = arith.mulf %117, %118 : vector<128x128xf32>
    %c0_58 = arith.constant 0 : index
    %c0_59 = arith.constant 0 : index
    %120 = vector.load %arg13[%c0_58, %c0_59] : memref<1x128xf32, #tpu.memory_space<vmem>>, vector<1x128xf32>
    %121 = vector.broadcast %120 : vector<1x128xf32> to vector<128x128xf32>
    %122 = arith.addf %119, %121 : vector<128x128xf32>
    %123 = arith.truncf %122 : vector<128x128xf32> to vector<128x128xbf16>
    %124 = tpu.iota {dimensions = array<i32: 0>} : vector<128x128xi32>
    %125 = tpu.iota {dimensions = array<i32: 1>} : vector<128x128xi32>
    %126 = arith.subi %125, %124 : vector<128x128xi32>
    %c0_i32_60 = arith.constant 0 : i32
    %127 = vector.broadcast %c0_i32_60 : i32 to vector<128x128xi32>
    %128 = arith.cmpi eq, %126, %127 : vector<128x128xi32>
    %c16_i32 = arith.constant 16 : i32
    %129 = vector.broadcast %c16_i32 : i32 to vector<128x128xi32>
    %130 = arith.cmpi slt, %124, %129 : vector<128x128xi32>
    %131 = arith.andi %128, %130 : vector<128x128xi1>
    %132 = arith.extui %131 : vector<128x128xi1> to vector<128x128xi32>
    %133 = arith.sitofp %132 : vector<128x128xi32> to vector<128x128xf32>
    %134 = arith.truncf %133 : vector<128x128xf32> to vector<128x128xbf16>
    %135 = vector.extract_strided_slice %123 {offsets = [0, 0], sizes = [16, 128], strides = [1, 1]} : vector<128x128xbf16> to vector<16x128xbf16>
    %cst_61 = arith.constant dense<0.000000e+00> : vector<16x128xf32>
    %136 = tpu.matmul %135, %134, %cst_61 {dimension_numbers = #tpu.dot_dimension_numbers<[1], [0], [0], [1], [0, 0, 1, 1], [], []>} : vector<16x128xbf16>, vector<128x128xbf16>, vector<16x128xf32> -> vector<16x128xf32>
    %137 = arith.subi %125, %124 : vector<128x128xi32>
    %c16_i32_62 = arith.constant 16 : i32
    %138 = vector.broadcast %c16_i32_62 : i32 to vector<128x128xi32>
    %139 = arith.cmpi eq, %137, %138 : vector<128x128xi32>
    %c16_i32_63 = arith.constant 16 : i32
    %140 = vector.broadcast %c16_i32_63 : i32 to vector<128x128xi32>
    %141 = arith.cmpi slt, %124, %140 : vector<128x128xi32>
    %142 = arith.andi %139, %141 : vector<128x128xi1>
    %143 = arith.extui %142 : vector<128x128xi1> to vector<128x128xi32>
    %144 = arith.sitofp %143 : vector<128x128xi32> to vector<128x128xf32>
    %145 = arith.truncf %144 : vector<128x128xf32> to vector<128x128xbf16>
    %146 = vector.extract_strided_slice %123 {offsets = [16, 0], sizes = [16, 128], strides = [1, 1]} : vector<128x128xbf16> to vector<16x128xbf16>
    %cst_64 = arith.constant dense<0.000000e+00> : vector<16x128xf32>
    %147 = tpu.matmul %146, %145, %cst_64 {dimension_numbers = #tpu.dot_dimension_numbers<[1], [0], [0], [1], [0, 0, 1, 1], [], []>} : vector<16x128xbf16>, vector<128x128xbf16>, vector<16x128xf32> -> vector<16x128xf32>
    %148 = arith.addf %136, %147 : vector<16x128xf32>
    %149 = arith.subi %125, %124 : vector<128x128xi32>
    %c32_i32 = arith.constant 32 : i32
    %150 = vector.broadcast %c32_i32 : i32 to vector<128x128xi32>
    %151 = arith.cmpi eq, %149, %150 : vector<128x128xi32>
    %c16_i32_65 = arith.constant 16 : i32
    %152 = vector.broadcast %c16_i32_65 : i32 to vector<128x128xi32>
    %153 = arith.cmpi slt, %124, %152 : vector<128x128xi32>
    %154 = arith.andi %151, %153 : vector<128x128xi1>
    %155 = arith.extui %154 : vector<128x128xi1> to vector<128x128xi32>
    %156 = arith.sitofp %155 : vector<128x128xi32> to vector<128x128xf32>
    %157 = arith.truncf %156 : vector<128x128xf32> to vector<128x128xbf16>
    %158 = vector.extract_strided_slice %123 {offsets = [32, 0], sizes = [16, 128], strides = [1, 1]} : vector<128x128xbf16> to vector<16x128xbf16>
    %cst_66 = arith.constant dense<0.000000e+00> : vector<16x128xf32>
    %159 = tpu.matmul %158, %157, %cst_66 {dimension_numbers = #tpu.dot_dimension_numbers<[1], [0], [0], [1], [0, 0, 1, 1], [], []>} : vector<16x128xbf16>, vector<128x128xbf16>, vector<16x128xf32> -> vector<16x128xf32>
    %160 = arith.addf %148, %159 : vector<16x128xf32>
    %161 = arith.subi %125, %124 : vector<128x128xi32>
    %c48_i32 = arith.constant 48 : i32
    %162 = vector.broadcast %c48_i32 : i32 to vector<128x128xi32>
    %163 = arith.cmpi eq, %161, %162 : vector<128x128xi32>
    %c16_i32_67 = arith.constant 16 : i32
    %164 = vector.broadcast %c16_i32_67 : i32 to vector<128x128xi32>
    %165 = arith.cmpi slt, %124, %164 : vector<128x128xi32>
    %166 = arith.andi %163, %165 : vector<128x128xi1>
    %167 = arith.extui %166 : vector<128x128xi1> to vector<128x128xi32>
    %168 = arith.sitofp %167 : vector<128x128xi32> to vector<128x128xf32>
    %169 = arith.truncf %168 : vector<128x128xf32> to vector<128x128xbf16>
    %170 = vector.extract_strided_slice %123 {offsets = [48, 0], sizes = [16, 128], strides = [1, 1]} : vector<128x128xbf16> to vector<16x128xbf16>
    %cst_68 = arith.constant dense<0.000000e+00> : vector<16x128xf32>
    %171 = tpu.matmul %170, %169, %cst_68 {dimension_numbers = #tpu.dot_dimension_numbers<[1], [0], [0], [1], [0, 0, 1, 1], [], []>} : vector<16x128xbf16>, vector<128x128xbf16>, vector<16x128xf32> -> vector<16x128xf32>
    %172 = arith.addf %160, %171 : vector<16x128xf32>
    %173 = arith.subi %125, %124 : vector<128x128xi32>
    %c64_i32 = arith.constant 64 : i32
    %174 = vector.broadcast %c64_i32 : i32 to vector<128x128xi32>
    %175 = arith.cmpi eq, %173, %174 : vector<128x128xi32>
    %c16_i32_69 = arith.constant 16 : i32
    %176 = vector.broadcast %c16_i32_69 : i32 to vector<128x128xi32>
    %177 = arith.cmpi slt, %124, %176 : vector<128x128xi32>
    %178 = arith.andi %175, %177 : vector<128x128xi1>
    %179 = arith.extui %178 : vector<128x128xi1> to vector<128x128xi32>
    %180 = arith.sitofp %179 : vector<128x128xi32> to vector<128x128xf32>
    %181 = arith.truncf %180 : vector<128x128xf32> to vector<128x128xbf16>
    %182 = vector.extract_strided_slice %123 {offsets = [64, 0], sizes = [16, 128], strides = [1, 1]} : vector<128x128xbf16> to vector<16x128xbf16>
    %cst_70 = arith.constant dense<0.000000e+00> : vector<16x128xf32>
    %183 = tpu.matmul %182, %181, %cst_70 {dimension_numbers = #tpu.dot_dimension_numbers<[1], [0], [0], [1], [0, 0, 1, 1], [], []>} : vector<16x128xbf16>, vector<128x128xbf16>, vector<16x128xf32> -> vector<16x128xf32>
    %184 = arith.addf %172, %183 : vector<16x128xf32>
    %185 = arith.subi %125, %124 : vector<128x128xi32>
    %c80_i32 = arith.constant 80 : i32
    %186 = vector.broadcast %c80_i32 : i32 to vector<128x128xi32>
    %187 = arith.cmpi eq, %185, %186 : vector<128x128xi32>
    %c16_i32_71 = arith.constant 16 : i32
    %188 = vector.broadcast %c16_i32_71 : i32 to vector<128x128xi32>
    %189 = arith.cmpi slt, %124, %188 : vector<128x128xi32>
    %190 = arith.andi %187, %189 : vector<128x128xi1>
    %191 = arith.extui %190 : vector<128x128xi1> to vector<128x128xi32>
    %192 = arith.sitofp %191 : vector<128x128xi32> to vector<128x128xf32>
    %193 = arith.truncf %192 : vector<128x128xf32> to vector<128x128xbf16>
    %194 = vector.extract_strided_slice %123 {offsets = [80, 0], sizes = [16, 128], strides = [1, 1]} : vector<128x128xbf16> to vector<16x128xbf16>
    %cst_72 = arith.constant dense<0.000000e+00> : vector<16x128xf32>
    %195 = tpu.matmul %194, %193, %cst_72 {dimension_numbers = #tpu.dot_dimension_numbers<[1], [0], [0], [1], [0, 0, 1, 1], [], []>} : vector<16x128xbf16>, vector<128x128xbf16>, vector<16x128xf32> -> vector<16x128xf32>
    %196 = arith.addf %184, %195 : vector<16x128xf32>
    %197 = arith.subi %125, %124 : vector<128x128xi32>
    %c96_i32 = arith.constant 96 : i32
    %198 = vector.broadcast %c96_i32 : i32 to vector<128x128xi32>
    %199 = arith.cmpi eq, %197, %198 : vector<128x128xi32>
    %c16_i32_73 = arith.constant 16 : i32
    %200 = vector.broadcast %c16_i32_73 : i32 to vector<128x128xi32>
    %201 = arith.cmpi slt, %124, %200 : vector<128x128xi32>
    %202 = arith.andi %199, %201 : vector<128x128xi1>
    %203 = arith.extui %202 : vector<128x128xi1> to vector<128x128xi32>
    %204 = arith.sitofp %203 : vector<128x128xi32> to vector<128x128xf32>
    %205 = arith.truncf %204 : vector<128x128xf32> to vector<128x128xbf16>
    %206 = vector.extract_strided_slice %123 {offsets = [96, 0], sizes = [16, 128], strides = [1, 1]} : vector<128x128xbf16> to vector<16x128xbf16>
    %cst_74 = arith.constant dense<0.000000e+00> : vector<16x128xf32>
    %207 = tpu.matmul %206, %205, %cst_74 {dimension_numbers = #tpu.dot_dimension_numbers<[1], [0], [0], [1], [0, 0, 1, 1], [], []>} : vector<16x128xbf16>, vector<128x128xbf16>, vector<16x128xf32> -> vector<16x128xf32>
    %208 = arith.addf %196, %207 : vector<16x128xf32>
    %209 = arith.subi %125, %124 : vector<128x128xi32>
    %c112_i32 = arith.constant 112 : i32
    %210 = vector.broadcast %c112_i32 : i32 to vector<128x128xi32>
    %211 = arith.cmpi eq, %209, %210 : vector<128x128xi32>
    %c16_i32_75 = arith.constant 16 : i32
    %212 = vector.broadcast %c16_i32_75 : i32 to vector<128x128xi32>
    %213 = arith.cmpi slt, %124, %212 : vector<128x128xi32>
    %214 = arith.andi %211, %213 : vector<128x128xi1>
    %215 = arith.extui %214 : vector<128x128xi1> to vector<128x128xi32>
    %216 = arith.sitofp %215 : vector<128x128xi32> to vector<128x128xf32>
    %217 = arith.truncf %216 : vector<128x128xf32> to vector<128x128xbf16>
    %218 = vector.extract_strided_slice %123 {offsets = [112, 0], sizes = [16, 128], strides = [1, 1]} : vector<128x128xbf16> to vector<16x128xbf16>
    %cst_76 = arith.constant dense<0.000000e+00> : vector<16x128xf32>
    %219 = tpu.matmul %218, %217, %cst_76 {dimension_numbers = #tpu.dot_dimension_numbers<[1], [0], [0], [1], [0, 0, 1, 1], [], []>} : vector<16x128xbf16>, vector<128x128xbf16>, vector<16x128xf32> -> vector<16x128xf32>
    %220 = arith.addf %208, %219 : vector<16x128xf32>
    %221 = arith.truncf %220 : vector<16x128xf32> to vector<16x128xbf16>
    %c0_i32_77 = arith.constant 0 : i32
    %222 = tpu.memref_slice %arg21[%c0_i32_77] : memref<2x!tpu.dma_semaphore, #tpu.memory_space<semaphore_mem>> -> memref<1x!tpu.dma_semaphore, #tpu.memory_space<semaphore_mem>>
    %223 = tpu.memref_squeeze %222 : memref<1x!tpu.dma_semaphore, #tpu.memory_space<semaphore_mem>> -> memref<!tpu.dma_semaphore, #tpu.memory_space<semaphore_mem>>
    tpu.wait_dma2 semaphore(%223 : memref<!tpu.dma_semaphore, #tpu.memory_space<semaphore_mem>>) src(%arg14 : memref<1024x512xbf16, #tpu.memory_space<any>>) dst(%arg19 : memref<1024x512xbf16, #tpu.memory_space<vmem>>)
    %224 = vector.extract_strided_slice %221 {offsets = [0, 0], sizes = [2, 128], strides = [1, 1]} : vector<16x128xbf16> to vector<2x128xbf16>
    %c0_78 = arith.constant 0 : index
    %c0_79 = arith.constant 0 : index
    %225 = vector.load %arg19[%c0_78, %c0_79] : memref<1024x512xbf16, #tpu.memory_space<vmem>>, vector<128x512xbf16>
    %cst_80 = arith.constant dense<0.000000e+00> : vector<2x512xf32>
    %226 = tpu.matmul %224, %225, %cst_80 {dimension_numbers = #tpu.dot_dimension_numbers<[1], [0], [0], [1], [0, 0, 1, 1], [], []>} : vector<2x128xbf16>, vector<128x512xbf16>, vector<2x512xf32> -> vector<2x512xf32>
    %227 = vector.extract_strided_slice %221 {offsets = [2, 0], sizes = [2, 128], strides = [1, 1]} : vector<16x128xbf16> to vector<2x128xbf16>
    %c128_81 = arith.constant 128 : index
    %c0_82 = arith.constant 0 : index
    %228 = vector.load %arg19[%c128_81, %c0_82] : memref<1024x512xbf16, #tpu.memory_space<vmem>>, vector<128x512xbf16>
    %cst_83 = arith.constant dense<0.000000e+00> : vector<2x512xf32>
    %229 = tpu.matmul %227, %228, %cst_83 {dimension_numbers = #tpu.dot_dimension_numbers<[1], [0], [0], [1], [0, 0, 1, 1], [], []>} : vector<2x128xbf16>, vector<128x512xbf16>, vector<2x512xf32> -> vector<2x512xf32>
    %230 = arith.addf %226, %229 : vector<2x512xf32>
    %231 = vector.extract_strided_slice %221 {offsets = [4, 0], sizes = [2, 128], strides = [1, 1]} : vector<16x128xbf16> to vector<2x128xbf16>
    %c256_84 = arith.constant 256 : index
    %c0_85 = arith.constant 0 : index
    %232 = vector.load %arg19[%c256_84, %c0_85] : memref<1024x512xbf16, #tpu.memory_space<vmem>>, vector<128x512xbf16>
    %cst_86 = arith.constant dense<0.000000e+00> : vector<2x512xf32>
    %233 = tpu.matmul %231, %232, %cst_86 {dimension_numbers = #tpu.dot_dimension_numbers<[1], [0], [0], [1], [0, 0, 1, 1], [], []>} : vector<2x128xbf16>, vector<128x512xbf16>, vector<2x512xf32> -> vector<2x512xf32>
    %234 = arith.addf %230, %233 : vector<2x512xf32>
    %235 = vector.extract_strided_slice %221 {offsets = [6, 0], sizes = [2, 128], strides = [1, 1]} : vector<16x128xbf16> to vector<2x128xbf16>
    %c384_87 = arith.constant 384 : index
    %c0_88 = arith.constant 0 : index
    %236 = vector.load %arg19[%c384_87, %c0_88] : memref<1024x512xbf16, #tpu.memory_space<vmem>>, vector<128x512xbf16>
    %cst_89 = arith.constant dense<0.000000e+00> : vector<2x512xf32>
    %237 = tpu.matmul %235, %236, %cst_89 {dimension_numbers = #tpu.dot_dimension_numbers<[1], [0], [0], [1], [0, 0, 1, 1], [], []>} : vector<2x128xbf16>, vector<128x512xbf16>, vector<2x512xf32> -> vector<2x512xf32>
    %238 = arith.addf %234, %237 : vector<2x512xf32>
    %239 = vector.extract_strided_slice %221 {offsets = [8, 0], sizes = [2, 128], strides = [1, 1]} : vector<16x128xbf16> to vector<2x128xbf16>
    %c512 = arith.constant 512 : index
    %c0_90 = arith.constant 0 : index
    %240 = vector.load %arg19[%c512, %c0_90] : memref<1024x512xbf16, #tpu.memory_space<vmem>>, vector<128x512xbf16>
    %cst_91 = arith.constant dense<0.000000e+00> : vector<2x512xf32>
    %241 = tpu.matmul %239, %240, %cst_91 {dimension_numbers = #tpu.dot_dimension_numbers<[1], [0], [0], [1], [0, 0, 1, 1], [], []>} : vector<2x128xbf16>, vector<128x512xbf16>, vector<2x512xf32> -> vector<2x512xf32>
    %242 = arith.addf %238, %241 : vector<2x512xf32>
    %243 = vector.extract_strided_slice %221 {offsets = [10, 0], sizes = [2, 128], strides = [1, 1]} : vector<16x128xbf16> to vector<2x128xbf16>
    %c640 = arith.constant 640 : index
    %c0_92 = arith.constant 0 : index
    %244 = vector.load %arg19[%c640, %c0_92] : memref<1024x512xbf16, #tpu.memory_space<vmem>>, vector<128x512xbf16>
    %cst_93 = arith.constant dense<0.000000e+00> : vector<2x512xf32>
    %245 = tpu.matmul %243, %244, %cst_93 {dimension_numbers = #tpu.dot_dimension_numbers<[1], [0], [0], [1], [0, 0, 1, 1], [], []>} : vector<2x128xbf16>, vector<128x512xbf16>, vector<2x512xf32> -> vector<2x512xf32>
    %246 = arith.addf %242, %245 : vector<2x512xf32>
    %247 = vector.extract_strided_slice %221 {offsets = [12, 0], sizes = [2, 128], strides = [1, 1]} : vector<16x128xbf16> to vector<2x128xbf16>
    %c768 = arith.constant 768 : index
    %c0_94 = arith.constant 0 : index
    %248 = vector.load %arg19[%c768, %c0_94] : memref<1024x512xbf16, #tpu.memory_space<vmem>>, vector<128x512xbf16>
    %cst_95 = arith.constant dense<0.000000e+00> : vector<2x512xf32>
    %249 = tpu.matmul %247, %248, %cst_95 {dimension_numbers = #tpu.dot_dimension_numbers<[1], [0], [0], [1], [0, 0, 1, 1], [], []>} : vector<2x128xbf16>, vector<128x512xbf16>, vector<2x512xf32> -> vector<2x512xf32>
    %250 = arith.addf %246, %249 : vector<2x512xf32>
    %251 = vector.extract_strided_slice %221 {offsets = [14, 0], sizes = [2, 128], strides = [1, 1]} : vector<16x128xbf16> to vector<2x128xbf16>
    %c896 = arith.constant 896 : index
    %c0_96 = arith.constant 0 : index
    %252 = vector.load %arg19[%c896, %c0_96] : memref<1024x512xbf16, #tpu.memory_space<vmem>>, vector<128x512xbf16>
    %cst_97 = arith.constant dense<0.000000e+00> : vector<2x512xf32>
    %253 = tpu.matmul %251, %252, %cst_97 {dimension_numbers = #tpu.dot_dimension_numbers<[1], [0], [0], [1], [0, 0, 1, 1], [], []>} : vector<2x128xbf16>, vector<128x512xbf16>, vector<2x512xf32> -> vector<2x512xf32>
    %254 = arith.addf %250, %253 : vector<2x512xf32>
    %c0_98 = arith.constant 0 : index
    %c0_99 = arith.constant 0 : index
    %255 = vector.load %arg15[%c0_98, %c0_99] : memref<1x512xf32, #tpu.memory_space<vmem>>, vector<1x512xf32>
    %256 = vector.broadcast %255 : vector<1x512xf32> to vector<2x512xf32>
    %257 = arith.addf %254, %256 : vector<2x512xf32>
    %cst_100 = arith.constant 0.000000e+00 : f32
    %258 = vector.broadcast %cst_100 : f32 to vector<2x512xf32>
    %259 = arith.cmpf ogt, %257, %258 : vector<2x512xf32>
    %260 = math.exp %257 : vector<2x512xf32>
    %cst_101 = arith.constant 1.000000e+00 : f32
    %261 = vector.broadcast %cst_101 : f32 to vector<2x512xf32>
    %262 = arith.subf %260, %261 : vector<2x512xf32>
    %cst_102 = arith.constant 1.67326319 : f32
    %263 = vector.broadcast %cst_102 : f32 to vector<2x512xf32>
    %264 = arith.mulf %263, %262 : vector<2x512xf32>
    %265 = arith.select %259, %257, %264 : vector<2x512xi1>, vector<2x512xf32>
    %cst_103 = arith.constant 1.05070102 : f32
    %266 = vector.broadcast %cst_103 : f32 to vector<2x512xf32>
    %267 = arith.mulf %266, %265 : vector<2x512xf32>
    %c1_i32_104 = arith.constant 1 : i32
    %268 = tpu.memref_slice %arg21[%c1_i32_104] : memref<2x!tpu.dma_semaphore, #tpu.memory_space<semaphore_mem>> -> memref<1x!tpu.dma_semaphore, #tpu.memory_space<semaphore_mem>>
    %269 = tpu.memref_squeeze %268 : memref<1x!tpu.dma_semaphore, #tpu.memory_space<semaphore_mem>> -> memref<!tpu.dma_semaphore, #tpu.memory_space<semaphore_mem>>
    tpu.wait_dma2 semaphore(%269 : memref<!tpu.dma_semaphore, #tpu.memory_space<semaphore_mem>>) src(%arg16 : memref<512x128xbf16, #tpu.memory_space<any>>) dst(%arg20 : memref<512x128xbf16, #tpu.memory_space<vmem>>)
    %270 = arith.truncf %267 : vector<2x512xf32> to vector<2x512xbf16>
    %c0_105 = arith.constant 0 : index
    %c0_106 = arith.constant 0 : index
    %271 = vector.load %arg20[%c0_105, %c0_106] : memref<512x128xbf16, #tpu.memory_space<vmem>>, vector<512x128xbf16>
    %cst_107 = arith.constant dense<0.000000e+00> : vector<2x128xf32>
    %272 = tpu.matmul %270, %271, %cst_107 {dimension_numbers = #tpu.dot_dimension_numbers<[1], [0], [0], [1], [0, 0, 1, 1], [], []>} : vector<2x512xbf16>, vector<512x128xbf16>, vector<2x128xf32> -> vector<2x128xf32>
    %c0_108 = arith.constant 0 : index
    %c0_109 = arith.constant 0 : index
    %273 = vector.load %arg17[%c0_108, %c0_109] : memref<1x128xf32, #tpu.memory_space<vmem>>, vector<1x128xf32>
    %274 = vector.broadcast %273 : vector<1x128xf32> to vector<2x128xf32>
    %275 = arith.addf %272, %274 : vector<2x128xf32>
    %c0_110 = arith.constant 0 : index
    %c0_111 = arith.constant 0 : index
    %276 = vector.load %arg18[%c0_110, %c0_111] : memref<2x128xf32, #tpu.memory_space<vmem>>, vector<2x128xf32>
    tpu.vector_store %arg18[%c0_110, %c0_111], %275 {strides = array<i32>} : memref<2x128xf32, #tpu.memory_space<vmem>>, vector<2x128xf32>,
    return
  }
  func.func @transform_0(%arg0: i32) -> (i32, i32) {
    %c0_i32 = arith.constant 0 : i32
    %c0_i32_0 = arith.constant 0 : i32
    %c0_i32_1 = arith.constant 0 : i32
    return %c0_i32, %c0_i32_0 : i32, i32
  }
  func.func @transform_1(%arg0: i32) -> (i32, i32) {
    %c0_i32 = arith.constant 0 : i32
    %c0_i32_0 = arith.constant 0 : i32
    %c0_i32_1 = arith.constant 0 : i32
    return %c0_i32, %c0_i32_0 : i32, i32
  }
  func.func @transform_2(%arg0: i32) -> (i32, i32) {
    %c0_i32 = arith.constant 0 : i32
    %c0_i32_0 = arith.constant 0 : i32
    %c0_i32_1 = arith.constant 0 : i32
    return %c0_i32, %c0_i32_0 : i32, i32
  }
  func.func @transform_3(%arg0: i32) -> (i32, i32) {
    %c0_i32 = arith.constant 0 : i32
    %c0_i32_0 = arith.constant 0 : i32
    %c0_i32_1 = arith.constant 0 : i32
    return %c0_i32, %c0_i32_0 : i32, i32
  }
  func.func @transform_4(%arg0: i32) -> (i32, i32) {
    %c0_i32 = arith.constant 0 : i32
    %c0_i32_0 = arith.constant 0 : i32
    %c0_i32_1 = arith.constant 0 : i32
    return %c0_i32, %c0_i32_0 : i32, i32
  }
  func.func @transform_5(%arg0: i32) -> (i32, i32) {
    %c0_i32 = arith.constant 0 : i32
    %c0_i32_0 = arith.constant 0 : i32
    %c0_i32_1 = arith.constant 0 : i32
    return %c0_i32, %c0_i32_0 : i32, i32
  }
  func.func @transform_6(%arg0: i32) -> (i32, i32) {
    %c0_i32 = arith.constant 0 : i32
    %c0_i32_0 = arith.constant 0 : i32
    %c0_i32_1 = arith.constant 0 : i32
    return %c0_i32, %c0_i32_0 : i32, i32
  }
  func.func @transform_7(%arg0: i32) -> (i32, i32) {
    %c0_i32 = arith.constant 0 : i32
    %c0_i32_0 = arith.constant 0 : i32
    %c0_i32_1 = arith.constant 0 : i32
    return %c0_i32, %c0_i32_0 : i32, i32
  }
  func.func @transform_8(%arg0: i32) -> (i32, i32) {
    %c0_i32 = arith.constant 0 : i32
    %c0_i32_0 = arith.constant 0 : i32
    %c0_i32_1 = arith.constant 0 : i32
    return %c0_i32, %c0_i32_0 : i32, i32
  }
  func.func @transform_9(%arg0: i32) -> (i32, i32) {
    %c0_i32 = arith.constant 0 : i32
    %c0_i32_0 = arith.constant 0 : i32
    %c0_i32_1 = arith.constant 0 : i32
    return %c0_i32, %c0_i32_0 : i32, i32
  }
  func.func @transform_10(%arg0: i32) -> (i32, i32) {
    %c0_i32 = arith.constant 0 : i32
    %c0_i32_0 = arith.constant 0 : i32
    %c0_i32_1 = arith.constant 0 : i32
    return %c0_i32, %c0_i32_0 : i32, i32
  }
  func.func @transform_11(%arg0: i32) -> (i32, i32) {
    %c0_i32 = arith.constant 0 : i32
    %c0_i32_0 = arith.constant 0 : i32
    %c0_i32_1 = arith.constant 0 : i32
    return %c0_i32, %c0_i32_0 : i32, i32
  }
  func.func @transform_12(%arg0: i32) -> (i32, i32) {
    %c0_i32 = arith.constant 0 : i32
    %c0_i32_0 = arith.constant 0 : i32
    %c0_i32_1 = arith.constant 0 : i32
    return %c0_i32, %c0_i32_0 : i32, i32
  }
  func.func @transform_14(%arg0: i32) -> (i32, i32) {
    %c0_i32 = arith.constant 0 : i32
    %c0_i32_0 = arith.constant 0 : i32
    %c0_i32_1 = arith.constant 0 : i32
    return %c0_i32, %c0_i32_0 : i32, i32
  }
  func.func @transform_16(%arg0: i32) -> (i32, i32) {
    %c0_i32 = arith.constant 0 : i32
    %c0_i32_0 = arith.constant 0 : i32
    %c0_i32_1 = arith.constant 0 : i32
    return %c0_i32, %c0_i32_0 : i32, i32
  }
  func.func @transform_17(%arg0: i32) -> (i32, i32) {
    %c0_i32 = arith.constant 0 : i32
    %c0_i32_0 = arith.constant 0 : i32
    %c0_i32_1 = arith.constant 0 : i32
    return %c0_i32, %c0_i32_0 : i32, i32
  }
}

</mosaic_0001>

<bundles_post_ra>
// kernel: conv_reducer_forward.1
= control target key start
LH: loop header
LB: loop body
LE: loop exit
PB: predicated region body
PF: predicated region fallthrough
CT: control target
= control target key end

     0   :  { %s21890_s0 = inlined_call_operand.vmem [shape: bf16[2048,128], index: 0, kind: input, shape index: {}]   ;;  %s21891_s1 = inlined_call_operand.vmem [shape: bf16[128,128], index: 1, kind: input, shape index: {}]   ;;  %s21892_s2 = inlined_call_operand.vmem [shape: f32[1,128], index: 2, kind: input, shape index: {}]   ;;  %s21893_s3 = inlined_call_operand.vmem [shape: f32[1,128], index: 3, kind: input, shape index: {}]   ;;  %s21894_s4 = inlined_call_operand.vmem [shape: f32[1,128], index: 4, kind: input, shape index: {}]   ;;  %s21895_s5 = inlined_call_operand.vmem [shape: bf16[512,128], index: 5, kind: input, shape index: {}]   ;;  %s21896_s6 = inlined_call_operand.vmem [shape: f32[1,128], index: 6, kind: input, shape index: {}]   ;;  %s21897_s7 = inlined_call_operand.vmem [shape: f32[1,128], index: 7, kind: input, shape index: {}]   ;;  %s21898_s8 = inlined_call_operand.vmem [shape: f32[1,128], index: 8, kind: input, shape index: {}]   ;;  %s21899_s9 = inlined_call_operand.vmem [shape: bf16[512,128], index: 9, kind: input, shape index: {}]   ;;  %s21900_s10 = inlined_call_operand.vmem [shape: f32[1,128], index: 10, kind: input, shape index: {}]   ;;  %s21901_s11 = inlined_call_operand.vmem [shape: f32[1,128], index: 11, kind: input, shape index: {}]   ;;  %s21902_s12 = inlined_call_operand.vmem [shape: f32[1,128], index: 12, kind: input, shape index: {}]   ;;  %s21903_s13 = inlined_call_operand.vmem [shape: bf16[1024,512], index: 13, kind: input, shape index: {}]   ;;  %s21904_s14 = inlined_call_operand.vmem [shape: f32[1,512], index: 14, kind: input, shape index: {}]   ;;  %s21905_s15 = inlined_call_operand.vmem [shape: bf16[512,128], index: 15, kind: input, shape index: {}]   ;;  %s21906_s16 = inlined_call_operand.vmem [shape: f32[1,128], index: 16, kind: input, shape index: {}]   ;;  %s21907_s17 = inlined_call_operand.hbm [shape: f32[2,128], index: 17, kind: output, shape index: {}]  }
   0x1   :  { %22165 = sst [smem:[#allocation260_spill]] %s21890_s0 }
   0x2   :  { %22166 = sst [smem:[#allocation261_spill]] %s21891_s1 }
   0x3   :  { %22 = vsyncpa [#allocation6], 0  ;;  %v71_v0 = vld [vmem:[%s21903_s13] sm:$0xf]  ;;  %v73_v1 = vld [vmem:[%s21903_s13 + $0x10] sm:$0xf] }
   0x4   :  { %72 = vst [vmem:[#allocation2] sm:$0xf] %v71_v0  ;;  %74 = vst [vmem:[#allocation2 + $0x4] sm:$0xf] %v73_v1  ;;  %v75_v2 = vld [vmem:[%s21903_s13 + $0x4] sm:$0xf] }
   0x5   :  { %v77_v3 = vld [vmem:[%s21903_s13 + $0x14] sm:$0xf]  ;;  %v79_v4 = vld [vmem:[%s21903_s13 + $0x8] sm:$0xf]  ;;  %76 = vst [vmem:[#allocation2 + $0x8] sm:$0xf] %v75_v2 }
   0x6   :  { %78 = vst [vmem:[#allocation2 + $0xc] sm:$0xf] %v77_v3  ;;  %80 = vst [vmem:[#allocation2 + $0x10] sm:$0xf] %v79_v4  ;;  %v81_v5 = vld [vmem:[%s21903_s13 + $0x18] sm:$0xf] }
   0x7   :  { %v83_v6 = vld [vmem:[%s21903_s13 + $0xc] sm:$0xf]  ;;  %v85_v7 = vld [vmem:[%s21903_s13 + $0x1c] sm:$0xff]   ;;  %82 = vst [vmem:[#allocation2 + $0x14] sm:$0xf] %v81_v5 }
   0x8   :  { %84 = vst [vmem:[#allocation2 + $0x18] sm:$0xf] %v83_v6  ;;  %86 = vst [vmem:[#allocation2 + $0x1c] sm:$0xff] %v85_v7   ;;  %v89_v8 = vld [vmem:[%s21903_s13 + $0x30] sm:$0xf]  ;;  %v101_v14 = vld [vmem:[%s21903_s13 + $0x3c] sm:$0xff]  }
   0x9   :  { %v91_v9 = vld [vmem:[%s21903_s13 + $0x24] sm:$0xf]  ;;  %v93_v10 = vld [vmem:[%s21903_s13 + $0x34] sm:$0xf]  ;;  %90 = vst [vmem:[#allocation2 + $0x24] sm:$0xf] %v89_v8 }
   0xa   :  { %92 = vst [vmem:[#allocation2 + $0x28] sm:$0xf] %v91_v9  ;;  %94 = vst [vmem:[#allocation2 + $0x2c] sm:$0xf] %v93_v10  ;;  %v95_v11 = vld [vmem:[%s21903_s13 + $0x28] sm:$0xf] }
   0xb   :  { %v97_v12 = vld [vmem:[%s21903_s13 + $0x38] sm:$0xf]  ;;  %v99_v13 = vld [vmem:[%s21903_s13 + $0x2c] sm:$0xf]  ;;  %96 = vst [vmem:[#allocation2 + $0x30] sm:$0xf] %v95_v11 }
   0xc   :  { %98 = vst [vmem:[#allocation2 + $0x34] sm:$0xf] %v97_v12  ;;  %100 = vst [vmem:[#allocation2 + $0x38] sm:$0xf] %v99_v13  ;;  %v105_v15 = vld [vmem:[%s21903_s13 + $0x50] sm:$0xf] }
   0xd   :  { %v107_v16 = vld [vmem:[%s21903_s13 + $0x44] sm:$0xf]  ;;  %102 = vst [vmem:[#allocation2 + $0x3c] sm:$0xff] %v101_v14   ;;  %106 = vst [vmem:[#allocation2 + $0x44] sm:$0xf] %v105_v15  ;;  %v117_v21 = vld [vmem:[%s21903_s13 + $0x5c] sm:$0xff]  }
   0xe   :  { %108 = vst [vmem:[#allocation2 + $0x48] sm:$0xf] %v107_v16  ;;  %v109_v17 = vld [vmem:[%s21903_s13 + $0x54] sm:$0xf]  ;;  %v111_v18 = vld [vmem:[%s21903_s13 + $0x48] sm:$0xf] }
   0xf   :  { %v113_v19 = vld [vmem:[%s21903_s13 + $0x58] sm:$0xf]  ;;  %110 = vst [vmem:[#allocation2 + $0x4c] sm:$0xf] %v109_v17  ;;  %112 = vst [vmem:[#allocation2 + $0x50] sm:$0xf] %v111_v18 }
  0x10   :  { %114 = vst [vmem:[#allocation2 + $0x54] sm:$0xf] %v113_v19  ;;  %v115_v20 = vld [vmem:[%s21903_s13 + $0x4c] sm:$0xf]  ;;  %v121_v22 = vld [vmem:[%s21903_s13 + $0x70] sm:$0xf] }
  0x11   :  { %116 = vst [vmem:[#allocation2 + $0x58] sm:$0xf] %v115_v20  ;;  %118 = vst [vmem:[#allocation2 + $0x5c] sm:$0xff] %v117_v21   ;;  %v123_v23 = vld [vmem:[%s21903_s13 + $0x64] sm:$0xf]  ;;  %v133_v28 = vld [vmem:[%s21903_s13 + $0x7c] sm:$0xff]  }
  0x12   :  { %122 = vst [vmem:[#allocation2 + $0x64] sm:$0xf] %v121_v22  ;;  %v125_v24 = vld [vmem:[%s21903_s13 + $0x74] sm:$0xf]  ;;  %v127_v25 = vld [vmem:[%s21903_s13 + $0x68] sm:$0xf] }
  0x13   :  { %124 = vst [vmem:[#allocation2 + $0x68] sm:$0xf] %v123_v23  ;;  %126 = vst [vmem:[#allocation2 + $0x6c] sm:$0xf] %v125_v24  ;;  %v129_v26 = vld [vmem:[%s21903_s13 + $0x78] sm:$0xf] }
  0x14   :  { %128 = vst [vmem:[#allocation2 + $0x70] sm:$0xf] %v127_v25  ;;  %v131_v27 = vld [vmem:[%s21903_s13 + $0x6c] sm:$0xf]  ;;  %130 = vst [vmem:[#allocation2 + $0x74] sm:$0xf] %v129_v26 }
  0x15   :  { %132 = vst [vmem:[#allocation2 + $0x78] sm:$0xf] %v131_v27  ;;  %134 = vst [vmem:[#allocation2 + $0x7c] sm:$0xff] %v133_v28   ;;  %v137_v29 = vld [vmem:[%s21903_s13 + $0x90] sm:$0xf]  ;;  %v149_v35 = vld [vmem:[%s21903_s13 + $0x9c] sm:$0xff]  }
  0x16   :  { %v139_v30 = vld [vmem:[%s21903_s13 + $0x84] sm:$0xf]  ;;  %v141_v31 = vld [vmem:[%s21903_s13 + $0x94] sm:$0xf]  ;;  %138 = vst [vmem:[#allocation2 + $0x84] sm:$0xf] %v137_v29 }
  0x17   :  { %140 = vst [vmem:[#allocation2 + $0x88] sm:$0xf] %v139_v30  ;;  %142 = vst [vmem:[#allocation2 + $0x8c] sm:$0xf] %v141_v31  ;;  %v143_v32 = vld [vmem:[%s21903_s13 + $0x88] sm:$0xf] }
  0x18   :  { %v145_v33 = vld [vmem:[%s21903_s13 + $0x98] sm:$0xf]  ;;  %v147_v34 = vld [vmem:[%s21903_s13 + $0x8c] sm:$0xf]  ;;  %144 = vst [vmem:[#allocation2 + $0x90] sm:$0xf] %v143_v32 }
  0x19   :  { %146 = vst [vmem:[#allocation2 + $0x94] sm:$0xf] %v145_v33  ;;  %148 = vst [vmem:[#allocation2 + $0x98] sm:$0xf] %v147_v34  ;;  %v153_v36 = vld [vmem:[%s21903_s13 + $0xb0] sm:$0xf] }
  0x1a   :  { %v155_v37 = vld [vmem:[%s21903_s13 + $0xa4] sm:$0xf]  ;;  %150 = vst [vmem:[#allocation2 + $0x9c] sm:$0xff] %v149_v35   ;;  %154 = vst [vmem:[#allocation2 + $0xa4] sm:$0xf] %v153_v36  ;;  %v165_v42 = vld [vmem:[%s21903_s13 + $0xbc] sm:$0xff]  }
  0x1b   :  { %156 = vst [vmem:[#allocation2 + $0xa8] sm:$0xf] %v155_v37  ;;  %v157_v38 = vld [vmem:[%s21903_s13 + $0xb4] sm:$0xf]  ;;  %v159_v39 = vld [vmem:[%s21903_s13 + $0xa8] sm:$0xf] }
  0x1c   :  { %v161_v40 = vld [vmem:[%s21903_s13 + $0xb8] sm:$0xf]  ;;  %158 = vst [vmem:[#allocation2 + $0xac] sm:$0xf] %v157_v38  ;;  %160 = vst [vmem:[#allocation2 + $0xb0] sm:$0xf] %v159_v39 }
  0x1d   :  { %162 = vst [vmem:[#allocation2 + $0xb4] sm:$0xf] %v161_v40  ;;  %v163_v41 = vld [vmem:[%s21903_s13 + $0xac] sm:$0xf]  ;;  %v169_v43 = vld [vmem:[%s21903_s13 + $0xd0] sm:$0xf] }
  0x1e   :  { %164 = vst [vmem:[#allocation2 + $0xb8] sm:$0xf] %v163_v41  ;;  %166 = vst [vmem:[#allocation2 + $0xbc] sm:$0xff] %v165_v42   ;;  %v171_v44 = vld [vmem:[%s21903_s13 + $0xc4] sm:$0xf]  ;;  %v181_v49 = vld [vmem:[%s21903_s13 + $0xdc] sm:$0xff]  }
  0x1f   :  { %170 = vst [vmem:[#allocation2 + $0xc4] sm:$0xf] %v169_v43  ;;  %v173_v45 = vld [vmem:[%s21903_s13 + $0xd4] sm:$0xf]  ;;  %v175_v46 = vld [vmem:[%s21903_s13 + $0xc8] sm:$0xf] }
  0x20   :  { %172 = vst [vmem:[#allocation2 + $0xc8] sm:$0xf] %v171_v44  ;;  %174 = vst [vmem:[#allocation2 + $0xcc] sm:$0xf] %v173_v45  ;;  %v177_v47 = vld [vmem:[%s21903_s13 + $0xd8] sm:$0xf] }
  0x21   :  { %176 = vst [vmem:[#allocation2 + $0xd0] sm:$0xf] %v175_v46  ;;  %v179_v48 = vld [vmem:[%s21903_s13 + $0xcc] sm:$0xf]  ;;  %178 = vst [vmem:[#allocation2 + $0xd4] sm:$0xf] %v177_v47 }
  0x22   :  { %180 = vst [vmem:[#allocation2 + $0xd8] sm:$0xf] %v179_v48  ;;  %182 = vst [vmem:[#allocation2 + $0xdc] sm:$0xff] %v181_v49   ;;  %v185_v50 = vld [vmem:[%s21903_s13 + $0xf0] sm:$0xf]  ;;  %v197_v56 = vld [vmem:[%s21903_s13 + $0xfc] sm:$0xff]  }
  0x23   :  { %v187_v51 = vld [vmem:[%s21903_s13 + $0xe4] sm:$0xf]  ;;  %v189_v52 = vld [vmem:[%s21903_s13 + $0xf4] sm:$0xf]  ;;  %186 = vst [vmem:[#allocation2 + $0xe4] sm:$0xf] %v185_v50 }
  0x24   :  { %188 = vst [vmem:[#allocation2 + $0xe8] sm:$0xf] %v187_v51  ;;  %190 = vst [vmem:[#allocation2 + $0xec] sm:$0xf] %v189_v52  ;;  %v191_v53 = vld [vmem:[%s21903_s13 + $0xe8] sm:$0xf] }
  0x25   :  { %v193_v54 = vld [vmem:[%s21903_s13 + $0xf8] sm:$0xf]  ;;  %v195_v55 = vld [vmem:[%s21903_s13 + $0xec] sm:$0xf]  ;;  %192 = vst [vmem:[#allocation2 + $0xf0] sm:$0xf] %v191_v53 }
  0x26   :  { %194 = vst [vmem:[#allocation2 + $0xf4] sm:$0xf] %v193_v54  ;;  %196 = vst [vmem:[#allocation2 + $0xf8] sm:$0xf] %v195_v55  ;;  %v201_v57 = vld [vmem:[%s21903_s13 + $0x110] sm:$0xf] }
  0x27   :  { %v203_v58 = vld [vmem:[%s21903_s13 + $0x104] sm:$0xf]  ;;  %198 = vst [vmem:[#allocation2 + $0xfc] sm:$0xff] %v197_v56   ;;  %202 = vst [vmem:[#allocation2 + $0x104] sm:$0xf] %v201_v57  ;;  %v213_v63 = vld [vmem:[%s21903_s13 + $0x11c] sm:$0xff]  }
  0x28   :  { %204 = vst [vmem:[#allocation2 + $0x108] sm:$0xf] %v203_v58  ;;  %v205_v59 = vld [vmem:[%s21903_s13 + $0x114] sm:$0xf]  ;;  %v207_v60 = vld [vmem:[%s21903_s13 + $0x108] sm:$0xf] }
  0x29   :  { %v209_v61 = vld [vmem:[%s21903_s13 + $0x118] sm:$0xf]  ;;  %206 = vst [vmem:[#allocation2 + $0x10c] sm:$0xf] %v205_v59  ;;  %208 = vst [vmem:[#allocation2 + $0x110] sm:$0xf] %v207_v60 }
  0x2a   :  { %210 = vst [vmem:[#allocation2 + $0x114] sm:$0xf] %v209_v61  ;;  %v211_v62 = vld [vmem:[%s21903_s13 + $0x10c] sm:$0xf]  ;;  %v217_v0 = vld [vmem:[%s21903_s13 + $0x130] sm:$0xf] }
  0x2b   :  { %212 = vst [vmem:[#allocation2 + $0x118] sm:$0xf] %v211_v62  ;;  %214 = vst [vmem:[#allocation2 + $0x11c] sm:$0xff] %v213_v63   ;;  %v219_v1 = vld [vmem:[%s21903_s13 + $0x124] sm:$0xf]  ;;  %v229_v6 = vld [vmem:[%s21903_s13 + $0x13c] sm:$0xff]  }
  0x2c   :  { %218 = vst [vmem:[#allocation2 + $0x124] sm:$0xf] %v217_v0  ;;  %v221_v2 = vld [vmem:[%s21903_s13 + $0x134] sm:$0xf]  ;;  %v223_v3 = vld [vmem:[%s21903_s13 + $0x128] sm:$0xf] }
  0x2d   :  { %220 = vst [vmem:[#allocation2 + $0x128] sm:$0xf] %v219_v1  ;;  %222 = vst [vmem:[#allocation2 + $0x12c] sm:$0xf] %v221_v2  ;;  %v225_v4 = vld [vmem:[%s21903_s13 + $0x138] sm:$0xf] }
  0x2e   :  { %224 = vst [vmem:[#allocation2 + $0x130] sm:$0xf] %v223_v3  ;;  %v227_v5 = vld [vmem:[%s21903_s13 + $0x12c] sm:$0xf]  ;;  %226 = vst [vmem:[#allocation2 + $0x134] sm:$0xf] %v225_v4 }
  0x2f   :  { %228 = vst [vmem:[#allocation2 + $0x138] sm:$0xf] %v227_v5  ;;  %230 = vst [vmem:[#allocation2 + $0x13c] sm:$0xff] %v229_v6   ;;  %v233_v7 = vld [vmem:[%s21903_s13 + $0x150] sm:$0xf]  ;;  %v245_v13 = vld [vmem:[%s21903_s13 + $0x15c] sm:$0xff]  }
  0x30   :  { %v235_v8 = vld [vmem:[%s21903_s13 + $0x144] sm:$0xf]  ;;  %v237_v9 = vld [vmem:[%s21903_s13 + $0x154] sm:$0xf]  ;;  %234 = vst [vmem:[#allocation2 + $0x144] sm:$0xf] %v233_v7 }
  0x31   :  { %236 = vst [vmem:[#allocation2 + $0x148] sm:$0xf] %v235_v8  ;;  %238 = vst [vmem:[#allocation2 + $0x14c] sm:$0xf] %v237_v9  ;;  %v239_v10 = vld [vmem:[%s21903_s13 + $0x148] sm:$0xf] }
  0x32   :  { %v241_v11 = vld [vmem:[%s21903_s13 + $0x158] sm:$0xf]  ;;  %v243_v12 = vld [vmem:[%s21903_s13 + $0x14c] sm:$0xf]  ;;  %240 = vst [vmem:[#allocation2 + $0x150] sm:$0xf] %v239_v10 }
  0x33   :  { %242 = vst [vmem:[#allocation2 + $0x154] sm:$0xf] %v241_v11  ;;  %244 = vst [vmem:[#allocation2 + $0x158] sm:$0xf] %v243_v12  ;;  %v249_v14 = vld [vmem:[%s21903_s13 + $0x170] sm:$0xf] }
  0x34   :  { %v251_v15 = vld [vmem:[%s21903_s13 + $0x164] sm:$0xf]  ;;  %246 = vst [vmem:[#allocation2 + $0x15c] sm:$0xff] %v245_v13   ;;  %250 = vst [vmem:[#allocation2 + $0x164] sm:$0xf] %v249_v14  ;;  %v261_v20 = vld [vmem:[%s21903_s13 + $0x17c] sm:$0xff]  }
  0x35   :  { %252 = vst [vmem:[#allocation2 + $0x168] sm:$0xf] %v251_v15  ;;  %v253_v16 = vld [vmem:[%s21903_s13 + $0x174] sm:$0xf]  ;;  %v255_v17 = vld [vmem:[%s21903_s13 + $0x168] sm:$0xf] }
  0x36   :  { %v257_v18 = vld [vmem:[%s21903_s13 + $0x178] sm:$0xf]  ;;  %254 = vst [vmem:[#allocation2 + $0x16c] sm:$0xf] %v253_v16  ;;  %256 = vst [vmem:[#allocation2 + $0x170] sm:$0xf] %v255_v17 }
  0x37   :  { %258 = vst [vmem:[#allocation2 + $0x174] sm:$0xf] %v257_v18  ;;  %v259_v19 = vld [vmem:[%s21903_s13 + $0x16c] sm:$0xf]  ;;  %v265_v21 = vld [vmem:[%s21903_s13 + $0x190] sm:$0xf] }
  0x38   :  { %260 = vst [vmem:[#allocation2 + $0x178] sm:$0xf] %v259_v19  ;;  %262 = vst [vmem:[#allocation2 + $0x17c] sm:$0xff] %v261_v20   ;;  %v267_v22 = vld [vmem:[%s21903_s13 + $0x184] sm:$0xf]  ;;  %v277_v27 = vld [vmem:[%s21903_s13 + $0x19c] sm:$0xff]  }
  0x39   :  { %266 = vst [vmem:[#allocation2 + $0x184] sm:$0xf] %v265_v21  ;;  %v269_v23 = vld [vmem:[%s21903_s13 + $0x194] sm:$0xf]  ;;  %v271_v24 = vld [vmem:[%s21903_s13 + $0x188] sm:$0xf] }
  0x3a   :  { %268 = vst [vmem:[#allocation2 + $0x188] sm:$0xf] %v267_v22  ;;  %270 = vst [vmem:[#allocation2 + $0x18c] sm:$0xf] %v269_v23  ;;  %v273_v25 = vld [vmem:[%s21903_s13 + $0x198] sm:$0xf] }
  0x3b   :  { %272 = vst [vmem:[#allocation2 + $0x190] sm:$0xf] %v271_v24  ;;  %v275_v26 = vld [vmem:[%s21903_s13 + $0x18c] sm:$0xf]  ;;  %274 = vst [vmem:[#allocation2 + $0x194] sm:$0xf] %v273_v25 }
  0x3c   :  { %276 = vst [vmem:[#allocation2 + $0x198] sm:$0xf] %v275_v26  ;;  %278 = vst [vmem:[#allocation2 + $0x19c] sm:$0xff] %v277_v27   ;;  %v281_v28 = vld [vmem:[%s21903_s13 + $0x1b0] sm:$0xf]  ;;  %v293_v34 = vld [vmem:[%s21903_s13 + $0x1bc] sm:$0xff]  }
  0x3d   :  { %v283_v29 = vld [vmem:[%s21903_s13 + $0x1a4] sm:$0xf]  ;;  %v285_v30 = vld [vmem:[%s21903_s13 + $0x1b4] sm:$0xf]  ;;  %282 = vst [vmem:[#allocation2 + $0x1a4] sm:$0xf] %v281_v28 }
  0x3e   :  { %284 = vst [vmem:[#allocation2 + $0x1a8] sm:$0xf] %v283_v29  ;;  %286 = vst [vmem:[#allocation2 + $0x1ac] sm:$0xf] %v285_v30  ;;  %v287_v31 = vld [vmem:[%s21903_s13 + $0x1a8] sm:$0xf] }
  0x3f   :  { %v289_v32 = vld [vmem:[%s21903_s13 + $0x1b8] sm:$0xf]  ;;  %v291_v33 = vld [vmem:[%s21903_s13 + $0x1ac] sm:$0xf]  ;;  %288 = vst [vmem:[#allocation2 + $0x1b0] sm:$0xf] %v287_v31 }
  0x40   :  { %290 = vst [vmem:[#allocation2 + $0x1b4] sm:$0xf] %v289_v32  ;;  %292 = vst [vmem:[#allocation2 + $0x1b8] sm:$0xf] %v291_v33  ;;  %v297_v35 = vld [vmem:[%s21903_s13 + $0x1d0] sm:$0xf] }
  0x41   :  { %v299_v36 = vld [vmem:[%s21903_s13 + $0x1c4] sm:$0xf]  ;;  %294 = vst [vmem:[#allocation2 + $0x1bc] sm:$0xff] %v293_v34   ;;  %298 = vst [vmem:[#allocation2 + $0x1c4] sm:$0xf] %v297_v35  ;;  %v309_v41 = vld [vmem:[%s21903_s13 + $0x1dc] sm:$0xff]  }
  0x42   :  { %300 = vst [vmem:[#allocation2 + $0x1c8] sm:$0xf] %v299_v36  ;;  %v301_v37 = vld [vmem:[%s21903_s13 + $0x1d4] sm:$0xf]  ;;  %v303_v38 = vld [vmem:[%s21903_s13 + $0x1c8] sm:$0xf] }
  0x43   :  { %v305_v39 = vld [vmem:[%s21903_s13 + $0x1d8] sm:$0xf]  ;;  %302 = vst [vmem:[#allocation2 + $0x1cc] sm:$0xf] %v301_v37  ;;  %304 = vst [vmem:[#allocation2 + $0x1d0] sm:$0xf] %v303_v38 }
  0x44   :  { %306 = vst [vmem:[#allocation2 + $0x1d4] sm:$0xf] %v305_v39  ;;  %v307_v40 = vld [vmem:[%s21903_s13 + $0x1cc] sm:$0xf]  ;;  %v313_v42 = vld [vmem:[%s21903_s13 + $0x1f0] sm:$0xf] }
  0x45   :  { %308 = vst [vmem:[#allocation2 + $0x1d8] sm:$0xf] %v307_v40  ;;  %310 = vst [vmem:[#allocation2 + $0x1dc] sm:$0xff] %v309_v41   ;;  %v315_v43 = vld [vmem:[%s21903_s13 + $0x1e4] sm:$0xf]  ;;  %v325_v48 = vld [vmem:[%s21903_s13 + $0x1fc] sm:$0xff]  }
  0x46   :  { %314 = vst [vmem:[#allocation2 + $0x1e4] sm:$0xf] %v313_v42  ;;  %v317_v44 = vld [vmem:[%s21903_s13 + $0x1f4] sm:$0xf]  ;;  %v319_v45 = vld [vmem:[%s21903_s13 + $0x1e8] sm:$0xf] }
  0x47   :  { %316 = vst [vmem:[#allocation2 + $0x1e8] sm:$0xf] %v315_v43  ;;  %318 = vst [vmem:[#allocation2 + $0x1ec] sm:$0xf] %v317_v44  ;;  %v321_v46 = vld [vmem:[%s21903_s13 + $0x1f8] sm:$0xf] }
  0x48   :  { %320 = vst [vmem:[#allocation2 + $0x1f0] sm:$0xf] %v319_v45  ;;  %v323_v47 = vld [vmem:[%s21903_s13 + $0x1ec] sm:$0xf]  ;;  %322 = vst [vmem:[#allocation2 + $0x1f4] sm:$0xf] %v321_v46 }
  0x49   :  { %324 = vst [vmem:[#allocation2 + $0x1f8] sm:$0xf] %v323_v47  ;;  %326 = vst [vmem:[#allocation2 + $0x1fc] sm:$0xff] %v325_v48   ;;  %v329_v49 = vld [vmem:[%s21903_s13 + $0x210] sm:$0xf]  ;;  %v341_v55 = vld [vmem:[%s21903_s13 + $0x21c] sm:$0xff]  }
  0x4a   :  { %v331_v50 = vld [vmem:[%s21903_s13 + $0x204] sm:$0xf]  ;;  %v333_v51 = vld [vmem:[%s21903_s13 + $0x214] sm:$0xf]  ;;  %330 = vst [vmem:[#allocation2 + $0x204] sm:$0xf] %v329_v49 }
  0x4b   :  { %332 = vst [vmem:[#allocation2 + $0x208] sm:$0xf] %v331_v50  ;;  %334 = vst [vmem:[#allocation2 + $0x20c] sm:$0xf] %v333_v51  ;;  %v335_v52 = vld [vmem:[%s21903_s13 + $0x208] sm:$0xf] }
  0x4c   :  { %v337_v53 = vld [vmem:[%s21903_s13 + $0x218] sm:$0xf]  ;;  %v339_v54 = vld [vmem:[%s21903_s13 + $0x20c] sm:$0xf]  ;;  %336 = vst [vmem:[#allocation2 + $0x210] sm:$0xf] %v335_v52 }
  0x4d   :  { %338 = vst [vmem:[#allocation2 + $0x214] sm:$0xf] %v337_v53  ;;  %340 = vst [vmem:[#allocation2 + $0x218] sm:$0xf] %v339_v54  ;;  %v345_v56 = vld [vmem:[%s21903_s13 + $0x230] sm:$0xf] }
  0x4e   :  { %v347_v57 = vld [vmem:[%s21903_s13 + $0x224] sm:$0xf]  ;;  %342 = vst [vmem:[#allocation2 + $0x21c] sm:$0xff] %v341_v55   ;;  %346 = vst [vmem:[#allocation2 + $0x224] sm:$0xf] %v345_v56  ;;  %v357_v62 = vld [vmem:[%s21903_s13 + $0x23c] sm:$0xff]  }
  0x4f   :  { %348 = vst [vmem:[#allocation2 + $0x228] sm:$0xf] %v347_v57  ;;  %v349_v58 = vld [vmem:[%s21903_s13 + $0x234] sm:$0xf]  ;;  %v351_v59 = vld [vmem:[%s21903_s13 + $0x228] sm:$0xf] }
  0x50   :  { %v353_v60 = vld [vmem:[%s21903_s13 + $0x238] sm:$0xf]  ;;  %350 = vst [vmem:[#allocation2 + $0x22c] sm:$0xf] %v349_v58  ;;  %352 = vst [vmem:[#allocation2 + $0x230] sm:$0xf] %v351_v59 }
  0x51   :  { %354 = vst [vmem:[#allocation2 + $0x234] sm:$0xf] %v353_v60  ;;  %v355_v61 = vld [vmem:[%s21903_s13 + $0x22c] sm:$0xf]  ;;  %v361_v63 = vld [vmem:[%s21903_s13 + $0x250] sm:$0xf] }
  0x52   :  { %356 = vst [vmem:[#allocation2 + $0x238] sm:$0xf] %v355_v61  ;;  %358 = vst [vmem:[#allocation2 + $0x23c] sm:$0xff] %v357_v62   ;;  %v363_v0 = vld [vmem:[%s21903_s13 + $0x244] sm:$0xf]  ;;  %v373_v5 = vld [vmem:[%s21903_s13 + $0x25c] sm:$0xff]  }
  0x53   :  { %362 = vst [vmem:[#allocation2 + $0x244] sm:$0xf] %v361_v63  ;;  %v365_v1 = vld [vmem:[%s21903_s13 + $0x254] sm:$0xf]  ;;  %v367_v2 = vld [vmem:[%s21903_s13 + $0x248] sm:$0xf] }
  0x54   :  { %364 = vst [vmem:[#allocation2 + $0x248] sm:$0xf] %v363_v0  ;;  %366 = vst [vmem:[#allocation2 + $0x24c] sm:$0xf] %v365_v1  ;;  %v369_v3 = vld [vmem:[%s21903_s13 + $0x258] sm:$0xf] }
  0x55   :  { %368 = vst [vmem:[#allocation2 + $0x250] sm:$0xf] %v367_v2  ;;  %v371_v4 = vld [vmem:[%s21903_s13 + $0x24c] sm:$0xf]  ;;  %370 = vst [vmem:[#allocation2 + $0x254] sm:$0xf] %v369_v3 }
  0x56   :  { %372 = vst [vmem:[#allocation2 + $0x258] sm:$0xf] %v371_v4  ;;  %374 = vst [vmem:[#allocation2 + $0x25c] sm:$0xff] %v373_v5   ;;  %v377_v6 = vld [vmem:[%s21903_s13 + $0x270] sm:$0xf]  ;;  %v389_v12 = vld [vmem:[%s21903_s13 + $0x27c] sm:$0xff]  }
  0x57   :  { %v379_v7 = vld [vmem:[%s21903_s13 + $0x264] sm:$0xf]  ;;  %v381_v8 = vld [vmem:[%s21903_s13 + $0x274] sm:$0xf]  ;;  %378 = vst [vmem:[#allocation2 + $0x264] sm:$0xf] %v377_v6 }
  0x58   :  { %380 = vst [vmem:[#allocation2 + $0x268] sm:$0xf] %v379_v7  ;;  %382 = vst [vmem:[#allocation2 + $0x26c] sm:$0xf] %v381_v8  ;;  %v383_v9 = vld [vmem:[%s21903_s13 + $0x268] sm:$0xf] }
  0x59   :  { %v385_v10 = vld [vmem:[%s21903_s13 + $0x278] sm:$0xf]  ;;  %v387_v11 = vld [vmem:[%s21903_s13 + $0x26c] sm:$0xf]  ;;  %384 = vst [vmem:[#allocation2 + $0x270] sm:$0xf] %v383_v9 }
  0x5a   :  { %386 = vst [vmem:[#allocation2 + $0x274] sm:$0xf] %v385_v10  ;;  %388 = vst [vmem:[#allocation2 + $0x278] sm:$0xf] %v387_v11  ;;  %v393_v13 = vld [vmem:[%s21903_s13 + $0x290] sm:$0xf] }
  0x5b   :  { %v395_v14 = vld [vmem:[%s21903_s13 + $0x284] sm:$0xf]  ;;  %390 = vst [vmem:[#allocation2 + $0x27c] sm:$0xff] %v389_v12   ;;  %394 = vst [vmem:[#allocation2 + $0x284] sm:$0xf] %v393_v13  ;;  %v405_v19 = vld [vmem:[%s21903_s13 + $0x29c] sm:$0xff]  }
  0x5c   :  { %396 = vst [vmem:[#allocation2 + $0x288] sm:$0xf] %v395_v14  ;;  %v397_v15 = vld [vmem:[%s21903_s13 + $0x294] sm:$0xf]  ;;  %v399_v16 = vld [vmem:[%s21903_s13 + $0x288] sm:$0xf] }
  0x5d   :  { %v401_v17 = vld [vmem:[%s21903_s13 + $0x298] sm:$0xf]  ;;  %398 = vst [vmem:[#allocation2 + $0x28c] sm:$0xf] %v397_v15  ;;  %400 = vst [vmem:[#allocation2 + $0x290] sm:$0xf] %v399_v16 }
  0x5e   :  { %402 = vst [vmem:[#allocation2 + $0x294] sm:$0xf] %v401_v17  ;;  %v403_v18 = vld [vmem:[%s21903_s13 + $0x28c] sm:$0xf]  ;;  %v409_v20 = vld [vmem:[%s21903_s13 + $0x2b0] sm:$0xf] }
  0x5f   :  { %404 = vst [vmem:[#allocation2 + $0x298] sm:$0xf] %v403_v18  ;;  %406 = vst [vmem:[#allocation2 + $0x29c] sm:$0xff] %v405_v19   ;;  %v411_v21 = vld [vmem:[%s21903_s13 + $0x2a4] sm:$0xf]  ;;  %v421_v26 = vld [vmem:[%s21903_s13 + $0x2bc] sm:$0xff]  }
  0x60   :  { %410 = vst [vmem:[#allocation2 + $0x2a4] sm:$0xf] %v409_v20  ;;  %v413_v22 = vld [vmem:[%s21903_s13 + $0x2b4] sm:$0xf]  ;;  %v415_v23 = vld [vmem:[%s21903_s13 + $0x2a8] sm:$0xf] }
  0x61   :  { %412 = vst [vmem:[#allocation2 + $0x2a8] sm:$0xf] %v411_v21  ;;  %414 = vst [vmem:[#allocation2 + $0x2ac] sm:$0xf] %v413_v22  ;;  %v417_v24 = vld [vmem:[%s21903_s13 + $0x2b8] sm:$0xf] }
  0x62   :  { %416 = vst [vmem:[#allocation2 + $0x2b0] sm:$0xf] %v415_v23  ;;  %v419_v25 = vld [vmem:[%s21903_s13 + $0x2ac] sm:$0xf]  ;;  %418 = vst [vmem:[#allocation2 + $0x2b4] sm:$0xf] %v417_v24 }
  0x63   :  { %420 = vst [vmem:[#allocation2 + $0x2b8] sm:$0xf] %v419_v25  ;;  %422 = vst [vmem:[#allocation2 + $0x2bc] sm:$0xff] %v421_v26   ;;  %v425_v27 = vld [vmem:[%s21903_s13 + $0x2d0] sm:$0xf]  ;;  %v437_v33 = vld [vmem:[%s21903_s13 + $0x2dc] sm:$0xff]  }
  0x64   :  { %v427_v28 = vld [vmem:[%s21903_s13 + $0x2c4] sm:$0xf]  ;;  %v429_v29 = vld [vmem:[%s21903_s13 + $0x2d4] sm:$0xf]  ;;  %426 = vst [vmem:[#allocation2 + $0x2c4] sm:$0xf] %v425_v27 }
  0x65   :  { %428 = vst [vmem:[#allocation2 + $0x2c8] sm:$0xf] %v427_v28  ;;  %430 = vst [vmem:[#allocation2 + $0x2cc] sm:$0xf] %v429_v29  ;;  %v431_v30 = vld [vmem:[%s21903_s13 + $0x2c8] sm:$0xf] }
  0x66   :  { %v433_v31 = vld [vmem:[%s21903_s13 + $0x2d8] sm:$0xf]  ;;  %v435_v32 = vld [vmem:[%s21903_s13 + $0x2cc] sm:$0xf]  ;;  %432 = vst [vmem:[#allocation2 + $0x2d0] sm:$0xf] %v431_v30 }
  0x67   :  { %434 = vst [vmem:[#allocation2 + $0x2d4] sm:$0xf] %v433_v31  ;;  %436 = vst [vmem:[#allocation2 + $0x2d8] sm:$0xf] %v435_v32  ;;  %v441_v34 = vld [vmem:[%s21903_s13 + $0x2f0] sm:$0xf] }
  0x68   :  { %v443_v35 = vld [vmem:[%s21903_s13 + $0x2e4] sm:$0xf]  ;;  %438 = vst [vmem:[#allocation2 + $0x2dc] sm:$0xff] %v437_v33   ;;  %442 = vst [vmem:[#allocation2 + $0x2e4] sm:$0xf] %v441_v34  ;;  %v453_v40 = vld [vmem:[%s21903_s13 + $0x2fc] sm:$0xff]  }
  0x69   :  { %444 = vst [vmem:[#allocation2 + $0x2e8] sm:$0xf] %v443_v35  ;;  %v445_v36 = vld [vmem:[%s21903_s13 + $0x2f4] sm:$0xf]  ;;  %v447_v37 = vld [vmem:[%s21903_s13 + $0x2e8] sm:$0xf] }
  0x6a   :  { %v449_v38 = vld [vmem:[%s21903_s13 + $0x2f8] sm:$0xf]  ;;  %446 = vst [vmem:[#allocation2 + $0x2ec] sm:$0xf] %v445_v36  ;;  %448 = vst [vmem:[#allocation2 + $0x2f0] sm:$0xf] %v447_v37 }
  0x6b   :  { %450 = vst [vmem:[#allocation2 + $0x2f4] sm:$0xf] %v449_v38  ;;  %v451_v39 = vld [vmem:[%s21903_s13 + $0x2ec] sm:$0xf]  ;;  %v457_v41 = vld [vmem:[%s21903_s13 + $0x310] sm:$0xf] }
  0x6c   :  { %452 = vst [vmem:[#allocation2 + $0x2f8] sm:$0xf] %v451_v39  ;;  %454 = vst [vmem:[#allocation2 + $0x2fc] sm:$0xff] %v453_v40   ;;  %v459_v42 = vld [vmem:[%s21903_s13 + $0x304] sm:$0xf]  ;;  %v469_v47 = vld [vmem:[%s21903_s13 + $0x31c] sm:$0xff]  }
  0x6d   :  { %458 = vst [vmem:[#allocation2 + $0x304] sm:$0xf] %v457_v41  ;;  %v461_v43 = vld [vmem:[%s21903_s13 + $0x314] sm:$0xf]  ;;  %v463_v44 = vld [vmem:[%s21903_s13 + $0x308] sm:$0xf] }
  0x6e   :  { %460 = vst [vmem:[#allocation2 + $0x308] sm:$0xf] %v459_v42  ;;  %462 = vst [vmem:[#allocation2 + $0x30c] sm:$0xf] %v461_v43  ;;  %v465_v45 = vld [vmem:[%s21903_s13 + $0x318] sm:$0xf] }
  0x6f   :  { %464 = vst [vmem:[#allocation2 + $0x310] sm:$0xf] %v463_v44  ;;  %v467_v46 = vld [vmem:[%s21903_s13 + $0x30c] sm:$0xf]  ;;  %466 = vst [vmem:[#allocation2 + $0x314] sm:$0xf] %v465_v45 }
  0x70   :  { %468 = vst [vmem:[#allocation2 + $0x318] sm:$0xf] %v467_v46  ;;  %470 = vst [vmem:[#allocation2 + $0x31c] sm:$0xff] %v469_v47   ;;  %v473_v48 = vld [vmem:[%s21903_s13 + $0x330] sm:$0xf]  ;;  %v485_v54 = vld [vmem:[%s21903_s13 + $0x33c] sm:$0xff]  }
  0x71   :  { %v475_v49 = vld [vmem:[%s21903_s13 + $0x324] sm:$0xf]  ;;  %v477_v50 = vld [vmem:[%s21903_s13 + $0x334] sm:$0xf]  ;;  %474 = vst [vmem:[#allocation2 + $0x324] sm:$0xf] %v473_v48 }
  0x72   :  { %476 = vst [vmem:[#allocation2 + $0x328] sm:$0xf] %v475_v49  ;;  %478 = vst [vmem:[#allocation2 + $0x32c] sm:$0xf] %v477_v50  ;;  %v479_v51 = vld [vmem:[%s21903_s13 + $0x328] sm:$0xf] }
  0x73   :  { %v481_v52 = vld [vmem:[%s21903_s13 + $0x338] sm:$0xf]  ;;  %v483_v53 = vld [vmem:[%s21903_s13 + $0x32c] sm:$0xf]  ;;  %480 = vst [vmem:[#allocation2 + $0x330] sm:$0xf] %v479_v51 }
  0x74   :  { %482 = vst [vmem:[#allocation2 + $0x334] sm:$0xf] %v481_v52  ;;  %484 = vst [vmem:[#allocation2 + $0x338] sm:$0xf] %v483_v53  ;;  %v489_v55 = vld [vmem:[%s21903_s13 + $0x350] sm:$0xf] }
  0x75   :  { %v491_v56 = vld [vmem:[%s21903_s13 + $0x344] sm:$0xf]  ;;  %486 = vst [vmem:[#allocation2 + $0x33c] sm:$0xff] %v485_v54   ;;  %490 = vst [vmem:[#allocation2 + $0x344] sm:$0xf] %v489_v55  ;;  %v501_v61 = vld [vmem:[%s21903_s13 + $0x35c] sm:$0xff]  }
  0x76   :  { %492 = vst [vmem:[#allocation2 + $0x348] sm:$0xf] %v491_v56  ;;  %v493_v57 = vld [vmem:[%s21903_s13 + $0x354] sm:$0xf]  ;;  %v495_v58 = vld [vmem:[%s21903_s13 + $0x348] sm:$0xf] }
  0x77   :  { %v497_v59 = vld [vmem:[%s21903_s13 + $0x358] sm:$0xf]  ;;  %494 = vst [vmem:[#allocation2 + $0x34c] sm:$0xf] %v493_v57  ;;  %496 = vst [vmem:[#allocation2 + $0x350] sm:$0xf] %v495_v58 }
  0x78   :  { %498 = vst [vmem:[#allocation2 + $0x354] sm:$0xf] %v497_v59  ;;  %v499_v60 = vld [vmem:[%s21903_s13 + $0x34c] sm:$0xf]  ;;  %v505_v62 = vld [vmem:[%s21903_s13 + $0x370] sm:$0xf] }
  0x79   :  { %500 = vst [vmem:[#allocation2 + $0x358] sm:$0xf] %v499_v60  ;;  %502 = vst [vmem:[#allocation2 + $0x35c] sm:$0xff] %v501_v61   ;;  %v507_v63 = vld [vmem:[%s21903_s13 + $0x364] sm:$0xf]  ;;  %v517_v4 = vld [vmem:[%s21903_s13 + $0x37c] sm:$0xff]  }
  0x7a   :  { %506 = vst [vmem:[#allocation2 + $0x364] sm:$0xf] %v505_v62  ;;  %v509_v0 = vld [vmem:[%s21903_s13 + $0x374] sm:$0xf]  ;;  %v511_v1 = vld [vmem:[%s21903_s13 + $0x368] sm:$0xf] }
  0x7b   :  { %508 = vst [vmem:[#allocation2 + $0x368] sm:$0xf] %v507_v63  ;;  %510 = vst [vmem:[#allocation2 + $0x36c] sm:$0xf] %v509_v0  ;;  %v513_v2 = vld [vmem:[%s21903_s13 + $0x378] sm:$0xf] }
  0x7c   :  { %512 = vst [vmem:[#allocation2 + $0x370] sm:$0xf] %v511_v1  ;;  %v515_v3 = vld [vmem:[%s21903_s13 + $0x36c] sm:$0xf]  ;;  %514 = vst [vmem:[#allocation2 + $0x374] sm:$0xf] %v513_v2 }
  0x7d   :  { %516 = vst [vmem:[#allocation2 + $0x378] sm:$0xf] %v515_v3  ;;  %518 = vst [vmem:[#allocation2 + $0x37c] sm:$0xff] %v517_v4   ;;  %v521_v5 = vld [vmem:[%s21903_s13 + $0x390] sm:$0xf]  ;;  %v533_v11 = vld [vmem:[%s21903_s13 + $0x39c] sm:$0xff]  }
  0x7e   :  { %v523_v6 = vld [vmem:[%s21903_s13 + $0x384] sm:$0xf]  ;;  %v525_v7 = vld [vmem:[%s21903_s13 + $0x394] sm:$0xf]  ;;  %522 = vst [vmem:[#allocation2 + $0x384] sm:$0xf] %v521_v5 }
  0x7f   :  { %524 = vst [vmem:[#allocation2 + $0x388] sm:$0xf] %v523_v6  ;;  %526 = vst [vmem:[#allocation2 + $0x38c] sm:$0xf] %v525_v7  ;;  %v527_v8 = vld [vmem:[%s21903_s13 + $0x388] sm:$0xf] }
  0x80   :  { %v529_v9 = vld [vmem:[%s21903_s13 + $0x398] sm:$0xf]  ;;  %v531_v10 = vld [vmem:[%s21903_s13 + $0x38c] sm:$0xf]  ;;  %528 = vst [vmem:[#allocation2 + $0x390] sm:$0xf] %v527_v8 }
  0x81   :  { %530 = vst [vmem:[#allocation2 + $0x394] sm:$0xf] %v529_v9  ;;  %532 = vst [vmem:[#allocation2 + $0x398] sm:$0xf] %v531_v10  ;;  %v537_v12 = vld [vmem:[%s21903_s13 + $0x3b0] sm:$0xf] }
  0x82   :  { %v539_v13 = vld [vmem:[%s21903_s13 + $0x3a4] sm:$0xf]  ;;  %534 = vst [vmem:[#allocation2 + $0x39c] sm:$0xff] %v533_v11   ;;  %538 = vst [vmem:[#allocation2 + $0x3a4] sm:$0xf] %v537_v12  ;;  %v549_v18 = vld [vmem:[%s21903_s13 + $0x3bc] sm:$0xff]  }
  0x83   :  { %540 = vst [vmem:[#allocation2 + $0x3a8] sm:$0xf] %v539_v13  ;;  %v541_v14 = vld [vmem:[%s21903_s13 + $0x3b4] sm:$0xf]  ;;  %v543_v15 = vld [vmem:[%s21903_s13 + $0x3a8] sm:$0xf] }
  0x84   :  { %v545_v16 = vld [vmem:[%s21903_s13 + $0x3b8] sm:$0xf]  ;;  %542 = vst [vmem:[#allocation2 + $0x3ac] sm:$0xf] %v541_v14  ;;  %544 = vst [vmem:[#allocation2 + $0x3b0] sm:$0xf] %v543_v15 }
  0x85   :  { %546 = vst [vmem:[#allocation2 + $0x3b4] sm:$0xf] %v545_v16  ;;  %v547_v17 = vld [vmem:[%s21903_s13 + $0x3ac] sm:$0xf]  ;;  %v553_v19 = vld [vmem:[%s21903_s13 + $0x3d0] sm:$0xf] }
  0x86   :  { %548 = vst [vmem:[#allocation2 + $0x3b8] sm:$0xf] %v547_v17  ;;  %550 = vst [vmem:[#allocation2 + $0x3bc] sm:$0xff] %v549_v18   ;;  %v555_v20 = vld [vmem:[%s21903_s13 + $0x3c4] sm:$0xf]  ;;  %v565_v25 = vld [vmem:[%s21903_s13 + $0x3dc] sm:$0xff]  }
  0x87   :  { %554 = vst [vmem:[#allocation2 + $0x3c4] sm:$0xf] %v553_v19  ;;  %v557_v21 = vld [vmem:[%s21903_s13 + $0x3d4] sm:$0xf]  ;;  %v559_v22 = vld [vmem:[%s21903_s13 + $0x3c8] sm:$0xf] }
  0x88   :  { %556 = vst [vmem:[#allocation2 + $0x3c8] sm:$0xf] %v555_v20  ;;  %558 = vst [vmem:[#allocation2 + $0x3cc] sm:$0xf] %v557_v21  ;;  %v561_v23 = vld [vmem:[%s21903_s13 + $0x3d8] sm:$0xf] }
  0x89   :  { %560 = vst [vmem:[#allocation2 + $0x3d0] sm:$0xf] %v559_v22  ;;  %v563_v24 = vld [vmem:[%s21903_s13 + $0x3cc] sm:$0xf]  ;;  %562 = vst [vmem:[#allocation2 + $0x3d4] sm:$0xf] %v561_v23 }
  0x8a   :  { %564 = vst [vmem:[#allocation2 + $0x3d8] sm:$0xf] %v563_v24  ;;  %566 = vst [vmem:[#allocation2 + $0x3dc] sm:$0xff] %v565_v25   ;;  %v569_v26 = vld [vmem:[%s21903_s13 + $0x3f0] sm:$0xf]  ;;  %v581_v32 = vld [vmem:[%s21903_s13 + $0x3fc] sm:$0xff]  }
  0x8b   :  { %v571_v27 = vld [vmem:[%s21903_s13 + $0x3e4] sm:$0xf]  ;;  %v573_v28 = vld [vmem:[%s21903_s13 + $0x3f4] sm:$0xf]  ;;  %570 = vst [vmem:[#allocation2 + $0x3e4] sm:$0xf] %v569_v26 }
  0x8c   :  { %572 = vst [vmem:[#allocation2 + $0x3e8] sm:$0xf] %v571_v27  ;;  %574 = vst [vmem:[#allocation2 + $0x3ec] sm:$0xf] %v573_v28  ;;  %v575_v29 = vld [vmem:[%s21903_s13 + $0x3e8] sm:$0xf] }
  0x8d   :  { %v577_v30 = vld [vmem:[%s21903_s13 + $0x3f8] sm:$0xf]  ;;  %v579_v31 = vld [vmem:[%s21903_s13 + $0x3ec] sm:$0xf]  ;;  %576 = vst [vmem:[#allocation2 + $0x3f0] sm:$0xf] %v575_v29 }
  0x8e   :  { %578 = vst [vmem:[#allocation2 + $0x3f4] sm:$0xf] %v577_v30  ;;  %580 = vst [vmem:[#allocation2 + $0x3f8] sm:$0xf] %v579_v31  ;;  %v585_v33 = vld [vmem:[%s21903_s13 + $0x410] sm:$0xf] }
  0x8f   :  { %v587_v34 = vld [vmem:[%s21903_s13 + $0x404] sm:$0xf]  ;;  %582 = vst [vmem:[#allocation2 + $0x3fc] sm:$0xff] %v581_v32   ;;  %586 = vst [vmem:[#allocation2 + $0x404] sm:$0xf] %v585_v33  ;;  %v597_v39 = vld [vmem:[%s21903_s13 + $0x41c] sm:$0xff]  }
  0x90   :  { %588 = vst [vmem:[#allocation2 + $0x408] sm:$0xf] %v587_v34  ;;  %v589_v35 = vld [vmem:[%s21903_s13 + $0x414] sm:$0xf]  ;;  %v591_v36 = vld [vmem:[%s21903_s13 + $0x408] sm:$0xf] }
  0x91   :  { %v593_v37 = vld [vmem:[%s21903_s13 + $0x418] sm:$0xf]  ;;  %590 = vst [vmem:[#allocation2 + $0x40c] sm:$0xf] %v589_v35  ;;  %592 = vst [vmem:[#allocation2 + $0x410] sm:$0xf] %v591_v36 }
  0x92   :  { %594 = vst [vmem:[#allocation2 + $0x414] sm:$0xf] %v593_v37  ;;  %v595_v38 = vld [vmem:[%s21903_s13 + $0x40c] sm:$0xf]  ;;  %v601_v40 = vld [vmem:[%s21903_s13 + $0x430] sm:$0xf] }
  0x93   :  { %596 = vst [vmem:[#allocation2 + $0x418] sm:$0xf] %v595_v38  ;;  %598 = vst [vmem:[#allocation2 + $0x41c] sm:$0xff] %v597_v39   ;;  %v603_v41 = vld [vmem:[%s21903_s13 + $0x424] sm:$0xf]  ;;  %v613_v46 = vld [vmem:[%s21903_s13 + $0x43c] sm:$0xff]  }
  0x94   :  { %602 = vst [vmem:[#allocation2 + $0x424] sm:$0xf] %v601_v40  ;;  %v605_v42 = vld [vmem:[%s21903_s13 + $0x434] sm:$0xf]  ;;  %v607_v43 = vld [vmem:[%s21903_s13 + $0x428] sm:$0xf] }
  0x95   :  { %604 = vst [vmem:[#allocation2 + $0x428] sm:$0xf] %v603_v41  ;;  %606 = vst [vmem:[#allocation2 + $0x42c] sm:$0xf] %v605_v42  ;;  %v609_v44 = vld [vmem:[%s21903_s13 + $0x438] sm:$0xf] }
  0x96   :  { %608 = vst [vmem:[#allocation2 + $0x430] sm:$0xf] %v607_v43  ;;  %v611_v45 = vld [vmem:[%s21903_s13 + $0x42c] sm:$0xf]  ;;  %610 = vst [vmem:[#allocation2 + $0x434] sm:$0xf] %v609_v44 }
  0x97   :  { %612 = vst [vmem:[#allocation2 + $0x438] sm:$0xf] %v611_v45  ;;  %614 = vst [vmem:[#allocation2 + $0x43c] sm:$0xff] %v613_v46   ;;  %v617_v47 = vld [vmem:[%s21903_s13 + $0x450] sm:$0xf]  ;;  %v629_v53 = vld [vmem:[%s21903_s13 + $0x45c] sm:$0xff]  }
  0x98   :  { %v619_v48 = vld [vmem:[%s21903_s13 + $0x444] sm:$0xf]  ;;  %v621_v49 = vld [vmem:[%s21903_s13 + $0x454] sm:$0xf]  ;;  %618 = vst [vmem:[#allocation2 + $0x444] sm:$0xf] %v617_v47 }
  0x99   :  { %620 = vst [vmem:[#allocation2 + $0x448] sm:$0xf] %v619_v48  ;;  %622 = vst [vmem:[#allocation2 + $0x44c] sm:$0xf] %v621_v49  ;;  %v623_v50 = vld [vmem:[%s21903_s13 + $0x448] sm:$0xf] }
  0x9a   :  { %v625_v51 = vld [vmem:[%s21903_s13 + $0x458] sm:$0xf]  ;;  %v627_v52 = vld [vmem:[%s21903_s13 + $0x44c] sm:$0xf]  ;;  %624 = vst [vmem:[#allocation2 + $0x450] sm:$0xf] %v623_v50 }
  0x9b   :  { %626 = vst [vmem:[#allocation2 + $0x454] sm:$0xf] %v625_v51  ;;  %628 = vst [vmem:[#allocation2 + $0x458] sm:$0xf] %v627_v52  ;;  %v633_v54 = vld [vmem:[%s21903_s13 + $0x470] sm:$0xf] }
  0x9c   :  { %v635_v55 = vld [vmem:[%s21903_s13 + $0x464] sm:$0xf]  ;;  %630 = vst [vmem:[#allocation2 + $0x45c] sm:$0xff] %v629_v53   ;;  %634 = vst [vmem:[#allocation2 + $0x464] sm:$0xf] %v633_v54  ;;  %v645_v60 = vld [vmem:[%s21903_s13 + $0x47c] sm:$0xff]  }
  0x9d   :  { %636 = vst [vmem:[#allocation2 + $0x468] sm:$0xf] %v635_v55  ;;  %v637_v56 = vld [vmem:[%s21903_s13 + $0x474] sm:$0xf]  ;;  %v639_v57 = vld [vmem:[%s21903_s13 + $0x468] sm:$0xf] }
  0x9e   :  { %v641_v58 = vld [vmem:[%s21903_s13 + $0x478] sm:$0xf]  ;;  %638 = vst [vmem:[#allocation2 + $0x46c] sm:$0xf] %v637_v56  ;;  %640 = vst [vmem:[#allocation2 + $0x470] sm:$0xf] %v639_v57 }
  0x9f   :  { %642 = vst [vmem:[#allocation2 + $0x474] sm:$0xf] %v641_v58  ;;  %v643_v59 = vld [vmem:[%s21903_s13 + $0x46c] sm:$0xf]  ;;  %v649_v61 = vld [vmem:[%s21903_s13 + $0x490] sm:$0xf] }
  0xa0   :  { %644 = vst [vmem:[#allocation2 + $0x478] sm:$0xf] %v643_v59  ;;  %646 = vst [vmem:[#allocation2 + $0x47c] sm:$0xff] %v645_v60   ;;  %v651_v62 = vld [vmem:[%s21903_s13 + $0x484] sm:$0xf]  ;;  %v661_v3 = vld [vmem:[%s21903_s13 + $0x49c] sm:$0xff]  }
  0xa1   :  { %650 = vst [vmem:[#allocation2 + $0x484] sm:$0xf] %v649_v61  ;;  %v653_v63 = vld [vmem:[%s21903_s13 + $0x494] sm:$0xf]  ;;  %v655_v0 = vld [vmem:[%s21903_s13 + $0x488] sm:$0xf] }
  0xa2   :  { %652 = vst [vmem:[#allocation2 + $0x488] sm:$0xf] %v651_v62  ;;  %654 = vst [vmem:[#allocation2 + $0x48c] sm:$0xf] %v653_v63  ;;  %v657_v1 = vld [vmem:[%s21903_s13 + $0x498] sm:$0xf] }
  0xa3   :  { %656 = vst [vmem:[#allocation2 + $0x490] sm:$0xf] %v655_v0  ;;  %v659_v2 = vld [vmem:[%s21903_s13 + $0x48c] sm:$0xf]  ;;  %658 = vst [vmem:[#allocation2 + $0x494] sm:$0xf] %v657_v1 }
  0xa4   :  { %660 = vst [vmem:[#allocation2 + $0x498] sm:$0xf] %v659_v2  ;;  %662 = vst [vmem:[#allocation2 + $0x49c] sm:$0xff] %v661_v3   ;;  %v665_v4 = vld [vmem:[%s21903_s13 + $0x4b0] sm:$0xf]  ;;  %v677_v10 = vld [vmem:[%s21903_s13 + $0x4bc] sm:$0xff]  }
  0xa5   :  { %v667_v5 = vld [vmem:[%s21903_s13 + $0x4a4] sm:$0xf]  ;;  %v669_v6 = vld [vmem:[%s21903_s13 + $0x4b4] sm:$0xf]  ;;  %666 = vst [vmem:[#allocation2 + $0x4a4] sm:$0xf] %v665_v4 }
  0xa6   :  { %668 = vst [vmem:[#allocation2 + $0x4a8] sm:$0xf] %v667_v5  ;;  %670 = vst [vmem:[#allocation2 + $0x4ac] sm:$0xf] %v669_v6  ;;  %v671_v7 = vld [vmem:[%s21903_s13 + $0x4a8] sm:$0xf] }
  0xa7   :  { %v673_v8 = vld [vmem:[%s21903_s13 + $0x4b8] sm:$0xf]  ;;  %v675_v9 = vld [vmem:[%s21903_s13 + $0x4ac] sm:$0xf]  ;;  %672 = vst [vmem:[#allocation2 + $0x4b0] sm:$0xf] %v671_v7 }
  0xa8   :  { %674 = vst [vmem:[#allocation2 + $0x4b4] sm:$0xf] %v673_v8  ;;  %676 = vst [vmem:[#allocation2 + $0x4b8] sm:$0xf] %v675_v9  ;;  %v681_v11 = vld [vmem:[%s21903_s13 + $0x4d0] sm:$0xf] }
  0xa9   :  { %v683_v12 = vld [vmem:[%s21903_s13 + $0x4c4] sm:$0xf]  ;;  %678 = vst [vmem:[#allocation2 + $0x4bc] sm:$0xff] %v677_v10   ;;  %682 = vst [vmem:[#allocation2 + $0x4c4] sm:$0xf] %v681_v11  ;;  %v693_v17 = vld [vmem:[%s21903_s13 + $0x4dc] sm:$0xff]  }
  0xaa   :  { %684 = vst [vmem:[#allocation2 + $0x4c8] sm:$0xf] %v683_v12  ;;  %v685_v13 = vld [vmem:[%s21903_s13 + $0x4d4] sm:$0xf]  ;;  %v687_v14 = vld [vmem:[%s21903_s13 + $0x4c8] sm:$0xf] }
  0xab   :  { %v689_v15 = vld [vmem:[%s21903_s13 + $0x4d8] sm:$0xf]  ;;  %686 = vst [vmem:[#allocation2 + $0x4cc] sm:$0xf] %v685_v13  ;;  %688 = vst [vmem:[#allocation2 + $0x4d0] sm:$0xf] %v687_v14 }
  0xac   :  { %690 = vst [vmem:[#allocation2 + $0x4d4] sm:$0xf] %v689_v15  ;;  %v691_v16 = vld [vmem:[%s21903_s13 + $0x4cc] sm:$0xf]  ;;  %v697_v18 = vld [vmem:[%s21903_s13 + $0x4f0] sm:$0xf] }
  0xad   :  { %692 = vst [vmem:[#allocation2 + $0x4d8] sm:$0xf] %v691_v16  ;;  %694 = vst [vmem:[#allocation2 + $0x4dc] sm:$0xff] %v693_v17   ;;  %v699_v19 = vld [vmem:[%s21903_s13 + $0x4e4] sm:$0xf]  ;;  %v709_v24 = vld [vmem:[%s21903_s13 + $0x4fc] sm:$0xff]  }
  0xae   :  { %698 = vst [vmem:[#allocation2 + $0x4e4] sm:$0xf] %v697_v18  ;;  %v701_v20 = vld [vmem:[%s21903_s13 + $0x4f4] sm:$0xf]  ;;  %v703_v21 = vld [vmem:[%s21903_s13 + $0x4e8] sm:$0xf] }
  0xaf   :  { %700 = vst [vmem:[#allocation2 + $0x4e8] sm:$0xf] %v699_v19  ;;  %702 = vst [vmem:[#allocation2 + $0x4ec] sm:$0xf] %v701_v20  ;;  %v705_v22 = vld [vmem:[%s21903_s13 + $0x4f8] sm:$0xf] }
  0xb0   :  { %704 = vst [vmem:[#allocation2 + $0x4f0] sm:$0xf] %v703_v21  ;;  %v707_v23 = vld [vmem:[%s21903_s13 + $0x4ec] sm:$0xf]  ;;  %706 = vst [vmem:[#allocation2 + $0x4f4] sm:$0xf] %v705_v22 }
  0xb1   :  { %708 = vst [vmem:[#allocation2 + $0x4f8] sm:$0xf] %v707_v23  ;;  %710 = vst [vmem:[#allocation2 + $0x4fc] sm:$0xff] %v709_v24   ;;  %v713_v25 = vld [vmem:[%s21903_s13 + $0x510] sm:$0xf]  ;;  %v725_v31 = vld [vmem:[%s21903_s13 + $0x51c] sm:$0xff]  }
  0xb2   :  { %v715_v26 = vld [vmem:[%s21903_s13 + $0x504] sm:$0xf]  ;;  %v717_v27 = vld [vmem:[%s21903_s13 + $0x514] sm:$0xf]  ;;  %714 = vst [vmem:[#allocation2 + $0x504] sm:$0xf] %v713_v25 }
  0xb3   :  { %716 = vst [vmem:[#allocation2 + $0x508] sm:$0xf] %v715_v26  ;;  %718 = vst [vmem:[#allocation2 + $0x50c] sm:$0xf] %v717_v27  ;;  %v719_v28 = vld [vmem:[%s21903_s13 + $0x508] sm:$0xf] }
  0xb4   :  { %v721_v29 = vld [vmem:[%s21903_s13 + $0x518] sm:$0xf]  ;;  %v723_v30 = vld [vmem:[%s21903_s13 + $0x50c] sm:$0xf]  ;;  %720 = vst [vmem:[#allocation2 + $0x510] sm:$0xf] %v719_v28 }
  0xb5   :  { %722 = vst [vmem:[#allocation2 + $0x514] sm:$0xf] %v721_v29  ;;  %724 = vst [vmem:[#allocation2 + $0x518] sm:$0xf] %v723_v30  ;;  %v729_v32 = vld [vmem:[%s21903_s13 + $0x530] sm:$0xf] }
  0xb6   :  { %v731_v33 = vld [vmem:[%s21903_s13 + $0x524] sm:$0xf]  ;;  %726 = vst [vmem:[#allocation2 + $0x51c] sm:$0xff] %v725_v31   ;;  %730 = vst [vmem:[#allocation2 + $0x524] sm:$0xf] %v729_v32  ;;  %v741_v38 = vld [vmem:[%s21903_s13 + $0x53c] sm:$0xff]  }
  0xb7   :  { %732 = vst [vmem:[#allocation2 + $0x528] sm:$0xf] %v731_v33  ;;  %v733_v34 = vld [vmem:[%s21903_s13 + $0x534] sm:$0xf]  ;;  %v735_v35 = vld [vmem:[%s21903_s13 + $0x528] sm:$0xf] }
  0xb8   :  { %v737_v36 = vld [vmem:[%s21903_s13 + $0x538] sm:$0xf]  ;;  %734 = vst [vmem:[#allocation2 + $0x52c] sm:$0xf] %v733_v34  ;;  %736 = vst [vmem:[#allocation2 + $0x530] sm:$0xf] %v735_v35 }
  0xb9   :  { %738 = vst [vmem:[#allocation2 + $0x534] sm:$0xf] %v737_v36  ;;  %v739_v37 = vld [vmem:[%s21903_s13 + $0x52c] sm:$0xf]  ;;  %v745_v39 = vld [vmem:[%s21903_s13 + $0x550] sm:$0xf] }
  0xba   :  { %740 = vst [vmem:[#allocation2 + $0x538] sm:$0xf] %v739_v37  ;;  %742 = vst [vmem:[#allocation2 + $0x53c] sm:$0xff] %v741_v38   ;;  %v747_v40 = vld [vmem:[%s21903_s13 + $0x544] sm:$0xf]  ;;  %v757_v45 = vld [vmem:[%s21903_s13 + $0x55c] sm:$0xff]  }
  0xbb   :  { %746 = vst [vmem:[#allocation2 + $0x544] sm:$0xf] %v745_v39  ;;  %v749_v41 = vld [vmem:[%s21903_s13 + $0x554] sm:$0xf]  ;;  %v751_v42 = vld [vmem:[%s21903_s13 + $0x548] sm:$0xf] }
  0xbc   :  { %748 = vst [vmem:[#allocation2 + $0x548] sm:$0xf] %v747_v40  ;;  %750 = vst [vmem:[#allocation2 + $0x54c] sm:$0xf] %v749_v41  ;;  %v753_v43 = vld [vmem:[%s21903_s13 + $0x558] sm:$0xf] }
  0xbd   :  { %752 = vst [vmem:[#allocation2 + $0x550] sm:$0xf] %v751_v42  ;;  %v755_v44 = vld [vmem:[%s21903_s13 + $0x54c] sm:$0xf]  ;;  %754 = vst [vmem:[#allocation2 + $0x554] sm:$0xf] %v753_v43 }
  0xbe   :  { %756 = vst [vmem:[#allocation2 + $0x558] sm:$0xf] %v755_v44  ;;  %758 = vst [vmem:[#allocation2 + $0x55c] sm:$0xff] %v757_v45   ;;  %v761_v46 = vld [vmem:[%s21903_s13 + $0x570] sm:$0xf]  ;;  %v773_v52 = vld [vmem:[%s21903_s13 + $0x57c] sm:$0xff]  }
  0xbf   :  { %v763_v47 = vld [vmem:[%s21903_s13 + $0x564] sm:$0xf]  ;;  %v765_v48 = vld [vmem:[%s21903_s13 + $0x574] sm:$0xf]  ;;  %762 = vst [vmem:[#allocation2 + $0x564] sm:$0xf] %v761_v46 }
  0xc0   :  { %764 = vst [vmem:[#allocation2 + $0x568] sm:$0xf] %v763_v47  ;;  %766 = vst [vmem:[#allocation2 + $0x56c] sm:$0xf] %v765_v48  ;;  %v767_v49 = vld [vmem:[%s21903_s13 + $0x568] sm:$0xf] }
  0xc1   :  { %v769_v50 = vld [vmem:[%s21903_s13 + $0x578] sm:$0xf]  ;;  %v771_v51 = vld [vmem:[%s21903_s13 + $0x56c] sm:$0xf]  ;;  %768 = vst [vmem:[#allocation2 + $0x570] sm:$0xf] %v767_v49 }
  0xc2   :  { %770 = vst [vmem:[#allocation2 + $0x574] sm:$0xf] %v769_v50  ;;  %772 = vst [vmem:[#allocation2 + $0x578] sm:$0xf] %v771_v51  ;;  %v777_v53 = vld [vmem:[%s21903_s13 + $0x590] sm:$0xf] }
  0xc3   :  { %v779_v54 = vld [vmem:[%s21903_s13 + $0x584] sm:$0xf]  ;;  %774 = vst [vmem:[#allocation2 + $0x57c] sm:$0xff] %v773_v52   ;;  %778 = vst [vmem:[#allocation2 + $0x584] sm:$0xf] %v777_v53  ;;  %v789_v59 = vld [vmem:[%s21903_s13 + $0x59c] sm:$0xff]  }
  0xc4   :  { %780 = vst [vmem:[#allocation2 + $0x588] sm:$0xf] %v779_v54  ;;  %v781_v55 = vld [vmem:[%s21903_s13 + $0x594] sm:$0xf]  ;;  %v783_v56 = vld [vmem:[%s21903_s13 + $0x588] sm:$0xf] }
  0xc5   :  { %v785_v57 = vld [vmem:[%s21903_s13 + $0x598] sm:$0xf]  ;;  %782 = vst [vmem:[#allocation2 + $0x58c] sm:$0xf] %v781_v55  ;;  %784 = vst [vmem:[#allocation2 + $0x590] sm:$0xf] %v783_v56 }
  0xc6   :  { %786 = vst [vmem:[#allocation2 + $0x594] sm:$0xf] %v785_v57  ;;  %v787_v58 = vld [vmem:[%s21903_s13 + $0x58c] sm:$0xf]  ;;  %v793_v60 = vld [vmem:[%s21903_s13 + $0x5b0] sm:$0xf] }
  0xc7   :  { %788 = vst [vmem:[#allocation2 + $0x598] sm:$0xf] %v787_v58  ;;  %790 = vst [vmem:[#allocation2 + $0x59c] sm:$0xff] %v789_v59   ;;  %v795_v61 = vld [vmem:[%s21903_s13 + $0x5a4] sm:$0xf]  ;;  %v805_v2 = vld [vmem:[%s21903_s13 + $0x5bc] sm:$0xff]  }
  0xc8   :  { %794 = vst [vmem:[#allocation2 + $0x5a4] sm:$0xf] %v793_v60  ;;  %v797_v62 = vld [vmem:[%s21903_s13 + $0x5b4] sm:$0xf]  ;;  %v799_v63 = vld [vmem:[%s21903_s13 + $0x5a8] sm:$0xf] }
  0xc9   :  { %796 = vst [vmem:[#allocation2 + $0x5a8] sm:$0xf] %v795_v61  ;;  %798 = vst [vmem:[#allocation2 + $0x5ac] sm:$0xf] %v797_v62  ;;  %v801_v0 = vld [vmem:[%s21903_s13 + $0x5b8] sm:$0xf] }
  0xca   :  { %800 = vst [vmem:[#allocation2 + $0x5b0] sm:$0xf] %v799_v63  ;;  %v803_v1 = vld [vmem:[%s21903_s13 + $0x5ac] sm:$0xf]  ;;  %802 = vst [vmem:[#allocation2 + $0x5b4] sm:$0xf] %v801_v0 }
  0xcb   :  { %804 = vst [vmem:[#allocation2 + $0x5b8] sm:$0xf] %v803_v1  ;;  %806 = vst [vmem:[#allocation2 + $0x5bc] sm:$0xff] %v805_v2   ;;  %v809_v3 = vld [vmem:[%s21903_s13 + $0x5d0] sm:$0xf]  ;;  %v821_v9 = vld [vmem:[%s21903_s13 + $0x5dc] sm:$0xff]  }
  0xcc   :  { %v811_v4 = vld [vmem:[%s21903_s13 + $0x5c4] sm:$0xf]  ;;  %v813_v5 = vld [vmem:[%s21903_s13 + $0x5d4] sm:$0xf]  ;;  %810 = vst [vmem:[#allocation2 + $0x5c4] sm:$0xf] %v809_v3 }
  0xcd   :  { %812 = vst [vmem:[#allocation2 + $0x5c8] sm:$0xf] %v811_v4  ;;  %814 = vst [vmem:[#allocation2 + $0x5cc] sm:$0xf] %v813_v5  ;;  %v815_v6 = vld [vmem:[%s21903_s13 + $0x5c8] sm:$0xf] }
  0xce   :  { %v817_v7 = vld [vmem:[%s21903_s13 + $0x5d8] sm:$0xf]  ;;  %v819_v8 = vld [vmem:[%s21903_s13 + $0x5cc] sm:$0xf]  ;;  %816 = vst [vmem:[#allocation2 + $0x5d0] sm:$0xf] %v815_v6 }
  0xcf   :  { %818 = vst [vmem:[#allocation2 + $0x5d4] sm:$0xf] %v817_v7  ;;  %820 = vst [vmem:[#allocation2 + $0x5d8] sm:$0xf] %v819_v8  ;;  %v825_v10 = vld [vmem:[%s21903_s13 + $0x5f0] sm:$0xf] }
  0xd0   :  { %v827_v11 = vld [vmem:[%s21903_s13 + $0x5e4] sm:$0xf]  ;;  %822 = vst [vmem:[#allocation2 + $0x5dc] sm:$0xff] %v821_v9   ;;  %826 = vst [vmem:[#allocation2 + $0x5e4] sm:$0xf] %v825_v10  ;;  %v837_v16 = vld [vmem:[%s21903_s13 + $0x5fc] sm:$0xff]  }
  0xd1   :  { %828 = vst [vmem:[#allocation2 + $0x5e8] sm:$0xf] %v827_v11  ;;  %v829_v12 = vld [vmem:[%s21903_s13 + $0x5f4] sm:$0xf]  ;;  %v831_v13 = vld [vmem:[%s21903_s13 + $0x5e8] sm:$0xf] }
  0xd2   :  { %v833_v14 = vld [vmem:[%s21903_s13 + $0x5f8] sm:$0xf]  ;;  %830 = vst [vmem:[#allocation2 + $0x5ec] sm:$0xf] %v829_v12  ;;  %832 = vst [vmem:[#allocation2 + $0x5f0] sm:$0xf] %v831_v13 }
  0xd3   :  { %834 = vst [vmem:[#allocation2 + $0x5f4] sm:$0xf] %v833_v14  ;;  %v835_v15 = vld [vmem:[%s21903_s13 + $0x5ec] sm:$0xf]  ;;  %v841_v17 = vld [vmem:[%s21903_s13 + $0x610] sm:$0xf] }
  0xd4   :  { %836 = vst [vmem:[#allocation2 + $0x5f8] sm:$0xf] %v835_v15  ;;  %838 = vst [vmem:[#allocation2 + $0x5fc] sm:$0xff] %v837_v16   ;;  %v843_v18 = vld [vmem:[%s21903_s13 + $0x604] sm:$0xf]  ;;  %v853_v23 = vld [vmem:[%s21903_s13 + $0x61c] sm:$0xff]  }
  0xd5   :  { %842 = vst [vmem:[#allocation2 + $0x604] sm:$0xf] %v841_v17  ;;  %v845_v19 = vld [vmem:[%s21903_s13 + $0x614] sm:$0xf]  ;;  %v847_v20 = vld [vmem:[%s21903_s13 + $0x608] sm:$0xf] }
  0xd6   :  { %844 = vst [vmem:[#allocation2 + $0x608] sm:$0xf] %v843_v18  ;;  %846 = vst [vmem:[#allocation2 + $0x60c] sm:$0xf] %v845_v19  ;;  %v849_v21 = vld [vmem:[%s21903_s13 + $0x618] sm:$0xf] }
  0xd7   :  { %848 = vst [vmem:[#allocation2 + $0x610] sm:$0xf] %v847_v20  ;;  %v851_v22 = vld [vmem:[%s21903_s13 + $0x60c] sm:$0xf]  ;;  %850 = vst [vmem:[#allocation2 + $0x614] sm:$0xf] %v849_v21 }
  0xd8   :  { %852 = vst [vmem:[#allocation2 + $0x618] sm:$0xf] %v851_v22  ;;  %854 = vst [vmem:[#allocation2 + $0x61c] sm:$0xff] %v853_v23   ;;  %v857_v24 = vld [vmem:[%s21903_s13 + $0x630] sm:$0xf]  ;;  %v869_v30 = vld [vmem:[%s21903_s13 + $0x63c] sm:$0xff]  }
  0xd9   :  { %v859_v25 = vld [vmem:[%s21903_s13 + $0x624] sm:$0xf]  ;;  %v861_v26 = vld [vmem:[%s21903_s13 + $0x634] sm:$0xf]  ;;  %858 = vst [vmem:[#allocation2 + $0x624] sm:$0xf] %v857_v24 }
  0xda   :  { %860 = vst [vmem:[#allocation2 + $0x628] sm:$0xf] %v859_v25  ;;  %862 = vst [vmem:[#allocation2 + $0x62c] sm:$0xf] %v861_v26  ;;  %v863_v27 = vld [vmem:[%s21903_s13 + $0x628] sm:$0xf] }
  0xdb   :  { %v865_v28 = vld [vmem:[%s21903_s13 + $0x638] sm:$0xf]  ;;  %v867_v29 = vld [vmem:[%s21903_s13 + $0x62c] sm:$0xf]  ;;  %864 = vst [vmem:[#allocation2 + $0x630] sm:$0xf] %v863_v27 }
  0xdc   :  { %866 = vst [vmem:[#allocation2 + $0x634] sm:$0xf] %v865_v28  ;;  %868 = vst [vmem:[#allocation2 + $0x638] sm:$0xf] %v867_v29  ;;  %v873_v31 = vld [vmem:[%s21903_s13 + $0x650] sm:$0xf] }
  0xdd   :  { %v875_v32 = vld [vmem:[%s21903_s13 + $0x644] sm:$0xf]  ;;  %870 = vst [vmem:[#allocation2 + $0x63c] sm:$0xff] %v869_v30   ;;  %874 = vst [vmem:[#allocation2 + $0x644] sm:$0xf] %v873_v31  ;;  %v885_v37 = vld [vmem:[%s21903_s13 + $0x65c] sm:$0xff]  }
  0xde   :  { %876 = vst [vmem:[#allocation2 + $0x648] sm:$0xf] %v875_v32  ;;  %v877_v33 = vld [vmem:[%s21903_s13 + $0x654] sm:$0xf]  ;;  %v879_v34 = vld [vmem:[%s21903_s13 + $0x648] sm:$0xf] }
  0xdf   :  { %v881_v35 = vld [vmem:[%s21903_s13 + $0x658] sm:$0xf]  ;;  %878 = vst [vmem:[#allocation2 + $0x64c] sm:$0xf] %v877_v33  ;;  %880 = vst [vmem:[#allocation2 + $0x650] sm:$0xf] %v879_v34 }
  0xe0   :  { %882 = vst [vmem:[#allocation2 + $0x654] sm:$0xf] %v881_v35  ;;  %v883_v36 = vld [vmem:[%s21903_s13 + $0x64c] sm:$0xf]  ;;  %v889_v38 = vld [vmem:[%s21903_s13 + $0x670] sm:$0xf] }
  0xe1   :  { %884 = vst [vmem:[#allocation2 + $0x658] sm:$0xf] %v883_v36  ;;  %886 = vst [vmem:[#allocation2 + $0x65c] sm:$0xff] %v885_v37   ;;  %v891_v39 = vld [vmem:[%s21903_s13 + $0x664] sm:$0xf]  ;;  %v901_v44 = vld [vmem:[%s21903_s13 + $0x67c] sm:$0xff]  }
  0xe2   :  { %890 = vst [vmem:[#allocation2 + $0x664] sm:$0xf] %v889_v38  ;;  %v893_v40 = vld [vmem:[%s21903_s13 + $0x674] sm:$0xf]  ;;  %v895_v41 = vld [vmem:[%s21903_s13 + $0x668] sm:$0xf] }
  0xe3   :  { %892 = vst [vmem:[#allocation2 + $0x668] sm:$0xf] %v891_v39  ;;  %894 = vst [vmem:[#allocation2 + $0x66c] sm:$0xf] %v893_v40  ;;  %v897_v42 = vld [vmem:[%s21903_s13 + $0x678] sm:$0xf] }
  0xe4   :  { %896 = vst [vmem:[#allocation2 + $0x670] sm:$0xf] %v895_v41  ;;  %v899_v43 = vld [vmem:[%s21903_s13 + $0x66c] sm:$0xf]  ;;  %898 = vst [vmem:[#allocation2 + $0x674] sm:$0xf] %v897_v42 }
  0xe5   :  { %900 = vst [vmem:[#allocation2 + $0x678] sm:$0xf] %v899_v43  ;;  %902 = vst [vmem:[#allocation2 + $0x67c] sm:$0xff] %v901_v44   ;;  %v905_v45 = vld [vmem:[%s21903_s13 + $0x690] sm:$0xf]  ;;  %v917_v51 = vld [vmem:[%s21903_s13 + $0x69c] sm:$0xff]  }
  0xe6   :  { %v907_v46 = vld [vmem:[%s21903_s13 + $0x684] sm:$0xf]  ;;  %v909_v47 = vld [vmem:[%s21903_s13 + $0x694] sm:$0xf]  ;;  %906 = vst [vmem:[#allocation2 + $0x684] sm:$0xf] %v905_v45 }
  0xe7   :  { %908 = vst [vmem:[#allocation2 + $0x688] sm:$0xf] %v907_v46  ;;  %910 = vst [vmem:[#allocation2 + $0x68c] sm:$0xf] %v909_v47  ;;  %v911_v48 = vld [vmem:[%s21903_s13 + $0x688] sm:$0xf] }
  0xe8   :  { %v913_v49 = vld [vmem:[%s21903_s13 + $0x698] sm:$0xf]  ;;  %v915_v50 = vld [vmem:[%s21903_s13 + $0x68c] sm:$0xf]  ;;  %912 = vst [vmem:[#allocation2 + $0x690] sm:$0xf] %v911_v48 }
  0xe9   :  { %914 = vst [vmem:[#allocation2 + $0x694] sm:$0xf] %v913_v49  ;;  %916 = vst [vmem:[#allocation2 + $0x698] sm:$0xf] %v915_v50  ;;  %v921_v52 = vld [vmem:[%s21903_s13 + $0x6b0] sm:$0xf] }
  0xea   :  { %v923_v53 = vld [vmem:[%s21903_s13 + $0x6a4] sm:$0xf]  ;;  %918 = vst [vmem:[#allocation2 + $0x69c] sm:$0xff] %v917_v51   ;;  %922 = vst [vmem:[#allocation2 + $0x6a4] sm:$0xf] %v921_v52  ;;  %v933_v58 = vld [vmem:[%s21903_s13 + $0x6bc] sm:$0xff]  }
  0xeb   :  { %924 = vst [vmem:[#allocation2 + $0x6a8] sm:$0xf] %v923_v53  ;;  %v925_v54 = vld [vmem:[%s21903_s13 + $0x6b4] sm:$0xf]  ;;  %v927_v55 = vld [vmem:[%s21903_s13 + $0x6a8] sm:$0xf] }
  0xec   :  { %v929_v56 = vld [vmem:[%s21903_s13 + $0x6b8] sm:$0xf]  ;;  %926 = vst [vmem:[#allocation2 + $0x6ac] sm:$0xf] %v925_v54  ;;  %928 = vst [vmem:[#allocation2 + $0x6b0] sm:$0xf] %v927_v55 }
  0xed   :  { %930 = vst [vmem:[#allocation2 + $0x6b4] sm:$0xf] %v929_v56  ;;  %v931_v57 = vld [vmem:[%s21903_s13 + $0x6ac] sm:$0xf]  ;;  %v937_v59 = vld [vmem:[%s21903_s13 + $0x6d0] sm:$0xf] }
  0xee   :  { %932 = vst [vmem:[#allocation2 + $0x6b8] sm:$0xf] %v931_v57  ;;  %934 = vst [vmem:[#allocation2 + $0x6bc] sm:$0xff] %v933_v58   ;;  %v939_v60 = vld [vmem:[%s21903_s13 + $0x6c4] sm:$0xf]  ;;  %v949_v1 = vld [vmem:[%s21903_s13 + $0x6dc] sm:$0xff]  }
  0xef   :  { %938 = vst [vmem:[#allocation2 + $0x6c4] sm:$0xf] %v937_v59  ;;  %v941_v61 = vld [vmem:[%s21903_s13 + $0x6d4] sm:$0xf]  ;;  %v943_v62 = vld [vmem:[%s21903_s13 + $0x6c8] sm:$0xf] }
  0xf0   :  { %940 = vst [vmem:[#allocation2 + $0x6c8] sm:$0xf] %v939_v60  ;;  %942 = vst [vmem:[#allocation2 + $0x6cc] sm:$0xf] %v941_v61  ;;  %v945_v63 = vld [vmem:[%s21903_s13 + $0x6d8] sm:$0xf] }
  0xf1   :  { %944 = vst [vmem:[#allocation2 + $0x6d0] sm:$0xf] %v943_v62  ;;  %v947_v0 = vld [vmem:[%s21903_s13 + $0x6cc] sm:$0xf]  ;;  %946 = vst [vmem:[#allocation2 + $0x6d4] sm:$0xf] %v945_v63 }
  0xf2   :  { %948 = vst [vmem:[#allocation2 + $0x6d8] sm:$0xf] %v947_v0  ;;  %950 = vst [vmem:[#allocation2 + $0x6dc] sm:$0xff] %v949_v1   ;;  %v953_v2 = vld [vmem:[%s21903_s13 + $0x6f0] sm:$0xf]  ;;  %v965_v8 = vld [vmem:[%s21903_s13 + $0x6fc] sm:$0xff]  }
  0xf3   :  { %v955_v3 = vld [vmem:[%s21903_s13 + $0x6e4] sm:$0xf]  ;;  %v957_v4 = vld [vmem:[%s21903_s13 + $0x6f4] sm:$0xf]  ;;  %954 = vst [vmem:[#allocation2 + $0x6e4] sm:$0xf] %v953_v2 }
  0xf4   :  { %956 = vst [vmem:[#allocation2 + $0x6e8] sm:$0xf] %v955_v3  ;;  %958 = vst [vmem:[#allocation2 + $0x6ec] sm:$0xf] %v957_v4  ;;  %v959_v5 = vld [vmem:[%s21903_s13 + $0x6e8] sm:$0xf] }
  0xf5   :  { %v961_v6 = vld [vmem:[%s21903_s13 + $0x6f8] sm:$0xf]  ;;  %v963_v7 = vld [vmem:[%s21903_s13 + $0x6ec] sm:$0xf]  ;;  %960 = vst [vmem:[#allocation2 + $0x6f0] sm:$0xf] %v959_v5 }
  0xf6   :  { %962 = vst [vmem:[#allocation2 + $0x6f4] sm:$0xf] %v961_v6  ;;  %964 = vst [vmem:[#allocation2 + $0x6f8] sm:$0xf] %v963_v7  ;;  %v969_v9 = vld [vmem:[%s21903_s13 + $0x710] sm:$0xf] }
  0xf7   :  { %v971_v10 = vld [vmem:[%s21903_s13 + $0x704] sm:$0xf]  ;;  %966 = vst [vmem:[#allocation2 + $0x6fc] sm:$0xff] %v965_v8   ;;  %970 = vst [vmem:[#allocation2 + $0x704] sm:$0xf] %v969_v9  ;;  %v981_v15 = vld [vmem:[%s21903_s13 + $0x71c] sm:$0xff]  }
  0xf8   :  { %972 = vst [vmem:[#allocation2 + $0x708] sm:$0xf] %v971_v10  ;;  %v973_v11 = vld [vmem:[%s21903_s13 + $0x714] sm:$0xf]  ;;  %v975_v12 = vld [vmem:[%s21903_s13 + $0x708] sm:$0xf] }
  0xf9   :  { %v977_v13 = vld [vmem:[%s21903_s13 + $0x718] sm:$0xf]  ;;  %974 = vst [vmem:[#allocation2 + $0x70c] sm:$0xf] %v973_v11  ;;  %976 = vst [vmem:[#allocation2 + $0x710] sm:$0xf] %v975_v12 }
  0xfa   :  { %978 = vst [vmem:[#allocation2 + $0x714] sm:$0xf] %v977_v13  ;;  %v979_v14 = vld [vmem:[%s21903_s13 + $0x70c] sm:$0xf]  ;;  %v985_v16 = vld [vmem:[%s21903_s13 + $0x730] sm:$0xf] }
  0xfb   :  { %980 = vst [vmem:[#allocation2 + $0x718] sm:$0xf] %v979_v14  ;;  %982 = vst [vmem:[#allocation2 + $0x71c] sm:$0xff] %v981_v15   ;;  %v987_v17 = vld [vmem:[%s21903_s13 + $0x724] sm:$0xf]  ;;  %v997_v22 = vld [vmem:[%s21903_s13 + $0x73c] sm:$0xff]  }
  0xfc   :  { %986 = vst [vmem:[#allocation2 + $0x724] sm:$0xf] %v985_v16  ;;  %v989_v18 = vld [vmem:[%s21903_s13 + $0x734] sm:$0xf]  ;;  %v991_v19 = vld [vmem:[%s21903_s13 + $0x728] sm:$0xf] }
  0xfd   :  { %988 = vst [vmem:[#allocation2 + $0x728] sm:$0xf] %v987_v17  ;;  %990 = vst [vmem:[#allocation2 + $0x72c] sm:$0xf] %v989_v18  ;;  %v993_v20 = vld [vmem:[%s21903_s13 + $0x738] sm:$0xf] }
  0xfe   :  { %992 = vst [vmem:[#allocation2 + $0x730] sm:$0xf] %v991_v19  ;;  %v995_v21 = vld [vmem:[%s21903_s13 + $0x72c] sm:$0xf]  ;;  %994 = vst [vmem:[#allocation2 + $0x734] sm:$0xf] %v993_v20 }
  0xff   :  { %996 = vst [vmem:[#allocation2 + $0x738] sm:$0xf] %v995_v21  ;;  %998 = vst [vmem:[#allocation2 + $0x73c] sm:$0xff] %v997_v22   ;;  %v1001_v23 = vld [vmem:[%s21903_s13 + $0x750] sm:$0xf]  ;;  %v1013_v29 = vld [vmem:[%s21903_s13 + $0x75c] sm:$0xff]  }
 0x100   :  { %v1003_v24 = vld [vmem:[%s21903_s13 + $0x744] sm:$0xf]  ;;  %v1005_v25 = vld [vmem:[%s21903_s13 + $0x754] sm:$0xf]  ;;  %1002 = vst [vmem:[#allocation2 + $0x744] sm:$0xf] %v1001_v23 }
 0x101   :  { %1004 = vst [vmem:[#allocation2 + $0x748] sm:$0xf] %v1003_v24  ;;  %1006 = vst [vmem:[#allocation2 + $0x74c] sm:$0xf] %v1005_v25  ;;  %v1007_v26 = vld [vmem:[%s21903_s13 + $0x748] sm:$0xf] }
 0x102   :  { %v1009_v27 = vld [vmem:[%s21903_s13 + $0x758] sm:$0xf]  ;;  %v1011_v28 = vld [vmem:[%s21903_s13 + $0x74c] sm:$0xf]  ;;  %1008 = vst [vmem:[#allocation2 + $0x750] sm:$0xf] %v1007_v26 }
 0x103   :  { %1010 = vst [vmem:[#allocation2 + $0x754] sm:$0xf] %v1009_v27  ;;  %1012 = vst [vmem:[#allocation2 + $0x758] sm:$0xf] %v1011_v28  ;;  %v1017_v30 = vld [vmem:[%s21903_s13 + $0x770] sm:$0xf] }
 0x104   :  { %v1019_v31 = vld [vmem:[%s21903_s13 + $0x764] sm:$0xf]  ;;  %1014 = vst [vmem:[#allocation2 + $0x75c] sm:$0xff] %v1013_v29   ;;  %1018 = vst [vmem:[#allocation2 + $0x764] sm:$0xf] %v1017_v30  ;;  %v1029_v36 = vld [vmem:[%s21903_s13 + $0x77c] sm:$0xff]  }
 0x105   :  { %1020 = vst [vmem:[#allocation2 + $0x768] sm:$0xf] %v1019_v31  ;;  %v1021_v32 = vld [vmem:[%s21903_s13 + $0x774] sm:$0xf]  ;;  %v1023_v33 = vld [vmem:[%s21903_s13 + $0x768] sm:$0xf] }
 0x106   :  { %v1025_v34 = vld [vmem:[%s21903_s13 + $0x778] sm:$0xf]  ;;  %1022 = vst [vmem:[#allocation2 + $0x76c] sm:$0xf] %v1021_v32  ;;  %1024 = vst [vmem:[#allocation2 + $0x770] sm:$0xf] %v1023_v33 }
 0x107   :  { %1026 = vst [vmem:[#allocation2 + $0x774] sm:$0xf] %v1025_v34  ;;  %v1027_v35 = vld [vmem:[%s21903_s13 + $0x76c] sm:$0xf]  ;;  %v1033_v37 = vld [vmem:[%s21903_s13 + $0x790] sm:$0xf] }
 0x108   :  { %1028 = vst [vmem:[#allocation2 + $0x778] sm:$0xf] %v1027_v35  ;;  %1030 = vst [vmem:[#allocation2 + $0x77c] sm:$0xff] %v1029_v36   ;;  %v1035_v38 = vld [vmem:[%s21903_s13 + $0x784] sm:$0xf]  ;;  %v1045_v43 = vld [vmem:[%s21903_s13 + $0x79c] sm:$0xff]  }
 0x109   :  { %1034 = vst [vmem:[#allocation2 + $0x784] sm:$0xf] %v1033_v37  ;;  %v1037_v39 = vld [vmem:[%s21903_s13 + $0x794] sm:$0xf]  ;;  %v1039_v40 = vld [vmem:[%s21903_s13 + $0x788] sm:$0xf] }
 0x10a   :  { %1036 = vst [vmem:[#allocation2 + $0x788] sm:$0xf] %v1035_v38  ;;  %1038 = vst [vmem:[#allocation2 + $0x78c] sm:$0xf] %v1037_v39  ;;  %v1041_v41 = vld [vmem:[%s21903_s13 + $0x798] sm:$0xf] }
 0x10b   :  { %1040 = vst [vmem:[#allocation2 + $0x790] sm:$0xf] %v1039_v40  ;;  %v1043_v42 = vld [vmem:[%s21903_s13 + $0x78c] sm:$0xf]  ;;  %1042 = vst [vmem:[#allocation2 + $0x794] sm:$0xf] %v1041_v41 }
 0x10c   :  { %1044 = vst [vmem:[#allocation2 + $0x798] sm:$0xf] %v1043_v42  ;;  %1046 = vst [vmem:[#allocation2 + $0x79c] sm:$0xff] %v1045_v43   ;;  %v1049_v44 = vld [vmem:[%s21903_s13 + $0x7b0] sm:$0xf]  ;;  %v1061_v50 = vld [vmem:[%s21903_s13 + $0x7bc] sm:$0xff]  }
 0x10d   :  { %v1051_v45 = vld [vmem:[%s21903_s13 + $0x7a4] sm:$0xf]  ;;  %v1053_v46 = vld [vmem:[%s21903_s13 + $0x7b4] sm:$0xf]  ;;  %1050 = vst [vmem:[#allocation2 + $0x7a4] sm:$0xf] %v1049_v44 }
 0x10e   :  { %1052 = vst [vmem:[#allocation2 + $0x7a8] sm:$0xf] %v1051_v45  ;;  %1054 = vst [vmem:[#allocation2 + $0x7ac] sm:$0xf] %v1053_v46  ;;  %v1055_v47 = vld [vmem:[%s21903_s13 + $0x7a8] sm:$0xf] }
 0x10f   :  { %v1057_v48 = vld [vmem:[%s21903_s13 + $0x7b8] sm:$0xf]  ;;  %v1059_v49 = vld [vmem:[%s21903_s13 + $0x7ac] sm:$0xf]  ;;  %1056 = vst [vmem:[#allocation2 + $0x7b0] sm:$0xf] %v1055_v47 }
 0x110   :  { %1058 = vst [vmem:[#allocation2 + $0x7b4] sm:$0xf] %v1057_v48  ;;  %1060 = vst [vmem:[#allocation2 + $0x7b8] sm:$0xf] %v1059_v49  ;;  %v1065_v51 = vld [vmem:[%s21903_s13 + $0x7d0] sm:$0xf] }
 0x111   :  { %v1067_v52 = vld [vmem:[%s21903_s13 + $0x7c4] sm:$0xf]  ;;  %1062 = vst [vmem:[#allocation2 + $0x7bc] sm:$0xff] %v1061_v50   ;;  %1066 = vst [vmem:[#allocation2 + $0x7c4] sm:$0xf] %v1065_v51  ;;  %v1077_v57 = vld [vmem:[%s21903_s13 + $0x7dc] sm:$0xff]  }
 0x112   :  { %1068 = vst [vmem:[#allocation2 + $0x7c8] sm:$0xf] %v1067_v52  ;;  %v1069_v53 = vld [vmem:[%s21903_s13 + $0x7d4] sm:$0xf]  ;;  %v1071_v54 = vld [vmem:[%s21903_s13 + $0x7c8] sm:$0xf] }
 0x113   :  { %v1073_v55 = vld [vmem:[%s21903_s13 + $0x7d8] sm:$0xf]  ;;  %1070 = vst [vmem:[#allocation2 + $0x7cc] sm:$0xf] %v1069_v53  ;;  %1072 = vst [vmem:[#allocation2 + $0x7d0] sm:$0xf] %v1071_v54 }
 0x114   :  { %1074 = vst [vmem:[#allocation2 + $0x7d4] sm:$0xf] %v1073_v55  ;;  %v1075_v56 = vld [vmem:[%s21903_s13 + $0x7cc] sm:$0xf]  ;;  %v1081_v58 = vld [vmem:[%s21903_s13 + $0x7f0] sm:$0xf] }
 0x115   :  { %1076 = vst [vmem:[#allocation2 + $0x7d8] sm:$0xf] %v1075_v56  ;;  %1078 = vst [vmem:[#allocation2 + $0x7dc] sm:$0xff] %v1077_v57   ;;  %v1083_v59 = vld [vmem:[%s21903_s13 + $0x7e4] sm:$0xf] }
 0x116   :  { %1082 = vst [vmem:[#allocation2 + $0x7e4] sm:$0xf] %v1081_v58  ;;  %v1085_v60 = vld [vmem:[%s21903_s13 + $0x7f4] sm:$0xf]  ;;  %v1087_v61 = vld [vmem:[%s21903_s13 + $0x7e8] sm:$0xf] }
 0x117   :  { %1084 = vst [vmem:[#allocation2 + $0x7e8] sm:$0xf] %v1083_v59  ;;  %1086 = vst [vmem:[#allocation2 + $0x7ec] sm:$0xf] %v1085_v60  ;;  %v1089_v62 = vld [vmem:[%s21903_s13 + $0x7f8] sm:$0xf] }
 0x118   :  { %1088 = vst [vmem:[#allocation2 + $0x7f0] sm:$0xf] %v1087_v61  ;;  %v1091_v63 = vld [vmem:[%s21903_s13 + $0x7ec] sm:$0xf]  ;;  %v1093_v0 = vld [vmem:[%s21903_s13 + $0x7fc] sm:$0xf] }
 0x119   :  { %1090 = vst [vmem:[#allocation2 + $0x7f4] sm:$0xf] %v1089_v62  ;;  %1092 = vst [vmem:[#allocation2 + $0x7f8] sm:$0xf] %v1091_v63 }
 0x11a   :  { %1094 = vst [vmem:[#allocation2 + $0x7fc] sm:$0xf] %v1093_v0 }
 0x11b   :  { %4230 = vsyncadd [#allocation4], 32768  ;;  %v16993_v1 = vld [vmem:[%s21905_s15] sm:$0xff]  ;;  %v16998_v2 = vld [vmem:[%s21905_s15 + $0x8] sm:$0xff] }
 0x11c   :  { %22167 = vst [vmem:[#allocation12_spill] sm:$0xff] %v16993_v1  ;;  %22168 = vst [vmem:[#allocation13_spill] sm:$0xff] %v16998_v2  ;;  %v17003_v3 = vld [vmem:[%s21905_s15 + $0x10] sm:$0xff]  ;;  %v17008_v4 = vld [vmem:[%s21905_s15 + $0x18] sm:$0xff] }
 0x11d   :  { %22169 = vst [vmem:[#allocation14_spill] sm:$0xff] %v17003_v3  ;;  %22170 = vst [vmem:[#allocation15_spill] sm:$0xff] %v17008_v4  ;;  %v17013_v5 = vld [vmem:[%s21905_s15 + $0x20] sm:$0xff]  ;;  %v17018_v6 = vld [vmem:[%s21905_s15 + $0x28] sm:$0xff] }
 0x11e   :  { %22171 = vst [vmem:[#allocation16_spill] sm:$0xff] %v17013_v5  ;;  %22172 = vst [vmem:[#allocation17_spill] sm:$0xff] %v17018_v6  ;;  %v17023_v7 = vld [vmem:[%s21905_s15 + $0x30] sm:$0xff]  ;;  %v17028_v8 = vld [vmem:[%s21905_s15 + $0x38] sm:$0xff] }
 0x11f   :  { %22173 = vst [vmem:[#allocation18_spill] sm:$0xff] %v17023_v7  ;;  %22174 = vst [vmem:[#allocation19_spill] sm:$0xff] %v17028_v8  ;;  %v17033_v9 = vld [vmem:[%s21905_s15 + $0x40] sm:$0xff]  ;;  %v17038_v10 = vld [vmem:[%s21905_s15 + $0x48] sm:$0xff] }
 0x120   :  { %22175 = vst [vmem:[#allocation20_spill] sm:$0xff] %v17033_v9  ;;  %22176 = vst [vmem:[#allocation21_spill] sm:$0xff] %v17038_v10  ;;  %v17043_v11 = vld [vmem:[%s21905_s15 + $0x50] sm:$0xff]  ;;  %v17048_v12 = vld [vmem:[%s21905_s15 + $0x58] sm:$0xff] }
 0x121   :  { %22177 = vst [vmem:[#allocation22_spill] sm:$0xff] %v17043_v11  ;;  %22178 = vst [vmem:[#allocation23_spill] sm:$0xff] %v17048_v12  ;;  %v17053_v13 = vld [vmem:[%s21905_s15 + $0x60] sm:$0xff]  ;;  %v17058_v14 = vld [vmem:[%s21905_s15 + $0x68] sm:$0xff] }
 0x122   :  { %22179 = vst [vmem:[#allocation24_spill] sm:$0xff] %v17053_v13  ;;  %22180 = vst [vmem:[#allocation25_spill] sm:$0xff] %v17058_v14  ;;  %v17063_v15 = vld [vmem:[%s21905_s15 + $0x70] sm:$0xff]  ;;  %v17068_v16 = vld [vmem:[%s21905_s15 + $0x78] sm:$0xff] }
 0x123   :  { %22181 = vst [vmem:[#allocation26_spill] sm:$0xff] %v17063_v15  ;;  %22182 = vst [vmem:[#allocation27_spill] sm:$0xff] %v17068_v16  ;;  %v17073_v17 = vld [vmem:[%s21905_s15 + $0x80] sm:$0xff]  ;;  %v17078_v18 = vld [vmem:[%s21905_s15 + $0x88] sm:$0xff] }
 0x124   :  { %22183 = vst [vmem:[#allocation28_spill] sm:$0xff] %v17073_v17  ;;  %22184 = vst [vmem:[#allocation29_spill] sm:$0xff] %v17078_v18  ;;  %v17083_v19 = vld [vmem:[%s21905_s15 + $0x90] sm:$0xff]  ;;  %v17088_v20 = vld [vmem:[%s21905_s15 + $0x98] sm:$0xff] }
 0x125   :  { %22185 = vst [vmem:[#allocation30_spill] sm:$0xff] %v17083_v19  ;;  %22186 = vst [vmem:[#allocation31_spill] sm:$0xff] %v17088_v20  ;;  %v17093_v21 = vld [vmem:[%s21905_s15 + $0xa0] sm:$0xff]  ;;  %v17098_v22 = vld [vmem:[%s21905_s15 + $0xa8] sm:$0xff] }
 0x126   :  { %22187 = vst [vmem:[#allocation32_spill] sm:$0xff] %v17093_v21  ;;  %22188 = vst [vmem:[#allocation33_spill] sm:$0xff] %v17098_v22  ;;  %v17103_v23 = vld [vmem:[%s21905_s15 + $0xb0] sm:$0xff]  ;;  %v17108_v24 = vld [vmem:[%s21905_s15 + $0xb8] sm:$0xff] }
 0x127   :  { %22189 = vst [vmem:[#allocation34_spill] sm:$0xff] %v17103_v23  ;;  %22190 = vst [vmem:[#allocation35_spill] sm:$0xff] %v17108_v24  ;;  %v17113_v25 = vld [vmem:[%s21905_s15 + $0xc0] sm:$0xff]  ;;  %v17118_v26 = vld [vmem:[%s21905_s15 + $0xc8] sm:$0xff] }
 0x128   :  { %22191 = vst [vmem:[#allocation36_spill] sm:$0xff] %v17113_v25  ;;  %22192 = vst [vmem:[#allocation37_spill] sm:$0xff] %v17118_v26  ;;  %v17123_v27 = vld [vmem:[%s21905_s15 + $0xd0] sm:$0xff]  ;;  %v17128_v28 = vld [vmem:[%s21905_s15 + $0xd8] sm:$0xff] }
 0x129   :  { %22193 = vst [vmem:[#allocation38_spill] sm:$0xff] %v17123_v27  ;;  %22194 = vst [vmem:[#allocation39_spill] sm:$0xff] %v17128_v28  ;;  %v17133_v29 = vld [vmem:[%s21905_s15 + $0xe0] sm:$0xff]  ;;  %v17138_v30 = vld [vmem:[%s21905_s15 + $0xe8] sm:$0xff] }
 0x12a   :  { %22195 = vst [vmem:[#allocation40_spill] sm:$0xff] %v17133_v29  ;;  %22196 = vst [vmem:[#allocation41_spill] sm:$0xff] %v17138_v30  ;;  %v17143_v31 = vld [vmem:[%s21905_s15 + $0xf0] sm:$0xff]  ;;  %v17148_v32 = vld [vmem:[%s21905_s15 + $0xf8] sm:$0xff] }
 0x12b   :  { %22197 = vst [vmem:[#allocation42_spill] sm:$0xff] %v17143_v31  ;;  %22198 = vst [vmem:[#allocation43_spill] sm:$0xff] %v17148_v32 }
 0x12c   :  { %4335 = vsyncadd [#allocation4 + $0x1], 4096  ;;  %s22199_s24 = sld [smem:[#allocation261_spill]]  ;;  %s22200_s30 = sld [smem:[#allocation260_spill]]  ;;  %vm15550_vm3 = vmmov 0  }
 0x132   :  { %v15301_v33 = vld [vmem:[%s22199_s24] sm:$0xff]   ;;  %v15302_v34 = vld [vmem:[%s22199_s24 + $0x8] sm:$0xff]   ;;  %v15303_v35 = vld [vmem:[%s22199_s24 + $0x10] sm:$0xff]  }
 0x133   :  { %14260 = vmatprep.subr.bf16.mxu0 %v15301_v33  ;;  %v15304_v36 = vld [vmem:[%s22199_s24 + $0x18] sm:$0xff]   ;;  %v15309_v37 = vld [vmem:[%s22200_s30] sm:$0xff]   ;;  %v15306_v39 = vld [vmem:[%s22199_s24 + $0x28] sm:$0xff]  }
 0x134   :  { %14261 = vmatpush3.bf16.msra.mxu0 %v15301_v33  ;;  %14276 = vmatprep.mubr.bf16.mxu0 %v15309_v37  ;;  %v15305_v38 = vld [vmem:[%s22199_s24 + $0x20] sm:$0xff]   ;;  %v15307_v40 = vld [vmem:[%s22199_s24 + $0x30] sm:$0xff]   ;;  %v15308_v41 = vld [vmem:[%s22199_s24 + $0x38] sm:$0xff]  }
 0x135   :  { %14262 = vmatprep.subr.bf16.mxu0 %v15302_v34  ;;  %v15310_v42 = vld [vmem:[%s22200_s30 + $0x8] sm:$0xff]   ;;  %v15311_v43 = vld [vmem:[%s22200_s30 + $0x10] sm:$0xff]   ;;  %v15312_v44 = vld [vmem:[%s22200_s30 + $0x18] sm:$0xff]  }
 0x136   :  { %v15313_v45 = vld [vmem:[%s22200_s30 + $0x20] sm:$0xff]   ;;  %v15314_v46 = vld [vmem:[%s22200_s30 + $0x28] sm:$0xff]   ;;  %v15315_v47 = vld [vmem:[%s22200_s30 + $0x30] sm:$0xff]  }
 0x137   :  { %v15316_v48 = vld [vmem:[%s22200_s30 + $0x38] sm:$0xff]   ;;  %v15317_v49 = vld [vmem:[%s22200_s30 + $0x40] sm:$0xff]   ;;  %v15318_v50 = vld [vmem:[%s22200_s30 + $0x48] sm:$0xff]  }
 0x138   :  { %14263 = vmatpush3.bf16.msra.mxu0 %v15302_v34  ;;  %v15319_v51 = vld [vmem:[%s22200_s30 + $0x50] sm:$0xff]   ;;  %v15320_v52 = vld [vmem:[%s22200_s30 + $0x58] sm:$0xff]   ;;  %v15321_v53 = vld [vmem:[%s22200_s30 + $0x60] sm:$0xff]  }
 0x139   :  { %14264 = vmatprep.subr.bf16.mxu0 %v15303_v35  ;;  %v15322_v54 = vld [vmem:[%s22200_s30 + $0x68] sm:$0xff]   ;;  %v15323_v55 = vld [vmem:[%s22200_s30 + $0x70] sm:$0xff]   ;;  %v15324_v56 = vld [vmem:[%s22200_s30 + $0x78] sm:$0xff]  }
 0x13a   :  { %v15325_v57 = vld [vmem:[%s22200_s30 + $0x80] sm:$0xff]   ;;  %v15326_v58 = vld [vmem:[%s22200_s30 + $0x88] sm:$0xff]   ;;  %v15327_v59 = vld [vmem:[%s22200_s30 + $0x90] sm:$0xff]  }
 0x13b   :  { %v15328_v60 = vld [vmem:[%s22200_s30 + $0x98] sm:$0xff]   ;;  %v15329_v61 = vld [vmem:[%s22200_s30 + $0xa0] sm:$0xff]   ;;  %v15330_v62 = vld [vmem:[%s22200_s30 + $0xa8] sm:$0xff]  }
 0x13c   :  { %14265 = vmatpush3.bf16.msra.mxu0 %v15303_v35  ;;  %v15331_v63 = vld [vmem:[%s22200_s30 + $0xb0] sm:$0xff]   ;;  %v15332_v0 = vld [vmem:[%s22200_s30 + $0xb8] sm:$0xff]   ;;  %v15333_v33 = vld [vmem:[%s22200_s30 + $0xc0] sm:$0xff]  }
 0x13d   :  { %14266 = vmatprep.subr.bf16.mxu0 %v15304_v36  ;;  %v15334_v34 = vld [vmem:[%s22200_s30 + $0xc8] sm:$0xff]   ;;  %v15335_v35 = vld [vmem:[%s22200_s30 + $0xd0] sm:$0xff]   ;;  %v15337_v37 = vld [vmem:[%s22200_s30 + $0xe0] sm:$0xff]  }
 0x140   :  { %14267 = vmatpush3.bf16.msra.mxu0 %v15304_v36  ;;  %v15336_v36 = vld [vmem:[%s22200_s30 + $0xd8] sm:$0xff]  }
 0x141   :  { %14268 = vmatprep.subr.bf16.mxu0 %v15305_v38 }
 0x144   :  { %14269 = vmatpush3.bf16.msra.mxu0 %v15305_v38  ;;  %v15338_v38 = vld [vmem:[%s22200_s30 + $0xe8] sm:$0xff]  }
 0x145   :  { %14270 = vmatprep.subr.bf16.mxu0 %v15306_v39 }
 0x148   :  { %14271 = vmatpush3.bf16.msra.mxu0 %v15306_v39  ;;  %v15339_v39 = vld [vmem:[%s22200_s30 + $0xf0] sm:$0xff]  }
 0x149   :  { %14272 = vmatprep.subr.bf16.mxu0 %v15307_v40 }
 0x14c   :  { %14273 = vmatpush3.bf16.msra.mxu0 %v15307_v40  ;;  %v15340_v40 = vld [vmem:[%s22200_s30 + $0xf8] sm:$0xff]  }
 0x14d   :  { %14274 = vmatprep.subr.bf16.mxu0 %v15308_v41 }
 0x150   :  { %14275 = vmatpush3.bf16.msra.mxu0 %v15308_v41  ;;  %v15341_v41 = vld [vmem:[%s22200_s30 + $0x100] sm:$0xff]  }
 0x153   :  { %14277 = vmatmul.mubr.bf16.vlgmr.msra.gmra.mrb[0].mxu0 %v15310_v42  ;;  %v15342_v42 = vld [vmem:[%s22200_s30 + $0x108] sm:$0xff]  }
 0x154   :  { %14280 = vmatprep.mubr.bf16.mxu0 %v15311_v43  ;;  %v15343_v43 = vld [vmem:[%s22200_s30 + $0x110] sm:$0xff]  }
 0x15b   :  { %14281 = vmatmul.mubr.bf16.gmra.mrb[4].mxu0 %v15312_v44  ;;  %v15344_v44 = vld [vmem:[%s22200_s30 + $0x118] sm:$0xff]  }
 0x15c   :  { %14284 = vmatprep.mubr.bf16.mxu0 %v15313_v45  ;;  %v15345_v45 = vld [vmem:[%s22200_s30 + $0x120] sm:$0xff]  }
 0x163   :  { %14285 = vmatmul.mubr.bf16.gmra.mrb[8].mxu0 %v15314_v46  ;;  %v15346_v46 = vld [vmem:[%s22200_s30 + $0x128] sm:$0xff]  }
 0x164   :  { %14288 = vmatprep.mubr.bf16.mxu0 %v15315_v47  ;;  %v15347_v47 = vld [vmem:[%s22200_s30 + $0x130] sm:$0xff]  }
 0x16b   :  { %14289 = vmatmul.mubr.bf16.gmra.mrb[12].mxu0 %v15316_v48  ;;  %v15348_v48 = vld [vmem:[%s22200_s30 + $0x138] sm:$0xff]  }
 0x16c   :  { %14292 = vmatprep.mubr.bf16.mxu0 %v15317_v49  ;;  %v15349_v49 = vld [vmem:[%s22200_s30 + $0x140] sm:$0xff]  }
 0x173   :  { %14293 = vmatmul.mubr.bf16.gmra.mrb[16].mxu0 %v15318_v50  ;;  %v15350_v50 = vld [vmem:[%s22200_s30 + $0x148] sm:$0xff]  }
 0x174   :  { %14296 = vmatprep.mubr.bf16.mxu0 %v15319_v51  ;;  %v15351_v51 = vld [vmem:[%s22200_s30 + $0x150] sm:$0xff]  }
 0x17b   :  { %14297 = vmatmul.mubr.bf16.gmra.mrb[20].mxu0 %v15320_v52  ;;  %v15352_v52 = vld [vmem:[%s22200_s30 + $0x158] sm:$0xff]  }
 0x17c   :  { %14300 = vmatprep.mubr.bf16.mxu0 %v15321_v53  ;;  %v15353_v53 = vld [vmem:[%s22200_s30 + $0x160] sm:$0xff]  }
 0x183   :  { %14301 = vmatmul.mubr.bf16.gmra.mrb[24].mxu0 %v15322_v54  ;;  %v15354_v54 = vld [vmem:[%s22200_s30 + $0x168] sm:$0xff]  }
 0x184   :  { %14304 = vmatprep.mubr.bf16.mxu0 %v15323_v55  ;;  %v15355_v55 = vld [vmem:[%s22200_s30 + $0x170] sm:$0xff]  }
 0x18b   :  { %14305 = vmatmul.mubr.bf16.gmra.mrb[28].mxu0 %v15324_v56  ;;  %v15356_v56 = vld [vmem:[%s22200_s30 + $0x178] sm:$0xff]  }
 0x18c   :  { %14308 = vmatprep.mubr.bf16.mxu0 %v15325_v57  ;;  %v15357_v57 = vld [vmem:[%s22200_s30 + $0x180] sm:$0xff]  }
 0x193   :  { %14309 = vmatmul.mubr.bf16.gmra.mrb[32].mxu0 %v15326_v58  ;;  %v15358_v58 = vld [vmem:[%s22200_s30 + $0x188] sm:$0xff]  }
 0x194   :  { %14312 = vmatprep.mubr.bf16.mxu0 %v15327_v59  ;;  %v15359_v59 = vld [vmem:[%s22200_s30 + $0x190] sm:$0xff]  }
 0x19b   :  { %14313 = vmatmul.mubr.bf16.gmra.mrb[36].mxu0 %v15328_v60  ;;  %v15360_v60 = vld [vmem:[%s22200_s30 + $0x198] sm:$0xff]  }
 0x19c   :  { %14316 = vmatprep.mubr.bf16.mxu0 %v15329_v61  ;;  %v15361_v61 = vld [vmem:[%s22200_s30 + $0x1a0] sm:$0xff]  }
 0x1a3   :  { %14317 = vmatmul.mubr.bf16.gmra.mrb[40].mxu0 %v15330_v62  ;;  %v15362_v62 = vld [vmem:[%s22200_s30 + $0x1a8] sm:$0xff]  }
 0x1a4   :  { %14320 = vmatprep.mubr.bf16.mxu0 %v15331_v63  ;;  %v15363_v63 = vld [vmem:[%s22200_s30 + $0x1b0] sm:$0xff]  }
 0x1ab   :  { %14321 = vmatmul.mubr.bf16.gmra.mrb[44].mxu0 %v15332_v0  ;;  %v17342_v0 = vld [vmem:[%s21892_s2] ss:$0 sm:$0xff] }
 0x1ac   :  { %14324 = vmatprep.mubr.bf16.mxu0 %v15333_v33 }
 0x1b3   :  { %14325 = vmatmul.mubr.bf16.gmra.mrb[48].mxu0 %v15334_v34 }
 0x1b4   :  { %14328 = vmatprep.mubr.bf16.mxu0 %v15335_v35  ;;  %v15364_v35 = vld [vmem:[%s22200_s30 + $0x1b8] sm:$0xff]  }
 0x1bb   :  { %14329 = vmatmul.mubr.bf16.gmra.mrb[52].mxu0 %v15336_v36 }
 0x1bc   :  { %14332 = vmatprep.mubr.bf16.mxu0 %v15337_v37 }
 0x1c3   :  { %14333 = vmatmul.mubr.bf16.gmra.mrb[56].mxu0 %v15338_v38 }
 0x1c4   :  { %14336 = vmatprep.mubr.bf16.mxu0 %v15339_v39  ;;  %v15365_v39 = vld [vmem:[%s22200_s30 + $0x1c0] sm:$0xff]  }
 0x1cb   :  { %14337 = vmatmul.mubr.bf16.gmra.mrb[60].mxu0 %v15340_v40 }
 0x1cc   :  { %14340 = vmatprep.mubr.bf16.mxu0 %v15341_v41 }
 0x1d3   :  { %14341 = vmatmul.mubr.bf16.gmra.mrb[64].mxu0 %v15342_v42 }
 0x1d4   :  { %14344 = vmatprep.mubr.bf16.mxu0 %v15343_v43 }
 0x1db   :  { %14345 = vmatmul.mubr.bf16.gmra.mrb[68].mxu0 %v15344_v44 }
 0x1dc   :  { %14348 = vmatprep.mubr.bf16.mxu0 %v15345_v45 }
 0x1e3   :  { %14349 = vmatmul.mubr.bf16.gmra.mrb[72].mxu0 %v15346_v46 }
 0x1e4   :  { %14352 = vmatprep.mubr.bf16.mxu0 %v15347_v47 }
 0x1eb   :  { %14353 = vmatmul.mubr.bf16.gmra.mrb[76].mxu0 %v15348_v48 }
 0x1ec   :  { %14356 = vmatprep.mubr.bf16.mxu0 %v15349_v49 }
 0x1f3   :  { %14357 = vmatmul.mubr.bf16.gmra.mrb[80].mxu0 %v15350_v50 }
 0x1f4   :  { %14360 = vmatprep.mubr.bf16.mxu0 %v15351_v51 }
 0x1fb   :  { %14361 = vmatmul.mubr.bf16.gmra.mrb[84].mxu0 %v15352_v52 }
 0x1fc   :  { %14364 = vmatprep.mubr.bf16.mxu0 %v15353_v53  ;;  %v15366_v53 = vld [vmem:[%s22200_s30 + $0x1c8] sm:$0xff]  }
 0x203   :  { %14365 = vmatmul.mubr.bf16.gmra.mrb[88].mxu0 %v15354_v54 }
 0x204   :  { %14368 = vmatprep.mubr.bf16.mxu0 %v15355_v55 }
 0x20b   :  { %14369 = vmatmul.mubr.bf16.gmra.mrb[92].mxu0 %v15356_v56 }
 0x20c   :  { %14372 = vmatprep.mubr.bf16.mxu0 %v15357_v57 }
 0x213   :  { %14373 = vmatmul.mubr.bf16.gmra.mrb[96].mxu0 %v15358_v58 }
 0x214   :  { %14376 = vmatprep.mubr.bf16.mxu0 %v15359_v59  ;;  %v15367_v59 = vld [vmem:[%s22200_s30 + $0x1d0] sm:$0xff]  }
 0x21b   :  { %14377 = vmatmul.mubr.bf16.gmra.mrb[100].mxu0 %v15360_v60 }
 0x21c   :  { %14380 = vmatprep.mubr.bf16.mxu0 %v15361_v61 }
 0x223   :  { %14381 = vmatmul.mubr.bf16.gmra.mrb[104].mxu0 %v15362_v62 }
 0x224   :  { %14384 = vmatprep.mubr.bf16.mxu0 %v15363_v63 }
 0x226   :  { %v14278_v33 = vpop.f32.mrb[0].mxu0 }
 0x227   :  { %v5465_v34 = vpop.f32.mrb[1].mxu0  ;;  %v5474_v36 = vadd.f32 %v14278_v33, %v17342_v0 }
 0x228   :  { %v5466_v37 = vadd.f32 %v17342_v0, %v5465_v34  ;;  %v14279_v38 = vpop.f32.mrb[2].mxu0 }
 0x229   :  { %v5477_v40 = vadd.f32 %v14279_v38, %v17342_v0  ;;  %v5468_v41 = vpop.f32.mrb[3].mxu0  ;;  %v17356_v44 = vmax.f32 %v5474_v36, 0.0 }
 0x22a   :  { %v17353_v42 = vmax.f32 %v5466_v37, 0.0  ;;  %v5469_v43 = vadd.f32 %v17342_v0, %v5468_v41 }
 0x22b   :  { %14385 = vmatmul.mubr.bf16.gmra.mrb[108].mxu0 %v15364_v35  ;;  %22202 = vst [vmem:[#allocation45_spill] sm:$0xff] %v17356_v44  ;;  %v17360_v46 = vmax.f32 %v5477_v40, 0.0  ;;  %v7008_v54 = vmul.f32 %v17356_v44, %v17356_v44 }
 0x22c   :  { %22201 = vst [vmem:[#allocation44_spill] sm:$0xff] %v17353_v42  ;;  %v17358_v45 = vmax.f32 %v5469_v43, 0.0  ;;  %14388 = vmatprep.mubr.bf16.mxu0 %v15365_v39  ;;  %v7006_v47 = vmul.f32 %v17353_v42, %v17353_v42 }
 0x22d   :  { %22204 = vst [vmem:[#allocation47_spill] sm:$0xff] %v17360_v46  ;;  %v7009_v60 = vmul.f32 %v17360_v46, %v17360_v46 }
 0x22e   :  { %22203 = vst [vmem:[#allocation46_spill] sm:$0xff] %v17358_v45  ;;  %v6744_v48 = vadd.f32 %v17358_v45, %v17353_v42  ;;  %v7007_v49 = vmul.f32 %v17358_v45, %v17358_v45  ;;  %v14282_v50 = vpop.f32.mrb[4].mxu0 }
 0x22f   :  { %v5490_v51 = vadd.f32 %v14282_v50, %v17342_v0  ;;  %v5481_v52 = vpop.f32.mrb[5].mxu0 }
 0x230   :  { %v6745_v55 = vadd.f32 %v6744_v48, %v17356_v44  ;;  %v7262_v56 = vadd.f32 %v7007_v49, %v7006_v47  ;;  %v5482_v57 = vadd.f32 %v17342_v0, %v5481_v52  ;;  %v14283_v58 = vpop.f32.mrb[6].mxu0  ;;  %v15368_v52 = vld [vmem:[%s22200_s30 + $0x1d8] sm:$0xff]  }
 0x231   :  { %v5493_v61 = vadd.f32 %v14283_v58, %v17342_v0  ;;  %v5484_v62 = vpop.f32.mrb[7].mxu0  ;;  %v17386_v36 = vmax.f32 %v5490_v51, 0.0  ;;  %v15369_v58 = vld [vmem:[%s22200_s30 + $0x1e0] sm:$0xff]  }
 0x232   :  { %v6746_v63 = vadd.f32 %v6745_v55, %v17360_v46  ;;  %v7263_v33 = vadd.f32 %v7262_v56, %v7008_v54  ;;  %v17383_v34 = vmax.f32 %v5482_v57, 0.0  ;;  %v5485_v35 = vadd.f32 %v17342_v0, %v5484_v62 }
 0x233   :  { %22206 = vst [vmem:[#allocation49_spill] sm:$0xff] %v17386_v36  ;;  %14389 = vmatmul.mubr.bf16.gmra.mrb[112].mxu0 %v15366_v53  ;;  %v17393_v41 = vmax.f32 %v5493_v61, 0.0  ;;  %v7012_v53 = vmul.f32 %v17386_v36, %v17386_v36 }
 0x234   :  { %22205 = vst [vmem:[#allocation48_spill] sm:$0xff] %v17383_v34  ;;  %v7264_v37 = vadd.f32 %v7263_v33, %v7009_v60  ;;  %v6747_v38 = vadd.f32 %v6746_v63, %v17383_v34  ;;  %v7010_v39 = vmul.f32 %v17383_v34, %v17383_v34  ;;  %v17391_v40 = vmax.f32 %v5485_v35, 0.0  ;;  %14392 = vmatprep.mubr.bf16.mxu0 %v15367_v59 }
 0x235   :  { %22208 = vst [vmem:[#allocation51_spill] sm:$0xff] %v17393_v41  ;;  %v7013_v59 = vmul.f32 %v17393_v41, %v17393_v41 }
 0x236   :  { %22207 = vst [vmem:[#allocation50_spill] sm:$0xff] %v17391_v40  ;;  %v7265_v43 = vadd.f32 %v7264_v37, %v7010_v39  ;;  %v6748_v47 = vadd.f32 %v6747_v38, %v17391_v40  ;;  %v7011_v48 = vmul.f32 %v17391_v40, %v17391_v40  ;;  %v14286_v49 = vpop.f32.mrb[8].mxu0 }
 0x237   :  { %v5506_v50 = vadd.f32 %v14286_v49, %v17342_v0  ;;  %v5497_v51 = vpop.f32.mrb[9].mxu0 }
 0x238   :  { %v6749_v54 = vadd.f32 %v6748_v47, %v17386_v36  ;;  %v7266_v55 = vadd.f32 %v7265_v43, %v7011_v48  ;;  %v5498_v56 = vadd.f32 %v17342_v0, %v5497_v51  ;;  %v14287_v57 = vpop.f32.mrb[10].mxu0 }
 0x239   :  { %v5509_v60 = vadd.f32 %v14287_v57, %v17342_v0  ;;  %v5500_v61 = vpop.f32.mrb[11].mxu0  ;;  %v17416_v37 = vmax.f32 %v5506_v50, 0.0 }
 0x23a   :  { %v6750_v62 = vadd.f32 %v6749_v54, %v17393_v41  ;;  %v7267_v63 = vadd.f32 %v7266_v55, %v7012_v53  ;;  %v17413_v33 = vmax.f32 %v5498_v56, 0.0  ;;  %v5501_v35 = vadd.f32 %v17342_v0, %v5500_v61  ;;  %v15370_v55 = vld [vmem:[%s22200_s30 + $0x1e8] sm:$0xff]   ;;  %v15371_v61 = vld [vmem:[%s22200_s30 + $0x1f0] sm:$0xff]  }
 0x23b   :  { %22210 = vst [vmem:[#allocation53_spill] sm:$0xff] %v17416_v37  ;;  %14393 = vmatmul.mubr.bf16.gmra.mrb[116].mxu0 %v15368_v52  ;;  %v17423_v48 = vmax.f32 %v5509_v60, 0.0  ;;  %v7016_v56 = vmul.f32 %v17416_v37, %v17416_v37 }
 0x23c   :  { %22209 = vst [vmem:[#allocation52_spill] sm:$0xff] %v17413_v33  ;;  %v7268_v38 = vadd.f32 %v7267_v63, %v7013_v59  ;;  %v6751_v39 = vadd.f32 %v6750_v62, %v17413_v33  ;;  %v7014_v43 = vmul.f32 %v17413_v33, %v17413_v33  ;;  %v17421_v47 = vmax.f32 %v5501_v35, 0.0  ;;  %14396 = vmatprep.mubr.bf16.mxu0 %v15369_v58 }
 0x23d   :  { %22212 = vst [vmem:[#allocation55_spill] sm:$0xff] %v17423_v48  ;;  %v7017_v62 = vmul.f32 %v17423_v48, %v17423_v48 }
 0x23e   :  { %22211 = vst [vmem:[#allocation54_spill] sm:$0xff] %v17421_v47  ;;  %v7269_v49 = vadd.f32 %v7268_v38, %v7014_v43  ;;  %v6752_v51 = vadd.f32 %v6751_v39, %v17421_v47  ;;  %v7015_v53 = vmul.f32 %v17421_v47, %v17421_v47  ;;  %v14290_v50 = vpop.f32.mrb[12].mxu0 }
 0x23f   :  { %v5522_v52 = vadd.f32 %v14290_v50, %v17342_v0  ;;  %v5513_v54 = vpop.f32.mrb[13].mxu0 }
 0x240   :  { %v6753_v57 = vadd.f32 %v6752_v51, %v17416_v37  ;;  %v7270_v58 = vadd.f32 %v7269_v49, %v7015_v53  ;;  %v5514_v59 = vadd.f32 %v17342_v0, %v5513_v54  ;;  %v14291_v60 = vpop.f32.mrb[14].mxu0 }
 0x241   :  { %v5525_v63 = vadd.f32 %v14291_v60, %v17342_v0  ;;  %v5516_v35 = vpop.f32.mrb[15].mxu0  ;;  %v17446_v51 = vmax.f32 %v5522_v52, 0.0 }
 0x242   :  { %v6754_v38 = vadd.f32 %v6753_v57, %v17423_v48  ;;  %v7271_v39 = vadd.f32 %v7270_v58, %v7016_v56  ;;  %v17443_v43 = vmax.f32 %v5514_v59, 0.0  ;;  %v5517_v49 = vadd.f32 %v17342_v0, %v5516_v35 }
 0x243   :  { %22214 = vst [vmem:[#allocation57_spill] sm:$0xff] %v17446_v51  ;;  %14397 = vmatmul.mubr.bf16.gmra.mrb[120].mxu0 %v15370_v55  ;;  %v17453_v60 = vmax.f32 %v5525_v63, 0.0  ;;  %v7020_v35 = vmul.f32 %v17446_v51, %v17446_v51 }
 0x244   :  { %22213 = vst [vmem:[#allocation56_spill] sm:$0xff] %v17443_v43  ;;  %v7272_v53 = vadd.f32 %v7271_v39, %v7017_v62  ;;  %v6755_v50 = vadd.f32 %v6754_v38, %v17443_v43  ;;  %v7018_v54 = vmul.f32 %v17443_v43, %v17443_v43  ;;  %v17451_v24 = vmax.f32 %v5517_v49, 0.0  ;;  %14400 = vmatprep.mubr.bf16.mxu0 %v15371_v61  ;;  %v15372_v62 = vld [vmem:[%s22200_s30 + $0x1f8] sm:$0xff]   ;;  %v15373_v49 = vld [vmem:[%s22200_s30 + $0x200] sm:$0xff]  }
 0x245   :  { %22216 = vst [vmem:[#allocation59_spill] sm:$0xff] %v17453_v60 }
 0x246   :  { %22215 = vst [vmem:[#allocation58_spill] sm:$0xff] %v17451_v24  ;;  %v7273_v57 = vadd.f32 %v7272_v53, %v7018_v54  ;;  %v6756_v56 = vadd.f32 %v6755_v50, %v17451_v24  ;;  %v7019_v58 = vmul.f32 %v17451_v24, %v17451_v24  ;;  %v14294_v52 = vpop.f32.mrb[16].mxu0  ;;  %v7021_v53 = vmul.f32 %v17453_v60, %v17453_v60 }
 0x247   :  { %v5538_v55 = vadd.f32 %v14294_v52, %v17342_v0  ;;  %v5529_v59 = vpop.f32.mrb[17].mxu0 }
 0x248   :  { %v6757_v61 = vadd.f32 %v6756_v56, %v17446_v51  ;;  %v7274_v63 = vadd.f32 %v7273_v57, %v7019_v58  ;;  %v5530_v38 = vadd.f32 %v17342_v0, %v5529_v59  ;;  %v14295_v39 = vpop.f32.mrb[18].mxu0 }
 0x249   :  { %v5541_v50 = vadd.f32 %v14295_v39, %v17342_v0  ;;  %v5532_v54 = vpop.f32.mrb[19].mxu0  ;;  %v17476_v56 = vmax.f32 %v5538_v55, 0.0 }
 0x24a   :  { %v6758_v52 = vadd.f32 %v6757_v61, %v17453_v60  ;;  %v7275_v8 = vadd.f32 %v7274_v63, %v7020_v35  ;;  %v17473_v32 = vmax.f32 %v5530_v38, 0.0  ;;  %v5533_v57 = vadd.f32 %v17342_v0, %v5532_v54  ;;  %v15374_v38 = vld [vmem:[%s22200_s30 + $0x208] sm:$0xff]  }
 0x24b   :  { %22218 = vst [vmem:[#allocation61_spill] sm:$0xff] %v17476_v56  ;;  %14401 = vmatmul.mubr.bf16.gmra.mrb[124].mxu0 %v15372_v62  ;;  %v17483_v39 = vmax.f32 %v5541_v50, 0.0 }
 0x24c   :  { %22217 = vst [vmem:[#allocation60_spill] sm:$0xff] %v17473_v32  ;;  %v7276_v58 = vadd.f32 %v7275_v8, %v7021_v53  ;;  %v6759_v59 = vadd.f32 %v6758_v52, %v17473_v32  ;;  %v7022_v16 = vmul.f32 %v17473_v32, %v17473_v32  ;;  %v17481_v23 = vmax.f32 %v5533_v57, 0.0  ;;  %14404 = vmatprep.mubr.bf16.mxu0 %v15373_v49  ;;  %v15375_v52 = vld [vmem:[%s22200_s30 + $0x210] sm:$0xff]  }
 0x24d   :  { %22220 = vst [vmem:[#allocation63_spill] sm:$0xff] %v17483_v39  ;;  %v7024_v53 = vmul.f32 %v17476_v56, %v17476_v56  ;;  %v7025_v57 = vmul.f32 %v17483_v39, %v17483_v39 }
 0x24e   :  { %22219 = vst [vmem:[#allocation62_spill] sm:$0xff] %v17481_v23  ;;  %v7277_v61 = vadd.f32 %v7276_v58, %v7022_v16  ;;  %v6760_v35 = vadd.f32 %v6759_v59, %v17481_v23  ;;  %v7023_v63 = vmul.f32 %v17481_v23, %v17481_v23  ;;  %v14298_v55 = vpop.f32.mrb[20].mxu0 }
 0x24f   :  { %v5554_v62 = vadd.f32 %v14298_v55, %v17342_v0  ;;  %v5545_v8 = vpop.f32.mrb[21].mxu0 }
 0x250   :  { %v6761_v49 = vadd.f32 %v6760_v35, %v17476_v56  ;;  %v7278_v50 = vadd.f32 %v7277_v61, %v7023_v63  ;;  %v5546_v16 = vadd.f32 %v17342_v0, %v5545_v8  ;;  %v14299_v54 = vpop.f32.mrb[22].mxu0 }
 0x251   :  { %v5557_v58 = vadd.f32 %v14299_v54, %v17342_v0  ;;  %v5548_v59 = vpop.f32.mrb[23].mxu0  ;;  %v17506_v35 = vmax.f32 %v5554_v62, 0.0 }
 0x252   :  { %v6762_v55 = vadd.f32 %v6761_v49, %v17483_v39  ;;  %v7279_v7 = vadd.f32 %v7278_v50, %v7024_v53  ;;  %v17503_v31 = vmax.f32 %v5546_v16, 0.0  ;;  %v5549_v61 = vadd.f32 %v17342_v0, %v5548_v59  ;;  %v15376_v16 = vld [vmem:[%s22200_s30 + $0x218] sm:$0xff]  }
 0x253   :  { %22222 = vst [vmem:[#allocation65_spill] sm:$0xff] %v17506_v35  ;;  %14405 = vmatmul.mubr.bf16.gmra.mrb[128].mxu0 %v15374_v38  ;;  %v17513_v54 = vmax.f32 %v5557_v58, 0.0 }
 0x254   :  { %22221 = vst [vmem:[#allocation64_spill] sm:$0xff] %v17503_v31  ;;  %v7280_v63 = vadd.f32 %v7279_v7, %v7025_v57  ;;  %v6763_v8 = vadd.f32 %v6762_v55, %v17503_v31  ;;  %v7026_v15 = vmul.f32 %v17503_v31, %v17503_v31  ;;  %v17511_v22 = vmax.f32 %v5549_v61, 0.0  ;;  %14408 = vmatprep.mubr.bf16.mxu0 %v15375_v52  ;;  %v15377_v55 = vld [vmem:[%s22200_s30 + $0x220] sm:$0xff]  }
 0x255   :  { %22224 = vst [vmem:[#allocation67_spill] sm:$0xff] %v17513_v54  ;;  %v7028_v57 = vmul.f32 %v17506_v35, %v17506_v35  ;;  %v7029_v61 = vmul.f32 %v17513_v54, %v17513_v54 }
 0x256   :  { %22223 = vst [vmem:[#allocation66_spill] sm:$0xff] %v17511_v22  ;;  %v7281_v49 = vadd.f32 %v7280_v63, %v7026_v15  ;;  %v6764_v53 = vadd.f32 %v6763_v8, %v17511_v22  ;;  %v7027_v50 = vmul.f32 %v17511_v22, %v17511_v22  ;;  %v14302_v62 = vpop.f32.mrb[24].mxu0 }
 0x257   :  { %v5570_v38 = vadd.f32 %v14302_v62, %v17342_v0  ;;  %v5561_v7 = vpop.f32.mrb[25].mxu0 }
 0x258   :  { %v6765_v52 = vadd.f32 %v6764_v53, %v17506_v35  ;;  %v7282_v58 = vadd.f32 %v7281_v49, %v7027_v50  ;;  %v5562_v15 = vadd.f32 %v17342_v0, %v5561_v7  ;;  %v14303_v59 = vpop.f32.mrb[26].mxu0 }
 0x259   :  { %v5573_v63 = vadd.f32 %v14303_v59, %v17342_v0  ;;  %v5564_v8 = vpop.f32.mrb[27].mxu0  ;;  %v17536_v53 = vmax.f32 %v5570_v38, 0.0 }
 0x25a   :  { %v6766_v62 = vadd.f32 %v6765_v52, %v17513_v54  ;;  %v7283_v6 = vadd.f32 %v7282_v58, %v7028_v57  ;;  %v17533_v30 = vmax.f32 %v5562_v15, 0.0  ;;  %v5565_v49 = vadd.f32 %v17342_v0, %v5564_v8  ;;  %v15378_v15 = vld [vmem:[%s22200_s30 + $0x228] sm:$0xff]  }
 0x25b   :  { %22226 = vst [vmem:[#allocation69_spill] sm:$0xff] %v17536_v53  ;;  %14409 = vmatmul.mubr.bf16.gmra.mrb[132].mxu0 %v15376_v16  ;;  %v17543_v59 = vmax.f32 %v5573_v63, 0.0 }
 0x25c   :  { %22225 = vst [vmem:[#allocation68_spill] sm:$0xff] %v17533_v30  ;;  %v7284_v50 = vadd.f32 %v7283_v6, %v7029_v61  ;;  %v6767_v7 = vadd.f32 %v6766_v62, %v17533_v30  ;;  %v7030_v14 = vmul.f32 %v17533_v30, %v17533_v30  ;;  %v17541_v21 = vmax.f32 %v5565_v49, 0.0  ;;  %14412 = vmatprep.mubr.bf16.mxu0 %v15377_v55  ;;  %v15379_v62 = vld [vmem:[%s22200_s30 + $0x230] sm:$0xff]  }
 0x25d   :  { %22228 = vst [vmem:[#allocation71_spill] sm:$0xff] %v17543_v59  ;;  %v7032_v61 = vmul.f32 %v17536_v53, %v17536_v53  ;;  %v7033_v49 = vmul.f32 %v17543_v59, %v17543_v59 }
 0x25e   :  { %22227 = vst [vmem:[#allocation70_spill] sm:$0xff] %v17541_v21  ;;  %v7285_v52 = vadd.f32 %v7284_v50, %v7030_v14  ;;  %v6768_v57 = vadd.f32 %v6767_v7, %v17541_v21  ;;  %v7031_v58 = vmul.f32 %v17541_v21, %v17541_v21  ;;  %v14306_v38 = vpop.f32.mrb[28].mxu0 }
 0x25f   :  { %v5586_v16 = vadd.f32 %v14306_v38, %v17342_v0  ;;  %v5577_v6 = vpop.f32.mrb[29].mxu0 }
 0x260   :  { %v6769_v55 = vadd.f32 %v6768_v57, %v17536_v53  ;;  %v7286_v63 = vadd.f32 %v7285_v52, %v7031_v58  ;;  %v5578_v14 = vadd.f32 %v17342_v0, %v5577_v6  ;;  %v14307_v8 = vpop.f32.mrb[30].mxu0 }
 0x261   :  { %v5589_v50 = vadd.f32 %v14307_v8, %v17342_v0  ;;  %v5580_v7 = vpop.f32.mrb[31].mxu0  ;;  %v17566_v57 = vmax.f32 %v5586_v16, 0.0 }
 0x262   :  { %v6770_v38 = vadd.f32 %v6769_v55, %v17543_v59  ;;  %v7287_v5 = vadd.f32 %v7286_v63, %v7032_v61  ;;  %v17563_v29 = vmax.f32 %v5578_v14, 0.0  ;;  %v5581_v52 = vadd.f32 %v17342_v0, %v5580_v7  ;;  %v15380_v14 = vld [vmem:[%s22200_s30 + $0x238] sm:$0xff]  }
 0x263   :  { %22230 = vst [vmem:[#allocation73_spill] sm:$0xff] %v17566_v57  ;;  %14413 = vmatmul.mubr.bf16.gmra.mrb[136].mxu0 %v15378_v15  ;;  %v17573_v8 = vmax.f32 %v5589_v50, 0.0 }
 0x264   :  { %22229 = vst [vmem:[#allocation72_spill] sm:$0xff] %v17563_v29  ;;  %v7288_v58 = vadd.f32 %v7287_v5, %v7033_v49  ;;  %v6771_v6 = vadd.f32 %v6770_v38, %v17563_v29  ;;  %v7034_v13 = vmul.f32 %v17563_v29, %v17563_v29  ;;  %v17571_v20 = vmax.f32 %v5581_v52, 0.0  ;;  %14416 = vmatprep.mubr.bf16.mxu0 %v15379_v62  ;;  %v15381_v38 = vld [vmem:[%s22200_s30 + $0x240] sm:$0xff]  }
 0x265   :  { %22232 = vst [vmem:[#allocation75_spill] sm:$0xff] %v17573_v8  ;;  %v7036_v49 = vmul.f32 %v17566_v57, %v17566_v57  ;;  %v7037_v52 = vmul.f32 %v17573_v8, %v17573_v8 }
 0x266   :  { %22231 = vst [vmem:[#allocation74_spill] sm:$0xff] %v17571_v20  ;;  %v7289_v55 = vadd.f32 %v7288_v58, %v7034_v13  ;;  %v6772_v61 = vadd.f32 %v6771_v6, %v17571_v20  ;;  %v7035_v63 = vmul.f32 %v17571_v20, %v17571_v20  ;;  %v14310_v16 = vpop.f32.mrb[32].mxu0 }
 0x267   :  { %v5602_v15 = vadd.f32 %v14310_v16, %v17342_v0  ;;  %v5593_v5 = vpop.f32.mrb[33].mxu0 }
 0x268   :  { %v6773_v62 = vadd.f32 %v6772_v61, %v17566_v57  ;;  %v7290_v50 = vadd.f32 %v7289_v55, %v7035_v63  ;;  %v5594_v13 = vadd.f32 %v17342_v0, %v5593_v5  ;;  %v14311_v7 = vpop.f32.mrb[34].mxu0 }
 0x269   :  { %v5605_v58 = vadd.f32 %v14311_v7, %v17342_v0  ;;  %v5596_v6 = vpop.f32.mrb[35].mxu0  ;;  %v17596_v61 = vmax.f32 %v5602_v15, 0.0 }
 0x26a   :  { %v6774_v16 = vadd.f32 %v6773_v62, %v17573_v8  ;;  %v7291_v4 = vadd.f32 %v7290_v50, %v7036_v49  ;;  %v17593_v28 = vmax.f32 %v5594_v13, 0.0  ;;  %v5597_v55 = vadd.f32 %v17342_v0, %v5596_v6  ;;  %v15382_v13 = vld [vmem:[%s22200_s30 + $0x248] sm:$0xff]  }
 0x26b   :  { %22234 = vst [vmem:[#allocation77_spill] sm:$0xff] %v17596_v61  ;;  %14417 = vmatmul.mubr.bf16.gmra.mrb[140].mxu0 %v15380_v14  ;;  %v17603_v7 = vmax.f32 %v5605_v58, 0.0 }
 0x26c   :  { %22233 = vst [vmem:[#allocation76_spill] sm:$0xff] %v17593_v28  ;;  %v7292_v63 = vadd.f32 %v7291_v4, %v7037_v52  ;;  %v6775_v5 = vadd.f32 %v6774_v16, %v17593_v28  ;;  %v7038_v12 = vmul.f32 %v17593_v28, %v17593_v28  ;;  %v17601_v19 = vmax.f32 %v5597_v55, 0.0  ;;  %14420 = vmatprep.mubr.bf16.mxu0 %v15381_v38  ;;  %v15383_v16 = vld [vmem:[%s22200_s30 + $0x250] sm:$0xff]  }
 0x26d   :  { %22236 = vst [vmem:[#allocation79_spill] sm:$0xff] %v17603_v7  ;;  %v7040_v52 = vmul.f32 %v17596_v61, %v17596_v61  ;;  %v7041_v55 = vmul.f32 %v17603_v7, %v17603_v7 }
 0x26e   :  { %22235 = vst [vmem:[#allocation78_spill] sm:$0xff] %v17601_v19  ;;  %v7293_v62 = vadd.f32 %v7292_v63, %v7038_v12  ;;  %v6776_v49 = vadd.f32 %v6775_v5, %v17601_v19  ;;  %v7039_v50 = vmul.f32 %v17601_v19, %v17601_v19  ;;  %v14314_v15 = vpop.f32.mrb[36].mxu0 }
 0x26f   :  { %v5618_v14 = vadd.f32 %v14314_v15, %v17342_v0  ;;  %v5609_v4 = vpop.f32.mrb[37].mxu0 }
 0x270   :  { %v6777_v38 = vadd.f32 %v6776_v49, %v17596_v61  ;;  %v7294_v58 = vadd.f32 %v7293_v62, %v7039_v50  ;;  %v5610_v12 = vadd.f32 %v17342_v0, %v5609_v4  ;;  %v14315_v6 = vpop.f32.mrb[38].mxu0 }
 0x271   :  { %v5621_v63 = vadd.f32 %v14315_v6, %v17342_v0  ;;  %v5612_v5 = vpop.f32.mrb[39].mxu0  ;;  %v17626_v49 = vmax.f32 %v5618_v14, 0.0 }
 0x272   :  { %v6778_v15 = vadd.f32 %v6777_v38, %v17603_v7  ;;  %v7295_v3 = vadd.f32 %v7294_v58, %v7040_v52  ;;  %v17623_v27 = vmax.f32 %v5610_v12, 0.0  ;;  %v5613_v62 = vadd.f32 %v17342_v0, %v5612_v5  ;;  %v15384_v12 = vld [vmem:[%s22200_s30 + $0x258] sm:$0xff]  }
 0x273   :  { %22238 = vst [vmem:[#allocation81_spill] sm:$0xff] %v17626_v49  ;;  %14421 = vmatmul.mubr.bf16.gmra.mrb[144].mxu0 %v15382_v13  ;;  %v17633_v6 = vmax.f32 %v5621_v63, 0.0 }
 0x274   :  { %22237 = vst [vmem:[#allocation80_spill] sm:$0xff] %v17623_v27  ;;  %v7296_v50 = vadd.f32 %v7295_v3, %v7041_v55  ;;  %v6779_v4 = vadd.f32 %v6778_v15, %v17623_v27  ;;  %v7042_v11 = vmul.f32 %v17623_v27, %v17623_v27  ;;  %v17631_v18 = vmax.f32 %v5613_v62, 0.0  ;;  %14424 = vmatprep.mubr.bf16.mxu0 %v15383_v16  ;;  %v15385_v15 = vld [vmem:[%s22200_s30 + $0x260] sm:$0xff]  }
 0x275   :  { %22240 = vst [vmem:[#allocation83_spill] sm:$0xff] %v17633_v6  ;;  %v7044_v55 = vmul.f32 %v17626_v49, %v17626_v49  ;;  %v7045_v62 = vmul.f32 %v17633_v6, %v17633_v6 }
 0x276   :  { %22239 = vst [vmem:[#allocation82_spill] sm:$0xff] %v17631_v18  ;;  %v7297_v38 = vadd.f32 %v7296_v50, %v7042_v11  ;;  %v6780_v52 = vadd.f32 %v6779_v4, %v17631_v18  ;;  %v7043_v58 = vmul.f32 %v17631_v18, %v17631_v18  ;;  %v14318_v14 = vpop.f32.mrb[40].mxu0 }
 0x277   :  { %v5634_v13 = vadd.f32 %v14318_v14, %v17342_v0  ;;  %v5625_v3 = vpop.f32.mrb[41].mxu0 }
 0x278   :  { %v6781_v16 = vadd.f32 %v6780_v52, %v17626_v49  ;;  %v7298_v63 = vadd.f32 %v7297_v38, %v7043_v58  ;;  %v5626_v11 = vadd.f32 %v17342_v0, %v5625_v3  ;;  %v14319_v5 = vpop.f32.mrb[42].mxu0 }
 0x279   :  { %v5637_v50 = vadd.f32 %v14319_v5, %v17342_v0  ;;  %v5628_v4 = vpop.f32.mrb[43].mxu0  ;;  %v17656_v52 = vmax.f32 %v5634_v13, 0.0 }
 0x27a   :  { %v6782_v14 = vadd.f32 %v6781_v16, %v17633_v6  ;;  %v7299_v2 = vadd.f32 %v7298_v63, %v7044_v55  ;;  %v17653_v26 = vmax.f32 %v5626_v11, 0.0  ;;  %v5629_v38 = vadd.f32 %v17342_v0, %v5628_v4  ;;  %v15386_v11 = vld [vmem:[%s22200_s30 + $0x268] sm:$0xff]  }
 0x27b   :  { %22242 = vst [vmem:[#allocation85_spill] sm:$0xff] %v17656_v52  ;;  %14425 = vmatmul.mubr.bf16.gmra.mrb[148].mxu0 %v15384_v12  ;;  %v17663_v5 = vmax.f32 %v5637_v50, 0.0 }
 0x27c   :  { %22241 = vst [vmem:[#allocation84_spill] sm:$0xff] %v17653_v26  ;;  %v7300_v58 = vadd.f32 %v7299_v2, %v7045_v62  ;;  %v6783_v3 = vadd.f32 %v6782_v14, %v17653_v26  ;;  %v7046_v10 = vmul.f32 %v17653_v26, %v17653_v26  ;;  %v17661_v17 = vmax.f32 %v5629_v38, 0.0  ;;  %14428 = vmatprep.mubr.bf16.mxu0 %v15385_v15  ;;  %v15387_v14 = vld [vmem:[%s22200_s30 + $0x270] sm:$0xff]  }
 0x27d   :  { %22244 = vst [vmem:[#allocation87_spill] sm:$0xff] %v17663_v5  ;;  %v7048_v62 = vmul.f32 %v17656_v52, %v17656_v52  ;;  %v7049_v38 = vmul.f32 %v17663_v5, %v17663_v5 }
 0x27e   :  { %22243 = vst [vmem:[#allocation86_spill] sm:$0xff] %v17661_v17  ;;  %v7301_v16 = vadd.f32 %v7300_v58, %v7046_v10  ;;  %v6784_v55 = vadd.f32 %v6783_v3, %v17661_v17  ;;  %v7047_v63 = vmul.f32 %v17661_v17, %v17661_v17  ;;  %v14322_v13 = vpop.f32.mrb[44].mxu0 }
 0x27f   :  { %v5650_v12 = vadd.f32 %v14322_v13, %v17342_v0  ;;  %v5641_v2 = vpop.f32.mrb[45].mxu0 }
 0x280   :  { %v6785_v15 = vadd.f32 %v6784_v55, %v17656_v52  ;;  %v7302_v50 = vadd.f32 %v7301_v16, %v7047_v63  ;;  %v5642_v10 = vadd.f32 %v17342_v0, %v5641_v2  ;;  %v14323_v4 = vpop.f32.mrb[46].mxu0 }
 0x281   :  { %v5653_v58 = vadd.f32 %v14323_v4, %v17342_v0  ;;  %v5644_v3 = vpop.f32.mrb[47].mxu0  ;;  %v17686_v55 = vmax.f32 %v5650_v12, 0.0 }
 0x282   :  { %v6786_v13 = vadd.f32 %v6785_v15, %v17663_v5  ;;  %v7303_v1 = vadd.f32 %v7302_v50, %v7048_v62  ;;  %v17683_v25 = vmax.f32 %v5642_v10, 0.0  ;;  %v5645_v16 = vadd.f32 %v17342_v0, %v5644_v3  ;;  %v15388_v10 = vld [vmem:[%s22200_s30 + $0x278] sm:$0xff]  }
 0x283   :  { %22246 = vst [vmem:[#allocation89_spill] sm:$0xff] %v17686_v55  ;;  %14429 = vmatmul.mubr.bf16.gmra.mrb[152].mxu0 %v15386_v11  ;;  %v17693_v4 = vmax.f32 %v5653_v58, 0.0 }
 0x284   :  { %22245 = vst [vmem:[#allocation88_spill] sm:$0xff] %v17683_v25  ;;  %v7304_v63 = vadd.f32 %v7303_v1, %v7049_v38  ;;  %v6787_v2 = vadd.f32 %v6786_v13, %v17683_v25  ;;  %v7050_v9 = vmul.f32 %v17683_v25, %v17683_v25  ;;  %v17691_v52 = vmax.f32 %v5645_v16, 0.0  ;;  %14432 = vmatprep.mubr.bf16.mxu0 %v15387_v14  ;;  %v15389_v13 = vld [vmem:[%s22200_s30 + $0x280] sm:$0xff]  }
 0x285   :  { %22248 = vst [vmem:[#allocation91_spill] sm:$0xff] %v17693_v4  ;;  %v7052_v38 = vmul.f32 %v17686_v55, %v17686_v55  ;;  %v7053_v16 = vmul.f32 %v17693_v4, %v17693_v4 }
 0x286   :  { %22247 = vst [vmem:[#allocation90_spill] sm:$0xff] %v17691_v52  ;;  %v7305_v15 = vadd.f32 %v7304_v63, %v7050_v9  ;;  %v6788_v62 = vadd.f32 %v6787_v2, %v17691_v52  ;;  %v7051_v50 = vmul.f32 %v17691_v52, %v17691_v52  ;;  %v14326_v12 = vpop.f32.mrb[48].mxu0 }
 0x287   :  { %v5666_v11 = vadd.f32 %v14326_v12, %v17342_v0  ;;  %v5657_v1 = vpop.f32.mrb[49].mxu0 }
 0x288   :  { %v6789_v14 = vadd.f32 %v6788_v62, %v17686_v55  ;;  %v7306_v58 = vadd.f32 %v7305_v15, %v7051_v50  ;;  %v5658_v9 = vadd.f32 %v17342_v0, %v5657_v1  ;;  %v14327_v3 = vpop.f32.mrb[50].mxu0 }
 0x289   :  { %v5669_v63 = vadd.f32 %v14327_v3, %v17342_v0  ;;  %v5660_v2 = vpop.f32.mrb[51].mxu0  ;;  %v17716_v62 = vmax.f32 %v5666_v11, 0.0 }
 0x28a   :  { %v6790_v12 = vadd.f32 %v6789_v14, %v17693_v4  ;;  %v7307_v52 = vadd.f32 %v7306_v58, %v7052_v38  ;;  %v17713_v25 = vmax.f32 %v5658_v9, 0.0  ;;  %v5661_v15 = vadd.f32 %v17342_v0, %v5660_v2  ;;  %v15390_v9 = vld [vmem:[%s22200_s30 + $0x288] sm:$0xff]  }
 0x28b   :  { %22250 = vst [vmem:[#allocation93_spill] sm:$0xff] %v17716_v62  ;;  %14433 = vmatmul.mubr.bf16.gmra.mrb[156].mxu0 %v15388_v10  ;;  %v17723_v3 = vmax.f32 %v5669_v63, 0.0 }
 0x28c   :  { %22249 = vst [vmem:[#allocation92_spill] sm:$0xff] %v17713_v25  ;;  %v7308_v50 = vadd.f32 %v7307_v52, %v7053_v16  ;;  %v6791_v1 = vadd.f32 %v6790_v12, %v17713_v25  ;;  %v7054_v55 = vmul.f32 %v17713_v25, %v17713_v25  ;;  %v17721_v5 = vmax.f32 %v5661_v15, 0.0  ;;  %14436 = vmatprep.mubr.bf16.mxu0 %v15389_v13  ;;  %v15391_v12 = vld [vmem:[%s22200_s30 + $0x290] sm:$0xff]  }
 0x28d   :  { %22252 = vst [vmem:[#allocation95_spill] sm:$0xff] %v17723_v3  ;;  %v7056_v16 = vmul.f32 %v17716_v62, %v17716_v62  ;;  %v7057_v15 = vmul.f32 %v17723_v3, %v17723_v3 }
 0x28e   :  { %22251 = vst [vmem:[#allocation94_spill] sm:$0xff] %v17721_v5  ;;  %v7309_v14 = vadd.f32 %v7308_v50, %v7054_v55  ;;  %v6792_v38 = vadd.f32 %v6791_v1, %v17721_v5  ;;  %v7055_v58 = vmul.f32 %v17721_v5, %v17721_v5  ;;  %v14330_v11 = vpop.f32.mrb[52].mxu0 }
 0x28f   :  { %v5682_v10 = vadd.f32 %v14330_v11, %v17342_v0  ;;  %v5673_v52 = vpop.f32.mrb[53].mxu0 }
 0x290   :  { %v6793_v13 = vadd.f32 %v6792_v38, %v17716_v62  ;;  %v7310_v63 = vadd.f32 %v7309_v14, %v7055_v58  ;;  %v5674_v55 = vadd.f32 %v17342_v0, %v5673_v52  ;;  %v14331_v2 = vpop.f32.mrb[54].mxu0 }
 0x291   :  { %v5685_v50 = vadd.f32 %v14331_v2, %v17342_v0  ;;  %v5676_v1 = vpop.f32.mrb[55].mxu0  ;;  %v17746_v38 = vmax.f32 %v5682_v10, 0.0 }
 0x292   :  { %v6794_v11 = vadd.f32 %v6793_v13, %v17723_v3  ;;  %v7311_v5 = vadd.f32 %v7310_v63, %v7056_v16  ;;  %v17743_v25 = vmax.f32 %v5674_v55, 0.0  ;;  %v5677_v14 = vadd.f32 %v17342_v0, %v5676_v1  ;;  %v15392_v55 = vld [vmem:[%s22200_s30 + $0x298] sm:$0xff]  }
 0x293   :  { %22254 = vst [vmem:[#allocation97_spill] sm:$0xff] %v17746_v38  ;;  %14437 = vmatmul.mubr.bf16.gmra.mrb[160].mxu0 %v15390_v9  ;;  %v17753_v2 = vmax.f32 %v5685_v50, 0.0 }
 0x294   :  { %22253 = vst [vmem:[#allocation96_spill] sm:$0xff] %v17743_v25  ;;  %v7312_v58 = vadd.f32 %v7311_v5, %v7057_v15  ;;  %v6795_v52 = vadd.f32 %v6794_v11, %v17743_v25  ;;  %v7058_v62 = vmul.f32 %v17743_v25, %v17743_v25  ;;  %v17751_v4 = vmax.f32 %v5677_v14, 0.0  ;;  %14440 = vmatprep.mubr.bf16.mxu0 %v15391_v12  ;;  %v15393_v11 = vld [vmem:[%s22200_s30 + $0x2a0] sm:$0xff]  }
 0x295   :  { %22256 = vst [vmem:[#allocation99_spill] sm:$0xff] %v17753_v2  ;;  %v7060_v15 = vmul.f32 %v17746_v38, %v17746_v38  ;;  %v7061_v14 = vmul.f32 %v17753_v2, %v17753_v2 }
 0x296   :  { %22255 = vst [vmem:[#allocation98_spill] sm:$0xff] %v17751_v4  ;;  %v7313_v13 = vadd.f32 %v7312_v58, %v7058_v62  ;;  %v6796_v16 = vadd.f32 %v6795_v52, %v17751_v4  ;;  %v7059_v63 = vmul.f32 %v17751_v4, %v17751_v4  ;;  %v14334_v10 = vpop.f32.mrb[56].mxu0 }
 0x297   :  { %v5698_v9 = vadd.f32 %v14334_v10, %v17342_v0  ;;  %v5689_v5 = vpop.f32.mrb[57].mxu0 }
 0x298   :  { %v6797_v12 = vadd.f32 %v6796_v16, %v17746_v38  ;;  %v7314_v50 = vadd.f32 %v7313_v13, %v7059_v63  ;;  %v5690_v62 = vadd.f32 %v17342_v0, %v5689_v5  ;;  %v14335_v1 = vpop.f32.mrb[58].mxu0 }
 0x299   :  { %v5701_v58 = vadd.f32 %v14335_v1, %v17342_v0  ;;  %v5692_v52 = vpop.f32.mrb[59].mxu0  ;;  %v17776_v16 = vmax.f32 %v5698_v9, 0.0 }
 0x29a   :  { %v6798_v10 = vadd.f32 %v6797_v12, %v17753_v2  ;;  %v7315_v4 = vadd.f32 %v7314_v50, %v7060_v15  ;;  %v17773_v25 = vmax.f32 %v5690_v62, 0.0  ;;  %v5693_v13 = vadd.f32 %v17342_v0, %v5692_v52  ;;  %v15394_v62 = vld [vmem:[%s22200_s30 + $0x2a8] sm:$0xff]  }
 0x29b   :  { %22258 = vst [vmem:[#allocation101_spill] sm:$0xff] %v17776_v16  ;;  %14441 = vmatmul.mubr.bf16.gmra.mrb[164].mxu0 %v15392_v55  ;;  %v17783_v1 = vmax.f32 %v5701_v58, 0.0 }
 0x29c   :  { %22257 = vst [vmem:[#allocation100_spill] sm:$0xff] %v17773_v25  ;;  %v7316_v63 = vadd.f32 %v7315_v4, %v7061_v14  ;;  %v6799_v5 = vadd.f32 %v6798_v10, %v17773_v25  ;;  %v7062_v38 = vmul.f32 %v17773_v25, %v17773_v25  ;;  %v17781_v3 = vmax.f32 %v5693_v13, 0.0  ;;  %14444 = vmatprep.mubr.bf16.mxu0 %v15393_v11  ;;  %v15395_v10 = vld [vmem:[%s22200_s30 + $0x2b0] sm:$0xff]  }
 0x29d   :  { %22260 = vst [vmem:[#allocation103_spill] sm:$0xff] %v17783_v1  ;;  %v7064_v14 = vmul.f32 %v17776_v16, %v17776_v16  ;;  %v7065_v13 = vmul.f32 %v17783_v1, %v17783_v1 }
 0x29e   :  { %22259 = vst [vmem:[#allocation102_spill] sm:$0xff] %v17781_v3  ;;  %v7317_v12 = vadd.f32 %v7316_v63, %v7062_v38  ;;  %v6800_v15 = vadd.f32 %v6799_v5, %v17781_v3  ;;  %v7063_v50 = vmul.f32 %v17781_v3, %v17781_v3  ;;  %v14338_v9 = vpop.f32.mrb[60].mxu0 }
 0x29f   :  { %v5714_v55 = vadd.f32 %v14338_v9, %v17342_v0  ;;  %v5705_v4 = vpop.f32.mrb[61].mxu0 }
 0x2a0   :  { %v6801_v11 = vadd.f32 %v6800_v15, %v17776_v16  ;;  %v7318_v58 = vadd.f32 %v7317_v12, %v7063_v50  ;;  %v5706_v38 = vadd.f32 %v17342_v0, %v5705_v4  ;;  %v14339_v52 = vpop.f32.mrb[62].mxu0 }
 0x2a1   :  { %v5717_v63 = vadd.f32 %v14339_v52, %v17342_v0  ;;  %v5708_v5 = vpop.f32.mrb[63].mxu0  ;;  %v17806_v15 = vmax.f32 %v5714_v55, 0.0 }
 0x2a2   :  { %v6802_v9 = vadd.f32 %v6801_v11, %v17783_v1  ;;  %v7319_v3 = vadd.f32 %v7318_v58, %v7064_v14  ;;  %v17803_v25 = vmax.f32 %v5706_v38, 0.0  ;;  %v5709_v12 = vadd.f32 %v17342_v0, %v5708_v5  ;;  %v15396_v38 = vld [vmem:[%s22200_s30 + $0x2b8] sm:$0xff]  }
 0x2a3   :  { %22262 = vst [vmem:[#allocation105_spill] sm:$0xff] %v17806_v15  ;;  %14445 = vmatmul.mubr.bf16.gmra.mrb[168].mxu0 %v15394_v62  ;;  %v17813_v52 = vmax.f32 %v5717_v63, 0.0 }
 0x2a4   :  { %22261 = vst [vmem:[#allocation104_spill] sm:$0xff] %v17803_v25  ;;  %v7320_v50 = vadd.f32 %v7319_v3, %v7065_v13  ;;  %v6803_v4 = vadd.f32 %v6802_v9, %v17803_v25  ;;  %v7066_v16 = vmul.f32 %v17803_v25, %v17803_v25  ;;  %v17811_v2 = vmax.f32 %v5709_v12, 0.0  ;;  %14448 = vmatprep.mubr.bf16.mxu0 %v15395_v10  ;;  %v15397_v9 = vld [vmem:[%s22200_s30 + $0x2c0] sm:$0xff]  }
 0x2a5   :  { %22264 = vst [vmem:[#allocation107_spill] sm:$0xff] %v17813_v52  ;;  %v7068_v13 = vmul.f32 %v17806_v15, %v17806_v15  ;;  %v7069_v12 = vmul.f32 %v17813_v52, %v17813_v52 }
 0x2a6   :  { %22263 = vst [vmem:[#allocation106_spill] sm:$0xff] %v17811_v2  ;;  %v7321_v11 = vadd.f32 %v7320_v50, %v7066_v16  ;;  %v6804_v14 = vadd.f32 %v6803_v4, %v17811_v2  ;;  %v7067_v58 = vmul.f32 %v17811_v2, %v17811_v2  ;;  %v14342_v55 = vpop.f32.mrb[64].mxu0 }
 0x2a7   :  { %v5730_v62 = vadd.f32 %v14342_v55, %v17342_v0  ;;  %v5721_v3 = vpop.f32.mrb[65].mxu0 }
 0x2a8   :  { %v6805_v10 = vadd.f32 %v6804_v14, %v17806_v15  ;;  %v7322_v63 = vadd.f32 %v7321_v11, %v7067_v58  ;;  %v5722_v16 = vadd.f32 %v17342_v0, %v5721_v3  ;;  %v14343_v5 = vpop.f32.mrb[66].mxu0 }
 0x2a9   :  { %v5733_v50 = vadd.f32 %v14343_v5, %v17342_v0  ;;  %v5724_v4 = vpop.f32.mrb[67].mxu0  ;;  %v17836_v14 = vmax.f32 %v5730_v62, 0.0 }
 0x2aa   :  { %v6806_v55 = vadd.f32 %v6805_v10, %v17813_v52  ;;  %v7323_v2 = vadd.f32 %v7322_v63, %v7068_v13  ;;  %v17833_v25 = vmax.f32 %v5722_v16, 0.0  ;;  %v5725_v11 = vadd.f32 %v17342_v0, %v5724_v4  ;;  %v15398_v16 = vld [vmem:[%s22200_s30 + $0x2c8] sm:$0xff]  }
 0x2ab   :  { %14449 = vmatmul.mubr.bf16.gmra.mrb[172].mxu0 %v15396_v38  ;;  %v17843_v5 = vmax.f32 %v5733_v50, 0.0 }
 0x2ac   :  { %v7324_v58 = vadd.f32 %v7323_v2, %v7069_v12  ;;  %v6807_v3 = vadd.f32 %v6806_v55, %v17833_v25  ;;  %v7070_v15 = vmul.f32 %v17833_v25, %v17833_v25  ;;  %v17841_v1 = vmax.f32 %v5725_v11, 0.0  ;;  %14452 = vmatprep.mubr.bf16.mxu0 %v15397_v9  ;;  %v15399_v55 = vld [vmem:[%s22200_s30 + $0x2d0] sm:$0xff]  }
 0x2ad   :  { %v7072_v12 = vmul.f32 %v17836_v14, %v17836_v14  ;;  %v7073_v11 = vmul.f32 %v17843_v5, %v17843_v5 }
 0x2ae   :  { %v7325_v10 = vadd.f32 %v7324_v58, %v7070_v15  ;;  %v6808_v13 = vadd.f32 %v6807_v3, %v17841_v1  ;;  %v7071_v63 = vmul.f32 %v17841_v1, %v17841_v1  ;;  %v14346_v62 = vpop.f32.mrb[68].mxu0 }
 0x2af   :  { %v5746_v38 = vadd.f32 %v14346_v62, %v17342_v0  ;;  %v5737_v2 = vpop.f32.mrb[69].mxu0 }
 0x2b0   :  { %v6809_v9 = vadd.f32 %v6808_v13, %v17836_v14  ;;  %v7326_v50 = vadd.f32 %v7325_v10, %v7071_v63  ;;  %v5738_v15 = vadd.f32 %v17342_v0, %v5737_v2  ;;  %v14347_v4 = vpop.f32.mrb[70].mxu0 }
 0x2b1   :  { %v5749_v58 = vadd.f32 %v14347_v4, %v17342_v0  ;;  %v5740_v3 = vpop.f32.mrb[71].mxu0  ;;  %v17866_v13 = vmax.f32 %v5746_v38, 0.0 }
 0x2b2   :  { %v6810_v62 = vadd.f32 %v6809_v9, %v17843_v5  ;;  %v7327_v52 = vadd.f32 %v7326_v50, %v7072_v12  ;;  %v17863_v17 = vmax.f32 %v5738_v15, 0.0  ;;  %v5741_v10 = vadd.f32 %v17342_v0, %v5740_v3  ;;  %v15400_v15 = vld [vmem:[%s22200_s30 + $0x2d8] sm:$0xff]  }
 0x2b3   :  { %14453 = vmatmul.mubr.bf16.gmra.mrb[176].mxu0 %v15398_v16  ;;  %v17873_v4 = vmax.f32 %v5749_v58, 0.0 }
 0x2b4   :  { %v7328_v63 = vadd.f32 %v7327_v52, %v7073_v11  ;;  %v6811_v2 = vadd.f32 %v6810_v62, %v17863_v17  ;;  %v7074_v26 = vmul.f32 %v17863_v17, %v17863_v17  ;;  %v17871_v6 = vmax.f32 %v5741_v10, 0.0  ;;  %14456 = vmatprep.mubr.bf16.mxu0 %v15399_v55  ;;  %v15401_v62 = vld [vmem:[%s22200_s30 + $0x2e0] sm:$0xff]  }
 0x2b5   :  { %v7076_v11 = vmul.f32 %v17866_v13, %v17866_v13  ;;  %v7077_v10 = vmul.f32 %v17873_v4, %v17873_v4 }
 0x2b6   :  { %v7329_v9 = vadd.f32 %v7328_v63, %v7074_v26  ;;  %v6812_v12 = vadd.f32 %v6811_v2, %v17871_v6  ;;  %v7075_v50 = vmul.f32 %v17871_v6, %v17871_v6  ;;  %v14350_v38 = vpop.f32.mrb[72].mxu0 }
 0x2b7   :  { %v5762_v16 = vadd.f32 %v14350_v38, %v17342_v0  ;;  %v5753_v52 = vpop.f32.mrb[73].mxu0 }
 0x2b8   :  { %v6813_v55 = vadd.f32 %v6812_v12, %v17866_v13  ;;  %v7330_v58 = vadd.f32 %v7329_v9, %v7075_v50  ;;  %v5754_v26 = vadd.f32 %v17342_v0, %v5753_v52  ;;  %v14351_v3 = vpop.f32.mrb[74].mxu0  ;;  %v17898_v9 = vld [vmem:[%s21892_s2] ss:$0 sm:$0xff] }
 0x2b9   :  { %v5765_v63 = vadd.f32 %v14351_v3, %v17342_v0  ;;  %v5756_v2 = vpop.f32.mrb[75].mxu0  ;;  %v17901_v50 = vmax.f32 %v5762_v16, 0.0 }
 0x2ba   :  { %v6814_v38 = vadd.f32 %v6813_v55, %v17873_v4  ;;  %v7331_v49 = vadd.f32 %v7330_v58, %v7076_v11  ;;  %v17893_v18 = vmax.f32 %v5754_v26, 0.0  ;;  %v5757_v12 = vadd.f32 %v17898_v9, %v5756_v2 }
 0x2bb   :  { %14457 = vmatmul.mubr.bf16.gmra.mrb[180].mxu0 %v15400_v15  ;;  %v17908_v11 = vmax.f32 %v5765_v63, 0.0  ;;  %v7080_v2 = vmul.f32 %v17901_v50, %v17901_v50 }
 0x2bc   :  { %v7332_v52 = vadd.f32 %v7331_v49, %v7077_v10  ;;  %v6815_v27 = vadd.f32 %v6814_v38, %v17893_v18  ;;  %v7078_v0 = vmul.f32 %v17893_v18, %v17893_v18  ;;  %v17906_v55 = vmax.f32 %v5757_v12, 0.0  ;;  %14460 = vmatprep.mubr.bf16.mxu0 %v15401_v62  ;;  %v15402_v10 = vld [vmem:[%s22200_s30 + $0x2e8] sm:$0xff]   ;;  %v15403_v12 = vld [vmem:[%s22200_s30 + $0x2f0] sm:$0xff]  }
 0x2be   :  { %v7333_v58 = vadd.f32 %v7332_v52, %v7078_v0  ;;  %v6816_v26 = vadd.f32 %v6815_v27, %v17906_v55  ;;  %v7079_v3 = vmul.f32 %v17906_v55, %v17906_v55  ;;  %v14354_v16 = vpop.f32.mrb[76].mxu0  ;;  %v7081_v52 = vmul.f32 %v17908_v11, %v17908_v11 }
 0x2bf   :  { %v5778_v15 = vadd.f32 %v17898_v9, %v14354_v16  ;;  %v5769_v49 = vpop.f32.mrb[77].mxu0 }
 0x2c0   :  { %v6817_v62 = vadd.f32 %v6816_v26, %v17901_v50  ;;  %v7334_v63 = vadd.f32 %v7333_v58, %v7079_v3  ;;  %v5770_v38 = vadd.f32 %v17898_v9, %v5769_v49  ;;  %v14355_v27 = vpop.f32.mrb[78].mxu0 }
 0x2c1   :  { %v5781_v0 = vadd.f32 %v17898_v9, %v14355_v27  ;;  %v5772_v16 = vpop.f32.mrb[79].mxu0  ;;  %v17931_v26 = vmax.f32 %v5778_v15, 0.0 }
 0x2c2   :  { %v6818_v7 = vadd.f32 %v6817_v62, %v17908_v11  ;;  %v7335_v61 = vadd.f32 %v7334_v63, %v7080_v2  ;;  %v17928_v19 = vmax.f32 %v5770_v38, 0.0  ;;  %v5773_v58 = vadd.f32 %v17898_v9, %v5772_v16  ;;  %v15405_v16 = vld [vmem:[%s22200_s30 + $0x300] sm:$0xff]  }
 0x2c3   :  { %14461 = vmatmul.mubr.bf16.gmra.mrb[184].mxu0 %v15402_v10  ;;  %v17938_v27 = vmax.f32 %v5781_v0, 0.0  ;;  %v7084_v38 = vmul.f32 %v17931_v26, %v17931_v26 }
 0x2c4   :  { %v7336_v3 = vadd.f32 %v7335_v61, %v7081_v52  ;;  %v6819_v49 = vadd.f32 %v6818_v7, %v17928_v19  ;;  %v7082_v28 = vmul.f32 %v17928_v19, %v17928_v19  ;;  %v17936_v8 = vmax.f32 %v5773_v58, 0.0  ;;  %14464 = vmatprep.mubr.bf16.mxu0 %v15403_v12  ;;  %v15404_v7 = vld [vmem:[%s22200_s30 + $0x2f8] sm:$0xff]  }
 0x2c5   :  { %v7085_v58 = vmul.f32 %v17938_v27, %v17938_v27 }
 0x2c6   :  { %v7337_v62 = vadd.f32 %v7336_v3, %v7082_v28  ;;  %v6820_v2 = vadd.f32 %v6819_v49, %v17936_v8  ;;  %v7083_v63 = vmul.f32 %v17936_v8, %v17936_v8  ;;  %v14358_v15 = vpop.f32.mrb[80].mxu0 }
 0x2c7   :  { %v5794_v10 = vadd.f32 %v17898_v9, %v14358_v15  ;;  %v5785_v61 = vpop.f32.mrb[81].mxu0 }
 0x2c8   :  { %v6821_v12 = vadd.f32 %v6820_v2, %v17931_v26  ;;  %v7338_v52 = vadd.f32 %v7337_v62, %v7083_v63  ;;  %v5786_v28 = vadd.f32 %v17898_v9, %v5785_v61  ;;  %v14359_v0 = vpop.f32.mrb[82].mxu0 }
 0x2c9   :  { %v5797_v3 = vadd.f32 %v17898_v9, %v14359_v0  ;;  %v5788_v49 = vpop.f32.mrb[83].mxu0  ;;  %v17961_v2 = vmax.f32 %v5794_v10, 0.0 }
 0x2ca   :  { %v6822_v15 = vadd.f32 %v6821_v12, %v17938_v27  ;;  %v7339_v57 = vadd.f32 %v7338_v52, %v7084_v38  ;;  %v17958_v20 = vmax.f32 %v5786_v28, 0.0  ;;  %v5789_v62 = vadd.f32 %v17898_v9, %v5788_v49  ;;  %v15406_v28 = vld [vmem:[%s22200_s30 + $0x308] sm:$0xff]  }
 0x2cb   :  { %14465 = vmatmul.mubr.bf16.gmra.mrb[188].mxu0 %v15404_v7  ;;  %v17968_v0 = vmax.f32 %v5797_v3, 0.0 }
 0x2cc   :  { %v7340_v63 = vadd.f32 %v7339_v57, %v7085_v58  ;;  %v6823_v61 = vadd.f32 %v6822_v15, %v17958_v20  ;;  %v7086_v29 = vmul.f32 %v17958_v20, %v17958_v20  ;;  %v17966_v59 = vmax.f32 %v5789_v62, 0.0  ;;  %14468 = vmatprep.mubr.bf16.mxu0 %v15405_v16  ;;  %v15407_v15 = vld [vmem:[%s22200_s30 + $0x310] sm:$0xff]  }
 0x2cd   :  { %v7088_v58 = vmul.f32 %v17961_v2, %v17961_v2  ;;  %v7089_v62 = vmul.f32 %v17968_v0, %v17968_v0 }
 0x2ce   :  { %v7341_v12 = vadd.f32 %v7340_v63, %v7086_v29  ;;  %v6824_v38 = vadd.f32 %v6823_v61, %v17966_v59  ;;  %v7087_v52 = vmul.f32 %v17966_v59, %v17966_v59  ;;  %v14362_v10 = vpop.f32.mrb[84].mxu0 }
 0x2cf   :  { %v5810_v7 = vadd.f32 %v17898_v9, %v14362_v10  ;;  %v5801_v57 = vpop.f32.mrb[85].mxu0 }
 0x2d0   :  { %v6825_v16 = vadd.f32 %v6824_v38, %v17961_v2  ;;  %v7342_v3 = vadd.f32 %v7341_v12, %v7087_v52  ;;  %v5802_v29 = vadd.f32 %v17898_v9, %v5801_v57  ;;  %v14363_v49 = vpop.f32.mrb[86].mxu0 }
 0x2d1   :  { %v5813_v63 = vadd.f32 %v17898_v9, %v14363_v49  ;;  %v5804_v61 = vpop.f32.mrb[87].mxu0  ;;  %v17991_v38 = vmax.f32 %v5810_v7, 0.0 }
 0x2d2   :  { %v6826_v10 = vadd.f32 %v6825_v16, %v17968_v0  ;;  %v7343_v53 = vadd.f32 %v7342_v3, %v7088_v58  ;;  %v17988_v21 = vmax.f32 %v5802_v29, 0.0  ;;  %v5805_v12 = vadd.f32 %v17898_v9, %v5804_v61  ;;  %v15408_v29 = vld [vmem:[%s22200_s30 + $0x318] sm:$0xff]  }
 0x2d3   :  { %14469 = vmatmul.mubr.bf16.gmra.mrb[192].mxu0 %v15406_v28  ;;  %v17998_v49 = vmax.f32 %v5813_v63, 0.0 }
 0x2d4   :  { %v7344_v52 = vadd.f32 %v7343_v53, %v7089_v62  ;;  %v6827_v57 = vadd.f32 %v6826_v10, %v17988_v21  ;;  %v7090_v30 = vmul.f32 %v17988_v21, %v17988_v21  ;;  %v17996_v54 = vmax.f32 %v5805_v12, 0.0  ;;  %14472 = vmatprep.mubr.bf16.mxu0 %v15407_v15  ;;  %v15409_v10 = vld [vmem:[%s22200_s30 + $0x320] sm:$0xff]  }
 0x2d5   :  { %v7092_v62 = vmul.f32 %v17991_v38, %v17991_v38  ;;  %v7093_v12 = vmul.f32 %v17998_v49, %v17998_v49 }
 0x2d6   :  { %v7345_v16 = vadd.f32 %v7344_v52, %v7090_v30  ;;  %v6828_v58 = vadd.f32 %v6827_v57, %v17996_v54  ;;  %v7091_v3 = vmul.f32 %v17996_v54, %v17996_v54  ;;  %v14366_v7 = vpop.f32.mrb[88].mxu0 }
 0x2d7   :  { %v5826_v28 = vadd.f32 %v17898_v9, %v14366_v7  ;;  %v5817_v53 = vpop.f32.mrb[89].mxu0 }
 0x2d8   :  { %v6829_v15 = vadd.f32 %v6828_v58, %v17991_v38  ;;  %v7346_v63 = vadd.f32 %v7345_v16, %v7091_v3  ;;  %v5818_v30 = vadd.f32 %v17898_v9, %v5817_v53  ;;  %v14367_v61 = vpop.f32.mrb[90].mxu0 }
 0x2d9   :  { %v5829_v52 = vadd.f32 %v17898_v9, %v14367_v61  ;;  %v5820_v57 = vpop.f32.mrb[91].mxu0  ;;  %v18021_v58 = vmax.f32 %v5826_v28, 0.0 }
 0x2da   :  { %v6830_v7 = vadd.f32 %v6829_v15, %v17998_v49  ;;  %v7347_v35 = vadd.f32 %v7346_v63, %v7092_v62  ;;  %v18018_v22 = vmax.f32 %v5818_v30, 0.0  ;;  %v5821_v16 = vadd.f32 %v17898_v9, %v5820_v57  ;;  %v15410_v30 = vld [vmem:[%s22200_s30 + $0x328] sm:$0xff]  }
 0x2db   :  { %14473 = vmatmul.mubr.bf16.gmra.mrb[196].mxu0 %v15408_v29  ;;  %v18028_v61 = vmax.f32 %v5829_v52, 0.0 }
 0x2dc   :  { %v7348_v3 = vadd.f32 %v7347_v35, %v7093_v12  ;;  %v6831_v53 = vadd.f32 %v6830_v7, %v18018_v22  ;;  %v7094_v31 = vmul.f32 %v18018_v22, %v18018_v22  ;;  %v18026_v39 = vmax.f32 %v5821_v16, 0.0  ;;  %14476 = vmatprep.mubr.bf16.mxu0 %v15409_v10  ;;  %v15411_v7 = vld [vmem:[%s22200_s30 + $0x330] sm:$0xff]  }
 0x2dd   :  { %v7096_v12 = vmul.f32 %v18021_v58, %v18021_v58  ;;  %v7097_v16 = vmul.f32 %v18028_v61, %v18028_v61 }
 0x2de   :  { %v7349_v15 = vadd.f32 %v7348_v3, %v7094_v31  ;;  %v6832_v62 = vadd.f32 %v6831_v53, %v18026_v39  ;;  %v7095_v63 = vmul.f32 %v18026_v39, %v18026_v39  ;;  %v14370_v28 = vpop.f32.mrb[92].mxu0 }
 0x2df   :  { %v5842_v29 = vadd.f32 %v17898_v9, %v14370_v28  ;;  %v5833_v35 = vpop.f32.mrb[93].mxu0 }
 0x2e0   :  { %v6833_v10 = vadd.f32 %v6832_v62, %v18021_v58  ;;  %v7350_v52 = vadd.f32 %v7349_v15, %v7095_v63  ;;  %v5834_v31 = vadd.f32 %v17898_v9, %v5833_v35  ;;  %v14371_v57 = vpop.f32.mrb[94].mxu0 }
 0x2e1   :  { %v5845_v3 = vadd.f32 %v17898_v9, %v14371_v57  ;;  %v5836_v53 = vpop.f32.mrb[95].mxu0  ;;  %v18051_v62 = vmax.f32 %v5842_v29, 0.0 }
 0x2e2   :  { %v6834_v28 = vadd.f32 %v6833_v10, %v18028_v61  ;;  %v7351_v56 = vadd.f32 %v7350_v52, %v7096_v12  ;;  %v18048_v23 = vmax.f32 %v5834_v31, 0.0  ;;  %v5837_v15 = vadd.f32 %v17898_v9, %v5836_v53  ;;  %v15412_v31 = vld [vmem:[%s22200_s30 + $0x338] sm:$0xff]  }
 0x2e3   :  { %14477 = vmatmul.mubr.bf16.gmra.mrb[200].mxu0 %v15410_v30  ;;  %v18058_v57 = vmax.f32 %v5845_v3, 0.0 }
 0x2e4   :  { %v7352_v63 = vadd.f32 %v7351_v56, %v7097_v16  ;;  %v6835_v35 = vadd.f32 %v6834_v28, %v18048_v23  ;;  %v7098_v32 = vmul.f32 %v18048_v23, %v18048_v23  ;;  %v18056_v60 = vmax.f32 %v5837_v15, 0.0  ;;  %14480 = vmatprep.mubr.bf16.mxu0 %v15411_v7  ;;  %v15413_v28 = vld [vmem:[%s22200_s30 + $0x340] sm:$0xff]  }
 0x2e5   :  { %v7100_v16 = vmul.f32 %v18051_v62, %v18051_v62  ;;  %v7101_v15 = vmul.f32 %v18058_v57, %v18058_v57 }
 0x2e6   :  { %v7353_v10 = vadd.f32 %v7352_v63, %v7098_v32  ;;  %v6836_v12 = vadd.f32 %v6835_v35, %v18056_v60  ;;  %v7099_v52 = vmul.f32 %v18056_v60, %v18056_v60  ;;  %v14374_v29 = vpop.f32.mrb[96].mxu0 }
 0x2e7   :  { %v5858_v30 = vadd.f32 %v17898_v9, %v14374_v29  ;;  %v5849_v56 = vpop.f32.mrb[97].mxu0 }
 0x2e8   :  { %v6837_v7 = vadd.f32 %v6836_v12, %v18051_v62  ;;  %v7354_v3 = vadd.f32 %v7353_v10, %v7099_v52  ;;  %v5850_v32 = vadd.f32 %v17898_v9, %v5849_v56  ;;  %v14375_v53 = vpop.f32.mrb[98].mxu0 }
 0x2e9   :  { %v5861_v63 = vadd.f32 %v17898_v9, %v14375_v53  ;;  %v5852_v35 = vpop.f32.mrb[99].mxu0  ;;  %v18081_v12 = vmax.f32 %v5858_v30, 0.0 }
 0x2ea   :  { %v6838_v29 = vadd.f32 %v6837_v7, %v18058_v57  ;;  %v7355_v51 = vadd.f32 %v7354_v3, %v7100_v16  ;;  %v18078_v24 = vmax.f32 %v5850_v32, 0.0  ;;  %v5853_v10 = vadd.f32 %v17898_v9, %v5852_v35  ;;  %v15414_v32 = vld [vmem:[%s22200_s30 + $0x348] sm:$0xff]  }
 0x2eb   :  { %22266 = vst [vmem:[#allocation109_spill] sm:$0xff] %v18081_v12  ;;  %14481 = vmatmul.mubr.bf16.gmra.mrb[204].mxu0 %v15412_v31  ;;  %v18088_v53 = vmax.f32 %v5861_v63, 0.0 }
 0x2ec   :  { %22265 = vst [vmem:[#allocation108_spill] sm:$0xff] %v18078_v24  ;;  %v7356_v52 = vadd.f32 %v7355_v51, %v7101_v15  ;;  %v6839_v56 = vadd.f32 %v6838_v29, %v18078_v24  ;;  %v7102_v43 = vmul.f32 %v18078_v24, %v18078_v24  ;;  %v18086_v48 = vmax.f32 %v5853_v10, 0.0  ;;  %14484 = vmatprep.mubr.bf16.mxu0 %v15413_v28  ;;  %v15415_v29 = vld [vmem:[%s22200_s30 + $0x350] sm:$0xff]  }
 0x2ed   :  { %22268 = vst [vmem:[#allocation111_spill] sm:$0xff] %v18088_v53  ;;  %v7104_v15 = vmul.f32 %v18081_v12, %v18081_v12  ;;  %v7105_v10 = vmul.f32 %v18088_v53, %v18088_v53 }
 0x2ee   :  { %22267 = vst [vmem:[#allocation110_spill] sm:$0xff] %v18086_v48  ;;  %v7357_v7 = vadd.f32 %v7356_v52, %v7102_v43  ;;  %v6840_v16 = vadd.f32 %v6839_v56, %v18086_v48  ;;  %v7103_v3 = vmul.f32 %v18086_v48, %v18086_v48  ;;  %v14378_v30 = vpop.f32.mrb[100].mxu0 }
 0x2ef   :  { %v5874_v31 = vadd.f32 %v17898_v9, %v14378_v30  ;;  %v5865_v51 = vpop.f32.mrb[101].mxu0 }
 0x2f0   :  { %v6841_v28 = vadd.f32 %v6840_v16, %v18081_v12  ;;  %v7358_v63 = vadd.f32 %v7357_v7, %v7103_v3  ;;  %v5866_v43 = vadd.f32 %v17898_v9, %v5865_v51  ;;  %v14379_v35 = vpop.f32.mrb[102].mxu0 }
 0x2f1   :  { %v5877_v52 = vadd.f32 %v17898_v9, %v14379_v35  ;;  %v5868_v56 = vpop.f32.mrb[103].mxu0  ;;  %v18111_v16 = vmax.f32 %v5874_v31, 0.0 }
 0x2f2   :  { %v6842_v30 = vadd.f32 %v6841_v28, %v18088_v53  ;;  %v7359_v37 = vadd.f32 %v7358_v63, %v7104_v15  ;;  %v18108_v47 = vmax.f32 %v5866_v43, 0.0  ;;  %v5869_v7 = vadd.f32 %v17898_v9, %v5868_v56  ;;  %v15416_v43 = vld [vmem:[%s22200_s30 + $0x358] sm:$0xff]  }
 0x2f3   :  { %22270 = vst [vmem:[#allocation113_spill] sm:$0xff] %v18111_v16  ;;  %14485 = vmatmul.mubr.bf16.gmra.mrb[208].mxu0 %v15414_v32  ;;  %v18118_v35 = vmax.f32 %v5877_v52, 0.0 }
 0x2f4   :  { %22269 = vst [vmem:[#allocation112_spill] sm:$0xff] %v18108_v47  ;;  %v7360_v3 = vadd.f32 %v7359_v37, %v7105_v10  ;;  %v6843_v51 = vadd.f32 %v6842_v30, %v18108_v47  ;;  %v7106_v33 = vmul.f32 %v18108_v47, %v18108_v47  ;;  %v18116_v41 = vmax.f32 %v5869_v7, 0.0  ;;  %14488 = vmatprep.mubr.bf16.mxu0 %v15415_v29  ;;  %v15417_v30 = vld [vmem:[%s22200_s30 + $0x360] sm:$0xff]  }
 0x2f5   :  { %22272 = vst [vmem:[#allocation115_spill] sm:$0xff] %v18118_v35  ;;  %v7108_v10 = vmul.f32 %v18111_v16, %v18111_v16  ;;  %v7109_v7 = vmul.f32 %v18118_v35, %v18118_v35 }
 0x2f6   :  { %22271 = vst [vmem:[#allocation114_spill] sm:$0xff] %v18116_v41  ;;  %v7361_v28 = vadd.f32 %v7360_v3, %v7106_v33  ;;  %v6844_v15 = vadd.f32 %v6843_v51, %v18116_v41  ;;  %v7107_v63 = vmul.f32 %v18116_v41, %v18116_v41  ;;  %v14382_v31 = vpop.f32.mrb[104].mxu0 }
 0x2f7   :  { %v5890_v32 = vadd.f32 %v17898_v9, %v14382_v31  ;;  %v5881_v37 = vpop.f32.mrb[105].mxu0 }
 0x2f8   :  { %v6845_v29 = vadd.f32 %v6844_v15, %v18111_v16  ;;  %v7362_v52 = vadd.f32 %v7361_v28, %v7107_v63  ;;  %v5882_v33 = vadd.f32 %v17898_v9, %v5881_v37  ;;  %v14383_v56 = vpop.f32.mrb[106].mxu0 }
 0x2f9   :  { %v5893_v3 = vadd.f32 %v17898_v9, %v14383_v56  ;;  %v5884_v51 = vpop.f32.mrb[107].mxu0  ;;  %v18141_v15 = vmax.f32 %v5890_v32, 0.0 }
 0x2fa   :  { %v6846_v31 = vadd.f32 %v6845_v29, %v18118_v35  ;;  %v7363_v36 = vadd.f32 %v7362_v52, %v7108_v10  ;;  %v18138_v40 = vmax.f32 %v5882_v33, 0.0  ;;  %v5885_v28 = vadd.f32 %v17898_v9, %v5884_v51  ;;  %v15418_v33 = vld [vmem:[%s22200_s30 + $0x368] sm:$0xff]  }
 0x2fb   :  { %22274 = vst [vmem:[#allocation117_spill] sm:$0xff] %v18141_v15  ;;  %14489 = vmatmul.mubr.bf16.gmra.mrb[212].mxu0 %v15416_v43  ;;  %v18148_v56 = vmax.f32 %v5893_v3, 0.0 }
 0x2fc   :  { %22273 = vst [vmem:[#allocation116_spill] sm:$0xff] %v18138_v40  ;;  %v7364_v63 = vadd.f32 %v7363_v36, %v7109_v7  ;;  %v6847_v37 = vadd.f32 %v6846_v31, %v18138_v40  ;;  %v7110_v34 = vmul.f32 %v18138_v40, %v18138_v40  ;;  %v18146_v46 = vmax.f32 %v5885_v28, 0.0  ;;  %14492 = vmatprep.mubr.bf16.mxu0 %v15417_v30  ;;  %v15419_v31 = vld [vmem:[%s22200_s30 + $0x370] sm:$0xff]  }
 0x2fd   :  { %22276 = vst [vmem:[#allocation119_spill] sm:$0xff] %v18148_v56  ;;  %v7112_v7 = vmul.f32 %v18141_v15, %v18141_v15  ;;  %v7113_v28 = vmul.f32 %v18148_v56, %v18148_v56 }
 0x2fe   :  { %22275 = vst [vmem:[#allocation118_spill] sm:$0xff] %v18146_v46  ;;  %v7365_v29 = vadd.f32 %v7364_v63, %v7110_v34  ;;  %v6848_v10 = vadd.f32 %v6847_v37, %v18146_v46  ;;  %v7111_v52 = vmul.f32 %v18146_v46, %v18146_v46  ;;  %v14386_v32 = vpop.f32.mrb[108].mxu0 }
 0x2ff   :  { %v5906_v43 = vadd.f32 %v17898_v9, %v14386_v32  ;;  %v5897_v36 = vpop.f32.mrb[109].mxu0 }
 0x300   :  { %v6849_v30 = vadd.f32 %v6848_v10, %v18141_v15  ;;  %v7366_v3 = vadd.f32 %v7365_v29, %v7111_v52  ;;  %v5898_v34 = vadd.f32 %v17898_v9, %v5897_v36  ;;  %v14387_v51 = vpop.f32.mrb[110].mxu0 }
 0x301   :  { %v5909_v63 = vadd.f32 %v17898_v9, %v14387_v51  ;;  %v5900_v37 = vpop.f32.mrb[111].mxu0  ;;  %v18171_v10 = vmax.f32 %v5906_v43, 0.0 }
 0x302   :  { %v6850_v32 = vadd.f32 %v6849_v30, %v18148_v56  ;;  %v7367_v44 = vadd.f32 %v7366_v3, %v7112_v7  ;;  %v18168_v45 = vmax.f32 %v5898_v34, 0.0  ;;  %v5901_v29 = vadd.f32 %v17898_v9, %v5900_v37  ;;  %v15420_v34 = vld [vmem:[%s22200_s30 + $0x378] sm:$0xff]  }
 0x303   :  { %22278 = vst [vmem:[#allocation121_spill] sm:$0xff] %v18171_v10  ;;  %14493 = vmatmul.mubr.bf16.gmra.mrb[216].mxu0 %v15418_v33  ;;  %v18178_v51 = vmax.f32 %v5909_v63, 0.0 }
 0x304   :  { %22277 = vst [vmem:[#allocation120_spill] sm:$0xff] %v18168_v45  ;;  %v7368_v52 = vadd.f32 %v7367_v44, %v7113_v28  ;;  %v6851_v36 = vadd.f32 %v6850_v32, %v18168_v45  ;;  %v7114_v42 = vmul.f32 %v18168_v45, %v18168_v45  ;;  %v18176_v15 = vmax.f32 %v5901_v29, 0.0  ;;  %14496 = vmatprep.mubr.bf16.mxu0 %v15419_v31  ;;  %v15421_v32 = vld [vmem:[%s22200_s30 + $0x380] sm:$0xff]  }
 0x305   :  { %22280 = vst [vmem:[#allocation123_spill] sm:$0xff] %v18178_v51  ;;  %v7116_v28 = vmul.f32 %v18171_v10, %v18171_v10  ;;  %v7117_v29 = vmul.f32 %v18178_v51, %v18178_v51 }
 0x306   :  { %22279 = vst [vmem:[#allocation122_spill] sm:$0xff] %v18176_v15  ;;  %v7369_v30 = vadd.f32 %v7368_v52, %v7114_v42  ;;  %v6852_v7 = vadd.f32 %v6851_v36, %v18176_v15  ;;  %v7115_v3 = vmul.f32 %v18176_v15, %v18176_v15  ;;  %v14390_v43 = vpop.f32.mrb[112].mxu0 }
 0x307   :  { %v5922_v33 = vadd.f32 %v17898_v9, %v14390_v43  ;;  %v5913_v44 = vpop.f32.mrb[113].mxu0 }
 0x308   :  { %v6853_v31 = vadd.f32 %v6852_v7, %v18171_v10  ;;  %v7370_v63 = vadd.f32 %v7369_v30, %v7115_v3  ;;  %v5914_v42 = vadd.f32 %v17898_v9, %v5913_v44  ;;  %v14391_v37 = vpop.f32.mrb[114].mxu0 }
 0x309   :  { %v5925_v52 = vadd.f32 %v17898_v9, %v14391_v37  ;;  %v5916_v36 = vpop.f32.mrb[115].mxu0  ;;  %v18201_v7 = vmax.f32 %v5922_v33, 0.0 }
 0x30a   :  { %v6854_v43 = vadd.f32 %v6853_v31, %v18178_v51  ;;  %v7371_v15 = vadd.f32 %v7370_v63, %v7116_v28  ;;  %v18198_v45 = vmax.f32 %v5914_v42, 0.0  ;;  %v5917_v30 = vadd.f32 %v17898_v9, %v5916_v36  ;;  %v15422_v42 = vld [vmem:[%s22200_s30 + $0x388] sm:$0xff]  }
 0x30b   :  { %22282 = vst [vmem:[#allocation125_spill] sm:$0xff] %v18201_v7  ;;  %14497 = vmatmul.mubr.bf16.gmra.mrb[220].mxu0 %v15420_v34  ;;  %v18208_v37 = vmax.f32 %v5925_v52, 0.0 }
 0x30c   :  { %22281 = vst [vmem:[#allocation124_spill] sm:$0xff] %v18198_v45  ;;  %v7372_v3 = vadd.f32 %v7371_v15, %v7117_v29  ;;  %v6855_v44 = vadd.f32 %v6854_v43, %v18198_v45  ;;  %v7118_v10 = vmul.f32 %v18198_v45, %v18198_v45  ;;  %v18206_v56 = vmax.f32 %v5917_v30, 0.0  ;;  %14500 = vmatprep.mubr.bf16.mxu0 %v15421_v32  ;;  %v15423_v43 = vld [vmem:[%s22200_s30 + $0x390] sm:$0xff]  }
 0x30d   :  { %22284 = vst [vmem:[#allocation127_spill] sm:$0xff] %v18208_v37  ;;  %v7120_v29 = vmul.f32 %v18201_v7, %v18201_v7  ;;  %v7121_v30 = vmul.f32 %v18208_v37, %v18208_v37 }
 0x30e   :  { %22283 = vst [vmem:[#allocation126_spill] sm:$0xff] %v18206_v56  ;;  %v7373_v31 = vadd.f32 %v7372_v3, %v7118_v10  ;;  %v6856_v28 = vadd.f32 %v6855_v44, %v18206_v56  ;;  %v7119_v63 = vmul.f32 %v18206_v56, %v18206_v56  ;;  %v14394_v33 = vpop.f32.mrb[116].mxu0 }
 0x30f   :  { %v5938_v34 = vadd.f32 %v17898_v9, %v14394_v33  ;;  %v5929_v15 = vpop.f32.mrb[117].mxu0 }
 0x310   :  { %v6857_v32 = vadd.f32 %v6856_v28, %v18201_v7  ;;  %v7374_v52 = vadd.f32 %v7373_v31, %v7119_v63  ;;  %v5930_v10 = vadd.f32 %v17898_v9, %v5929_v15  ;;  %v14395_v36 = vpop.f32.mrb[118].mxu0 }
 0x311   :  { %v5941_v3 = vadd.f32 %v17898_v9, %v14395_v36  ;;  %v5932_v44 = vpop.f32.mrb[119].mxu0  ;;  %v18231_v28 = vmax.f32 %v5938_v34, 0.0 }
 0x312   :  { %v6858_v33 = vadd.f32 %v6857_v32, %v18208_v37  ;;  %v7375_v56 = vadd.f32 %v7374_v52, %v7120_v29  ;;  %v18228_v45 = vmax.f32 %v5930_v10, 0.0  ;;  %v5933_v31 = vadd.f32 %v17898_v9, %v5932_v44  ;;  %v15424_v10 = vld [vmem:[%s22200_s30 + $0x398] sm:$0xff]  }
 0x313   :  { %22286 = vst [vmem:[#allocation129_spill] sm:$0xff] %v18231_v28  ;;  %14501 = vmatmul.mubr.bf16.gmra.mrb[224].mxu0 %v15422_v42  ;;  %v18238_v36 = vmax.f32 %v5941_v3, 0.0 }
 0x314   :  { %22285 = vst [vmem:[#allocation128_spill] sm:$0xff] %v18228_v45  ;;  %v7376_v63 = vadd.f32 %v7375_v56, %v7121_v30  ;;  %v6859_v15 = vadd.f32 %v6858_v33, %v18228_v45  ;;  %v7122_v7 = vmul.f32 %v18228_v45, %v18228_v45  ;;  %v18236_v51 = vmax.f32 %v5933_v31, 0.0  ;;  %14504 = vmatprep.mubr.bf16.mxu0 %v15423_v43  ;;  %v15425_v33 = vld [vmem:[%s22200_s30 + $0x3a0] sm:$0xff]  }
 0x315   :  { %22288 = vst [vmem:[#allocation131_spill] sm:$0xff] %v18238_v36  ;;  %v7124_v30 = vmul.f32 %v18231_v28, %v18231_v28  ;;  %v7125_v31 = vmul.f32 %v18238_v36, %v18238_v36 }
 0x316   :  { %22287 = vst [vmem:[#allocation130_spill] sm:$0xff] %v18236_v51  ;;  %v7377_v32 = vadd.f32 %v7376_v63, %v7122_v7  ;;  %v6860_v29 = vadd.f32 %v6859_v15, %v18236_v51  ;;  %v7123_v52 = vmul.f32 %v18236_v51, %v18236_v51  ;;  %v14398_v34 = vpop.f32.mrb[120].mxu0 }
 0x317   :  { %v5954_v42 = vadd.f32 %v17898_v9, %v14398_v34  ;;  %v5945_v56 = vpop.f32.mrb[121].mxu0 }
 0x318   :  { %v6861_v43 = vadd.f32 %v6860_v29, %v18231_v28  ;;  %v7378_v3 = vadd.f32 %v7377_v32, %v7123_v52  ;;  %v5946_v7 = vadd.f32 %v17898_v9, %v5945_v56  ;;  %v14399_v44 = vpop.f32.mrb[122].mxu0 }
 0x319   :  { %v5957_v63 = vadd.f32 %v17898_v9, %v14399_v44  ;;  %v5948_v15 = vpop.f32.mrb[123].mxu0  ;;  %v18261_v29 = vmax.f32 %v5954_v42, 0.0 }
 0x31a   :  { %v6862_v34 = vadd.f32 %v6861_v43, %v18238_v36  ;;  %v7379_v51 = vadd.f32 %v7378_v3, %v7124_v30  ;;  %v18258_v45 = vmax.f32 %v5946_v7, 0.0  ;;  %v5949_v32 = vadd.f32 %v17898_v9, %v5948_v15  ;;  %v15426_v7 = vld [vmem:[%s22200_s30 + $0x3a8] sm:$0xff]  }
 0x31b   :  { %22290 = vst [vmem:[#allocation133_spill] sm:$0xff] %v18261_v29  ;;  %14505 = vmatmul.mubr.bf16.gmra.mrb[228].mxu0 %v15424_v10  ;;  %v18268_v44 = vmax.f32 %v5957_v63, 0.0 }
 0x31c   :  { %22289 = vst [vmem:[#allocation132_spill] sm:$0xff] %v18258_v45  ;;  %v7380_v52 = vadd.f32 %v7379_v51, %v7125_v31  ;;  %v6863_v56 = vadd.f32 %v6862_v34, %v18258_v45  ;;  %v7126_v28 = vmul.f32 %v18258_v45, %v18258_v45  ;;  %v18266_v37 = vmax.f32 %v5949_v32, 0.0  ;;  %14508 = vmatprep.mubr.bf16.mxu0 %v15425_v33  ;;  %v15427_v34 = vld [vmem:[%s22200_s30 + $0x3b0] sm:$0xff]  }
 0x31d   :  { %22292 = vst [vmem:[#allocation135_spill] sm:$0xff] %v18268_v44  ;;  %v7128_v31 = vmul.f32 %v18261_v29, %v18261_v29  ;;  %v7129_v32 = vmul.f32 %v18268_v44, %v18268_v44 }
 0x31e   :  { %22291 = vst [vmem:[#allocation134_spill] sm:$0xff] %v18266_v37  ;;  %v7381_v43 = vadd.f32 %v7380_v52, %v7126_v28  ;;  %v6864_v30 = vadd.f32 %v6863_v56, %v18266_v37  ;;  %v7127_v3 = vmul.f32 %v18266_v37, %v18266_v37  ;;  %v14402_v42 = vpop.f32.mrb[124].mxu0 }
 0x31f   :  { %v5970_v10 = vadd.f32 %v17898_v9, %v14402_v42  ;;  %v5961_v51 = vpop.f32.mrb[125].mxu0 }
 0x320   :  { %v6865_v33 = vadd.f32 %v6864_v30, %v18261_v29  ;;  %v7382_v63 = vadd.f32 %v7381_v43, %v7127_v3  ;;  %v5962_v28 = vadd.f32 %v17898_v9, %v5961_v51  ;;  %v14403_v15 = vpop.f32.mrb[126].mxu0 }
 0x321   :  { %v5973_v52 = vadd.f32 %v17898_v9, %v14403_v15  ;;  %v5964_v56 = vpop.f32.mrb[127].mxu0  ;;  %v18291_v30 = vmax.f32 %v5970_v10, 0.0 }
 0x322   :  { %v6866_v42 = vadd.f32 %v6865_v33, %v18268_v44  ;;  %v7383_v37 = vadd.f32 %v7382_v63, %v7128_v31  ;;  %v18288_v45 = vmax.f32 %v5962_v28, 0.0  ;;  %v5965_v43 = vadd.f32 %v17898_v9, %v5964_v56  ;;  %v15428_v28 = vld [vmem:[%s22200_s30 + $0x3b8] sm:$0xff]  }
 0x323   :  { %22294 = vst [vmem:[#allocation137_spill] sm:$0xff] %v18291_v30  ;;  %14509 = vmatmul.mubr.bf16.gmra.mrb[232].mxu0 %v15426_v7  ;;  %v18298_v15 = vmax.f32 %v5973_v52, 0.0 }
 0x324   :  { %22293 = vst [vmem:[#allocation136_spill] sm:$0xff] %v18288_v45  ;;  %v7384_v3 = vadd.f32 %v7383_v37, %v7129_v32  ;;  %v6867_v51 = vadd.f32 %v6866_v42, %v18288_v45  ;;  %v7130_v29 = vmul.f32 %v18288_v45, %v18288_v45  ;;  %v18296_v36 = vmax.f32 %v5965_v43, 0.0  ;;  %14512 = vmatprep.mubr.bf16.mxu0 %v15427_v34  ;;  %v15429_v42 = vld [vmem:[%s22200_s30 + $0x3c0] sm:$0xff]  }
 0x325   :  { %22296 = vst [vmem:[#allocation139_spill] sm:$0xff] %v18298_v15  ;;  %v7132_v32 = vmul.f32 %v18291_v30, %v18291_v30  ;;  %v7133_v43 = vmul.f32 %v18298_v15, %v18298_v15 }
 0x326   :  { %22295 = vst [vmem:[#allocation138_spill] sm:$0xff] %v18296_v36  ;;  %v7385_v33 = vadd.f32 %v7384_v3, %v7130_v29  ;;  %v6868_v31 = vadd.f32 %v6867_v51, %v18296_v36  ;;  %v7131_v63 = vmul.f32 %v18296_v36, %v18296_v36  ;;  %v14406_v10 = vpop.f32.mrb[128].mxu0 }
 0x327   :  { %v5986_v7 = vadd.f32 %v17898_v9, %v14406_v10  ;;  %v5977_v37 = vpop.f32.mrb[129].mxu0 }
 0x328   :  { %v6869_v34 = vadd.f32 %v6868_v31, %v18291_v30  ;;  %v7386_v52 = vadd.f32 %v7385_v33, %v7131_v63  ;;  %v5978_v29 = vadd.f32 %v17898_v9, %v5977_v37  ;;  %v14407_v56 = vpop.f32.mrb[130].mxu0 }
 0x329   :  { %v5989_v3 = vadd.f32 %v17898_v9, %v14407_v56  ;;  %v5980_v51 = vpop.f32.mrb[131].mxu0  ;;  %v18321_v31 = vmax.f32 %v5986_v7, 0.0 }
 0x32a   :  { %v6870_v10 = vadd.f32 %v6869_v34, %v18298_v15  ;;  %v7387_v36 = vadd.f32 %v7386_v52, %v7132_v32  ;;  %v18318_v45 = vmax.f32 %v5978_v29, 0.0  ;;  %v5981_v33 = vadd.f32 %v17898_v9, %v5980_v51  ;;  %v15430_v29 = vld [vmem:[%s22200_s30 + $0x3c8] sm:$0xff]  }
 0x32b   :  { %22298 = vst [vmem:[#allocation141_spill] sm:$0xff] %v18321_v31  ;;  %14513 = vmatmul.mubr.bf16.gmra.mrb[236].mxu0 %v15428_v28  ;;  %v18328_v56 = vmax.f32 %v5989_v3, 0.0 }
 0x32c   :  { %22297 = vst [vmem:[#allocation140_spill] sm:$0xff] %v18318_v45  ;;  %v7388_v63 = vadd.f32 %v7387_v36, %v7133_v43  ;;  %v6871_v37 = vadd.f32 %v6870_v10, %v18318_v45  ;;  %v7134_v30 = vmul.f32 %v18318_v45, %v18318_v45  ;;  %v18326_v44 = vmax.f32 %v5981_v33, 0.0  ;;  %14516 = vmatprep.mubr.bf16.mxu0 %v15429_v42  ;;  %v15431_v10 = vld [vmem:[%s22200_s30 + $0x3d0] sm:$0xff]  }
 0x32d   :  { %22300 = vst [vmem:[#allocation143_spill] sm:$0xff] %v18328_v56  ;;  %v7136_v43 = vmul.f32 %v18321_v31, %v18321_v31  ;;  %v7137_v33 = vmul.f32 %v18328_v56, %v18328_v56 }
 0x32e   :  { %22299 = vst [vmem:[#allocation142_spill] sm:$0xff] %v18326_v44  ;;  %v7389_v34 = vadd.f32 %v7388_v63, %v7134_v30  ;;  %v6872_v32 = vadd.f32 %v6871_v37, %v18326_v44  ;;  %v7135_v52 = vmul.f32 %v18326_v44, %v18326_v44  ;;  %v14410_v7 = vpop.f32.mrb[132].mxu0 }
 0x32f   :  { %v6002_v28 = vadd.f32 %v17898_v9, %v14410_v7  ;;  %v5993_v36 = vpop.f32.mrb[133].mxu0 }
 0x330   :  { %v6873_v42 = vadd.f32 %v6872_v32, %v18321_v31  ;;  %v7390_v3 = vadd.f32 %v7389_v34, %v7135_v52  ;;  %v5994_v30 = vadd.f32 %v17898_v9, %v5993_v36  ;;  %v14411_v51 = vpop.f32.mrb[134].mxu0 }
 0x331   :  { %v6005_v63 = vadd.f32 %v17898_v9, %v14411_v51  ;;  %v5996_v37 = vpop.f32.mrb[135].mxu0  ;;  %v18351_v32 = vmax.f32 %v6002_v28, 0.0 }
 0x332   :  { %v6874_v7 = vadd.f32 %v6873_v42, %v18328_v56  ;;  %v7391_v44 = vadd.f32 %v7390_v3, %v7136_v43  ;;  %v18348_v45 = vmax.f32 %v5994_v30, 0.0  ;;  %v5997_v34 = vadd.f32 %v17898_v9, %v5996_v37  ;;  %v15432_v30 = vld [vmem:[%s22200_s30 + $0x3d8] sm:$0xff]  }
 0x333   :  { %22302 = vst [vmem:[#allocation145_spill] sm:$0xff] %v18351_v32  ;;  %14517 = vmatmul.mubr.bf16.gmra.mrb[240].mxu0 %v15430_v29  ;;  %v18358_v51 = vmax.f32 %v6005_v63, 0.0 }
 0x334   :  { %22301 = vst [vmem:[#allocation144_spill] sm:$0xff] %v18348_v45  ;;  %v7392_v52 = vadd.f32 %v7391_v44, %v7137_v33  ;;  %v6875_v36 = vadd.f32 %v6874_v7, %v18348_v45  ;;  %v7138_v31 = vmul.f32 %v18348_v45, %v18348_v45  ;;  %v18356_v15 = vmax.f32 %v5997_v34, 0.0  ;;  %14520 = vmatprep.mubr.bf16.mxu0 %v15431_v10  ;;  %v15433_v7 = vld [vmem:[%s22200_s30 + $0x3e0] sm:$0xff]  }
 0x335   :  { %22304 = vst [vmem:[#allocation147_spill] sm:$0xff] %v18358_v51  ;;  %v7140_v33 = vmul.f32 %v18351_v32, %v18351_v32  ;;  %v7141_v34 = vmul.f32 %v18358_v51, %v18358_v51 }
 0x336   :  { %22303 = vst [vmem:[#allocation146_spill] sm:$0xff] %v18356_v15  ;;  %v7393_v42 = vadd.f32 %v7392_v52, %v7138_v31  ;;  %v6876_v43 = vadd.f32 %v6875_v36, %v18356_v15  ;;  %v7139_v3 = vmul.f32 %v18356_v15, %v18356_v15  ;;  %v14414_v28 = vpop.f32.mrb[136].mxu0 }
 0x337   :  { %v6018_v29 = vadd.f32 %v17898_v9, %v14414_v28  ;;  %v6009_v44 = vpop.f32.mrb[137].mxu0 }
 0x338   :  { %v6877_v10 = vadd.f32 %v6876_v43, %v18351_v32  ;;  %v7394_v63 = vadd.f32 %v7393_v42, %v7139_v3  ;;  %v6010_v31 = vadd.f32 %v17898_v9, %v6009_v44  ;;  %v14415_v37 = vpop.f32.mrb[138].mxu0 }
 0x339   :  { %v6021_v52 = vadd.f32 %v17898_v9, %v14415_v37  ;;  %v6012_v36 = vpop.f32.mrb[139].mxu0  ;;  %v18381_v43 = vmax.f32 %v6018_v29, 0.0 }
 0x33a   :  { %v6878_v28 = vadd.f32 %v6877_v10, %v18358_v51  ;;  %v7395_v15 = vadd.f32 %v7394_v63, %v7140_v33  ;;  %v18378_v45 = vmax.f32 %v6010_v31, 0.0  ;;  %v6013_v42 = vadd.f32 %v17898_v9, %v6012_v36  ;;  %v15434_v31 = vld [vmem:[%s22200_s30 + $0x3e8] sm:$0xff]  }
 0x33b   :  { %22306 = vst [vmem:[#allocation149_spill] sm:$0xff] %v18381_v43  ;;  %14521 = vmatmul.mubr.bf16.gmra.mrb[244].mxu0 %v15432_v30  ;;  %v18388_v37 = vmax.f32 %v6021_v52, 0.0 }
 0x33c   :  { %22305 = vst [vmem:[#allocation148_spill] sm:$0xff] %v18378_v45  ;;  %v7396_v3 = vadd.f32 %v7395_v15, %v7141_v34  ;;  %v6879_v44 = vadd.f32 %v6878_v28, %v18378_v45  ;;  %v7142_v32 = vmul.f32 %v18378_v45, %v18378_v45  ;;  %v18386_v56 = vmax.f32 %v6013_v42, 0.0  ;;  %14524 = vmatprep.mubr.bf16.mxu0 %v15433_v7  ;;  %v15435_v28 = vld [vmem:[%s22200_s30 + $0x3f0] sm:$0xff]  }
 0x33d   :  { %22308 = vst [vmem:[#allocation151_spill] sm:$0xff] %v18388_v37  ;;  %v7144_v34 = vmul.f32 %v18381_v43, %v18381_v43  ;;  %v7145_v42 = vmul.f32 %v18388_v37, %v18388_v37 }
 0x33e   :  { %22307 = vst [vmem:[#allocation150_spill] sm:$0xff] %v18386_v56  ;;  %v7397_v10 = vadd.f32 %v7396_v3, %v7142_v32  ;;  %v6880_v33 = vadd.f32 %v6879_v44, %v18386_v56  ;;  %v7143_v63 = vmul.f32 %v18386_v56, %v18386_v56  ;;  %v14418_v29 = vpop.f32.mrb[140].mxu0 }
 0x33f   :  { %v6034_v30 = vadd.f32 %v17898_v9, %v14418_v29  ;;  %v6025_v15 = vpop.f32.mrb[141].mxu0 }
 0x340   :  { %v6881_v7 = vadd.f32 %v6880_v33, %v18381_v43  ;;  %v7398_v52 = vadd.f32 %v7397_v10, %v7143_v63  ;;  %v6026_v32 = vadd.f32 %v17898_v9, %v6025_v15  ;;  %v14419_v36 = vpop.f32.mrb[142].mxu0 }
 0x341   :  { %v6037_v3 = vadd.f32 %v17898_v9, %v14419_v36  ;;  %v6028_v44 = vpop.f32.mrb[143].mxu0  ;;  %v18411_v33 = vmax.f32 %v6034_v30, 0.0 }
 0x342   :  { %v6882_v29 = vadd.f32 %v6881_v7, %v18388_v37  ;;  %v7399_v56 = vadd.f32 %v7398_v52, %v7144_v34  ;;  %v18408_v45 = vmax.f32 %v6026_v32, 0.0  ;;  %v6029_v10 = vadd.f32 %v17898_v9, %v6028_v44  ;;  %v15436_v32 = vld [vmem:[%s22200_s30 + $0x3f8] sm:$0xff]  }
 0x343   :  { %22310 = vst [vmem:[#allocation153_spill] sm:$0xff] %v18411_v33  ;;  %14525 = vmatmul.mubr.bf16.gmra.mrb[248].mxu0 %v15434_v31  ;;  %v18418_v36 = vmax.f32 %v6037_v3, 0.0 }
 0x344   :  { %22309 = vst [vmem:[#allocation152_spill] sm:$0xff] %v18408_v45  ;;  %v7400_v63 = vadd.f32 %v7399_v56, %v7145_v42  ;;  %v6883_v15 = vadd.f32 %v6882_v29, %v18408_v45  ;;  %v7146_v43 = vmul.f32 %v18408_v45, %v18408_v45  ;;  %v18416_v51 = vmax.f32 %v6029_v10, 0.0  ;;  %14528 = vmatprep.mubr.bf16.mxu0 %v15435_v28 }
 0x345   :  { %22312 = vst [vmem:[#allocation155_spill] sm:$0xff] %v18418_v36  ;;  %v7148_v42 = vmul.f32 %v18411_v33, %v18411_v33  ;;  %v7149_v29 = vmul.f32 %v18418_v36, %v18418_v36 }
 0x346   :  { %22311 = vst [vmem:[#allocation154_spill] sm:$0xff] %v18416_v51  ;;  %v7401_v7 = vadd.f32 %v7400_v63, %v7146_v43  ;;  %v6884_v34 = vadd.f32 %v6883_v15, %v18416_v51  ;;  %v7147_v52 = vmul.f32 %v18416_v51, %v18416_v51  ;;  %v14422_v30 = vpop.f32.mrb[144].mxu0 }
 0x347   :  { %v6050_v31 = vadd.f32 %v17898_v9, %v14422_v30  ;;  %v6041_v56 = vpop.f32.mrb[145].mxu0 }
 0x348   :  { %v6885_v28 = vadd.f32 %v6884_v34, %v18411_v33  ;;  %v7402_v3 = vadd.f32 %v7401_v7, %v7147_v52  ;;  %v6042_v43 = vadd.f32 %v17898_v9, %v6041_v56  ;;  %v14423_v44 = vpop.f32.mrb[146].mxu0 }
 0x349   :  { %v6053_v10 = vadd.f32 %v17898_v9, %v14423_v44  ;;  %v6044_v63 = vpop.f32.mrb[147].mxu0  ;;  %v18438_v37 = vmax.f32 %v6050_v31, 0.0  ;;  %v18453_v31 = vld [vmem:[%s21892_s2] ss:$0 sm:$0xff] }
 0x34a   :  { %v6886_v15 = vadd.f32 %v6885_v28, %v18418_v36  ;;  %v7403_v30 = vadd.f32 %v7402_v3, %v7148_v42  ;;  %v18435_v51 = vmax.f32 %v6042_v43, 0.0  ;;  %v6045_v45 = vadd.f32 %v17898_v9, %v6044_v63 }
 0x34b   :  { %22314 = vst [vmem:[#allocation157_spill] sm:$0xff] %v18438_v37  ;;  %14529 = vmatmul.mubr.bf16.gmra.mrb[252].mxu0 %v15436_v32  ;;  %v18445_v44 = vmax.f32 %v6053_v10, 0.0 }
 0x34c   :  { %22313 = vst [vmem:[#allocation156_spill] sm:$0xff] %v18435_v51  ;;  %v7404_v7 = vadd.f32 %v7403_v30, %v7149_v29  ;;  %v6887_v34 = vadd.f32 %v6886_v15, %v18435_v51  ;;  %v7150_v52 = vmul.f32 %v18435_v51, %v18435_v51  ;;  %v18443_v56 = vmax.f32 %v6045_v45, 0.0 }
 0x34d   :  { %22316 = vst [vmem:[#allocation159_spill] sm:$0xff] %v18445_v44  ;;  %v7152_v45 = vmul.f32 %v18438_v37, %v18438_v37  ;;  %v7153_v15 = vmul.f32 %v18445_v44, %v18445_v44 }
 0x34e   :  { %22315 = vst [vmem:[#allocation158_spill] sm:$0xff] %v18443_v56  ;;  %v7405_v33 = vadd.f32 %v7404_v7, %v7150_v52  ;;  %v6888_v42 = vadd.f32 %v6887_v34, %v18443_v56  ;;  %v7151_v28 = vmul.f32 %v18443_v56, %v18443_v56  ;;  %v14426_v9 = vpop.f32.mrb[148].mxu0 }
 0x34f   :  { %v6066_v32 = vadd.f32 %v18453_v31, %v14426_v9  ;;  %v6057_v3 = vpop.f32.mrb[149].mxu0 }
 0x350   :  { %v6889_v43 = vadd.f32 %v6888_v42, %v18438_v37  ;;  %v7406_v29 = vadd.f32 %v7405_v33, %v7151_v28  ;;  %v6058_v10 = vadd.f32 %v18453_v31, %v6057_v3  ;;  %v14427_v63 = vpop.f32.mrb[150].mxu0 }
 0x351   :  { %v6069_v30 = vadd.f32 %v18453_v31, %v14427_v63  ;;  %v6060_v7 = vpop.f32.mrb[151].mxu0  ;;  %v18467_v51 = vmax.f32 %v6066_v32, 0.0 }
 0x352   :  { %v6890_v34 = vadd.f32 %v6889_v43, %v18445_v44  ;;  %v7407_v52 = vadd.f32 %v7406_v29, %v7152_v45  ;;  %v18464_v9 = vmax.f32 %v6058_v10, 0.0  ;;  %v6061_v56 = vadd.f32 %v18453_v31, %v6060_v7 }
 0x353   :  { %22318 = vst [vmem:[#allocation161_spill] sm:$0xff] %v18467_v51  ;;  %v18474_v37 = vmax.f32 %v6069_v30, 0.0 }
 0x354   :  { %22317 = vst [vmem:[#allocation160_spill] sm:$0xff] %v18464_v9  ;;  %v7408_v42 = vadd.f32 %v7407_v52, %v7153_v15  ;;  %v6891_v33 = vadd.f32 %v6890_v34, %v18464_v9  ;;  %v7154_v28 = vmul.f32 %v18464_v9, %v18464_v9  ;;  %v18472_v3 = vmax.f32 %v6061_v56, 0.0 }
 0x355   :  { %22320 = vst [vmem:[#allocation163_spill] sm:$0xff] %v18474_v37  ;;  %v7156_v15 = vmul.f32 %v18467_v51, %v18467_v51  ;;  %v7157_v52 = vmul.f32 %v18474_v37, %v18474_v37 }
 0x356   :  { %22319 = vst [vmem:[#allocation162_spill] sm:$0xff] %v18472_v3  ;;  %v7409_v63 = vadd.f32 %v7408_v42, %v7154_v28  ;;  %v6892_v43 = vadd.f32 %v6891_v33, %v18472_v3  ;;  %v7155_v45 = vmul.f32 %v18472_v3, %v18472_v3  ;;  %v14430_v29 = vpop.f32.mrb[152].mxu0 }
 0x357   :  { %v6082_v32 = vadd.f32 %v18453_v31, %v14430_v29  ;;  %v6073_v10 = vpop.f32.mrb[153].mxu0 }
 0x358   :  { %v6893_v7 = vadd.f32 %v6892_v43, %v18467_v51  ;;  %v7410_v34 = vadd.f32 %v7409_v63, %v7155_v45  ;;  %v6074_v56 = vadd.f32 %v18453_v31, %v6073_v10  ;;  %v14431_v30 = vpop.f32.mrb[154].mxu0 }
 0x359   :  { %v6085_v42 = vadd.f32 %v18453_v31, %v14431_v30  ;;  %v6076_v33 = vpop.f32.mrb[155].mxu0  ;;  %v18491_v44 = vmax.f32 %v6082_v32, 0.0 }
 0x35a   :  { %v6894_v28 = vadd.f32 %v6893_v7, %v18474_v37  ;;  %v7411_v3 = vadd.f32 %v7410_v34, %v7156_v15  ;;  %v18488_v29 = vmax.f32 %v6074_v56, 0.0  ;;  %v6077_v9 = vadd.f32 %v18453_v31, %v6076_v33 }
 0x35b   :  { %22322 = vst [vmem:[#allocation165_spill] sm:$0xff] %v18491_v44  ;;  %v18498_v51 = vmax.f32 %v6085_v42, 0.0 }
 0x35c   :  { %22321 = vst [vmem:[#allocation164_spill] sm:$0xff] %v18488_v29  ;;  %v7412_v43 = vadd.f32 %v7411_v3, %v7157_v52  ;;  %v6895_v63 = vadd.f32 %v6894_v28, %v18488_v29  ;;  %v7158_v45 = vmul.f32 %v18488_v29, %v18488_v29  ;;  %v18496_v10 = vmax.f32 %v6077_v9, 0.0 }
 0x35d   :  { %22324 = vst [vmem:[#allocation167_spill] sm:$0xff] %v18498_v51  ;;  %v7160_v3 = vmul.f32 %v18491_v44, %v18491_v44  ;;  %v7161_v28 = vmul.f32 %v18498_v51, %v18498_v51 }
 0x35e   :  { %22323 = vst [vmem:[#allocation166_spill] sm:$0xff] %v18496_v10  ;;  %v7413_v30 = vadd.f32 %v7412_v43, %v7158_v45  ;;  %v6896_v7 = vadd.f32 %v6895_v63, %v18496_v10  ;;  %v7159_v15 = vmul.f32 %v18496_v10, %v18496_v10  ;;  %v14434_v34 = vpop.f32.mrb[156].mxu0 }
 0x35f   :  { %v6098_v32 = vadd.f32 %v18453_v31, %v14434_v34  ;;  %v6089_v56 = vpop.f32.mrb[157].mxu0 }
 0x360   :  { %v6897_v52 = vadd.f32 %v6896_v7, %v18491_v44  ;;  %v7414_v33 = vadd.f32 %v7413_v30, %v7159_v15  ;;  %v6090_v9 = vadd.f32 %v18453_v31, %v6089_v56  ;;  %v14435_v42 = vpop.f32.mrb[158].mxu0 }
 0x361   :  { %v6101_v43 = vadd.f32 %v18453_v31, %v14435_v42  ;;  %v6092_v63 = vpop.f32.mrb[159].mxu0  ;;  %v18515_v37 = vmax.f32 %v6098_v32, 0.0 }
 0x362   :  { %v6898_v45 = vadd.f32 %v6897_v52, %v18498_v51  ;;  %v7415_v10 = vadd.f32 %v7414_v33, %v7160_v3  ;;  %v18512_v34 = vmax.f32 %v6090_v9, 0.0  ;;  %v6093_v29 = vadd.f32 %v18453_v31, %v6092_v63 }
 0x363   :  { %22326 = vst [vmem:[#allocation169_spill] sm:$0xff] %v18515_v37  ;;  %v18522_v44 = vmax.f32 %v6101_v43, 0.0 }
 0x364   :  { %22325 = vst [vmem:[#allocation168_spill] sm:$0xff] %v18512_v34  ;;  %v7416_v7 = vadd.f32 %v7415_v10, %v7161_v28  ;;  %v6899_v30 = vadd.f32 %v6898_v45, %v18512_v34  ;;  %v7162_v15 = vmul.f32 %v18512_v34, %v18512_v34  ;;  %v18520_v56 = vmax.f32 %v6093_v29, 0.0 }
 0x365   :  { %22328 = vst [vmem:[#allocation171_spill] sm:$0xff] %v18522_v44  ;;  %v7164_v10 = vmul.f32 %v18515_v37, %v18515_v37  ;;  %v7165_v45 = vmul.f32 %v18522_v44, %v18522_v44 }
 0x366   :  { %22327 = vst [vmem:[#allocation170_spill] sm:$0xff] %v18520_v56  ;;  %v7417_v42 = vadd.f32 %v7416_v7, %v7162_v15  ;;  %v6900_v52 = vadd.f32 %v6899_v30, %v18520_v56  ;;  %v7163_v3 = vmul.f32 %v18520_v56, %v18520_v56  ;;  %v14438_v33 = vpop.f32.mrb[160].mxu0 }
 0x367   :  { %v6114_v32 = vadd.f32 %v18453_v31, %v14438_v33  ;;  %v6105_v9 = vpop.f32.mrb[161].mxu0 }
 0x368   :  { %v6901_v28 = vadd.f32 %v6900_v52, %v18515_v37  ;;  %v7418_v63 = vadd.f32 %v7417_v42, %v7163_v3  ;;  %v6106_v29 = vadd.f32 %v18453_v31, %v6105_v9  ;;  %v14439_v43 = vpop.f32.mrb[162].mxu0 }
 0x369   :  { %v6117_v7 = vadd.f32 %v18453_v31, %v14439_v43  ;;  %v6108_v30 = vpop.f32.mrb[163].mxu0  ;;  %v18539_v51 = vmax.f32 %v6114_v32, 0.0 }
 0x36a   :  { %v6902_v15 = vadd.f32 %v6901_v28, %v18522_v44  ;;  %v7419_v56 = vadd.f32 %v7418_v63, %v7164_v10  ;;  %v18536_v33 = vmax.f32 %v6106_v29, 0.0  ;;  %v6109_v34 = vadd.f32 %v18453_v31, %v6108_v30 }
 0x36b   :  { %22330 = vst [vmem:[#allocation173_spill] sm:$0xff] %v18539_v51  ;;  %v18546_v37 = vmax.f32 %v6117_v7, 0.0 }
 0x36c   :  { %22329 = vst [vmem:[#allocation172_spill] sm:$0xff] %v18536_v33  ;;  %v7420_v52 = vadd.f32 %v7419_v56, %v7165_v45  ;;  %v6903_v42 = vadd.f32 %v6902_v15, %v18536_v33  ;;  %v7166_v3 = vmul.f32 %v18536_v33, %v18536_v33  ;;  %v18544_v9 = vmax.f32 %v6109_v34, 0.0 }
 0x36d   :  { %22332 = vst [vmem:[#allocation175_spill] sm:$0xff] %v18546_v37  ;;  %v7168_v56 = vmul.f32 %v18539_v51, %v18539_v51  ;;  %v7169_v15 = vmul.f32 %v18546_v37, %v18546_v37 }
 0x36e   :  { %22331 = vst [vmem:[#allocation174_spill] sm:$0xff] %v18544_v9  ;;  %v7421_v43 = vadd.f32 %v7420_v52, %v7166_v3  ;;  %v6904_v28 = vadd.f32 %v6903_v42, %v18544_v9  ;;  %v7167_v10 = vmul.f32 %v18544_v9, %v18544_v9  ;;  %v14442_v63 = vpop.f32.mrb[164].mxu0 }
 0x36f   :  { %v6130_v32 = vadd.f32 %v18453_v31, %v14442_v63  ;;  %v6121_v29 = vpop.f32.mrb[165].mxu0 }
 0x370   :  { %v6905_v45 = vadd.f32 %v6904_v28, %v18539_v51  ;;  %v7422_v30 = vadd.f32 %v7421_v43, %v7167_v10  ;;  %v6122_v34 = vadd.f32 %v18453_v31, %v6121_v29  ;;  %v14443_v7 = vpop.f32.mrb[166].mxu0 }
 0x371   :  { %v6133_v52 = vadd.f32 %v18453_v31, %v14443_v7  ;;  %v6124_v42 = vpop.f32.mrb[167].mxu0  ;;  %v18563_v44 = vmax.f32 %v6130_v32, 0.0 }
 0x372   :  { %v6906_v3 = vadd.f32 %v6905_v45, %v18546_v37  ;;  %v7423_v9 = vadd.f32 %v7422_v30, %v7168_v56  ;;  %v18560_v63 = vmax.f32 %v6122_v34, 0.0  ;;  %v6125_v33 = vadd.f32 %v18453_v31, %v6124_v42 }
 0x373   :  { %22334 = vst [vmem:[#allocation177_spill] sm:$0xff] %v18563_v44  ;;  %v18570_v51 = vmax.f32 %v6133_v52, 0.0 }
 0x374   :  { %22333 = vst [vmem:[#allocation176_spill] sm:$0xff] %v18560_v63  ;;  %v7424_v28 = vadd.f32 %v7423_v9, %v7169_v15  ;;  %v6907_v43 = vadd.f32 %v6906_v3, %v18560_v63  ;;  %v7170_v10 = vmul.f32 %v18560_v63, %v18560_v63  ;;  %v18568_v29 = vmax.f32 %v6125_v33, 0.0 }
 0x375   :  { %22336 = vst [vmem:[#allocation179_spill] sm:$0xff] %v18570_v51  ;;  %v7172_v9 = vmul.f32 %v18563_v44, %v18563_v44  ;;  %v7173_v3 = vmul.f32 %v18570_v51, %v18570_v51 }
 0x376   :  { %22335 = vst [vmem:[#allocation178_spill] sm:$0xff] %v18568_v29  ;;  %v7425_v7 = vadd.f32 %v7424_v28, %v7170_v10  ;;  %v6908_v45 = vadd.f32 %v6907_v43, %v18568_v29  ;;  %v7171_v56 = vmul.f32 %v18568_v29, %v18568_v29  ;;  %v14446_v30 = vpop.f32.mrb[168].mxu0 }
 0x377   :  { %v6146_v32 = vadd.f32 %v18453_v31, %v14446_v30  ;;  %v6137_v34 = vpop.f32.mrb[169].mxu0 }
 0x378   :  { %v6909_v15 = vadd.f32 %v6908_v45, %v18563_v44  ;;  %v7426_v42 = vadd.f32 %v7425_v7, %v7171_v56  ;;  %v6138_v33 = vadd.f32 %v18453_v31, %v6137_v34  ;;  %v14447_v52 = vpop.f32.mrb[170].mxu0 }
 0x379   :  { %v6149_v28 = vadd.f32 %v18453_v31, %v14447_v52  ;;  %v6140_v43 = vpop.f32.mrb[171].mxu0  ;;  %v18587_v37 = vmax.f32 %v6146_v32, 0.0 }
 0x37a   :  { %v6910_v10 = vadd.f32 %v6909_v15, %v18570_v51  ;;  %v7427_v29 = vadd.f32 %v7426_v42, %v7172_v9  ;;  %v18584_v30 = vmax.f32 %v6138_v33, 0.0  ;;  %v6141_v63 = vadd.f32 %v18453_v31, %v6140_v43 }
 0x37b   :  { %22338 = vst [vmem:[#allocation181_spill] sm:$0xff] %v18587_v37  ;;  %v18594_v44 = vmax.f32 %v6149_v28, 0.0 }
 0x37c   :  { %22337 = vst [vmem:[#allocation180_spill] sm:$0xff] %v18584_v30  ;;  %v7428_v45 = vadd.f32 %v7427_v29, %v7173_v3  ;;  %v6911_v7 = vadd.f32 %v6910_v10, %v18584_v30  ;;  %v7174_v56 = vmul.f32 %v18584_v30, %v18584_v30  ;;  %v18592_v34 = vmax.f32 %v6141_v63, 0.0 }
 0x37d   :  { %22340 = vst [vmem:[#allocation183_spill] sm:$0xff] %v18594_v44  ;;  %v7176_v29 = vmul.f32 %v18587_v37, %v18587_v37  ;;  %v7177_v10 = vmul.f32 %v18594_v44, %v18594_v44 }
 0x37e   :  { %22339 = vst [vmem:[#allocation182_spill] sm:$0xff] %v18592_v34  ;;  %v7429_v52 = vadd.f32 %v7428_v45, %v7174_v56  ;;  %v6912_v15 = vadd.f32 %v6911_v7, %v18592_v34  ;;  %v7175_v9 = vmul.f32 %v18592_v34, %v18592_v34  ;;  %v14450_v42 = vpop.f32.mrb[172].mxu0 }
 0x37f   :  { %v6162_v32 = vadd.f32 %v18453_v31, %v14450_v42  ;;  %v6153_v33 = vpop.f32.mrb[173].mxu0 }
 0x380   :  { %v6913_v3 = vadd.f32 %v6912_v15, %v18587_v37  ;;  %v7430_v43 = vadd.f32 %v7429_v52, %v7175_v9  ;;  %v6154_v63 = vadd.f32 %v18453_v31, %v6153_v33  ;;  %v14451_v28 = vpop.f32.mrb[174].mxu0 }
 0x381   :  { %v6165_v45 = vadd.f32 %v18453_v31, %v14451_v28  ;;  %v6156_v7 = vpop.f32.mrb[175].mxu0  ;;  %v18611_v51 = vmax.f32 %v6162_v32, 0.0 }
 0x382   :  { %v6914_v56 = vadd.f32 %v6913_v3, %v18594_v44  ;;  %v7431_v34 = vadd.f32 %v7430_v43, %v7176_v29  ;;  %v18608_v42 = vmax.f32 %v6154_v63, 0.0  ;;  %v6157_v30 = vadd.f32 %v18453_v31, %v6156_v7 }
 0x383   :  { %22342 = vst [vmem:[#allocation185_spill] sm:$0xff] %v18611_v51  ;;  %v18618_v37 = vmax.f32 %v6165_v45, 0.0 }
 0x384   :  { %22341 = vst [vmem:[#allocation184_spill] sm:$0xff] %v18608_v42  ;;  %v7432_v15 = vadd.f32 %v7431_v34, %v7177_v10  ;;  %v6915_v52 = vadd.f32 %v6914_v56, %v18608_v42  ;;  %v7178_v9 = vmul.f32 %v18608_v42, %v18608_v42  ;;  %v18616_v33 = vmax.f32 %v6157_v30, 0.0 }
 0x385   :  { %22344 = vst [vmem:[#allocation187_spill] sm:$0xff] %v18618_v37  ;;  %v7180_v34 = vmul.f32 %v18611_v51, %v18611_v51  ;;  %v7181_v56 = vmul.f32 %v18618_v37, %v18618_v37 }
 0x386   :  { %22343 = vst [vmem:[#allocation186_spill] sm:$0xff] %v18616_v33  ;;  %v7433_v28 = vadd.f32 %v7432_v15, %v7178_v9  ;;  %v6916_v3 = vadd.f32 %v6915_v52, %v18616_v33  ;;  %v7179_v29 = vmul.f32 %v18616_v33, %v18616_v33  ;;  %v14454_v43 = vpop.f32.mrb[176].mxu0 }
 0x387   :  { %v6178_v32 = vadd.f32 %v18453_v31, %v14454_v43  ;;  %v6169_v63 = vpop.f32.mrb[177].mxu0 }
 0x388   :  { %v6917_v10 = vadd.f32 %v6916_v3, %v18611_v51  ;;  %v7434_v7 = vadd.f32 %v7433_v28, %v7179_v29  ;;  %v6170_v30 = vadd.f32 %v18453_v31, %v6169_v63  ;;  %v14455_v45 = vpop.f32.mrb[178].mxu0 }
 0x389   :  { %v6181_v15 = vadd.f32 %v18453_v31, %v14455_v45  ;;  %v6172_v52 = vpop.f32.mrb[179].mxu0  ;;  %v18635_v44 = vmax.f32 %v6178_v32, 0.0 }
 0x38a   :  { %v6918_v9 = vadd.f32 %v6917_v10, %v18618_v37  ;;  %v7435_v33 = vadd.f32 %v7434_v7, %v7180_v34  ;;  %v18632_v43 = vmax.f32 %v6170_v30, 0.0  ;;  %v6173_v42 = vadd.f32 %v18453_v31, %v6172_v52 }
 0x38b   :  { %22346 = vst [vmem:[#allocation189_spill] sm:$0xff] %v18635_v44  ;;  %v18642_v51 = vmax.f32 %v6181_v15, 0.0 }
 0x38c   :  { %22345 = vst [vmem:[#allocation188_spill] sm:$0xff] %v18632_v43  ;;  %v7436_v3 = vadd.f32 %v7435_v33, %v7181_v56  ;;  %v6919_v28 = vadd.f32 %v6918_v9, %v18632_v43  ;;  %v7182_v29 = vmul.f32 %v18632_v43, %v18632_v43  ;;  %v18640_v63 = vmax.f32 %v6173_v42, 0.0 }
 0x38d   :  { %22348 = vst [vmem:[#allocation191_spill] sm:$0xff] %v18642_v51  ;;  %v7184_v33 = vmul.f32 %v18635_v44, %v18635_v44  ;;  %v7185_v9 = vmul.f32 %v18642_v51, %v18642_v51 }
 0x38e   :  { %22347 = vst [vmem:[#allocation190_spill] sm:$0xff] %v18640_v63  ;;  %v7437_v45 = vadd.f32 %v7436_v3, %v7182_v29  ;;  %v6920_v10 = vadd.f32 %v6919_v28, %v18640_v63  ;;  %v7183_v34 = vmul.f32 %v18640_v63, %v18640_v63  ;;  %v14458_v7 = vpop.f32.mrb[180].mxu0 }
 0x38f   :  { %v6194_v32 = vadd.f32 %v18453_v31, %v14458_v7  ;;  %v6185_v30 = vpop.f32.mrb[181].mxu0 }
 0x390   :  { %v6921_v56 = vadd.f32 %v6920_v10, %v18635_v44  ;;  %v7438_v52 = vadd.f32 %v7437_v45, %v7183_v34  ;;  %v6186_v42 = vadd.f32 %v18453_v31, %v6185_v30  ;;  %v14459_v15 = vpop.f32.mrb[182].mxu0 }
 0x391   :  { %v6197_v3 = vadd.f32 %v18453_v31, %v14459_v15  ;;  %v6188_v28 = vpop.f32.mrb[183].mxu0  ;;  %v18659_v37 = vmax.f32 %v6194_v32, 0.0 }
 0x392   :  { %v6922_v29 = vadd.f32 %v6921_v56, %v18642_v51  ;;  %v7439_v63 = vadd.f32 %v7438_v52, %v7184_v33  ;;  %v18656_v7 = vmax.f32 %v6186_v42, 0.0  ;;  %v6189_v43 = vadd.f32 %v18453_v31, %v6188_v28 }
 0x393   :  { %22350 = vst [vmem:[#allocation193_spill] sm:$0xff] %v18659_v37  ;;  %v18666_v44 = vmax.f32 %v6197_v3, 0.0 }
 0x394   :  { %22349 = vst [vmem:[#allocation192_spill] sm:$0xff] %v18656_v7  ;;  %v7440_v10 = vadd.f32 %v7439_v63, %v7185_v9  ;;  %v6923_v45 = vadd.f32 %v6922_v29, %v18656_v7  ;;  %v7186_v34 = vmul.f32 %v18656_v7, %v18656_v7  ;;  %v18664_v30 = vmax.f32 %v6189_v43, 0.0 }
 0x395   :  { %22352 = vst [vmem:[#allocation195_spill] sm:$0xff] %v18666_v44  ;;  %v7188_v63 = vmul.f32 %v18659_v37, %v18659_v37  ;;  %v7189_v29 = vmul.f32 %v18666_v44, %v18666_v44 }
 0x396   :  { %22351 = vst [vmem:[#allocation194_spill] sm:$0xff] %v18664_v30  ;;  %v7441_v15 = vadd.f32 %v7440_v10, %v7186_v34  ;;  %v6924_v56 = vadd.f32 %v6923_v45, %v18664_v30  ;;  %v7187_v33 = vmul.f32 %v18664_v30, %v18664_v30  ;;  %v14462_v52 = vpop.f32.mrb[184].mxu0 }
 0x397   :  { %v6210_v32 = vadd.f32 %v18453_v31, %v14462_v52  ;;  %v6201_v42 = vpop.f32.mrb[185].mxu0 }
 0x398   :  { %v6925_v9 = vadd.f32 %v6924_v56, %v18659_v37  ;;  %v7442_v28 = vadd.f32 %v7441_v15, %v7187_v33  ;;  %v6202_v43 = vadd.f32 %v18453_v31, %v6201_v42  ;;  %v14463_v3 = vpop.f32.mrb[186].mxu0 }
 0x399   :  { %v6213_v10 = vadd.f32 %v18453_v31, %v14463_v3  ;;  %v6204_v45 = vpop.f32.mrb[187].mxu0  ;;  %v18683_v51 = vmax.f32 %v6210_v32, 0.0 }
 0x39a   :  { %v6926_v34 = vadd.f32 %v6925_v9, %v18666_v44  ;;  %v7443_v30 = vadd.f32 %v7442_v28, %v7188_v63  ;;  %v18680_v52 = vmax.f32 %v6202_v43, 0.0  ;;  %v6205_v7 = vadd.f32 %v18453_v31, %v6204_v45 }
 0x39b   :  { %22354 = vst [vmem:[#allocation197_spill] sm:$0xff] %v18683_v51  ;;  %v18690_v37 = vmax.f32 %v6213_v10, 0.0 }
 0x39c   :  { %22353 = vst [vmem:[#allocation196_spill] sm:$0xff] %v18680_v52  ;;  %v7444_v56 = vadd.f32 %v7443_v30, %v7189_v29  ;;  %v6927_v15 = vadd.f32 %v6926_v34, %v18680_v52  ;;  %v7190_v33 = vmul.f32 %v18680_v52, %v18680_v52  ;;  %v18688_v42 = vmax.f32 %v6205_v7, 0.0 }
 0x39d   :  { %22356 = vst [vmem:[#allocation199_spill] sm:$0xff] %v18690_v37  ;;  %v7192_v30 = vmul.f32 %v18683_v51, %v18683_v51  ;;  %v7193_v34 = vmul.f32 %v18690_v37, %v18690_v37 }
 0x39e   :  { %22355 = vst [vmem:[#allocation198_spill] sm:$0xff] %v18688_v42  ;;  %v7445_v3 = vadd.f32 %v7444_v56, %v7190_v33  ;;  %v6928_v9 = vadd.f32 %v6927_v15, %v18688_v42  ;;  %v7191_v63 = vmul.f32 %v18688_v42, %v18688_v42  ;;  %v14466_v28 = vpop.f32.mrb[188].mxu0 }
 0x39f   :  { %v6226_v32 = vadd.f32 %v18453_v31, %v14466_v28  ;;  %v6217_v43 = vpop.f32.mrb[189].mxu0 }
 0x3a0   :  { %v6929_v29 = vadd.f32 %v6928_v9, %v18683_v51  ;;  %v7446_v45 = vadd.f32 %v7445_v3, %v7191_v63  ;;  %v6218_v7 = vadd.f32 %v18453_v31, %v6217_v43  ;;  %v14467_v10 = vpop.f32.mrb[190].mxu0 }
 0x3a1   :  { %v6229_v56 = vadd.f32 %v18453_v31, %v14467_v10  ;;  %v6220_v15 = vpop.f32.mrb[191].mxu0  ;;  %v18707_v44 = vmax.f32 %v6226_v32, 0.0 }
 0x3a2   :  { %v6930_v33 = vadd.f32 %v6929_v29, %v18690_v37  ;;  %v7447_v42 = vadd.f32 %v7446_v45, %v7192_v30  ;;  %v18704_v28 = vmax.f32 %v6218_v7, 0.0  ;;  %v6221_v52 = vadd.f32 %v18453_v31, %v6220_v15 }
 0x3a3   :  { %22358 = vst [vmem:[#allocation201_spill] sm:$0xff] %v18707_v44  ;;  %v18714_v51 = vmax.f32 %v6229_v56, 0.0 }
 0x3a4   :  { %22357 = vst [vmem:[#allocation200_spill] sm:$0xff] %v18704_v28  ;;  %v7448_v9 = vadd.f32 %v7447_v42, %v7193_v34  ;;  %v6931_v3 = vadd.f32 %v6930_v33, %v18704_v28  ;;  %v7194_v63 = vmul.f32 %v18704_v28, %v18704_v28  ;;  %v18712_v43 = vmax.f32 %v6221_v52, 0.0 }
 0x3a5   :  { %22360 = vst [vmem:[#allocation203_spill] sm:$0xff] %v18714_v51  ;;  %v7196_v42 = vmul.f32 %v18707_v44, %v18707_v44  ;;  %v7197_v33 = vmul.f32 %v18714_v51, %v18714_v51 }
 0x3a6   :  { %22359 = vst [vmem:[#allocation202_spill] sm:$0xff] %v18712_v43  ;;  %v7449_v10 = vadd.f32 %v7448_v9, %v7194_v63  ;;  %v6932_v29 = vadd.f32 %v6931_v3, %v18712_v43  ;;  %v7195_v30 = vmul.f32 %v18712_v43, %v18712_v43  ;;  %v14470_v45 = vpop.f32.mrb[192].mxu0 }
 0x3a7   :  { %v6242_v32 = vadd.f32 %v18453_v31, %v14470_v45  ;;  %v6233_v7 = vpop.f32.mrb[193].mxu0 }
 0x3a8   :  { %v6933_v34 = vadd.f32 %v6932_v29, %v18707_v44  ;;  %v7450_v15 = vadd.f32 %v7449_v10, %v7195_v30  ;;  %v6234_v52 = vadd.f32 %v18453_v31, %v6233_v7  ;;  %v14471_v56 = vpop.f32.mrb[194].mxu0 }
 0x3a9   :  { %v6245_v9 = vadd.f32 %v18453_v31, %v14471_v56  ;;  %v6236_v3 = vpop.f32.mrb[195].mxu0  ;;  %v18731_v37 = vmax.f32 %v6242_v32, 0.0 }
 0x3aa   :  { %v6934_v63 = vadd.f32 %v6933_v34, %v18714_v51  ;;  %v7451_v43 = vadd.f32 %v7450_v15, %v7196_v42  ;;  %v18728_v45 = vmax.f32 %v6234_v52, 0.0  ;;  %v6237_v28 = vadd.f32 %v18453_v31, %v6236_v3 }
 0x3ab   :  { %22362 = vst [vmem:[#allocation205_spill] sm:$0xff] %v18731_v37  ;;  %v18738_v44 = vmax.f32 %v6245_v9, 0.0 }
 0x3ac   :  { %22361 = vst [vmem:[#allocation204_spill] sm:$0xff] %v18728_v45  ;;  %v7452_v29 = vadd.f32 %v7451_v43, %v7197_v33  ;;  %v6935_v10 = vadd.f32 %v6934_v63, %v18728_v45  ;;  %v7198_v30 = vmul.f32 %v18728_v45, %v18728_v45  ;;  %v18736_v7 = vmax.f32 %v6237_v28, 0.0 }
 0x3ad   :  { %22364 = vst [vmem:[#allocation207_spill] sm:$0xff] %v18738_v44  ;;  %v7200_v43 = vmul.f32 %v18731_v37, %v18731_v37  ;;  %v7201_v63 = vmul.f32 %v18738_v44, %v18738_v44 }
 0x3ae   :  { %22363 = vst [vmem:[#allocation206_spill] sm:$0xff] %v18736_v7  ;;  %v7453_v56 = vadd.f32 %v7452_v29, %v7198_v30  ;;  %v6936_v34 = vadd.f32 %v6935_v10, %v18736_v7  ;;  %v7199_v42 = vmul.f32 %v18736_v7, %v18736_v7  ;;  %v14474_v15 = vpop.f32.mrb[196].mxu0 }
 0x3af   :  { %v6258_v32 = vadd.f32 %v18453_v31, %v14474_v15  ;;  %v6249_v52 = vpop.f32.mrb[197].mxu0 }
 0x3b0   :  { %v6937_v33 = vadd.f32 %v6936_v34, %v18731_v37  ;;  %v7454_v3 = vadd.f32 %v7453_v56, %v7199_v42  ;;  %v6250_v28 = vadd.f32 %v18453_v31, %v6249_v52  ;;  %v14475_v9 = vpop.f32.mrb[198].mxu0 }
 0x3b1   :  { %v6261_v29 = vadd.f32 %v18453_v31, %v14475_v9  ;;  %v6252_v10 = vpop.f32.mrb[199].mxu0  ;;  %v18755_v51 = vmax.f32 %v6258_v32, 0.0 }
 0x3b2   :  { %v7455_v30 = vadd.f32 %v7454_v3, %v7200_v43  ;;  %v18751_v7 = vmax.f32 %v6250_v28, 0.0  ;;  %v6938_v15 = vadd.f32 %v6937_v33, %v18738_v44  ;;  %v6253_v45 = vadd.f32 %v18453_v31, %v6252_v10 }
 0x3b3   :  { %22366 = vst [vmem:[#allocation209_spill] sm:$0xff] %v18755_v51  ;;  %v18762_v37 = vmax.f32 %v6261_v29, 0.0  ;;  %v7204_v10 = vmul.f32 %v18755_v51, %v18755_v51 }
 0x3b4   :  { %22365 = vst [vmem:[#allocation208_spill] sm:$0xff] %v18751_v7  ;;  %v6939_v56 = vadd.f32 %v6938_v15, %v18751_v7  ;;  %v7202_v34 = vmul.f32 %v18751_v7, %v18751_v7  ;;  %v7456_v42 = vadd.f32 %v7455_v30, %v7201_v63  ;;  %v18760_v52 = vmax.f32 %v6253_v45, 0.0 }
 0x3b5   :  { %22368 = vst [vmem:[#allocation211_spill] sm:$0xff] %v18762_v37  ;;  %v7205_v30 = vmul.f32 %v18762_v37, %v18762_v37 }
 0x3b6   :  { %22367 = vst [vmem:[#allocation210_spill] sm:$0xff] %v18760_v52  ;;  %v7457_v9 = vadd.f32 %v7456_v42, %v7202_v34  ;;  %v6940_v43 = vadd.f32 %v6939_v56, %v18760_v52  ;;  %v7203_v33 = vmul.f32 %v18760_v52, %v18760_v52  ;;  %v14478_v3 = vpop.f32.mrb[200].mxu0 }
 0x3b7   :  { %v6274_v32 = vadd.f32 %v18453_v31, %v14478_v3  ;;  %v6265_v28 = vpop.f32.mrb[201].mxu0 }
 0x3b8   :  { %v6941_v15 = vadd.f32 %v6940_v43, %v18755_v51  ;;  %v7458_v63 = vadd.f32 %v7457_v9, %v7203_v33  ;;  %v6266_v45 = vadd.f32 %v18453_v31, %v6265_v28  ;;  %v14479_v29 = vpop.f32.mrb[202].mxu0 }
 0x3b9   :  { %v6277_v56 = vadd.f32 %v18453_v31, %v14479_v29  ;;  %v6268_v34 = vpop.f32.mrb[203].mxu0  ;;  %v18779_v44 = vmax.f32 %v6274_v32, 0.0 }
 0x3ba   :  { %v7459_v42 = vadd.f32 %v7458_v63, %v7204_v10  ;;  %v18775_v52 = vmax.f32 %v6266_v45, 0.0  ;;  %v6942_v3 = vadd.f32 %v6941_v15, %v18762_v37  ;;  %v6269_v7 = vadd.f32 %v18453_v31, %v6268_v34 }
 0x3bb   :  { %22370 = vst [vmem:[#allocation213_spill] sm:$0xff] %v18779_v44  ;;  %v18786_v51 = vmax.f32 %v6277_v56, 0.0  ;;  %v7208_v34 = vmul.f32 %v18779_v44, %v18779_v44 }
 0x3bc   :  { %22369 = vst [vmem:[#allocation212_spill] sm:$0xff] %v18775_v52  ;;  %v6943_v9 = vadd.f32 %v6942_v3, %v18775_v52  ;;  %v7206_v43 = vmul.f32 %v18775_v52, %v18775_v52  ;;  %v7460_v33 = vadd.f32 %v7459_v42, %v7205_v30  ;;  %v18784_v28 = vmax.f32 %v6269_v7, 0.0 }
 0x3bd   :  { %22372 = vst [vmem:[#allocation215_spill] sm:$0xff] %v18786_v51  ;;  %v7209_v42 = vmul.f32 %v18786_v51, %v18786_v51 }
 0x3be   :  { %22371 = vst [vmem:[#allocation214_spill] sm:$0xff] %v18784_v28  ;;  %v7461_v29 = vadd.f32 %v7460_v33, %v7206_v43  ;;  %v6944_v10 = vadd.f32 %v6943_v9, %v18784_v28  ;;  %v7207_v15 = vmul.f32 %v18784_v28, %v18784_v28  ;;  %v14482_v63 = vpop.f32.mrb[204].mxu0 }
 0x3bf   :  { %v6290_v32 = vadd.f32 %v18453_v31, %v14482_v63  ;;  %v6281_v45 = vpop.f32.mrb[205].mxu0 }
 0x3c0   :  { %v6945_v3 = vadd.f32 %v6944_v10, %v18779_v44  ;;  %v7462_v30 = vadd.f32 %v7461_v29, %v7207_v15  ;;  %v6282_v7 = vadd.f32 %v18453_v31, %v6281_v45  ;;  %v14483_v56 = vpop.f32.mrb[206].mxu0 }
 0x3c1   :  { %v6293_v9 = vadd.f32 %v18453_v31, %v14483_v56  ;;  %v6284_v43 = vpop.f32.mrb[207].mxu0  ;;  %v18803_v37 = vmax.f32 %v6290_v32, 0.0 }
 0x3c2   :  { %v7463_v33 = vadd.f32 %v7462_v30, %v7208_v34  ;;  %v18799_v28 = vmax.f32 %v6282_v7, 0.0  ;;  %v6946_v63 = vadd.f32 %v6945_v3, %v18786_v51  ;;  %v6285_v52 = vadd.f32 %v18453_v31, %v6284_v43 }
 0x3c3   :  { %22374 = vst [vmem:[#allocation217_spill] sm:$0xff] %v18803_v37  ;;  %v18810_v44 = vmax.f32 %v6293_v9, 0.0  ;;  %v7212_v43 = vmul.f32 %v18803_v37, %v18803_v37 }
 0x3c4   :  { %22373 = vst [vmem:[#allocation216_spill] sm:$0xff] %v18799_v28  ;;  %v6947_v29 = vadd.f32 %v6946_v63, %v18799_v28  ;;  %v7210_v10 = vmul.f32 %v18799_v28, %v18799_v28  ;;  %v7464_v15 = vadd.f32 %v7463_v33, %v7209_v42  ;;  %v18808_v45 = vmax.f32 %v6285_v52, 0.0 }
 0x3c5   :  { %22376 = vst [vmem:[#allocation219_spill] sm:$0xff] %v18810_v44  ;;  %v7213_v33 = vmul.f32 %v18810_v44, %v18810_v44 }
 0x3c6   :  { %22375 = vst [vmem:[#allocation218_spill] sm:$0xff] %v18808_v45  ;;  %v7465_v56 = vadd.f32 %v7464_v15, %v7210_v10  ;;  %v6948_v34 = vadd.f32 %v6947_v29, %v18808_v45  ;;  %v7211_v3 = vmul.f32 %v18808_v45, %v18808_v45  ;;  %v14486_v30 = vpop.f32.mrb[208].mxu0 }
 0x3c7   :  { %v6306_v32 = vadd.f32 %v18453_v31, %v14486_v30  ;;  %v6297_v7 = vpop.f32.mrb[209].mxu0 }
 0x3c8   :  { %v6949_v63 = vadd.f32 %v6948_v34, %v18803_v37  ;;  %v7466_v42 = vadd.f32 %v7465_v56, %v7211_v3  ;;  %v6298_v52 = vadd.f32 %v18453_v31, %v6297_v7  ;;  %v14487_v9 = vpop.f32.mrb[210].mxu0 }
 0x3c9   :  { %v6309_v29 = vadd.f32 %v18453_v31, %v14487_v9  ;;  %v6300_v10 = vpop.f32.mrb[211].mxu0  ;;  %v18827_v51 = vmax.f32 %v6306_v32, 0.0 }
 0x3ca   :  { %v7467_v15 = vadd.f32 %v7466_v42, %v7212_v43  ;;  %v18823_v45 = vmax.f32 %v6298_v52, 0.0  ;;  %v6950_v30 = vadd.f32 %v6949_v63, %v18810_v44  ;;  %v6301_v28 = vadd.f32 %v18453_v31, %v6300_v10 }
 0x3cb   :  { %22378 = vst [vmem:[#allocation221_spill] sm:$0xff] %v18827_v51  ;;  %v18834_v37 = vmax.f32 %v6309_v29, 0.0  ;;  %v7216_v10 = vmul.f32 %v18827_v51, %v18827_v51 }
 0x3cc   :  { %22377 = vst [vmem:[#allocation220_spill] sm:$0xff] %v18823_v45  ;;  %v6951_v56 = vadd.f32 %v6950_v30, %v18823_v45  ;;  %v7214_v34 = vmul.f32 %v18823_v45, %v18823_v45  ;;  %v7468_v3 = vadd.f32 %v7467_v15, %v7213_v33  ;;  %v18832_v7 = vmax.f32 %v6301_v28, 0.0 }
 0x3cd   :  { %22380 = vst [vmem:[#allocation223_spill] sm:$0xff] %v18834_v37  ;;  %v7217_v15 = vmul.f32 %v18834_v37, %v18834_v37 }
 0x3ce   :  { %22379 = vst [vmem:[#allocation222_spill] sm:$0xff] %v18832_v7  ;;  %v7469_v9 = vadd.f32 %v7468_v3, %v7214_v34  ;;  %v6952_v43 = vadd.f32 %v6951_v56, %v18832_v7  ;;  %v7215_v63 = vmul.f32 %v18832_v7, %v18832_v7  ;;  %v14490_v42 = vpop.f32.mrb[212].mxu0 }
 0x3cf   :  { %v6322_v32 = vadd.f32 %v18453_v31, %v14490_v42  ;;  %v6313_v52 = vpop.f32.mrb[213].mxu0 }
 0x3d0   :  { %v6953_v30 = vadd.f32 %v6952_v43, %v18827_v51  ;;  %v7470_v33 = vadd.f32 %v7469_v9, %v7215_v63  ;;  %v6314_v28 = vadd.f32 %v18453_v31, %v6313_v52  ;;  %v14491_v29 = vpop.f32.mrb[214].mxu0 }
 0x3d1   :  { %v6325_v56 = vadd.f32 %v18453_v31, %v14491_v29  ;;  %v6316_v34 = vpop.f32.mrb[215].mxu0  ;;  %v18851_v44 = vmax.f32 %v6322_v32, 0.0 }
 0x3d2   :  { %v7471_v3 = vadd.f32 %v7470_v33, %v7216_v10  ;;  %v18847_v7 = vmax.f32 %v6314_v28, 0.0  ;;  %v6954_v42 = vadd.f32 %v6953_v30, %v18834_v37  ;;  %v6317_v45 = vadd.f32 %v18453_v31, %v6316_v34 }
 0x3d3   :  { %22382 = vst [vmem:[#allocation225_spill] sm:$0xff] %v18851_v44  ;;  %v18858_v51 = vmax.f32 %v6325_v56, 0.0  ;;  %v7220_v34 = vmul.f32 %v18851_v44, %v18851_v44 }
 0x3d4   :  { %22381 = vst [vmem:[#allocation224_spill] sm:$0xff] %v18847_v7  ;;  %v6955_v9 = vadd.f32 %v6954_v42, %v18847_v7  ;;  %v7218_v43 = vmul.f32 %v18847_v7, %v18847_v7  ;;  %v7472_v63 = vadd.f32 %v7471_v3, %v7217_v15  ;;  %v18856_v52 = vmax.f32 %v6317_v45, 0.0 }
 0x3d5   :  { %22384 = vst [vmem:[#allocation227_spill] sm:$0xff] %v18858_v51  ;;  %v7221_v3 = vmul.f32 %v18858_v51, %v18858_v51 }
 0x3d6   :  { %22383 = vst [vmem:[#allocation226_spill] sm:$0xff] %v18856_v52  ;;  %v7473_v29 = vadd.f32 %v7472_v63, %v7218_v43  ;;  %v6956_v10 = vadd.f32 %v6955_v9, %v18856_v52  ;;  %v7219_v30 = vmul.f32 %v18856_v52, %v18856_v52  ;;  %v14494_v33 = vpop.f32.mrb[216].mxu0 }
 0x3d7   :  { %v6338_v32 = vadd.f32 %v18453_v31, %v14494_v33  ;;  %v6329_v28 = vpop.f32.mrb[217].mxu0 }
 0x3d8   :  { %v6957_v42 = vadd.f32 %v6956_v10, %v18851_v44  ;;  %v7474_v15 = vadd.f32 %v7473_v29, %v7219_v30  ;;  %v6330_v45 = vadd.f32 %v18453_v31, %v6329_v28  ;;  %v14495_v56 = vpop.f32.mrb[218].mxu0 }
 0x3d9   :  { %v6341_v9 = vadd.f32 %v18453_v31, %v14495_v56  ;;  %v6332_v43 = vpop.f32.mrb[219].mxu0  ;;  %v18875_v37 = vmax.f32 %v6338_v32, 0.0 }
 0x3da   :  { %v7475_v63 = vadd.f32 %v7474_v15, %v7220_v34  ;;  %v18871_v52 = vmax.f32 %v6330_v45, 0.0  ;;  %v6958_v33 = vadd.f32 %v6957_v42, %v18858_v51  ;;  %v6333_v7 = vadd.f32 %v18453_v31, %v6332_v43 }
 0x3db   :  { %22386 = vst [vmem:[#allocation229_spill] sm:$0xff] %v18875_v37  ;;  %v18882_v44 = vmax.f32 %v6341_v9, 0.0  ;;  %v7224_v32 = vmul.f32 %v18875_v37, %v18875_v37 }
 0x3dc   :  { %22385 = vst [vmem:[#allocation228_spill] sm:$0xff] %v18871_v52  ;;  %v6959_v29 = vadd.f32 %v6958_v33, %v18871_v52  ;;  %v7222_v10 = vmul.f32 %v18871_v52, %v18871_v52  ;;  %v7476_v30 = vadd.f32 %v7475_v63, %v7221_v3  ;;  %v18880_v28 = vmax.f32 %v6333_v7, 0.0 }
 0x3dd   :  { %22388 = vst [vmem:[#allocation231_spill] sm:$0xff] %v18882_v44  ;;  %v7225_v9 = vmul.f32 %v18882_v44, %v18882_v44 }
 0x3de   :  { %22387 = vst [vmem:[#allocation230_spill] sm:$0xff] %v18880_v28  ;;  %v7477_v56 = vadd.f32 %v7476_v30, %v7222_v10  ;;  %v6960_v34 = vadd.f32 %v6959_v29, %v18880_v28  ;;  %v7223_v42 = vmul.f32 %v18880_v28, %v18880_v28  ;;  %v14498_v15 = vpop.f32.mrb[220].mxu0 }
 0x3df   :  { %v6345_v45 = vpop.f32.mrb[221].mxu0 }
 0x3e0   :  { %v6961_v43 = vadd.f32 %v6960_v34, %v18875_v37  ;;  %v7478_v33 = vadd.f32 %v7477_v56, %v7223_v42  ;;  %v6346_v3 = vadd.f32 %v18453_v31, %v6345_v45  ;;  %v14499_v7 = vpop.f32.mrb[222].mxu0  ;;  %v6354_v45 = vadd.f32 %v18453_v31, %v14498_v15 }
 0x3e1   :  { %v6348_v63 = vpop.f32.mrb[223].mxu0 }
 0x3e2   :  { %v7479_v10 = vadd.f32 %v7478_v33, %v7224_v32  ;;  %v18893_v29 = vmax.f32 %v6346_v3, 0.0  ;;  %v6962_v30 = vadd.f32 %v6961_v43, %v18882_v44  ;;  %v6349_v28 = vadd.f32 %v18453_v31, %v6348_v63 }
 0x3e3   :  { %v18906_v63 = vmax.f32 %v6354_v45, 0.0 }
 0x3e4   :  { %22389 = vst [vmem:[#allocation232_spill] sm:$0xff] %v18893_v29  ;;  %v6963_v52 = vadd.f32 %v6962_v30, %v18893_v29  ;;  %v7226_v34 = vmul.f32 %v18893_v29, %v18893_v29  ;;  %v7480_v56 = vadd.f32 %v7479_v10, %v7225_v9  ;;  %v18900_v42 = vmax.f32 %v6349_v28, 0.0 }
 0x3e5   :  { %22391 = vst [vmem:[#allocation234_spill] sm:$0xff] %v18906_v63  ;;  %v6357_v30 = vadd.f32 %v18453_v31, %v14499_v7  ;;  %v7228_v15 = vmul.f32 %v18906_v63, %v18906_v63 }
 0x3e6   :  { %22390 = vst [vmem:[#allocation233_spill] sm:$0xff] %v18900_v42  ;;  %v14502_v37 = vpop.f32.mrb[224].mxu0  ;;  %v7481_v36 = vadd.f32 %v7480_v56, %v7226_v34  ;;  %v6964_v32 = vadd.f32 %v6963_v52, %v18900_v42  ;;  %v7227_v43 = vmul.f32 %v18900_v42, %v18900_v42 }
 0x3e7   :  { %v6361_v51 = vpop.f32.mrb[225].mxu0  ;;  %v18913_v34 = vmax.f32 %v6357_v30, 0.0 }
 0x3e8   :  { %v14503_v33 = vpop.f32.mrb[226].mxu0  ;;  %v6965_v9 = vadd.f32 %v6964_v32, %v18906_v63  ;;  %v7482_v28 = vadd.f32 %v7481_v36, %v7227_v43  ;;  %v6362_v10 = vadd.f32 %v18453_v31, %v6361_v51 }
 0x3e9   :  { %v6364_v3 = vpop.f32.mrb[227].mxu0  ;;  %22392 = vst [vmem:[#allocation235_spill] sm:$0xff] %v18913_v34  ;;  %v7229_v36 = vmul.f32 %v18913_v34, %v18913_v34 }
 0x3ea   :  { %v7483_v29 = vadd.f32 %v7482_v28, %v7228_v15  ;;  %v18915_v42 = vmax.f32 %v6362_v10, 0.0  ;;  %v6966_v45 = vadd.f32 %v6965_v9, %v18913_v34  ;;  %v6365_v44 = vadd.f32 %v18453_v31, %v6364_v3 }
 0x3eb   :  { %v6370_v28 = vadd.f32 %v18453_v31, %v14502_v37 }
 0x3ec   :  { %22393 = vst [vmem:[#allocation236_spill] sm:$0xff] %v18915_v42  ;;  %v6967_v51 = vadd.f32 %v6966_v45, %v18915_v42  ;;  %v7230_v32 = vmul.f32 %v18915_v42, %v18915_v42  ;;  %v7484_v43 = vadd.f32 %v7483_v29, %v7229_v36  ;;  %v18924_v30 = vmax.f32 %v6365_v44, 0.0 }
 0x3ed   :  { %v18930_v35 = vmax.f32 %v6370_v28, 0.0  ;;  %v6373_v45 = vadd.f32 %v18453_v31, %v14503_v33 }
 0x3ee   :  { %v14506_v52 = vpop.f32.mrb[228].mxu0  ;;  %22394 = vst [vmem:[#allocation237_spill] sm:$0xff] %v18924_v30  ;;  %v7485_v9 = vadd.f32 %v7484_v43, %v7230_v32  ;;  %v6968_v3 = vadd.f32 %v6967_v51, %v18924_v30  ;;  %v7231_v63 = vmul.f32 %v18924_v30, %v18924_v30 }
 0x3ef   :  { %v6377_v56 = vpop.f32.mrb[229].mxu0  ;;  %22395 = vst [vmem:[#allocation238_spill] sm:$0xff] %v18930_v35  ;;  %v7232_v37 = vmul.f32 %v18930_v35, %v18930_v35  ;;  %v18937_v32 = vmax.f32 %v6373_v45, 0.0 }
 0x3f0   :  { %v14507_v7 = vpop.f32.mrb[230].mxu0  ;;  %v6969_v29 = vadd.f32 %v6968_v3, %v18930_v35  ;;  %v7486_v44 = vadd.f32 %v7485_v9, %v7231_v63  ;;  %v6378_v36 = vadd.f32 %v18453_v31, %v6377_v56 }
 0x3f1   :  { %v6380_v46 = vpop.f32.mrb[231].mxu0  ;;  %22396 = vst [vmem:[#allocation239_spill] sm:$0xff] %v18937_v32  ;;  %v7233_v56 = vmul.f32 %v18937_v32, %v18937_v32 }
 0x3f2   :  { %v7487_v30 = vadd.f32 %v7486_v44, %v7232_v37  ;;  %v18941_v42 = vmax.f32 %v6378_v36, 0.0  ;;  %v6970_v28 = vadd.f32 %v6969_v29, %v18937_v32  ;;  %v6381_v33 = vadd.f32 %v18453_v31, %v6380_v46 }
 0x3f3   :  { %v6386_v44 = vadd.f32 %v18453_v31, %v14506_v52  ;;  %v18971_v31 = vld [vmem:[%s21892_s2] ss:$0 sm:$0xff] }
 0x3f4   :  { %22397 = vst [vmem:[#allocation240_spill] sm:$0xff] %v18941_v42  ;;  %v6971_v9 = vadd.f32 %v6970_v28, %v18941_v42  ;;  %v7234_v3 = vmul.f32 %v18941_v42, %v18941_v42  ;;  %v7488_v45 = vadd.f32 %v7487_v30, %v7233_v56  ;;  %v18952_v35 = vmax.f32 %v6381_v33, 0.0 }
 0x3f5   :  { %v18966_v42 = vmax.f32 %v6386_v44, 0.0  ;;  %v6389_v52 = vadd.f32 %v18971_v31, %v14507_v7 }
 0x3f6   :  { %v14510_v10 = vpop.f32.mrb[232].mxu0  ;;  %22398 = vst [vmem:[#allocation241_spill] sm:$0xff] %v18952_v35  ;;  %v7489_v46 = vadd.f32 %v7488_v45, %v7234_v3  ;;  %v6972_v37 = vadd.f32 %v6971_v9, %v18952_v35  ;;  %v7235_v32 = vmul.f32 %v18952_v35, %v18952_v35 }
 0x3f7   :  { %v6393_v15 = vpop.f32.mrb[233].mxu0  ;;  %22399 = vst [vmem:[#allocation242_spill] sm:$0xff] %v18966_v42  ;;  %v7236_v9 = vmul.f32 %v18966_v42, %v18966_v42  ;;  %v18978_v3 = vmax.f32 %v6389_v52, 0.0 }
 0x3f8   :  { %v14511_v40 = vpop.f32.mrb[234].mxu0  ;;  %v6973_v30 = vadd.f32 %v6972_v37, %v18966_v42  ;;  %v7490_v33 = vadd.f32 %v7489_v46, %v7235_v32  ;;  %v6394_v56 = vadd.f32 %v18971_v31, %v6393_v15 }
 0x3f9   :  { %v6396_v34 = vpop.f32.mrb[235].mxu0  ;;  %22400 = vst [vmem:[#allocation243_spill] sm:$0xff] %v18978_v3  ;;  %v7237_v15 = vmul.f32 %v18978_v3, %v18978_v3 }
 0x3fa   :  { %v7491_v35 = vadd.f32 %v7490_v33, %v7236_v9  ;;  %v18984_v47 = vmax.f32 %v6394_v56, 0.0  ;;  %v6974_v53 = vadd.f32 %v6973_v30, %v18978_v3  ;;  %v6397_v7 = vadd.f32 %v18971_v31, %v6396_v34 }
 0x3fb   :  { %v6402_v56 = vadd.f32 %v18971_v31, %v14510_v10  ;;  %v6405_v10 = vadd.f32 %v18971_v31, %v14511_v40 }
 0x3fc   :  { %22401 = vst [vmem:[#allocation244_spill] sm:$0xff] %v18984_v47  ;;  %v6975_v46 = vadd.f32 %v6974_v53, %v18984_v47  ;;  %v7238_v52 = vmul.f32 %v18984_v47, %v18984_v47  ;;  %v7492_v42 = vadd.f32 %v7491_v35, %v7237_v15  ;;  %v18997_v33 = vmax.f32 %v6397_v7, 0.0  ;;  %v15437_v53 = vld [vmem:[%s21895_s5 + $0x40] sm:$0xff]  }
 0x3fd   :  { %v19014_v7 = vmax.f32 %v6402_v56, 0.0  ;;  %14532 = vmatprep.subr.bf16.mxu1 %v15437_v53  ;;  %v19024_v47 = vmax.f32 %v6405_v10, 0.0  ;;  %v15439_v10 = vld [vmem:[%s21895_s5 + $0x50] sm:$0xff]  }
 0x3fe   :  { %v18939_v51 = vpop.f32.mrb[236].mxu0  ;;  %22402 = vst [vmem:[#allocation245_spill] sm:$0xff] %v18997_v33  ;;  %v7493_v9 = vadd.f32 %v7492_v42, %v7238_v52  ;;  %v6976_v12 = vadd.f32 %v6975_v46, %v18997_v33  ;;  %v7239_v3 = vmul.f32 %v18997_v33, %v18997_v33  ;;  %14533 = vmatpush3.bf16.msra.mxu1 %v15437_v53  ;;  %v15438_v52 = vld [vmem:[%s21895_s5 + $0x48] sm:$0xff]  }
 0x3ff   :  { %v6409_v43 = vpop.f32.mrb[237].mxu0  ;;  %22403 = vst [vmem:[#allocation246_spill] sm:$0xff] %v19014_v7  ;;  %v7240_v33 = vmul.f32 %v19014_v7, %v19014_v7  ;;  %22404 = vst [vmem:[#allocation247_spill] sm:$0xff] %v19024_v47  ;;  %14534 = vmatprep.subr.bf16.mxu1 %v15438_v52  ;;  %v7241_v24 = vmul.f32 %v19024_v47, %v19024_v47 }
 0x400   :  { %v18945_v16 = vpop.f32.mrb[238].mxu0  ;;  %v6977_v42 = vadd.f32 %v6976_v12, %v19014_v7  ;;  %v7494_v15 = vadd.f32 %v7493_v9, %v7239_v3  ;;  %v6410_v46 = vadd.f32 %v18971_v31, %v6409_v43 }
 0x401   :  { %v6412_v63 = vpop.f32.mrb[239].mxu0 }
 0x402   :  { %14535 = vmatpush3.bf16.msra.mxu1 %v15438_v52  ;;  %v7495_v53 = vadd.f32 %v7494_v15, %v7240_v33  ;;  %v19030_v12 = vmax.f32 %v6410_v46, 0.0  ;;  %v6978_v43 = vadd.f32 %v6977_v42, %v19024_v47  ;;  %v6413_v3 = vadd.f32 %v18971_v31, %v6412_v63  ;;  %v15440_v46 = vld [vmem:[%s21895_s5 + $0x58] sm:$0xff]  }
 0x403   :  { %14536 = vmatprep.subr.bf16.mxu1 %v15439_v10  ;;  %v6418_v52 = vadd.f32 %v18971_v31, %v18939_v51 }
 0x404   :  { %v6979_v33 = vadd.f32 %v6978_v43, %v19030_v12  ;;  %v7242_v42 = vmul.f32 %v19030_v12, %v19030_v12  ;;  %v7496_v15 = vadd.f32 %v7495_v53, %v7241_v24  ;;  %v19046_v63 = vmax.f32 %v6413_v3, 0.0  ;;  %v15441_v24 = vld [vmem:[%s21895_s5 + $0x60] sm:$0xff]  }
 0x405   :  { %v19059_v53 = vmax.f32 %v6418_v52, 0.0  ;;  %v6421_v3 = vadd.f32 %v18971_v31, %v18945_v16 }
 0x406   :  { %v18955_v36 = vpop.f32.mrb[240].mxu0  ;;  %14537 = vmatpush3.bf16.msra.mxu1 %v15439_v10  ;;  %22405 = vst [vmem:[#allocation248_spill] sm:$0xff] %v19046_v63  ;;  %v7497_v47 = vadd.f32 %v7496_v15, %v7242_v42  ;;  %v6980_v10 = vadd.f32 %v6979_v33, %v19046_v63  ;;  %v7243_v43 = vmul.f32 %v19046_v63, %v19046_v63  ;;  %v15442_v42 = vld [vmem:[%s21895_s5 + $0x68] sm:$0xff]  }
 0x407   :  { %v18957_v29 = vpop.f32.mrb[241].mxu0  ;;  %14538 = vmatprep.subr.bf16.mxu1 %v15440_v46  ;;  %v7244_v15 = vmul.f32 %v19059_v53, %v19059_v53  ;;  %v19071_v52 = vmax.f32 %v6421_v3, 0.0 }
 0x408   :  { %v18962_v41 = vpop.f32.mrb[242].mxu0  ;;  %v6981_v51 = vadd.f32 %v6980_v10, %v19059_v53  ;;  %v6426_v33 = vadd.f32 %v18971_v31, %v18957_v29  ;;  %v15443_v29 = vld [vmem:[%s21895_s5 + $0x70] sm:$0xff]  }
 0x409   :  { %v18964_v28 = vpop.f32.mrb[243].mxu0 }
 0x40a   :  { %14539 = vmatpush3.bf16.msra.mxu1 %v15440_v46  ;;  %v7498_v46 = vadd.f32 %v7497_v47, %v7243_v43  ;;  %v19073_v63 = vmax.f32 %v6426_v33, 0.0  ;;  %v6982_v10 = vadd.f32 %v6981_v51, %v19071_v52  ;;  %v6429_v47 = vadd.f32 %v18971_v31, %v18964_v28  ;;  %v15444_v28 = vld [vmem:[%s21895_s5 + $0x78] sm:$0xff]  }
 0x40b   :  { %14540 = vmatprep.subr.bf16.mxu1 %v15441_v24  ;;  %v7245_v43 = vmul.f32 %v19071_v52, %v19071_v52  ;;  %v6434_v51 = vadd.f32 %v18971_v31, %v18955_v36 }
 0x40c   :  { %v7499_v16 = vadd.f32 %v7498_v46, %v7244_v15  ;;  %v7246_v3 = vmul.f32 %v19073_v63, %v19073_v63  ;;  %v19086_v33 = vmax.f32 %v6429_v47, 0.0  ;;  %v19103_v47 = vld [vmem:[%s21895_s5] sm:$0xff]  }
 0x40e   :  { %v18980_v45 = vpop.f32.mrb[244].mxu0  ;;  %14541 = vmatpush3.bf16.msra.mxu1 %v15441_v24  ;;  %v6983_v24 = vadd.f32 %v6982_v10, %v19073_v63  ;;  %v7500_v46 = vadd.f32 %v7499_v16, %v7245_v43  ;;  %22406 = vst [vmem:[#allocation249_spill] sm:$0xff] %v19086_v33  ;;  %v7247_v10 = vmul.f32 %v19086_v33, %v19086_v33 }
 0x40f   :  { %v18982_v44 = vpop.f32.mrb[245].mxu0  ;;  %14542 = vmatprep.subr.bf16.mxu1 %v15442_v42  ;;  %v6437_v16 = vadd.f32 %v18971_v31, %v18962_v41 }
 0x410   :  { %v18988_v37 = vpop.f32.mrb[246].mxu0  ;;  %v6984_v15 = vadd.f32 %v6983_v24, %v19086_v33 }
 0x411   :  { %v18990_v32 = vpop.f32.mrb[247].mxu0 }
 0x412   :  { %14543 = vmatpush3.bf16.msra.mxu1 %v15442_v42  ;;  %v7501_v42 = vadd.f32 %v7500_v46, %v7246_v3  ;;  %v6442_v3 = vadd.f32 %v18971_v31, %v18982_v44  ;;  %v19111_v46 = vmax.f32 %v6437_v16, 0.0  ;;  %v6445_v33 = vadd.f32 %v18971_v31, %v18990_v32 }
 0x413   :  { %14544 = vmatprep.subr.bf16.mxu1 %v15443_v29  ;;  %v6450_v16 = vadd.f32 %v18971_v31, %v18980_v45 }
 0x414   :  { %v7502_v43 = vadd.f32 %v7501_v42, %v7247_v10  ;;  %v19113_v41 = vmax.f32 %v6442_v3, 0.0  ;;  %v7249_v42 = vmul.f32 %v19111_v46, %v19111_v46 }
 0x415   :  { %v19130_v3 = vmax.f32 %v6450_v16, 0.0 }
 0x416   :  { %v19000_v30 = vpop.f32.mrb[248].mxu0  ;;  %14545 = vmatpush3.bf16.msra.mxu1 %v15443_v29  ;;  %v19096_v29 = vmax.f32 %v6434_v51, 0.0  ;;  %22408 = vst [vmem:[#allocation251_spill] sm:$0xff] %v19113_v41 }
 0x417   :  { %v19002_v34 = vpop.f32.mrb[249].mxu0  ;;  %14546 = vmatprep.subr.bf16.mxu1 %v15444_v28  ;;  %v7252_v45 = vmul.f32 %v19130_v3, %v19130_v3 }
 0x418   :  { %v19007_v48 = vpop.f32.mrb[250].mxu0  ;;  %22407 = vst [vmem:[#allocation250_spill] sm:$0xff] %v19096_v29  ;;  %v6985_v36 = vadd.f32 %v6984_v15, %v19096_v29  ;;  %v7248_v24 = vmul.f32 %v19096_v29, %v19096_v29  ;;  %v7250_v15 = vmul.f32 %v19113_v41, %v19113_v41  ;;  %v19123_v29 = vmax.f32 %v6445_v33, 0.0 }
 0x419   :  { %v19012_v35 = vpop.f32.mrb[251].mxu0  ;;  %v6458_v33 = vadd.f32 %v18971_v31, %v19002_v34 }
 0x41a   :  { %14547 = vmatpush3.bf16.msra.mxu1 %v15444_v28  ;;  %v7503_v28 = vadd.f32 %v7502_v43, %v7248_v24  ;;  %v6986_v51 = vadd.f32 %v6985_v36, %v19111_v46  ;;  %v7251_v32 = vmul.f32 %v19123_v29, %v19123_v29  ;;  %v6453_v24 = vadd.f32 %v18971_v31, %v18988_v37 }
 0x41b   :  { %14612 = vmatprep.subr.bf16.mxu1 %v19103_v47 }
 0x41c   :  { %v6987_v44 = vadd.f32 %v6986_v51, %v19113_v41  ;;  %v7504_v10 = vadd.f32 %v7503_v28, %v7249_v42  ;;  %v19139_v28 = vmax.f32 %v6453_v24, 0.0 }
 0x41e   :  { %v19026_v56 = vpop.f32.mrb[252].mxu0  ;;  %v7505_v43 = vadd.f32 %v7504_v10, %v7250_v15  ;;  %v6988_v36 = vadd.f32 %v6987_v44, %v19123_v29  ;;  %v19141_v44 = vmax.f32 %v6458_v33, 0.0  ;;  %v6461_v10 = vadd.f32 %v18971_v31, %v19012_v35 }
 0x41f   :  { %v19028_v40 = vpop.f32.mrb[253].mxu0  ;;  %v7253_v37 = vmul.f32 %v19139_v28, %v19139_v28  ;;  %v6469_v33 = vadd.f32 %v18971_v31, %v19007_v48 }
 0x420   :  { %v19034_v9 = vpop.f32.mrb[254].mxu0  ;;  %v6989_v51 = vadd.f32 %v6988_v36, %v19130_v3  ;;  %v7506_v41 = vadd.f32 %v7505_v43, %v7251_v32  ;;  %v7254_v34 = vmul.f32 %v19141_v44, %v19141_v44  ;;  %v19151_v36 = vmax.f32 %v6461_v10, 0.0 }
 0x421   :  { %v19039_v7 = vpop.f32.mrb[255].mxu0  ;;  %v19167_v10 = vmax.f32 %v6469_v33, 0.0 }
 0x422   :  { %v7507_v42 = vadd.f32 %v7506_v41, %v7252_v45  ;;  %v6990_v15 = vadd.f32 %v6989_v51, %v19139_v28  ;;  %v6466_v41 = vadd.f32 %v18971_v31, %v19000_v30  ;;  %v7255_v35 = vmul.f32 %v19151_v36, %v19151_v36 }
 0x423   :  { %22410 = vst [vmem:[#allocation253_spill] sm:$0xff] %v19167_v10  ;;  %v7257_v48 = vmul.f32 %v19167_v10, %v19167_v10 }
 0x424   :  { %v6991_v16 = vadd.f32 %v6990_v15, %v19141_v44  ;;  %v7508_v43 = vadd.f32 %v7507_v42, %v7253_v37  ;;  %v19158_v51 = vmax.f32 %v6466_v41, 0.0  ;;  %v6474_v42 = vadd.f32 %v18971_v31, %v19028_v40 }
 0x426   :  { %v7509_v32 = vadd.f32 %v7508_v43, %v7254_v34  ;;  %v6992_v24 = vadd.f32 %v6991_v16, %v19151_v36  ;;  %22409 = vst [vmem:[#allocation252_spill] sm:$0xff] %v19158_v51  ;;  %v7256_v30 = vmul.f32 %v19158_v51, %v19158_v51  ;;  %v19169_v16 = vmax.f32 %v6474_v42, 0.0 }
 0x427   :  { %v6477_v43 = vadd.f32 %v18971_v31, %v19039_v7  ;;  %v6485_v42 = vadd.f32 %v18971_v31, %v19034_v9 }
 0x428   :  { %v6993_v45 = vadd.f32 %v6992_v24, %v19158_v51  ;;  %v7510_v15 = vadd.f32 %v7509_v32, %v7255_v35  ;;  %22411 = vst [vmem:[#allocation254_spill] sm:$0xff] %v19169_v16  ;;  %v7258_v40 = vmul.f32 %v19169_v16, %v19169_v16  ;;  %v6482_v35 = vadd.f32 %v18971_v31, %v19026_v56 }
 0x429   :  { %v19179_v24 = vmax.f32 %v6477_v43, 0.0  ;;  %v19193_v43 = vmax.f32 %v6485_v42, 0.0 }
 0x42a   :  { %v7511_v37 = vadd.f32 %v7510_v15, %v7256_v30  ;;  %v6994_v34 = vadd.f32 %v6993_v45, %v19167_v10  ;;  %v19186_v15 = vmax.f32 %v6482_v35, 0.0 }
 0x42b   :  { %22412 = vst [vmem:[#allocation255_spill] sm:$0xff] %v19179_v24  ;;  %v7259_v7 = vmul.f32 %v19179_v24, %v19179_v24  ;;  %22414 = vst [vmem:[#allocation257_spill] sm:$0xff] %v19193_v43 }
 0x42c   :  { %v6995_v41 = vadd.f32 %v6994_v34, %v19169_v16  ;;  %v7512_v32 = vadd.f32 %v7511_v37, %v7257_v48  ;;  %22413 = vst [vmem:[#allocation256_spill] sm:$0xff] %v19186_v15  ;;  %v7260_v37 = vmul.f32 %v19186_v15, %v19186_v15 }
 0x42e   :  { %v7513_v33 = vadd.f32 %v7512_v32, %v7258_v40  ;;  %v6996_v45 = vadd.f32 %v6995_v41, %v19179_v24  ;;  %v7261_v41 = vmul.f32 %v19193_v43, %v19193_v43 }
 0x430   :  { %v6997_v30 = vadd.f32 %v6996_v45, %v19186_v15  ;;  %v7514_v34 = vadd.f32 %v7513_v33, %v7259_v7 }
 0x432   :  { %v6998_v56 = vadd.f32 %v6997_v30, %v19193_v43  ;;  %v7515_v48 = vadd.f32 %v7514_v34, %v7260_v37 }
 0x434   :  { %v6999_v40 = vrot.slane %v6998_v56, 4  ;;  %v7516_v32 = vadd.f32 %v7515_v48, %v7261_v41 }
 0x436   :  { %v7000_v35 = vadd.f32 %v6999_v40, %v6998_v56  ;;  %v7517_v16 = vrot.slane %v7516_v32, 4  ;;  %v22124_v56 = vlaneseq }
 0x438   :  { %v7001_v24 = vrot.slane %v7000_v35, 2  ;;  %v7518_v31 = vadd.f32 %v7517_v16, %v7516_v32  ;;  %v19203_v48 = vshrl.u32 %v22124_v56, 7 }
 0x43a   :  { %v7002_v9 = vadd.f32 %v7001_v24, %v7000_v35  ;;  %v7519_v45 = vrot.slane %v7518_v31, 2  ;;  %22415 = vst [vmem:[#allocation258_spill] sm:$0xff] %v19203_v48  ;;  %v7528_v24 = vld [vmem:[%s21893_s3] sm:$0x1] }
 0x43c   :  { %v7003_v33 = vrot.slane %v7002_v9, 1  ;;  %v7520_v7 = vadd.f32 %v7519_v45, %v7518_v31 }
 0x43e   :  { %v7004_v10 = vadd.f32 %v7003_v33, %v7002_v9  ;;  %v7521_v15 = vrot.slane %v7520_v7, 1  ;;  %v19227_v9 = vld [vmem:[%s21894_s4] ss:$0 sm:$0xff] }
 0x440   :  { %v19198_v42 = vmul.f32 0.00048828125, %v7004_v10  ;;  %v7522_v51 = vadd.f32 %v7521_v15, %v7520_v7  ;;  %v19209_v10 = vsub.s32 0, %v19203_v48 }
 0x442   :  { %v7523_v30 = vmul.f32 0.00048828125, %v7522_v51  ;;  %v7524_v34 = vmul.f32 %v19198_v42, %v19198_v42  ;;  %22416 = vst [vmem:[#allocation259_spill] sm:$0xff] %v19209_v10  ;;  %v7596_v15 = vsub.f32 %v17836_v14, %v19198_v42  ;;  %v7598_v40 = vsub.f32 %v17863_v17, %v19198_v42 }
 0x443   :  { %v7599_v32 = vsub.f32 %v17871_v6, %v19198_v42  ;;  %v7594_v14 = vsub.f32 %v17833_v25, %v19198_v42 }
 0x444   :  { %v7525_v37 = vsub.f32 %v7523_v30, %v7524_v34 }
 0x446   :  { %v7526_v43 = vadd.f32 1e-05, %v7525_v37 }
 0x448   :  { %15501 = vrsqrt.f32 %v7526_v43  ;;  %v7597_v43 = vsub.f32 %v17843_v5, %v19198_v42  ;;  %v7595_v5 = vsub.f32 %v17841_v1, %v19198_v42 }
 0x452   :  { %v15502_v16 = vpop.eup %15501 }
 0x453   :  { %v7529_v41 = vmul.f32 %v15502_v16, %v7528_v24  ;;  %v7600_v16 = vsub.f32 %v17866_v13, %v19198_v42  ;;  %v7601_v24 = vsub.f32 %v17873_v4, %v19198_v42 }
 0x455   :  { %v19212_v51 = vrot.slane %v7529_v41, %v19209_v10 }
 0x457   :  { %v7856_v35 = vmul.f32 %v19212_v51, %v7596_v15  ;;  %v7857_v31 = vmul.f32 %v19212_v51, %v7597_v43  ;;  %v7858_v17 = vmul.f32 %v19212_v51, %v7598_v40  ;;  %v7859_v45 = vmul.f32 %v19212_v51, %v7599_v32 }
 0x458   :  { %v7854_v6 = vmul.f32 %v19212_v51, %v7594_v14  ;;  %v7855_v33 = vmul.f32 %v19212_v51, %v7595_v5  ;;  %v7602_v15 = vsub.f32 %v17893_v18, %v19198_v42  ;;  %v7603_v43 = vsub.f32 %v17906_v55, %v19198_v42  ;;  %v15447_v5 = vld [vmem:[%s21895_s5 + $0x10] sm:$0xff]  }
 0x459   :  { %v8119_v7 = vadd.f32 %v19227_v9, %v7856_v35  ;;  %v8120_v30 = vadd.f32 %v19227_v9, %v7857_v31  ;;  %v8121_v25 = vadd.f32 %v19227_v9, %v7858_v17  ;;  %v8122_v1 = vadd.f32 %v19227_v9, %v7859_v45  ;;  %v15446_v31 = vld [vmem:[%s21895_s5 + $0x8] sm:$0xff]  }
 0x45a   :  { %v8117_v34 = vadd.f32 %v19227_v9, %v7854_v6  ;;  %v8118_v37 = vadd.f32 %v19227_v9, %v7855_v33  ;;  %v7860_v32 = vmul.f32 %v19212_v51, %v7600_v16  ;;  %v7861_v35 = vmul.f32 %v19212_v51, %v7601_v24  ;;  %v15449_v16 = vld [vmem:[%s21895_s5 + $0x20] sm:$0xff]  }
 0x45b   :  { %v8342_v41 = vpack.c.bf16 %v8120_v30, %v8119_v7  ;;  %v7862_v13 = vmul.f32 %v19212_v51, %v7602_v15  ;;  %v7863_v4 = vmul.f32 %v19212_v51, %v7603_v43  ;;  %v8343_v14 = vpack.c.bf16 %v8122_v1, %v8121_v25 }
 0x45c   :  { %v8341_v40 = vpack.c.bf16 %v8118_v37, %v8117_v34  ;;  %v8123_v18 = vadd.f32 %v19227_v9, %v7860_v32  ;;  %v8124_v55 = vadd.f32 %v19227_v9, %v7861_v35  ;;  %v7604_v6 = vsub.f32 %v17901_v50, %v19198_v42  ;;  %v15448_v50 = vld [vmem:[%s21895_s5 + $0x18] sm:$0xff]  }
 0x45d   :  { %v8125_v17 = vadd.f32 %v19227_v9, %v7862_v13  ;;  %v8126_v45 = vadd.f32 %v19227_v9, %v7863_v4  ;;  %v7606_v33 = vsub.f32 %v17928_v19, %v19198_v42  ;;  %v7607_v7 = vsub.f32 %v17936_v8, %v19198_v42 }
 0x45e   :  { %14548 = vmatprep.mubr.bf16.mxu1 %v8341_v40  ;;  %v7864_v30 = vmul.f32 %v19212_v51, %v7604_v6  ;;  %v8344_v37 = vpack.c.bf16 %v8124_v55, %v8123_v18  ;;  %v7608_v15 = vsub.f32 %v17931_v26, %v19198_v42  ;;  %v7609_v43 = vsub.f32 %v17938_v27, %v19198_v42  ;;  %v15450_v26 = vld [vmem:[%s21895_s5 + $0x28] sm:$0xff]   ;;  %v15451_v18 = vld [vmem:[%s21895_s5 + $0x30] sm:$0xff]  }
 0x45f   :  { %14549 = vmatmul.mubr.bf16.vlgmr.msra.gmra.mrb[0].mxu1 %v8342_v41  ;;  %v7866_v25 = vmul.f32 %v19212_v51, %v7606_v33  ;;  %v8345_v1 = vpack.c.bf16 %v8126_v45, %v8125_v17  ;;  %v7610_v40 = vsub.f32 %v17958_v20, %v19198_v42  ;;  %v7611_v32 = vsub.f32 %v17966_v59, %v19198_v42 }
 0x460   :  { %14613 = vmatpush3.bf16.msra.mxu1 %v19103_v47  ;;  %14552 = vmatprep.mubr.bf16.mxu1 %v8343_v14  ;;  %v7605_v47 = vsub.f32 %v17908_v11, %v19198_v42  ;;  %v7867_v11 = vmul.f32 %v19212_v51, %v7607_v7  ;;  %v8127_v19 = vadd.f32 %v19227_v9, %v7864_v30 }
 0x461   :  { %14614 = vmatprep.subr.bf16.mxu1 %v15446_v31  ;;  %v8129_v24 = vadd.f32 %v19227_v9, %v7866_v25  ;;  %v7868_v35 = vmul.f32 %v19212_v51, %v7608_v15  ;;  %v7870_v4 = vmul.f32 %v19212_v51, %v7610_v40  ;;  %v7871_v27 = vmul.f32 %v19212_v51, %v7611_v32 }
 0x462   :  { %v7865_v34 = vmul.f32 %v19212_v51, %v7605_v47  ;;  %v8130_v41 = vadd.f32 %v19227_v9, %v7867_v11  ;;  %v7612_v17 = vsub.f32 %v17961_v2, %v19198_v42  ;;  %v7613_v45 = vsub.f32 %v17968_v0, %v19198_v42  ;;  %v15452_v2 = vld [vmem:[%s21895_s5 + $0x38] sm:$0xff]  }
 0x463   :  { %v8131_v20 = vadd.f32 %v19227_v9, %v7868_v35  ;;  %v8133_v55 = vadd.f32 %v19227_v9, %v7870_v4  ;;  %v7614_v6 = vsub.f32 %v17988_v21, %v19198_v42  ;;  %v7615_v47 = vsub.f32 %v17996_v54, %v19198_v42 }
 0x464   :  { %14615 = vmatpush3.bf16.msra.mxu1 %v15446_v31  ;;  %v8128_v8 = vadd.f32 %v19227_v9, %v7865_v34  ;;  %v7869_v31 = vmul.f32 %v19212_v51, %v7609_v43  ;;  %v8347_v14 = vpack.c.bf16 %v8130_v41, %v8129_v24  ;;  %v7872_v33 = vmul.f32 %v19212_v51, %v7612_v17  ;;  %v22417_v17 = vld [vmem:[#allocation108_spill] sm:$0xff] }
 0x465   :  { %14616 = vmatprep.subr.bf16.mxu1 %v15447_v5  ;;  %v7873_v7 = vmul.f32 %v19212_v51, %v7613_v45  ;;  %v7874_v34 = vmul.f32 %v19212_v51, %v7614_v6  ;;  %v7875_v0 = vmul.f32 %v19212_v51, %v7615_v47  ;;  %v7620_v35 = vsub.f32 %v18021_v58, %v19198_v42  ;;  %v22418_v6 = vld [vmem:[#allocation110_spill] sm:$0xff] }
 0x466   :  { %v8346_v13 = vpack.c.bf16 %v8128_v8, %v8127_v19  ;;  %v8132_v59 = vadd.f32 %v19227_v9, %v7869_v31  ;;  %v8135_v21 = vadd.f32 %v19227_v9, %v7872_v33  ;;  %v7617_v19 = vsub.f32 %v17998_v49, %v19198_v42 }
 0x467   :  { %14553 = vmatmul.mubr.bf16.gmra.mrb[4].mxu1 %v8344_v37  ;;  %v8136_v54 = vadd.f32 %v19227_v9, %v7873_v7  ;;  %v8137_v25 = vadd.f32 %v19227_v9, %v7874_v34  ;;  %v8138_v11 = vadd.f32 %v19227_v9, %v7875_v0  ;;  %v7618_v8 = vsub.f32 %v18018_v22, %v19198_v42 }
 0x468   :  { %14556 = vmatprep.mubr.bf16.mxu1 %v8345_v1  ;;  %14617 = vmatpush3.bf16.msra.mxu1 %v15447_v5  ;;  %v8134_v5 = vadd.f32 %v19227_v9, %v7871_v27  ;;  %v8348_v30 = vpack.c.bf16 %v8132_v59, %v8131_v20  ;;  %v7616_v1 = vsub.f32 %v17991_v38, %v19198_v42 }
 0x469   :  { %14618 = vmatprep.subr.bf16.mxu1 %v15448_v50  ;;  %v7877_v41 = vmul.f32 %v19212_v51, %v7617_v19  ;;  %v8350_v15 = vpack.c.bf16 %v8136_v54, %v8135_v21  ;;  %v7878_v43 = vmul.f32 %v19212_v51, %v7618_v8  ;;  %v8351_v40 = vpack.c.bf16 %v8138_v11, %v8137_v25  ;;  %v22419_v54 = vld [vmem:[#allocation109_spill] sm:$0xff]  ;;  %v22420_v11 = vld [vmem:[#allocation111_spill] sm:$0xff]  ;;  %v22421_v19 = vld [vmem:[#allocation112_spill] sm:$0xff] }
 0x46a   :  { %v8349_v37 = vpack.c.bf16 %v8134_v5, %v8133_v55  ;;  %v7876_v24 = vmul.f32 %v19212_v51, %v7616_v1  ;;  %v7621_v31 = vsub.f32 %v18028_v61, %v19198_v42  ;;  %v7880_v4 = vmul.f32 %v19212_v51, %v7620_v35 }
 0x46b   :  { %v8140_v49 = vadd.f32 %v19227_v9, %v7877_v41  ;;  %v7624_v55 = vsub.f32 %v18051_v62, %v19198_v42  ;;  %v7625_v5 = vsub.f32 %v18058_v57, %v19198_v42  ;;  %v7626_v45 = vsub.f32 %v22417_v17, %v19198_v42 }
 0x46c   :  { %14619 = vmatpush3.bf16.msra.mxu1 %v15448_v50  ;;  %v19330_v50 = vld [vmem:[%s21895_s5 + $0x80] sm:$0xff]   ;;  %v8139_v22 = vadd.f32 %v19227_v9, %v7876_v24  ;;  %v7881_v27 = vmul.f32 %v19212_v51, %v7621_v31  ;;  %v8143_v58 = vadd.f32 %v19227_v9, %v7880_v4  ;;  %v7627_v47 = vsub.f32 %v22418_v6, %v19198_v42  ;;  %v22423_v31 = vld [vmem:[#allocation113_spill] sm:$0xff] }
 0x46d   :  { %14620 = vmatprep.subr.bf16.mxu1 %v15449_v16  ;;  %v7884_v33 = vmul.f32 %v19212_v51, %v7624_v55  ;;  %v7885_v7 = vmul.f32 %v19212_v51, %v7625_v5  ;;  %v7628_v25 = vsub.f32 %v22419_v54, %v19198_v42  ;;  %v7629_v1 = vsub.f32 %v22420_v11, %v19198_v42 }
 0x46e   :  { %v8144_v61 = vadd.f32 %v19227_v9, %v7881_v27  ;;  %v7887_v34 = vmul.f32 %v19212_v51, %v7627_v47  ;;  %v7630_v8 = vsub.f32 %v22421_v19, %v19198_v42  ;;  %v22425_v27 = vld [vmem:[#allocation116_spill] sm:$0xff]  ;;  %v22427_v47 = vld [vmem:[#allocation117_spill] sm:$0xff] }
 0x46f   :  { %14557 = vmatmul.mubr.bf16.gmra.mrb[8].mxu1 %v8346_v13  ;;  %v7622_v13 = vsub.f32 %v18048_v23, %v19198_v42  ;;  %v8147_v62 = vadd.f32 %v19227_v9, %v7884_v33  ;;  %v8148_v57 = vadd.f32 %v19227_v9, %v7885_v7  ;;  %v7888_v41 = vmul.f32 %v19212_v51, %v7628_v25  ;;  %v22428_v7 = vld [vmem:[#allocation119_spill] sm:$0xff] }
 0x470   :  { %14560 = vmatprep.mubr.bf16.mxu1 %v8347_v14  ;;  %14621 = vmatpush3.bf16.msra.mxu1 %v15449_v16  ;;  %v7619_v16 = vsub.f32 %v18026_v39, %v19198_v42  ;;  %v8141_v39 = vadd.f32 %v19227_v9, %v7878_v43  ;;  %v8352_v14 = vpack.c.bf16 %v8140_v49, %v8139_v22 }
 0x471   :  { %14622 = vmatprep.subr.bf16.mxu1 %v15450_v26  ;;  %v7882_v20 = vmul.f32 %v19212_v51, %v7622_v13  ;;  %v8150_v21 = vadd.f32 %v19227_v9, %v7887_v34  ;;  %v8356_v43 = vpack.c.bf16 %v8148_v57, %v8147_v62  ;;  %v8151_v49 = vadd.f32 %v19227_v9, %v7888_v41 }
 0x472   :  { %v7879_v38 = vmul.f32 %v19212_v51, %v7619_v16  ;;  %v22422_v16 = vld [vmem:[#allocation114_spill] sm:$0xff]  ;;  %v7632_v13 = vsub.f32 %v22423_v31, %v19198_v42  ;;  %v7636_v33 = vsub.f32 %v22427_v47, %v19198_v42 }
 0x473   :  { %v8145_v23 = vadd.f32 %v19227_v9, %v7882_v20  ;;  %v7631_v24 = vsub.f32 %v22422_v16, %v19198_v42  ;;  %v22426_v20 = vld [vmem:[#allocation118_spill] sm:$0xff] }
 0x474   :  { %14623 = vmatpush3.bf16.msra.mxu1 %v15450_v26  ;;  %v8142_v32 = vadd.f32 %v19227_v9, %v7879_v38  ;;  %v7623_v26 = vsub.f32 %v18056_v60, %v19198_v42  ;;  %v7890_v38 = vmul.f32 %v19212_v51, %v7630_v8  ;;  %v7896_v57 = vmul.f32 %v19212_v51, %v7636_v33 }
 0x475   :  { %14624 = vmatprep.subr.bf16.mxu1 %v15451_v18 }
 0x476   :  { %v7883_v59 = vmul.f32 %v19212_v51, %v7623_v26  ;;  %v22424_v26 = vld [vmem:[#allocation115_spill] sm:$0xff] }
 0x477   :  { %14561 = vmatmul.mubr.bf16.gmra.mrb[12].mxu1 %v8348_v30  ;;  %v8354_v30 = vpack.c.bf16 %v8144_v61, %v8143_v58  ;;  %v7633_v4 = vsub.f32 %v22424_v26, %v19198_v42 }
 0x478   :  { %14564 = vmatprep.mubr.bf16.mxu1 %v8349_v37  ;;  %14625 = vmatpush3.bf16.msra.mxu1 %v15451_v18  ;;  %v8353_v18 = vpack.c.bf16 %v8142_v32, %v8141_v39  ;;  %v8146_v60 = vadd.f32 %v19227_v9, %v7883_v59  ;;  %v8153_v32 = vadd.f32 %v19227_v9, %v7890_v38  ;;  %v22433_v38 = vld [vmem:[#allocation124_spill] sm:$0xff] }
 0x479   :  { %14626 = vmatprep.subr.bf16.mxu1 %v15452_v2  ;;  %v7635_v59 = vsub.f32 %v22426_v20, %v19198_v42  ;;  %v7893_v58 = vmul.f32 %v19212_v51, %v7633_v4 }
 0x47a   :  { %v8355_v0 = vpack.c.bf16 %v8146_v60, %v8145_v23 }
 0x47b   :  { %v7895_v60 = vmul.f32 %v19212_v51, %v7635_v59  ;;  %v8156_v17 = vadd.f32 %v19227_v9, %v7893_v58  ;;  %v22435_v59 = vld [vmem:[#allocation125_spill] sm:$0xff]  ;;  %v22436_v58 = vld [vmem:[#allocation127_spill] sm:$0xff] }
 0x47c   :  { %14627 = vmatpush3.bf16.msra.mxu1 %v15452_v2  ;;  %v7886_v2 = vmul.f32 %v19212_v51, %v7626_v45 }
 0x47d   :  { %14692 = vmatprep.subr.bf16.mxu1 %v19330_v50  ;;  %v8158_v6 = vadd.f32 %v19227_v9, %v7895_v60 }
 0x47e   :  { %v8149_v37 = vadd.f32 %v19227_v9, %v7886_v2  ;;  %v22429_v2 = vld [vmem:[#allocation120_spill] sm:$0xff] }
 0x47f   :  { %14565 = vmatmul.mubr.bf16.gmra.mrb[16].mxu1 %v8350_v15  ;;  %v7889_v15 = vmul.f32 %v19212_v51, %v7629_v1  ;;  %v7638_v34 = vsub.f32 %v22429_v2, %v19198_v42  ;;  %v8159_v1 = vadd.f32 %v19227_v9, %v7896_v57 }
 0x480   :  { %14568 = vmatprep.mubr.bf16.mxu1 %v8351_v40  ;;  %v7891_v40 = vmul.f32 %v19212_v51, %v7631_v24  ;;  %v8357_v22 = vpack.c.bf16 %v8150_v21, %v8149_v37  ;;  %v22431_v24 = vld [vmem:[#allocation121_spill] sm:$0xff] }
 0x481   :  { %v8152_v39 = vadd.f32 %v19227_v9, %v7889_v15  ;;  %v7898_v54 = vmul.f32 %v19212_v51, %v7638_v34  ;;  %v7640_v41 = vsub.f32 %v22431_v24, %v19198_v42  ;;  %v22432_v15 = vld [vmem:[#allocation123_spill] sm:$0xff] }
 0x482   :  { %v8154_v35 = vadd.f32 %v19227_v9, %v7891_v40  ;;  %v7642_v40 = vsub.f32 %v22433_v38, %v19198_v42 }
 0x483   :  { %v8358_v61 = vpack.c.bf16 %v8152_v39, %v8151_v49  ;;  %v8161_v8 = vadd.f32 %v19227_v9, %v7898_v54  ;;  %v7900_v39 = vmul.f32 %v19212_v51, %v7640_v41  ;;  %v22441_v54 = vld [vmem:[#allocation132_spill] sm:$0xff] }
 0x484   :  { %v8359_v55 = vpack.c.bf16 %v8154_v35, %v8153_v32  ;;  %v7902_v31 = vmul.f32 %v19212_v51, %v7642_v40 }
 0x485   :  { %v8163_v4 = vadd.f32 %v19227_v9, %v7900_v39 }
 0x487   :  { %14569 = vmatmul.mubr.bf16.gmra.mrb[20].mxu1 %v8352_v14  ;;  %v7634_v14 = vsub.f32 %v22425_v27, %v19198_v42 }
 0x488   :  { %14572 = vmatprep.mubr.bf16.mxu1 %v8353_v18  ;;  %v7892_v18 = vmul.f32 %v19212_v51, %v7632_v13 }
 0x489   :  { %v7894_v23 = vmul.f32 %v19212_v51, %v7634_v14  ;;  %v8165_v14 = vadd.f32 %v19227_v9, %v7902_v31  ;;  %v22445_v31 = vld [vmem:[#allocation136_spill] sm:$0xff] }
 0x48a   :  { %v8155_v5 = vadd.f32 %v19227_v9, %v7892_v18  ;;  %v7644_v18 = vsub.f32 %v22435_v59, %v19198_v42 }
 0x48b   :  { %v8157_v45 = vadd.f32 %v19227_v9, %v7894_v23  ;;  %v22437_v23 = vld [vmem:[#allocation128_spill] sm:$0xff] }
 0x48c   :  { %v8360_v21 = vpack.c.bf16 %v8156_v17, %v8155_v5  ;;  %v7646_v60 = vsub.f32 %v22437_v23, %v19198_v42  ;;  %v7904_v17 = vmul.f32 %v19212_v51, %v7644_v18 }
 0x48d   :  { %v8361_v11 = vpack.c.bf16 %v8158_v6, %v8157_v45 }
 0x48e   :  { %v7906_v47 = vmul.f32 %v19212_v51, %v7646_v60 }
 0x48f   :  { %14573 = vmatmul.mubr.bf16.gmra.mrb[24].mxu1 %v8354_v30  ;;  %v7637_v30 = vsub.f32 %v22428_v7, %v19198_v42 }
 0x490   :  { %14576 = vmatprep.mubr.bf16.mxu1 %v8355_v0  ;;  %v22430_v0 = vld [vmem:[#allocation122_spill] sm:$0xff]  ;;  %v8169_v34 = vadd.f32 %v19227_v9, %v7906_v47  ;;  %v22449_v47 = vld [vmem:[#allocation44_spill] sm:$0xff] }
 0x491   :  { %v7639_v62 = vsub.f32 %v22430_v0, %v19198_v42  ;;  %v7897_v37 = vmul.f32 %v19212_v51, %v7637_v30  ;;  %v8167_v30 = vadd.f32 %v19227_v9, %v7904_v17 }
 0x493   :  { %v7899_v25 = vmul.f32 %v19212_v51, %v7639_v62  ;;  %v8160_v19 = vadd.f32 %v19227_v9, %v7897_v37  ;;  %v22439_v62 = vld [vmem:[#allocation129_spill] sm:$0xff]  ;;  %v22440_v37 = vld [vmem:[#allocation131_spill] sm:$0xff] }
 0x494   :  { %v7648_v57 = vsub.f32 %v22439_v62, %v19198_v42 }
 0x495   :  { %v8162_v16 = vadd.f32 %v19227_v9, %v7899_v25  ;;  %v8362_v35 = vpack.c.bf16 %v8160_v19, %v8159_v1  ;;  %v7650_v25 = vsub.f32 %v22441_v54, %v19198_v42 }
 0x496   :  { %v7908_v19 = vmul.f32 %v19212_v51, %v7648_v57 }
 0x497   :  { %14577 = vmatmul.mubr.bf16.gmra.mrb[28].mxu1 %v8356_v43  ;;  %v7641_v43 = vsub.f32 %v22432_v15, %v19198_v42  ;;  %v8363_v26 = vpack.c.bf16 %v8162_v16, %v8161_v8  ;;  %v7910_v24 = vmul.f32 %v19212_v51, %v7650_v25 }
 0x498   :  { %14580 = vmatprep.mubr.bf16.mxu1 %v8357_v22  ;;  %v22434_v22 = vld [vmem:[#allocation126_spill] sm:$0xff] }
 0x499   :  { %v7643_v49 = vsub.f32 %v22434_v22, %v19198_v42  ;;  %v7901_v32 = vmul.f32 %v19212_v51, %v7641_v43  ;;  %v8171_v43 = vadd.f32 %v19227_v9, %v7908_v19  ;;  %v8173_v40 = vadd.f32 %v19227_v9, %v7910_v24  ;;  %v22453_v24 = vld [vmem:[#allocation48_spill] sm:$0xff] }
 0x49b   :  { %v7903_v13 = vmul.f32 %v19212_v51, %v7643_v49  ;;  %v8164_v27 = vadd.f32 %v19227_v9, %v7901_v32  ;;  %v22443_v49 = vld [vmem:[#allocation133_spill] sm:$0xff]  ;;  %v22444_v32 = vld [vmem:[#allocation135_spill] sm:$0xff] }
 0x49c   :  { %v7652_v39 = vsub.f32 %v22443_v49, %v19198_v42 }
 0x49d   :  { %v8166_v20 = vadd.f32 %v19227_v9, %v7903_v13  ;;  %v8364_v6 = vpack.c.bf16 %v8164_v27, %v8163_v4  ;;  %v7654_v13 = vsub.f32 %v22445_v31, %v19198_v42 }
 0x49e   :  { %v7912_v27 = vmul.f32 %v19212_v51, %v7652_v39 }
 0x49f   :  { %14581 = vmatmul.mubr.bf16.gmra.mrb[32].mxu1 %v8358_v61  ;;  %v7645_v61 = vsub.f32 %v22436_v58, %v19198_v42  ;;  %v8365_v7 = vpack.c.bf16 %v8166_v20, %v8165_v14  ;;  %v7914_v59 = vmul.f32 %v19212_v51, %v7654_v13 }
 0x4a0   :  { %14584 = vmatprep.mubr.bf16.mxu1 %v8359_v55  ;;  %v22438_v55 = vld [vmem:[#allocation130_spill] sm:$0xff] }
 0x4a1   :  { %v7647_v5 = vsub.f32 %v22438_v55, %v19198_v42  ;;  %v7905_v45 = vmul.f32 %v19212_v51, %v7645_v61  ;;  %v8175_v61 = vadd.f32 %v19227_v9, %v7912_v27  ;;  %v8177_v60 = vadd.f32 %v19227_v9, %v7914_v59  ;;  %v22457_v59 = vld [vmem:[#allocation52_spill] sm:$0xff] }
 0x4a3   :  { %v7907_v33 = vmul.f32 %v19212_v51, %v7647_v5  ;;  %v8168_v2 = vadd.f32 %v19227_v9, %v7905_v45  ;;  %v22447_v5 = vld [vmem:[#allocation137_spill] sm:$0xff]  ;;  %v22448_v45 = vld [vmem:[#allocation139_spill] sm:$0xff] }
 0x4a4   :  { %v7656_v17 = vsub.f32 %v22447_v5, %v19198_v42  ;;  %v15454_v5 = vld [vmem:[%s21895_s5 + $0x88] sm:$0xff]  }
 0x4a5   :  { %v8170_v0 = vadd.f32 %v19227_v9, %v7907_v33  ;;  %v8366_v16 = vpack.c.bf16 %v8168_v2, %v8167_v30  ;;  %v7530_v33 = vsub.f32 %v22449_v47, %v19198_v42  ;;  %v15462_v47 = vld [vmem:[%s21899_s9 + $0x40] sm:$0xff]  }
 0x4a6   :  { %v7916_v2 = vmul.f32 %v19212_v51, %v7656_v17  ;;  %14852 = vmatprep.subr.bf16.mxu0 %v15462_v47 }
 0x4a7   :  { %14585 = vmatmul.mubr.bf16.gmra.mrb[36].mxu1 %v8360_v21  ;;  %v7649_v21 = vsub.f32 %v22440_v37, %v19198_v42  ;;  %v8367_v15 = vpack.c.bf16 %v8170_v0, %v8169_v34  ;;  %v7790_v57 = vmul.f32 %v19212_v51, %v7530_v33  ;;  %14853 = vmatpush3.bf16.msra.mxu0 %v15462_v47  ;;  %v22468_v47 = vld [vmem:[#allocation63_spill] sm:$0xff] }
 0x4a8   :  { %14588 = vmatprep.mubr.bf16.mxu1 %v8361_v11  ;;  %v22442_v11 = vld [vmem:[#allocation134_spill] sm:$0xff] }
 0x4a9   :  { %v7651_v1 = vsub.f32 %v22442_v11, %v19198_v42  ;;  %v7909_v8 = vmul.f32 %v19212_v51, %v7649_v21  ;;  %v8179_v21 = vadd.f32 %v19227_v9, %v7916_v2  ;;  %v8053_v25 = vadd.f32 %v19227_v9, %v7790_v57 }
 0x4ab   :  { %v7911_v41 = vmul.f32 %v19212_v51, %v7651_v1  ;;  %v8172_v38 = vadd.f32 %v19227_v9, %v7909_v8  ;;  %v22451_v1 = vld [vmem:[#allocation45_spill] sm:$0xff]  ;;  %v22452_v8 = vld [vmem:[#allocation47_spill] sm:$0xff] }
 0x4ac   :  { %v7532_v19 = vsub.f32 %v22451_v1, %v19198_v42 }
 0x4ad   :  { %v8174_v22 = vadd.f32 %v19227_v9, %v7911_v41  ;;  %v8368_v20 = vpack.c.bf16 %v8172_v38, %v8171_v43  ;;  %v7534_v41 = vsub.f32 %v22453_v24, %v19198_v42 }
 0x4af   :  { %14589 = vmatmul.mubr.bf16.gmra.mrb[40].mxu1 %v8362_v35  ;;  %v7653_v35 = vsub.f32 %v22444_v32, %v19198_v42  ;;  %v8369_v58 = vpack.c.bf16 %v8174_v22, %v8173_v40  ;;  %v7792_v40 = vmul.f32 %v19212_v51, %v7532_v19  ;;  %v7794_v39 = vmul.f32 %v19212_v51, %v7534_v41 }
 0x4b0   :  { %14592 = vmatprep.mubr.bf16.mxu1 %v8363_v26  ;;  %v22446_v26 = vld [vmem:[#allocation138_spill] sm:$0xff] }
 0x4b1   :  { %v7655_v4 = vsub.f32 %v22446_v26, %v19198_v42  ;;  %v7913_v14 = vmul.f32 %v19212_v51, %v7653_v35  ;;  %v8055_v35 = vadd.f32 %v19227_v9, %v7792_v40  ;;  %v8057_v13 = vadd.f32 %v19227_v9, %v7794_v39 }
 0x4b3   :  { %v7915_v18 = vmul.f32 %v19212_v51, %v7655_v4  ;;  %v8176_v23 = vadd.f32 %v19227_v9, %v7913_v14  ;;  %v22455_v4 = vld [vmem:[#allocation49_spill] sm:$0xff]  ;;  %v22456_v14 = vld [vmem:[#allocation51_spill] sm:$0xff] }
 0x4b4   :  { %v7536_v27 = vsub.f32 %v22455_v4, %v19198_v42 }
 0x4b5   :  { %v8178_v55 = vadd.f32 %v19227_v9, %v7915_v18  ;;  %v8370_v0 = vpack.c.bf16 %v8176_v23, %v8175_v61  ;;  %v7538_v18 = vsub.f32 %v22457_v59, %v19198_v42  ;;  %v15458_v59 = vld [vmem:[%s21895_s5 + $0xa8] sm:$0xff]  }
 0x4b7   :  { %14593 = vmatmul.mubr.bf16.gmra.mrb[44].mxu1 %v8364_v6  ;;  %v7657_v6 = vsub.f32 %v22448_v45, %v19198_v42  ;;  %v8371_v62 = vpack.c.bf16 %v8178_v55, %v8177_v60  ;;  %v7796_v60 = vmul.f32 %v19212_v51, %v7536_v27  ;;  %v7798_v45 = vmul.f32 %v19212_v51, %v7538_v18 }
 0x4b8   :  { %14596 = vmatprep.mubr.bf16.mxu1 %v8365_v7  ;;  %v22450_v7 = vld [vmem:[#allocation46_spill] sm:$0xff] }
 0x4b9   :  { %v7531_v30 = vsub.f32 %v22450_v7, %v19198_v42  ;;  %v7917_v34 = vmul.f32 %v19212_v51, %v7657_v6  ;;  %v8059_v33 = vadd.f32 %v19227_v9, %v7796_v60  ;;  %v8061_v2 = vadd.f32 %v19227_v9, %v7798_v45  ;;  %v22467_v45 = vld [vmem:[#allocation61_spill] sm:$0xff] }
 0x4bb   :  { %v7791_v37 = vmul.f32 %v19212_v51, %v7531_v30  ;;  %v8180_v54 = vadd.f32 %v19227_v9, %v7917_v34  ;;  %v15455_v30 = vld [vmem:[%s21895_s5 + $0x90] sm:$0xff]  }
 0x4bd   :  { %v8054_v11 = vadd.f32 %v19227_v9, %v7791_v37  ;;  %v8372_v38 = vpack.c.bf16 %v8180_v54, %v8179_v21  ;;  %v22461_v37 = vld [vmem:[#allocation56_spill] sm:$0xff]  ;;  %v22462_v54 = vld [vmem:[#allocation58_spill] sm:$0xff] }
 0x4be   :  { %v7542_v21 = vsub.f32 %v22461_v37, %v19198_v42 }
 0x4bf   :  { %14597 = vmatmul.mubr.bf16.gmra.mrb[48].mxu1 %v8366_v16  ;;  %v7533_v16 = vsub.f32 %v22452_v8, %v19198_v42  ;;  %v8309_v49 = vpack.c.bf16 %v8054_v11, %v8053_v25  ;;  %v7543_v25 = vsub.f32 %v22462_v54, %v19198_v42  ;;  %v15456_v8 = vld [vmem:[%s21895_s5 + $0x98] sm:$0xff]  }
 0x4c0   :  { %14600 = vmatprep.mubr.bf16.mxu1 %v8367_v15  ;;  %v22454_v15 = vld [vmem:[#allocation50_spill] sm:$0xff]  ;;  %v7802_v24 = vmul.f32 %v19212_v51, %v7542_v21 }
 0x4c1   :  { %v7535_v43 = vsub.f32 %v22454_v15, %v19198_v42  ;;  %v7793_v22 = vmul.f32 %v19212_v51, %v7533_v16  ;;  %v7803_v41 = vmul.f32 %v19212_v51, %v7543_v25 }
 0x4c2   :  { %v8065_v40 = vadd.f32 %v19227_v9, %v7802_v24 }
 0x4c3   :  { %v7795_v32 = vmul.f32 %v19212_v51, %v7535_v43  ;;  %v8056_v31 = vadd.f32 %v19227_v9, %v7793_v22  ;;  %v8066_v22 = vadd.f32 %v19227_v9, %v7803_v41  ;;  %v22472_v41 = vld [vmem:[#allocation67_spill] sm:$0xff] }
 0x4c5   :  { %v8058_v26 = vadd.f32 %v19227_v9, %v7795_v32  ;;  %v8310_v23 = vpack.c.bf16 %v8056_v31, %v8055_v35  ;;  %v22464_v32 = vld [vmem:[#allocation59_spill] sm:$0xff]  ;;  %v22465_v31 = vld [vmem:[#allocation60_spill] sm:$0xff] }
 0x4c6   :  { %v7545_v35 = vsub.f32 %v22464_v32, %v19198_v42 }
 0x4c7   :  { %14601 = vmatmul.mubr.bf16.gmra.mrb[52].mxu1 %v8368_v20  ;;  %v7537_v20 = vsub.f32 %v22456_v14, %v19198_v42  ;;  %v8311_v17 = vpack.c.bf16 %v8058_v26, %v8057_v13  ;;  %v7546_v13 = vsub.f32 %v22465_v31, %v19198_v42  ;;  %v22466_v26 = vld [vmem:[#allocation62_spill] sm:$0xff] }
 0x4c8   :  { %14604 = vmatprep.mubr.bf16.mxu1 %v8369_v58  ;;  %v22458_v58 = vld [vmem:[#allocation54_spill] sm:$0xff]  ;;  %v7547_v4 = vsub.f32 %v22466_v26, %v19198_v42 }
 0x4c9   :  { %v7539_v61 = vsub.f32 %v22458_v58, %v19198_v42  ;;  %v7797_v55 = vmul.f32 %v19212_v51, %v7537_v20  ;;  %v7805_v20 = vmul.f32 %v19212_v51, %v7545_v35  ;;  %v7806_v18 = vmul.f32 %v19212_v51, %v7546_v13 }
 0x4ca   :  { %v7807_v58 = vmul.f32 %v19212_v51, %v7547_v4 }
 0x4cb   :  { %v7799_v6 = vmul.f32 %v19212_v51, %v7539_v61  ;;  %v8060_v7 = vadd.f32 %v19227_v9, %v7797_v55  ;;  %v8315_v61 = vpack.c.bf16 %v8066_v22, %v8065_v40  ;;  %v8068_v60 = vadd.f32 %v19227_v9, %v7805_v20  ;;  %v15459_v55 = vld [vmem:[%s21895_s5 + $0xb0] sm:$0xff]  }
 0x4cc   :  { %v22474_v40 = vld [vmem:[#allocation70_spill] sm:$0xff]  ;;  %v22475_v20 = vld [vmem:[#allocation69_spill] sm:$0xff] }
 0x4cd   :  { %v8062_v34 = vadd.f32 %v19227_v9, %v7799_v6  ;;  %v8312_v11 = vpack.c.bf16 %v8060_v7, %v8059_v33  ;;  %v7548_v6 = vsub.f32 %v22467_v45, %v19198_v42  ;;  %v7549_v33 = vsub.f32 %v22468_v47, %v19198_v42  ;;  %v22469_v7 = vld [vmem:[#allocation64_spill] sm:$0xff] }
 0x4ce   :  { %v7555_v22 = vsub.f32 %v22474_v40, %v19198_v42 }
 0x4cf   :  { %14605 = vmatmul.mubr.bf16.gmra.mrb[56].mxu1 %v8370_v0  ;;  %v8313_v16 = vpack.c.bf16 %v8062_v34, %v8061_v2  ;;  %v22470_v2 = vld [vmem:[#allocation66_spill] sm:$0xff] }
 0x4d0   :  { %14608 = vmatprep.mubr.bf16.mxu1 %v8371_v62  ;;  %v22460_v62 = vld [vmem:[#allocation55_spill] sm:$0xff]  ;;  %v7551_v34 = vsub.f32 %v22470_v2, %v19198_v42  ;;  %v7815_v31 = vmul.f32 %v19212_v51, %v7555_v22  ;;  %v22483_v22 = vld [vmem:[#allocation77_spill] sm:$0xff] }
 0x4d1   :  { %v7541_v57 = vsub.f32 %v22460_v62, %v19198_v42 }
 0x4d2   :  { %v7811_v21 = vmul.f32 %v19212_v51, %v7551_v34 }
 0x4d3   :  { %v7801_v19 = vmul.f32 %v19212_v51, %v7541_v57  ;;  %v15460_v57 = vld [vmem:[%s21895_s5 + $0xb8] sm:$0xff]  }
 0x4d5   :  { %v8064_v43 = vadd.f32 %v19227_v9, %v7801_v19 }
 0x4d7   :  { %14609 = vmatmul.mubr.bf16.gmra.mrb[60].mxu1 %v8372_v38  ;;  %v15457_v38 = vld [vmem:[%s21895_s5 + $0xa0] sm:$0xff]  }
 0x4d8   :  { %14628 = vmatprep.mubr.bf16.mxu1 %v8309_v49  ;;  %v22463_v49 = vld [vmem:[#allocation57_spill] sm:$0xff] }
 0x4d9   :  { %v7544_v39 = vsub.f32 %v22463_v49, %v19198_v42 }
 0x4db   :  { %v7804_v14 = vmul.f32 %v19212_v51, %v7544_v39 }
 0x4df   :  { %14629 = vmatmul.mubr.bf16.vlgmr.msra.gmra.mrb[0].mxu1 %v8310_v23  ;;  %v8067_v23 = vadd.f32 %v19227_v9, %v7804_v14  ;;  %v8078_v14 = vadd.f32 %v19227_v9, %v7815_v31 }
 0x4e0   :  { %14693 = vmatpush3.bf16.msra.mxu1 %v19330_v50  ;;  %14632 = vmatprep.mubr.bf16.mxu1 %v8311_v17  ;;  %v22459_v50 = vld [vmem:[#allocation53_spill] sm:$0xff]  ;;  %v8070_v17 = vadd.f32 %v19227_v9, %v7807_v58 }
 0x4e1   :  { %14694 = vmatprep.subr.bf16.mxu1 %v15454_v5  ;;  %v7540_v0 = vsub.f32 %v22459_v50, %v19198_v42  ;;  %v7808_v50 = vmul.f32 %v19212_v51, %v7548_v6  ;;  %v8316_v62 = vpack.c.bf16 %v8068_v60, %v8067_v23  ;;  %v22478_v60 = vld [vmem:[#allocation74_spill] sm:$0xff] }
 0x4e3   :  { %v7800_v1 = vmul.f32 %v19212_v51, %v7540_v0  ;;  %v7809_v0 = vmul.f32 %v19212_v51, %v7549_v33  ;;  %v8071_v25 = vadd.f32 %v19227_v9, %v7808_v50  ;;  %v22479_v50 = vld [vmem:[#allocation73_spill] sm:$0xff] }
 0x4e4   :  { %14695 = vmatpush3.bf16.msra.mxu1 %v15454_v5  ;;  %v8069_v5 = vadd.f32 %v19227_v9, %v7806_v18  ;;  %v22476_v18 = vld [vmem:[#allocation71_spill] sm:$0xff] }
 0x4e5   :  { %14696 = vmatprep.subr.bf16.mxu1 %v15455_v30  ;;  %v8063_v15 = vadd.f32 %v19227_v9, %v7800_v1  ;;  %v19617_v1 = vld [vmem:[%s21895_s5 + $0xc0] sm:$0xff]   ;;  %v7557_v58 = vsub.f32 %v22476_v18, %v19198_v42 }
 0x4e6   :  { %v8317_v54 = vpack.c.bf16 %v8070_v17, %v8069_v5 }
 0x4e7   :  { %14633 = vmatmul.mubr.bf16.gmra.mrb[4].mxu1 %v8312_v11  ;;  %v8314_v27 = vpack.c.bf16 %v8064_v43, %v8063_v15  ;;  %v8072_v11 = vadd.f32 %v19227_v9, %v7809_v0  ;;  %v7553_v15 = vsub.f32 %v22472_v41, %v19198_v42  ;;  %v22473_v43 = vld [vmem:[#allocation68_spill] sm:$0xff]  ;;  %v7817_v17 = vmul.f32 %v19212_v51, %v7557_v58 }
 0x4e8   :  { %14636 = vmatprep.mubr.bf16.mxu1 %v8313_v16  ;;  %14697 = vmatpush3.bf16.msra.mxu1 %v15455_v30  ;;  %v7550_v30 = vsub.f32 %v22469_v7, %v19198_v42  ;;  %v22471_v16 = vld [vmem:[#allocation65_spill] sm:$0xff]  ;;  %v7560_v0 = vsub.f32 %v22479_v50, %v19198_v42 }
 0x4e9   :  { %14698 = vmatprep.subr.bf16.mxu1 %v15456_v8  ;;  %v7552_v24 = vsub.f32 %v22471_v16, %v19198_v42  ;;  %v7813_v39 = vmul.f32 %v19212_v51, %v7553_v15  ;;  %v8318_v32 = vpack.c.bf16 %v8072_v11, %v8071_v25 }
 0x4ea   :  { %v7810_v37 = vmul.f32 %v19212_v51, %v7550_v30  ;;  %v8080_v30 = vadd.f32 %v19227_v9, %v7817_v17  ;;  %v7820_v11 = vmul.f32 %v19212_v51, %v7560_v0  ;;  %v22488_v17 = vld [vmem:[#allocation83_spill] sm:$0xff] }
 0x4eb   :  { %v7812_v49 = vmul.f32 %v19212_v51, %v7552_v24  ;;  %v8076_v4 = vadd.f32 %v19227_v9, %v7813_v39  ;;  %v22484_v39 = vld [vmem:[#allocation79_spill] sm:$0xff] }
 0x4ec   :  { %14699 = vmatpush3.bf16.msra.mxu1 %v15456_v8  ;;  %v8073_v19 = vadd.f32 %v19227_v9, %v7810_v37  ;;  %v8074_v8 = vadd.f32 %v19227_v9, %v7811_v21  ;;  %v22481_v37 = vld [vmem:[#allocation76_spill] sm:$0xff]  ;;  %v8083_v15 = vadd.f32 %v19227_v9, %v7820_v11  ;;  %v22491_v11 = vld [vmem:[#allocation85_spill] sm:$0xff] }
 0x4ed   :  { %14700 = vmatprep.subr.bf16.mxu1 %v15457_v38  ;;  %v8075_v26 = vadd.f32 %v19227_v9, %v7812_v49  ;;  %v7562_v21 = vsub.f32 %v22481_v37, %v19198_v42  ;;  %v7564_v49 = vsub.f32 %v22483_v22, %v19198_v42 }
 0x4ee   :  { %v8319_v13 = vpack.c.bf16 %v8074_v8, %v8073_v19 }
 0x4ef   :  { %14637 = vmatmul.mubr.bf16.gmra.mrb[8].mxu1 %v8314_v27  ;;  %v8320_v45 = vpack.c.bf16 %v8076_v4, %v8075_v26  ;;  %v7822_v16 = vmul.f32 %v19212_v51, %v7562_v21  ;;  %v7824_v4 = vmul.f32 %v19212_v51, %v7564_v49 }
 0x4f0   :  { %14640 = vmatprep.mubr.bf16.mxu1 %v8315_v61  ;;  %14701 = vmatpush3.bf16.msra.mxu1 %v15457_v38  ;;  %v7554_v38 = vsub.f32 %v22473_v43, %v19198_v42  ;;  %v22477_v61 = vld [vmem:[#allocation72_spill] sm:$0xff] }
 0x4f1   :  { %14702 = vmatprep.subr.bf16.mxu1 %v15458_v59  ;;  %v7558_v23 = vsub.f32 %v22477_v61, %v19198_v42  ;;  %v8087_v58 = vadd.f32 %v19227_v9, %v7824_v4  ;;  %v22495_v4 = vld [vmem:[#allocation89_spill] sm:$0xff] }
 0x4f2   :  { %v7814_v35 = vmul.f32 %v19212_v51, %v7554_v38  ;;  %v8085_v38 = vadd.f32 %v19227_v9, %v7822_v16 }
 0x4f3   :  { %v7818_v6 = vmul.f32 %v19212_v51, %v7558_v23 }
 0x4f4   :  { %14703 = vmatpush3.bf16.msra.mxu1 %v15458_v59  ;;  %v8077_v27 = vadd.f32 %v19227_v9, %v7814_v35  ;;  %v7556_v59 = vsub.f32 %v22475_v20, %v19198_v42  ;;  %v22485_v35 = vld [vmem:[#allocation80_spill] sm:$0xff] }
 0x4f5   :  { %14704 = vmatprep.subr.bf16.mxu1 %v15459_v55  ;;  %v8081_v2 = vadd.f32 %v19227_v9, %v7818_v6  ;;  %v7566_v31 = vsub.f32 %v22485_v35, %v19198_v42  ;;  %v22489_v6 = vld [vmem:[#allocation84_spill] sm:$0xff] }
 0x4f6   :  { %v7816_v5 = vmul.f32 %v19212_v51, %v7556_v59  ;;  %v8321_v33 = vpack.c.bf16 %v8078_v14, %v8077_v27 }
 0x4f7   :  { %14641 = vmatmul.mubr.bf16.gmra.mrb[12].mxu1 %v8316_v62  ;;  %v22480_v62 = vld [vmem:[#allocation75_spill] sm:$0xff]  ;;  %v7826_v20 = vmul.f32 %v19212_v51, %v7566_v31 }
 0x4f8   :  { %14644 = vmatprep.mubr.bf16.mxu1 %v8317_v54  ;;  %14705 = vmatpush3.bf16.msra.mxu1 %v15459_v55  ;;  %v7559_v55 = vsub.f32 %v22478_v60, %v19198_v42  ;;  %v8079_v7 = vadd.f32 %v19227_v9, %v7816_v5  ;;  %v22482_v54 = vld [vmem:[#allocation78_spill] sm:$0xff] }
 0x4f9   :  { %14706 = vmatprep.subr.bf16.mxu1 %v15460_v57  ;;  %v7563_v25 = vsub.f32 %v22482_v54, %v19198_v42  ;;  %v8089_v23 = vadd.f32 %v19227_v9, %v7826_v20 }
 0x4fa   :  { %v7819_v47 = vmul.f32 %v19212_v51, %v7559_v55  ;;  %v8322_v8 = vpack.c.bf16 %v8080_v30, %v8079_v7  ;;  %v22487_v55 = vld [vmem:[#allocation81_spill] sm:$0xff] }
 0x4fb   :  { %v7823_v24 = vmul.f32 %v19212_v51, %v7563_v25  ;;  %v7568_v5 = vsub.f32 %v22487_v55, %v19198_v42 }
 0x4fc   :  { %14707 = vmatpush3.bf16.msra.mxu1 %v15460_v57  ;;  %v8082_v34 = vadd.f32 %v19227_v9, %v7819_v47  ;;  %v7561_v57 = vsub.f32 %v22480_v62, %v19198_v42  ;;  %v7570_v47 = vsub.f32 %v22489_v6, %v19198_v42 }
 0x4fd   :  { %14772 = vmatprep.subr.bf16.mxu1 %v19617_v1  ;;  %v8086_v40 = vadd.f32 %v19227_v9, %v7823_v24  ;;  %v7828_v30 = vmul.f32 %v19212_v51, %v7568_v5  ;;  %v22493_v24 = vld [vmem:[#allocation88_spill] sm:$0xff] }
 0x4fe   :  { %v7821_v19 = vmul.f32 %v19212_v51, %v7561_v57  ;;  %v8323_v41 = vpack.c.bf16 %v8082_v34, %v8081_v2  ;;  %v7830_v50 = vmul.f32 %v19212_v51, %v7570_v47  ;;  %v15467_v57 = vld [vmem:[%s21899_s9 + $0x48] sm:$0xff]  }
 0x4ff   :  { %14645 = vmatmul.mubr.bf16.gmra.mrb[16].mxu1 %v8318_v32  ;;  %v7565_v32 = vsub.f32 %v22484_v39, %v19198_v42  ;;  %v8325_v18 = vpack.c.bf16 %v8086_v40, %v8085_v38  ;;  %v8091_v37 = vadd.f32 %v19227_v9, %v7828_v30  ;;  %14854 = vmatprep.subr.bf16.mxu0 %v15467_v57  ;;  %v22499_v30 = vld [vmem:[#allocation93_spill] sm:$0xff] }
 0x500   :  { %14648 = vmatprep.mubr.bf16.mxu1 %v8319_v13  ;;  %v8084_v43 = vadd.f32 %v19227_v9, %v7821_v19  ;;  %v22486_v13 = vld [vmem:[#allocation82_spill] sm:$0xff]  ;;  %v8093_v54 = vadd.f32 %v19227_v9, %v7830_v50  ;;  %v7572_v19 = vsub.f32 %v22491_v11, %v19198_v42  ;;  %14855 = vmatpush3.bf16.msra.mxu0 %v15467_v57 }
 0x501   :  { %v7567_v26 = vsub.f32 %v22486_v13, %v19198_v42  ;;  %v7825_v27 = vmul.f32 %v19212_v51, %v7565_v32  ;;  %v22502_v57 = vld [vmem:[#allocation98_spill] sm:$0xff] }
 0x502   :  { %v8324_v14 = vpack.c.bf16 %v8084_v43, %v8083_v15  ;;  %v22494_v15 = vld [vmem:[#allocation90_spill] sm:$0xff]  ;;  %v7832_v38 = vmul.f32 %v19212_v51, %v7572_v19 }
 0x503   :  { %v7827_v59 = vmul.f32 %v19212_v51, %v7567_v26  ;;  %v8088_v61 = vadd.f32 %v19227_v9, %v7825_v27  ;;  %v7575_v43 = vsub.f32 %v22494_v15, %v19198_v42  ;;  %v7576_v27 = vsub.f32 %v22495_v4, %v19198_v42 }
 0x504   :  { %v8095_v35 = vadd.f32 %v19227_v9, %v7832_v38 }
 0x505   :  { %v8090_v60 = vadd.f32 %v19227_v9, %v7827_v59  ;;  %v8326_v34 = vpack.c.bf16 %v8088_v61, %v8087_v58  ;;  %v7835_v39 = vmul.f32 %v19212_v51, %v7575_v43  ;;  %v22497_v59 = vld [vmem:[#allocation92_spill] sm:$0xff]  ;;  %v22498_v58 = vld [vmem:[#allocation94_spill] sm:$0xff]  ;;  %v22503_v43 = vld [vmem:[#allocation97_spill] sm:$0xff] }
 0x506   :  { %v7579_v61 = vsub.f32 %v22498_v58, %v19198_v42  ;;  %v7584_v38 = vsub.f32 %v22503_v43, %v19198_v42 }
 0x507   :  { %14649 = vmatmul.mubr.bf16.gmra.mrb[20].mxu1 %v8320_v45  ;;  %v7569_v45 = vsub.f32 %v22488_v17, %v19198_v42  ;;  %v8327_v62 = vpack.c.bf16 %v8090_v60, %v8089_v23  ;;  %v8098_v26 = vadd.f32 %v19227_v9, %v7835_v39  ;;  %v7836_v23 = vmul.f32 %v19212_v51, %v7576_v27 }
 0x508   :  { %14652 = vmatprep.mubr.bf16.mxu1 %v8321_v33  ;;  %v22490_v33 = vld [vmem:[#allocation86_spill] sm:$0xff]  ;;  %v7839_v17 = vmul.f32 %v19212_v51, %v7579_v61  ;;  %v22507_v61 = vld [vmem:[#allocation101_spill] sm:$0xff] }
 0x509   :  { %v7571_v7 = vsub.f32 %v22490_v33, %v19198_v42  ;;  %v7829_v2 = vmul.f32 %v19212_v51, %v7569_v45  ;;  %v8099_v6 = vadd.f32 %v19227_v9, %v7836_v23  ;;  %v7588_v23 = vsub.f32 %v22507_v61, %v19198_v42 }
 0x50b   :  { %v7831_v0 = vmul.f32 %v19212_v51, %v7571_v7  ;;  %v8092_v21 = vadd.f32 %v19227_v9, %v7829_v2  ;;  %v8102_v7 = vadd.f32 %v19227_v9, %v7839_v17  ;;  %v7580_v2 = vsub.f32 %v22499_v30, %v19198_v42 }
 0x50d   :  { %v8094_v25 = vadd.f32 %v19227_v9, %v7831_v0  ;;  %v8328_v22 = vpack.c.bf16 %v8092_v21, %v8091_v37  ;;  %v22501_v0 = vld [vmem:[#allocation96_spill] sm:$0xff]  ;;  %v7583_v37 = vsub.f32 %v22502_v57, %v19198_v42  ;;  %v7840_v21 = vmul.f32 %v19212_v51, %v7580_v2 }
 0x50f   :  { %14653 = vmatmul.mubr.bf16.gmra.mrb[24].mxu1 %v8322_v8  ;;  %v22492_v8 = vld [vmem:[#allocation87_spill] sm:$0xff]  ;;  %v8329_v32 = vpack.c.bf16 %v8094_v25, %v8093_v54 }
 0x510   :  { %14656 = vmatprep.mubr.bf16.mxu1 %v8323_v41  ;;  %v7573_v16 = vsub.f32 %v22492_v8, %v19198_v42  ;;  %v7574_v41 = vsub.f32 %v22493_v24, %v19198_v42  ;;  %v19752_v8 = vld [vmem:[%s21894_s4] ss:$0 sm:$0xff] }
 0x512   :  { %v7833_v40 = vmul.f32 %v19212_v51, %v7573_v16  ;;  %v7834_v49 = vmul.f32 %v19212_v51, %v7574_v41  ;;  %v8103_v16 = vadd.f32 %v19752_v8, %v7840_v21 }
 0x514   :  { %v8096_v31 = vadd.f32 %v19227_v9, %v7833_v40  ;;  %v8097_v13 = vadd.f32 %v19227_v9, %v7834_v49  ;;  %v22504_v40 = vld [vmem:[#allocation99_spill] sm:$0xff]  ;;  %v22505_v49 = vld [vmem:[#allocation100_spill] sm:$0xff] }
 0x515   :  { %v7586_v39 = vsub.f32 %v22505_v49, %v19198_v42 }
 0x516   :  { %v8330_v55 = vpack.c.bf16 %v8096_v31, %v8095_v35  ;;  %v8331_v45 = vpack.c.bf16 %v8098_v26, %v8097_v13  ;;  %v7844_v31 = vmul.f32 %v19212_v51, %v7584_v38 }
 0x517   :  { %14657 = vmatmul.mubr.bf16.gmra.mrb[28].mxu1 %v8324_v14  ;;  %v22496_v14 = vld [vmem:[#allocation91_spill] sm:$0xff]  ;;  %v7846_v4 = vmul.f32 %v19212_v51, %v7586_v39 }
 0x518   :  { %14660 = vmatprep.mubr.bf16.mxu1 %v8325_v18  ;;  %v7577_v20 = vsub.f32 %v22496_v14, %v19198_v42  ;;  %v7578_v18 = vsub.f32 %v22497_v59, %v19198_v42 }
 0x51a   :  { %v7837_v60 = vmul.f32 %v19212_v51, %v7577_v20  ;;  %v7838_v5 = vmul.f32 %v19212_v51, %v7578_v18  ;;  %v8107_v20 = vadd.f32 %v19752_v8, %v7844_v31  ;;  %v8109_v18 = vadd.f32 %v19752_v8, %v7846_v4  ;;  %v22517_v4 = vld [vmem:[#allocation144_spill] sm:$0xff] }
 0x51c   :  { %v8100_v47 = vadd.f32 %v19227_v9, %v7837_v60  ;;  %v8101_v33 = vadd.f32 %v19227_v9, %v7838_v5  ;;  %v7843_v9 = vmul.f32 %v19212_v51, %v7583_v37  ;;  %v22508_v60 = vld [vmem:[#allocation103_spill] sm:$0xff]  ;;  %v22509_v5 = vld [vmem:[#allocation104_spill] sm:$0xff]  ;;  %v22511_v37 = vld [vmem:[#allocation105_spill] sm:$0xff] }
 0x51d   :  { %v7590_v17 = vsub.f32 %v22509_v5, %v19198_v42  ;;  %v7592_v21 = vsub.f32 %v22511_v37, %v19198_v42  ;;  %v15463_v37 = vld [vmem:[%s21895_s5 + $0xc8] sm:$0xff]  }
 0x51e   :  { %v8332_v25 = vpack.c.bf16 %v8100_v47, %v8099_v6  ;;  %v8333_v19 = vpack.c.bf16 %v8102_v7, %v8101_v33  ;;  %v8106_v15 = vadd.f32 %v19752_v8, %v7843_v9  ;;  %v7848_v47 = vmul.f32 %v19212_v51, %v7588_v23 }
 0x51f   :  { %14661 = vmatmul.mubr.bf16.gmra.mrb[32].mxu1 %v8326_v34  ;;  %v22500_v34 = vld [vmem:[#allocation95_spill] sm:$0xff]  ;;  %v7850_v30 = vmul.f32 %v19212_v51, %v7590_v17 }
 0x520   :  { %14664 = vmatprep.mubr.bf16.mxu1 %v8327_v62  ;;  %v7581_v50 = vsub.f32 %v22500_v34, %v19198_v42  ;;  %v7582_v62 = vsub.f32 %v22501_v0, %v19198_v42 }
 0x522   :  { %v7841_v54 = vmul.f32 %v19212_v51, %v7581_v50  ;;  %v7842_v11 = vmul.f32 %v19212_v51, %v7582_v62  ;;  %v8111_v50 = vadd.f32 %v19752_v8, %v7848_v47  ;;  %v8113_v62 = vadd.f32 %v19752_v8, %v7850_v30  ;;  %v22521_v30 = vld [vmem:[#allocation148_spill] sm:$0xff] }
 0x524   :  { %v8104_v24 = vadd.f32 %v19752_v8, %v7841_v54  ;;  %v8105_v41 = vadd.f32 %v19752_v8, %v7842_v11  ;;  %v22512_v54 = vld [vmem:[#allocation107_spill] sm:$0xff]  ;;  %v22513_v11 = vld [vmem:[#allocation140_spill] sm:$0xff] }
 0x525   :  { %v7658_v9 = vsub.f32 %v22513_v11, %v19198_v42  ;;  %v15471_v11 = vld [vmem:[%s21899_s9 + $0x50] sm:$0xff]  }
 0x526   :  { %v8334_v26 = vpack.c.bf16 %v8104_v24, %v8103_v16  ;;  %v8335_v14 = vpack.c.bf16 %v8106_v15, %v8105_v41  ;;  %v7852_v24 = vmul.f32 %v19212_v51, %v7592_v21  ;;  %14856 = vmatprep.subr.bf16.mxu0 %v15471_v11 }
 0x527   :  { %14665 = vmatmul.mubr.bf16.gmra.mrb[36].mxu1 %v8328_v22  ;;  %v7585_v22 = vsub.f32 %v22504_v40, %v19198_v42  ;;  %v7918_v43 = vmul.f32 %v19212_v51, %v7658_v9  ;;  %14857 = vmatpush3.bf16.msra.mxu0 %v15471_v11  ;;  %v22532_v11 = vld [vmem:[#allocation159_spill] sm:$0xff] }
 0x528   :  { %14668 = vmatprep.mubr.bf16.mxu1 %v8329_v32  ;;  %v22506_v32 = vld [vmem:[#allocation102_spill] sm:$0xff] }
 0x529   :  { %v7587_v35 = vsub.f32 %v22506_v32, %v19198_v42  ;;  %v7845_v13 = vmul.f32 %v19212_v51, %v7585_v22  ;;  %v8115_v22 = vadd.f32 %v19752_v8, %v7852_v24  ;;  %v8181_v39 = vadd.f32 %v19752_v8, %v7918_v43  ;;  %v22524_v43 = vld [vmem:[#allocation151_spill] sm:$0xff] }
 0x52b   :  { %v7847_v27 = vmul.f32 %v19212_v51, %v7587_v35  ;;  %v8108_v59 = vadd.f32 %v19752_v8, %v7845_v13  ;;  %v22515_v35 = vld [vmem:[#allocation141_spill] sm:$0xff]  ;;  %v22516_v13 = vld [vmem:[#allocation143_spill] sm:$0xff] }
 0x52c   :  { %v7660_v31 = vsub.f32 %v22515_v35, %v19198_v42 }
 0x52d   :  { %v8110_v58 = vadd.f32 %v19752_v8, %v7847_v27  ;;  %v8336_v7 = vpack.c.bf16 %v8108_v59, %v8107_v20  ;;  %v7662_v27 = vsub.f32 %v22517_v4, %v19198_v42 }
 0x52e   :  { %v7920_v59 = vmul.f32 %v19212_v51, %v7660_v31 }
 0x52f   :  { %14669 = vmatmul.mubr.bf16.gmra.mrb[40].mxu1 %v8330_v55  ;;  %v7589_v55 = vsub.f32 %v22508_v60, %v19198_v42  ;;  %v8337_v34 = vpack.c.bf16 %v8110_v58, %v8109_v18  ;;  %v7922_v61 = vmul.f32 %v19212_v51, %v7662_v27 }
 0x530   :  { %14672 = vmatprep.mubr.bf16.mxu1 %v8331_v45  ;;  %v22510_v45 = vld [vmem:[#allocation106_spill] sm:$0xff] }
 0x531   :  { %v7591_v6 = vsub.f32 %v22510_v45, %v19198_v42  ;;  %v7849_v33 = vmul.f32 %v19212_v51, %v7589_v55  ;;  %v8183_v55 = vadd.f32 %v19752_v8, %v7920_v59  ;;  %v8185_v17 = vadd.f32 %v19752_v8, %v7922_v61  ;;  %v15466_v59 = vld [vmem:[%s21895_s5 + $0xe0] sm:$0xff]   ;;  %v22527_v61 = vld [vmem:[#allocation153_spill] sm:$0xff] }
 0x533   :  { %v7851_v2 = vmul.f32 %v19212_v51, %v7591_v6  ;;  %v8112_v0 = vadd.f32 %v19752_v8, %v7849_v33  ;;  %v22519_v6 = vld [vmem:[#allocation145_spill] sm:$0xff]  ;;  %v22520_v33 = vld [vmem:[#allocation147_spill] sm:$0xff] }
 0x534   :  { %v7664_v47 = vsub.f32 %v22519_v6, %v19198_v42 }
 0x535   :  { %v8114_v57 = vadd.f32 %v19752_v8, %v7851_v2  ;;  %v8338_v15 = vpack.c.bf16 %v8112_v0, %v8111_v50  ;;  %v7666_v2 = vsub.f32 %v22521_v30, %v19198_v42  ;;  %v15468_v30 = vld [vmem:[%s21895_s5 + $0xe8] sm:$0xff]  }
 0x536   :  { %v7924_v0 = vmul.f32 %v19212_v51, %v7664_v47 }
 0x537   :  { %14673 = vmatmul.mubr.bf16.gmra.mrb[44].mxu1 %v8332_v25  ;;  %v7593_v25 = vsub.f32 %v22512_v54, %v19198_v42  ;;  %v8339_v40 = vpack.c.bf16 %v8114_v57, %v8113_v62  ;;  %v7926_v21 = vmul.f32 %v19212_v51, %v7666_v2 }
 0x538   :  { %14676 = vmatprep.mubr.bf16.mxu1 %v8333_v19  ;;  %v22514_v19 = vld [vmem:[#allocation142_spill] sm:$0xff]  ;;  %v8187_v9 = vadd.f32 %v19752_v8, %v7924_v0 }
 0x539   :  { %v7659_v16 = vsub.f32 %v22514_v19, %v19198_v42  ;;  %v7853_v41 = vmul.f32 %v19212_v51, %v7593_v25  ;;  %v8189_v24 = vadd.f32 %v19752_v8, %v7926_v21 }
 0x53b   :  { %v7919_v38 = vmul.f32 %v19212_v51, %v7659_v16  ;;  %v8116_v49 = vadd.f32 %v19752_v8, %v7853_v41  ;;  %v15464_v16 = vld [vmem:[%s21895_s5 + $0xd0] sm:$0xff]  }
 0x53d   :  { %v8182_v32 = vadd.f32 %v19752_v8, %v7919_v38  ;;  %v8340_v58 = vpack.c.bf16 %v8116_v49, %v8115_v22  ;;  %v7669_v38 = vsub.f32 %v22524_v43, %v19198_v42  ;;  %v22526_v49 = vld [vmem:[#allocation154_spill] sm:$0xff] }
 0x53f   :  { %14677 = vmatmul.mubr.bf16.gmra.mrb[48].mxu1 %v8334_v26  ;;  %v7661_v26 = vsub.f32 %v22516_v13, %v19198_v42  ;;  %v8373_v60 = vpack.c.bf16 %v8182_v32, %v8181_v39  ;;  %v7671_v39 = vsub.f32 %v22526_v49, %v19198_v42  ;;  %v7929_v35 = vmul.f32 %v19212_v51, %v7669_v38  ;;  %v15465_v13 = vld [vmem:[%s21895_s5 + $0xd8] sm:$0xff]  }
 0x540   :  { %14680 = vmatprep.mubr.bf16.mxu1 %v8335_v14  ;;  %v22518_v14 = vld [vmem:[#allocation146_spill] sm:$0xff] }
 0x541   :  { %v7663_v20 = vsub.f32 %v22518_v14, %v19198_v42  ;;  %v7921_v18 = vmul.f32 %v19212_v51, %v7661_v26  ;;  %v7931_v4 = vmul.f32 %v19212_v51, %v7671_v39  ;;  %v15470_v38 = vld [vmem:[%s21895_s5 + $0xf8] sm:$0xff]  }
 0x543   :  { %v7923_v23 = vmul.f32 %v19212_v51, %v7663_v20  ;;  %v8184_v5 = vadd.f32 %v19752_v8, %v7921_v18  ;;  %v8192_v20 = vadd.f32 %v19752_v8, %v7929_v35 }
 0x545   :  { %v8186_v45 = vadd.f32 %v19752_v8, %v7923_v23  ;;  %v8374_v57 = vpack.c.bf16 %v8184_v5, %v8183_v55  ;;  %v7672_v23 = vsub.f32 %v22527_v61, %v19198_v42  ;;  %v22529_v5 = vld [vmem:[#allocation156_spill] sm:$0xff] }
 0x547   :  { %14681 = vmatmul.mubr.bf16.gmra.mrb[52].mxu1 %v8336_v7  ;;  %v7665_v7 = vsub.f32 %v22520_v33, %v19198_v42  ;;  %v8375_v25 = vpack.c.bf16 %v8186_v45, %v8185_v17  ;;  %v7674_v17 = vsub.f32 %v22529_v5, %v19198_v42  ;;  %v22530_v45 = vld [vmem:[#allocation158_spill] sm:$0xff]  ;;  %v7932_v47 = vmul.f32 %v19212_v51, %v7672_v23 }
 0x548   :  { %14684 = vmatprep.mubr.bf16.mxu1 %v8337_v34  ;;  %v22522_v34 = vld [vmem:[#allocation150_spill] sm:$0xff]  ;;  %v7675_v6 = vsub.f32 %v22530_v45, %v19198_v42 }
 0x549   :  { %v7667_v50 = vsub.f32 %v22522_v34, %v19198_v42  ;;  %v7925_v62 = vmul.f32 %v19212_v51, %v7665_v7  ;;  %v7934_v2 = vmul.f32 %v19212_v51, %v7674_v17  ;;  %v8195_v0 = vadd.f32 %v19752_v8, %v7932_v47 }
 0x54a   :  { %v7935_v34 = vmul.f32 %v19212_v51, %v7675_v6 }
 0x54b   :  { %v7927_v54 = vmul.f32 %v19212_v51, %v7667_v50  ;;  %v8188_v19 = vadd.f32 %v19752_v8, %v7925_v62 }
 0x54c   :  { %v8198_v21 = vadd.f32 %v19752_v8, %v7935_v34  ;;  %v22541_v34 = vld [vmem:[#allocation168_spill] sm:$0xff] }
 0x54d   :  { %v8190_v41 = vadd.f32 %v19752_v8, %v7927_v54  ;;  %v8376_v31 = vpack.c.bf16 %v8188_v19, %v8187_v9  ;;  %v22531_v54 = vld [vmem:[#allocation157_spill] sm:$0xff]  ;;  %v7677_v9 = vsub.f32 %v22532_v11, %v19198_v42  ;;  %v22533_v19 = vld [vmem:[#allocation160_spill] sm:$0xff] }
 0x54f   :  { %14685 = vmatmul.mubr.bf16.gmra.mrb[56].mxu1 %v8338_v15  ;;  %v8377_v27 = vpack.c.bf16 %v8190_v41, %v8189_v24  ;;  %v22534_v24 = vld [vmem:[#allocation162_spill] sm:$0xff] }
 0x550   :  { %14688 = vmatprep.mubr.bf16.mxu1 %v8339_v40  ;;  %v22525_v40 = vld [vmem:[#allocation152_spill] sm:$0xff]  ;;  %v7679_v41 = vsub.f32 %v22534_v24, %v19198_v42 }
 0x551   :  { %v7670_v22 = vsub.f32 %v22525_v40, %v19198_v42 }
 0x553   :  { %v7930_v26 = vmul.f32 %v19212_v51, %v7670_v22  ;;  %v7939_v22 = vmul.f32 %v19212_v51, %v7679_v41  ;;  %v22543_v41 = vld [vmem:[#allocation169_spill] sm:$0xff] }
 0x555   :  { %v8193_v18 = vadd.f32 %v19752_v8, %v7930_v26 }
 0x557   :  { %14689 = vmatmul.mubr.bf16.gmra.mrb[60].mxu1 %v8340_v58  ;;  %v8194_v58 = vadd.f32 %v19752_v8, %v7931_v4  ;;  %v22536_v4 = vld [vmem:[#allocation163_spill] sm:$0xff] }
 0x558   :  { %14708 = vmatprep.mubr.bf16.mxu1 %v8373_v60  ;;  %v22528_v60 = vld [vmem:[#allocation155_spill] sm:$0xff] }
 0x559   :  { %v7673_v55 = vsub.f32 %v22528_v60, %v19198_v42  ;;  %v8379_v50 = vpack.c.bf16 %v8194_v58, %v8193_v18 }
 0x55b   :  { %v7933_v33 = vmul.f32 %v19212_v51, %v7673_v55 }
 0x55d   :  { %v8196_v62 = vadd.f32 %v19752_v8, %v7933_v33  ;;  %v22539_v33 = vld [vmem:[#allocation165_spill] sm:$0xff] }
 0x55f   :  { %14709 = vmatmul.mubr.bf16.vlgmr.msra.gmra.mrb[0].mxu1 %v8374_v57  ;;  %v15469_v57 = vld [vmem:[%s21895_s5 + $0xf0] sm:$0xff]   ;;  %v8380_v43 = vpack.c.bf16 %v8196_v62, %v8195_v0 }
 0x560   :  { %14773 = vmatpush3.bf16.msra.mxu1 %v19617_v1  ;;  %14712 = vmatprep.mubr.bf16.mxu1 %v8375_v25  ;;  %v22523_v1 = vld [vmem:[#allocation149_spill] sm:$0xff]  ;;  %v7676_v25 = vsub.f32 %v22531_v54, %v19198_v42  ;;  %v22542_v0 = vld [vmem:[#allocation170_spill] sm:$0xff] }
 0x561   :  { %14774 = vmatprep.subr.bf16.mxu1 %v15463_v37  ;;  %v7668_v15 = vsub.f32 %v22523_v1, %v19198_v42  ;;  %v7687_v62 = vsub.f32 %v22542_v0, %v19198_v42  ;;  %v22551_v0 = vld [vmem:[#allocation177_spill] sm:$0xff] }
 0x562   :  { %v7936_v1 = vmul.f32 %v19212_v51, %v7676_v25 }
 0x563   :  { %v7928_v32 = vmul.f32 %v19212_v51, %v7668_v15  ;;  %v7937_v15 = vmul.f32 %v19212_v51, %v7677_v9  ;;  %v7947_v25 = vmul.f32 %v19212_v51, %v7687_v62  ;;  %v7696_v62 = vsub.f32 %v22551_v0, %v19198_v42 }
 0x564   :  { %14775 = vmatpush3.bf16.msra.mxu1 %v15463_v37  ;;  %v8197_v37 = vadd.f32 %v19752_v8, %v7934_v2  ;;  %v8199_v39 = vadd.f32 %v19752_v8, %v7936_v1  ;;  %v7688_v1 = vsub.f32 %v22543_v41, %v19198_v42 }
 0x565   :  { %14776 = vmatprep.subr.bf16.mxu1 %v15464_v16  ;;  %v8191_v14 = vadd.f32 %v19752_v8, %v7928_v32  ;;  %v8200_v32 = vadd.f32 %v19752_v8, %v7937_v15  ;;  %v8210_v24 = vadd.f32 %v19752_v8, %v7947_v25  ;;  %v22544_v15 = vld [vmem:[#allocation171_spill] sm:$0xff]  ;;  %v22554_v25 = vld [vmem:[#allocation182_spill] sm:$0xff] }
 0x566   :  { %v8381_v49 = vpack.c.bf16 %v8198_v21, %v8197_v37 }
 0x567   :  { %14713 = vmatmul.mubr.bf16.gmra.mrb[4].mxu1 %v8376_v31  ;;  %v8378_v7 = vpack.c.bf16 %v8192_v20, %v8191_v14  ;;  %v8202_v31 = vadd.f32 %v19752_v8, %v7939_v22  ;;  %v22537_v14 = vld [vmem:[#allocation164_spill] sm:$0xff]  ;;  %v8382_v23 = vpack.c.bf16 %v8200_v32, %v8199_v39  ;;  %v22546_v22 = vld [vmem:[#allocation174_spill] sm:$0xff]  ;;  %v7948_v39 = vmul.f32 %v19212_v51, %v7688_v1 }
 0x568   :  { %14716 = vmatprep.mubr.bf16.mxu1 %v8377_v27  ;;  %14777 = vmatpush3.bf16.msra.mxu1 %v15464_v16  ;;  %v7678_v16 = vsub.f32 %v22533_v19, %v19198_v42  ;;  %v7681_v27 = vsub.f32 %v22536_v4, %v19198_v42  ;;  %v7682_v20 = vsub.f32 %v22537_v14, %v19198_v42 }
 0x569   :  { %14778 = vmatprep.subr.bf16.mxu1 %v15465_v13  ;;  %v8211_v4 = vadd.f32 %v19752_v8, %v7948_v39 }
 0x56a   :  { %v7938_v40 = vmul.f32 %v19212_v51, %v7678_v16  ;;  %v7941_v61 = vmul.f32 %v19212_v51, %v7681_v27  ;;  %v7942_v60 = vmul.f32 %v19212_v51, %v7682_v20 }
 0x56c   :  { %14779 = vmatpush3.bf16.msra.mxu1 %v15465_v13  ;;  %v8201_v35 = vadd.f32 %v19752_v8, %v7938_v40  ;;  %v22535_v13 = vld [vmem:[#allocation161_spill] sm:$0xff]  ;;  %v8204_v45 = vadd.f32 %v19752_v8, %v7941_v61  ;;  %v8205_v6 = vadd.f32 %v19752_v8, %v7942_v60 }
 0x56d   :  { %14780 = vmatprep.subr.bf16.mxu1 %v15466_v59  ;;  %v7680_v26 = vsub.f32 %v22535_v13, %v19198_v42 }
 0x56e   :  { %v8383_v5 = vpack.c.bf16 %v8202_v31, %v8201_v35 }
 0x56f   :  { %14717 = vmatmul.mubr.bf16.gmra.mrb[8].mxu1 %v8378_v7  ;;  %v7940_v58 = vmul.f32 %v19212_v51, %v7680_v26  ;;  %v7684_v7 = vsub.f32 %v22539_v33, %v19198_v42 }
 0x570   :  { %14720 = vmatprep.mubr.bf16.mxu1 %v8379_v50  ;;  %14781 = vmatpush3.bf16.msra.mxu1 %v15466_v59  ;;  %v22538_v59 = vld [vmem:[#allocation166_spill] sm:$0xff]  ;;  %v7686_v50 = vsub.f32 %v22541_v34, %v19198_v42 }
 0x571   :  { %14782 = vmatprep.subr.bf16.mxu1 %v15468_v30  ;;  %v7683_v18 = vsub.f32 %v22538_v59, %v19198_v42  ;;  %v8203_v17 = vadd.f32 %v19752_v8, %v7940_v58  ;;  %v22547_v59 = vld [vmem:[#allocation173_spill] sm:$0xff]  ;;  %v22548_v58 = vld [vmem:[#allocation175_spill] sm:$0xff] }
 0x572   :  { %v7946_v54 = vmul.f32 %v19212_v51, %v7686_v50  ;;  %v7693_v61 = vsub.f32 %v22548_v58, %v19198_v42 }
 0x573   :  { %v7943_v55 = vmul.f32 %v19212_v51, %v7683_v18  ;;  %v8384_v21 = vpack.c.bf16 %v8204_v45, %v8203_v17  ;;  %v7692_v18 = vsub.f32 %v22547_v59, %v19198_v42 }
 0x574   :  { %14783 = vmatpush3.bf16.msra.mxu1 %v15468_v30  ;;  %v22540_v30 = vld [vmem:[#allocation167_spill] sm:$0xff]  ;;  %v8209_v16 = vadd.f32 %v19752_v8, %v7946_v54  ;;  %v7953_v45 = vmul.f32 %v19212_v51, %v7693_v61 }
 0x575   :  { %14784 = vmatprep.subr.bf16.mxu1 %v15469_v57  ;;  %v8206_v47 = vadd.f32 %v19752_v8, %v7943_v55  ;;  %v7685_v2 = vsub.f32 %v22540_v30, %v19198_v42  ;;  %v22550_v55 = vld [vmem:[#allocation178_spill] sm:$0xff]  ;;  %v7952_v17 = vmul.f32 %v19212_v51, %v7692_v18 }
 0x576   :  { %v8387_v26 = vpack.c.bf16 %v8210_v24, %v8209_v16 }
 0x577   :  { %14721 = vmatmul.mubr.bf16.gmra.mrb[12].mxu1 %v8380_v43  ;;  %v7945_v37 = vmul.f32 %v19212_v51, %v7685_v2  ;;  %v8385_v11 = vpack.c.bf16 %v8206_v47, %v8205_v6  ;;  %v7689_v43 = vsub.f32 %v22544_v15, %v19198_v42  ;;  %v8215_v30 = vadd.f32 %v19752_v8, %v7952_v17  ;;  %v15472_v15 = vld [vmem:[%s21899_s9 + $0x58] sm:$0xff]  }
 0x578   :  { %14724 = vmatprep.mubr.bf16.mxu1 %v8381_v49  ;;  %14785 = vmatpush3.bf16.msra.mxu1 %v15469_v57  ;;  %v7944_v57 = vmul.f32 %v19212_v51, %v7684_v7  ;;  %v7691_v49 = vsub.f32 %v22546_v22, %v19198_v42  ;;  %v8216_v2 = vadd.f32 %v19752_v8, %v7953_v45  ;;  %v22560_v45 = vld [vmem:[#allocation187_spill] sm:$0xff] }
 0x579   :  { %14786 = vmatprep.subr.bf16.mxu1 %v15470_v38  ;;  %v8208_v19 = vadd.f32 %v19752_v8, %v7945_v37  ;;  %v7949_v32 = vmul.f32 %v19212_v51, %v7689_v43  ;;  %14858 = vmatprep.subr.bf16.mxu0 %v15472_v15 }
 0x57a   :  { %v8207_v9 = vadd.f32 %v19752_v8, %v7944_v57  ;;  %v7951_v13 = vmul.f32 %v19212_v51, %v7691_v49  ;;  %v22552_v57 = vld [vmem:[#allocation179_spill] sm:$0xff]  ;;  %v8390_v16 = vpack.c.bf16 %v8216_v2, %v8215_v30  ;;  %v22555_v49 = vld [vmem:[#allocation181_spill] sm:$0xff]  ;;  %14859 = vmatpush3.bf16.msra.mxu0 %v15472_v15 }
 0x57b   :  { %v8212_v27 = vadd.f32 %v19752_v8, %v7949_v32  ;;  %v7697_v37 = vsub.f32 %v22552_v57, %v19198_v42  ;;  %v7700_v39 = vsub.f32 %v22555_v49, %v19198_v42  ;;  %v22556_v32 = vld [vmem:[#allocation183_spill] sm:$0xff] }
 0x57c   :  { %14787 = vmatpush3.bf16.msra.mxu1 %v15470_v38  ;;  %v22545_v38 = vld [vmem:[#allocation172_spill] sm:$0xff]  ;;  %v8386_v35 = vpack.c.bf16 %v8208_v19, %v8207_v9  ;;  %v8214_v20 = vadd.f32 %v19752_v8, %v7951_v13  ;;  %v7956_v9 = vmul.f32 %v19212_v51, %v7696_v62 }
 0x57d   :  { %v7690_v40 = vsub.f32 %v22545_v38, %v19198_v42  ;;  %v8388_v6 = vpack.c.bf16 %v8212_v27, %v8211_v4  ;;  %v7957_v19 = vmul.f32 %v19212_v51, %v7697_v37  ;;  %v7960_v27 = vmul.f32 %v19212_v51, %v7700_v39 }
 0x57e   :  { %v8219_v43 = vadd.f32 %v19752_v8, %v7956_v9 }
 0x57f   :  { %14725 = vmatmul.mubr.bf16.gmra.mrb[16].mxu1 %v8382_v23  ;;  %v7950_v31 = vmul.f32 %v19212_v51, %v7690_v40  ;;  %v22549_v23 = vld [vmem:[#allocation176_spill] sm:$0xff]  ;;  %v8220_v38 = vadd.f32 %v19752_v8, %v7957_v19  ;;  %v8223_v61 = vadd.f32 %v19752_v8, %v7960_v27  ;;  %v22564_v19 = vld [vmem:[#allocation191_spill] sm:$0xff] }
 0x580   :  { %14728 = vmatprep.mubr.bf16.mxu1 %v8383_v5  ;;  %v7694_v60 = vsub.f32 %v22549_v23, %v19198_v42  ;;  %v7695_v5 = vsub.f32 %v22550_v55, %v19198_v42  ;;  %v22568_v27 = vld [vmem:[#allocation195_spill] sm:$0xff] }
 0x581   :  { %v8213_v14 = vadd.f32 %v19752_v8, %v7950_v31  ;;  %v22557_v31 = vld [vmem:[#allocation184_spill] sm:$0xff] }
 0x582   :  { %v7954_v47 = vmul.f32 %v19212_v51, %v7694_v60  ;;  %v7955_v33 = vmul.f32 %v19212_v51, %v7695_v5  ;;  %v7702_v13 = vsub.f32 %v22557_v31, %v19198_v42  ;;  %v22559_v5 = vld [vmem:[#allocation185_spill] sm:$0xff] }
 0x583   :  { %v8389_v7 = vpack.c.bf16 %v8214_v20, %v8213_v14  ;;  %v8392_v20 = vpack.c.bf16 %v8220_v38, %v8219_v43  ;;  %v7704_v17 = vsub.f32 %v22559_v5, %v19198_v42 }
 0x584   :  { %v8217_v34 = vadd.f32 %v19752_v8, %v7954_v47  ;;  %v8218_v50 = vadd.f32 %v19752_v8, %v7955_v33  ;;  %v7962_v59 = vmul.f32 %v19212_v51, %v7702_v13  ;;  %v22561_v47 = vld [vmem:[#allocation188_spill] sm:$0xff] }
 0x585   :  { %v7706_v33 = vsub.f32 %v22561_v47, %v19198_v42  ;;  %v7964_v2 = vmul.f32 %v19212_v51, %v7704_v17 }
 0x586   :  { %v8391_v1 = vpack.c.bf16 %v8218_v50, %v8217_v34  ;;  %v8225_v60 = vadd.f32 %v19752_v8, %v7962_v59 }
 0x587   :  { %14729 = vmatmul.mubr.bf16.gmra.mrb[20].mxu1 %v8384_v21  ;;  %v22553_v21 = vld [vmem:[#allocation180_spill] sm:$0xff]  ;;  %v7966_v0 = vmul.f32 %v19212_v51, %v7706_v33  ;;  %v8227_v37 = vadd.f32 %v19752_v8, %v7964_v2  ;;  %v22572_v2 = vld [vmem:[#allocation199_spill] sm:$0xff] }
 0x588   :  { %14732 = vmatprep.mubr.bf16.mxu1 %v8385_v11  ;;  %v7698_v54 = vsub.f32 %v22553_v21, %v19198_v42  ;;  %v7699_v11 = vsub.f32 %v22554_v25, %v19198_v42 }
 0x58a   :  { %v7958_v24 = vmul.f32 %v19212_v51, %v7698_v54  ;;  %v7959_v41 = vmul.f32 %v19212_v51, %v7699_v11  ;;  %v8229_v54 = vadd.f32 %v19752_v8, %v7966_v0  ;;  %v22563_v11 = vld [vmem:[#allocation189_spill] sm:$0xff] }
 0x58b   :  { %v7708_v9 = vsub.f32 %v22563_v11, %v19198_v42 }
 0x58c   :  { %v8221_v40 = vadd.f32 %v19752_v8, %v7958_v24  ;;  %v8222_v22 = vadd.f32 %v19752_v8, %v7959_v41  ;;  %v22565_v24 = vld [vmem:[#allocation192_spill] sm:$0xff] }
 0x58d   :  { %v7710_v41 = vsub.f32 %v22565_v24, %v19198_v42  ;;  %v7968_v43 = vmul.f32 %v19212_v51, %v7708_v9 }
 0x58e   :  { %v8393_v58 = vpack.c.bf16 %v8222_v22, %v8221_v40 }
 0x58f   :  { %14733 = vmatmul.mubr.bf16.gmra.mrb[24].mxu1 %v8386_v35  ;;  %v7701_v35 = vsub.f32 %v22556_v32, %v19198_v42  ;;  %v7970_v22 = vmul.f32 %v19212_v51, %v7710_v41  ;;  %v8231_v32 = vadd.f32 %v19752_v8, %v7968_v43  ;;  %v22576_v43 = vld [vmem:[#allocation203_spill] sm:$0xff] }
 0x590   :  { %14736 = vmatprep.mubr.bf16.mxu1 %v8387_v26  ;;  %v22558_v26 = vld [vmem:[#allocation186_spill] sm:$0xff] }
 0x591   :  { %v7703_v4 = vsub.f32 %v22558_v26, %v19198_v42  ;;  %v7961_v14 = vmul.f32 %v19212_v51, %v7701_v35  ;;  %v8233_v31 = vadd.f32 %v19752_v8, %v7970_v22  ;;  %v22567_v26 = vld [vmem:[#allocation193_spill] sm:$0xff] }
 0x593   :  { %v7963_v18 = vmul.f32 %v19212_v51, %v7703_v4  ;;  %v8224_v23 = vadd.f32 %v19752_v8, %v7961_v14  ;;  %v7712_v4 = vsub.f32 %v22567_v26, %v19198_v42  ;;  %v7713_v14 = vsub.f32 %v22568_v27, %v19198_v42 }
 0x595   :  { %v8226_v55 = vadd.f32 %v19752_v8, %v7963_v18  ;;  %v8394_v50 = vpack.c.bf16 %v8224_v23, %v8223_v61  ;;  %v22570_v18 = vld [vmem:[#allocation198_spill] sm:$0xff]  ;;  %v7972_v61 = vmul.f32 %v19212_v51, %v7712_v4  ;;  %v7973_v23 = vmul.f32 %v19212_v51, %v7713_v14 }
 0x597   :  { %14737 = vmatmul.mubr.bf16.gmra.mrb[28].mxu1 %v8388_v6  ;;  %v7705_v6 = vsub.f32 %v22560_v45, %v19198_v42  ;;  %v8395_v57 = vpack.c.bf16 %v8226_v55, %v8225_v60  ;;  %v8235_v45 = vadd.f32 %v19752_v8, %v7972_v61  ;;  %v22580_v61 = vld [vmem:[#allocation207_spill] sm:$0xff] }
 0x598   :  { %14740 = vmatprep.mubr.bf16.mxu1 %v8389_v7  ;;  %v22562_v7 = vld [vmem:[#allocation190_spill] sm:$0xff] }
 0x599   :  { %v7707_v30 = vsub.f32 %v22562_v7, %v19198_v42  ;;  %v7965_v34 = vmul.f32 %v19212_v51, %v7705_v6  ;;  %v8236_v6 = vadd.f32 %v19752_v8, %v7973_v23  ;;  %v22571_v7 = vld [vmem:[#allocation197_spill] sm:$0xff]  ;;  %v7725_v23 = vsub.f32 %v22580_v61, %v19198_v42 }
 0x59b   :  { %v7967_v62 = vmul.f32 %v19212_v51, %v7707_v30  ;;  %v8228_v21 = vadd.f32 %v19752_v8, %v7965_v34  ;;  %v7716_v30 = vsub.f32 %v22571_v7, %v19198_v42  ;;  %v7717_v34 = vsub.f32 %v22572_v2, %v19198_v42  ;;  %v15473_v2 = vld [vmem:[%s21899_s9 + $0x60] sm:$0xff]  }
 0x59c   :  { %14860 = vmatprep.subr.bf16.mxu0 %v15473_v2 }
 0x59d   :  { %v8230_v25 = vadd.f32 %v19752_v8, %v7967_v62  ;;  %v8396_v40 = vpack.c.bf16 %v8228_v21, %v8227_v37  ;;  %v22574_v62 = vld [vmem:[#allocation202_spill] sm:$0xff]  ;;  %v7976_v37 = vmul.f32 %v19212_v51, %v7716_v30  ;;  %v7977_v21 = vmul.f32 %v19212_v51, %v7717_v34  ;;  %v15474_v34 = vld [vmem:[%s21899_s9 + $0x68] sm:$0xff]   ;;  %14861 = vmatpush3.bf16.msra.mxu0 %v15473_v2 }
 0x59e   :  { %14862 = vmatprep.subr.bf16.mxu0 %v15474_v34  ;;  %v22594_v2 = vld [vmem:[#allocation222_spill] sm:$0xff] }
 0x59f   :  { %14741 = vmatmul.mubr.bf16.gmra.mrb[32].mxu1 %v8390_v16  ;;  %v7709_v16 = vsub.f32 %v22564_v19, %v19198_v42  ;;  %v8397_v39 = vpack.c.bf16 %v8230_v25, %v8229_v54  ;;  %v8400_v54 = vpack.c.bf16 %v8236_v6, %v8235_v45  ;;  %v8239_v19 = vadd.f32 %v19752_v8, %v7976_v37  ;;  %v22583_v37 = vld [vmem:[#allocation209_spill] sm:$0xff] }
 0x5a0   :  { %14744 = vmatprep.mubr.bf16.mxu1 %v8391_v1  ;;  %v22566_v1 = vld [vmem:[#allocation194_spill] sm:$0xff]  ;;  %v7985_v6 = vmul.f32 %v19212_v51, %v7725_v23 }
 0x5a1   :  { %v7711_v15 = vsub.f32 %v22566_v1, %v19198_v42  ;;  %v7969_v38 = vmul.f32 %v19212_v51, %v7709_v16  ;;  %v8240_v16 = vadd.f32 %v19752_v8, %v7977_v21  ;;  %v22575_v1 = vld [vmem:[#allocation201_spill] sm:$0xff]  ;;  %v7728_v21 = vsub.f32 %v22583_v37, %v19198_v42  ;;  %14863 = vmatpush3.bf16.msra.mxu0 %v15474_v34 }
 0x5a2   :  { %v7739_v34 = vsub.f32 %v22594_v2, %v19198_v42  ;;  %v22603_v2 = vld [vmem:[#allocation229_spill] sm:$0xff] }
 0x5a3   :  { %v7971_v49 = vmul.f32 %v19212_v51, %v7711_v15  ;;  %v8232_v35 = vadd.f32 %v19752_v8, %v7969_v38  ;;  %v7720_v15 = vsub.f32 %v22575_v1, %v19198_v42  ;;  %v7721_v38 = vsub.f32 %v22576_v43, %v19198_v42 }
 0x5a4   :  { %v7999_v37 = vmul.f32 %v19212_v51, %v7739_v34  ;;  %v7748_v34 = vsub.f32 %v22603_v2, %v19198_v42 }
 0x5a5   :  { %v8234_v13 = vadd.f32 %v19752_v8, %v7971_v49  ;;  %v8398_v60 = vpack.c.bf16 %v8232_v35, %v8231_v32  ;;  %v22578_v49 = vld [vmem:[#allocation206_spill] sm:$0xff]  ;;  %v7980_v32 = vmul.f32 %v19212_v51, %v7720_v15  ;;  %v7981_v35 = vmul.f32 %v19212_v51, %v7721_v38 }
 0x5a7   :  { %14745 = vmatmul.mubr.bf16.gmra.mrb[36].mxu1 %v8392_v20  ;;  %v22569_v20 = vld [vmem:[#allocation196_spill] sm:$0xff]  ;;  %v8399_v17 = vpack.c.bf16 %v8234_v13, %v8233_v31  ;;  %v8402_v31 = vpack.c.bf16 %v8240_v16, %v8239_v19  ;;  %v8243_v27 = vadd.f32 %v19752_v8, %v7980_v32  ;;  %v8244_v14 = vadd.f32 %v19752_v8, %v7981_v35  ;;  %v22586_v19 = vld [vmem:[#allocation214_spill] sm:$0xff]  ;;  %v22587_v32 = vld [vmem:[#allocation213_spill] sm:$0xff] }
 0x5a8   :  { %14748 = vmatprep.mubr.bf16.mxu1 %v8393_v58  ;;  %v7714_v59 = vsub.f32 %v22569_v20, %v19198_v42  ;;  %v7715_v58 = vsub.f32 %v22570_v18, %v19198_v42  ;;  %v22579_v18 = vld [vmem:[#allocation205_spill] sm:$0xff]  ;;  %v7731_v16 = vsub.f32 %v22586_v19, %v19198_v42  ;;  %v7732_v35 = vsub.f32 %v22587_v32, %v19198_v42 }
 0x5a9   :  { %v22595_v19 = vld [vmem:[#allocation221_spill] sm:$0xff] }
 0x5aa   :  { %v7974_v55 = vmul.f32 %v19212_v51, %v7714_v59  ;;  %v7975_v5 = vmul.f32 %v19212_v51, %v7715_v58  ;;  %v7724_v58 = vsub.f32 %v22579_v18, %v19198_v42  ;;  %v7991_v43 = vmul.f32 %v19212_v51, %v7731_v16 }
 0x5ab   :  { %v7740_v16 = vsub.f32 %v22595_v19, %v19198_v42 }
 0x5ac   :  { %v8237_v47 = vadd.f32 %v19752_v8, %v7974_v55  ;;  %v8238_v33 = vadd.f32 %v19752_v8, %v7975_v5  ;;  %v22582_v5 = vld [vmem:[#allocation210_spill] sm:$0xff]  ;;  %v7984_v45 = vmul.f32 %v19212_v51, %v7724_v58 }
 0x5ae   :  { %v8401_v9 = vpack.c.bf16 %v8238_v33, %v8237_v47  ;;  %v8404_v47 = vpack.c.bf16 %v8244_v14, %v8243_v27  ;;  %v22590_v27 = vld [vmem:[#allocation218_spill] sm:$0xff] }
 0x5af   :  { %14749 = vmatmul.mubr.bf16.gmra.mrb[40].mxu1 %v8394_v50  ;;  %v22573_v50 = vld [vmem:[#allocation200_spill] sm:$0xff]  ;;  %v7735_v14 = vsub.f32 %v22590_v27, %v19198_v42  ;;  %v22599_v27 = vld [vmem:[#allocation225_spill] sm:$0xff] }
 0x5b0   :  { %14752 = vmatprep.mubr.bf16.mxu1 %v8395_v57  ;;  %v7718_v0 = vsub.f32 %v22573_v50, %v19198_v42  ;;  %v7719_v57 = vsub.f32 %v22574_v62, %v19198_v42  ;;  %v8247_v50 = vadd.f32 %v19752_v8, %v7984_v45  ;;  %v22591_v45 = vld [vmem:[#allocation217_spill] sm:$0xff] }
 0x5b1   :  { %v7995_v61 = vmul.f32 %v19212_v51, %v7735_v14  ;;  %v7744_v14 = vsub.f32 %v22599_v27, %v19198_v42 }
 0x5b2   :  { %v7978_v25 = vmul.f32 %v19212_v51, %v7718_v0  ;;  %v7979_v11 = vmul.f32 %v19212_v51, %v7719_v57  ;;  %v8248_v0 = vadd.f32 %v19752_v8, %v7985_v6  ;;  %v7736_v6 = vsub.f32 %v22591_v45, %v19198_v42 }
 0x5b4   :  { %v8241_v24 = vadd.f32 %v19752_v8, %v7978_v25  ;;  %v8242_v41 = vadd.f32 %v19752_v8, %v7979_v11  ;;  %v22585_v11 = vld [vmem:[#allocation212_spill] sm:$0xff]  ;;  %v8406_v1 = vpack.c.bf16 %v8248_v0, %v8247_v50  ;;  %v7996_v50 = vmul.f32 %v19212_v51, %v7736_v6 }
 0x5b6   :  { %v8403_v4 = vpack.c.bf16 %v8242_v41, %v8241_v24  ;;  %v7988_v24 = vmul.f32 %v19212_v51, %v7728_v21 }
 0x5b7   :  { %14753 = vmatmul.mubr.bf16.gmra.mrb[44].mxu1 %v8396_v40  ;;  %v22577_v40 = vld [vmem:[#allocation204_spill] sm:$0xff] }
 0x5b8   :  { %14756 = vmatprep.mubr.bf16.mxu1 %v8397_v39  ;;  %v7722_v22 = vsub.f32 %v22577_v40, %v19198_v42  ;;  %v7723_v39 = vsub.f32 %v22578_v49, %v19198_v42  ;;  %v8251_v40 = vadd.f32 %v19752_v8, %v7988_v24  ;;  %v22596_v24 = vld [vmem:[#allocation223_spill] sm:$0xff] }
 0x5ba   :  { %v7982_v13 = vmul.f32 %v19212_v51, %v7722_v22  ;;  %v7983_v26 = vmul.f32 %v19212_v51, %v7723_v39  ;;  %v8254_v39 = vadd.f32 %v19752_v8, %v7991_v43  ;;  %v22598_v43 = vld [vmem:[#allocation226_spill] sm:$0xff] }
 0x5bc   :  { %v8245_v20 = vadd.f32 %v19752_v8, %v7982_v13  ;;  %v8246_v59 = vadd.f32 %v19752_v8, %v7983_v26  ;;  %v22589_v26 = vld [vmem:[#allocation216_spill] sm:$0xff] }
 0x5be   :  { %v8405_v30 = vpack.c.bf16 %v8246_v59, %v8245_v20  ;;  %v7992_v20 = vmul.f32 %v19212_v51, %v7732_v35 }
 0x5bf   :  { %14757 = vmatmul.mubr.bf16.gmra.mrb[48].mxu1 %v8398_v60  ;;  %v22581_v60 = vld [vmem:[#allocation208_spill] sm:$0xff] }
 0x5c0   :  { %14760 = vmatprep.mubr.bf16.mxu1 %v8399_v17  ;;  %v7726_v55 = vsub.f32 %v22581_v60, %v19198_v42  ;;  %v7727_v17 = vsub.f32 %v22582_v5, %v19198_v42  ;;  %v8255_v60 = vadd.f32 %v19752_v8, %v7992_v20  ;;  %v22600_v20 = vld [vmem:[#allocation227_spill] sm:$0xff] }
 0x5c2   :  { %v7986_v33 = vmul.f32 %v19212_v51, %v7726_v55  ;;  %v7987_v7 = vmul.f32 %v19212_v51, %v7727_v17  ;;  %v8258_v17 = vadd.f32 %v19752_v8, %v7995_v61  ;;  %v22602_v61 = vld [vmem:[#allocation230_spill] sm:$0xff] }
 0x5c4   :  { %v8249_v62 = vadd.f32 %v19752_v8, %v7986_v33  ;;  %v8250_v57 = vadd.f32 %v19752_v8, %v7987_v7  ;;  %v22593_v7 = vld [vmem:[#allocation220_spill] sm:$0xff] }
 0x5c6   :  { %v8407_v38 = vpack.c.bf16 %v8250_v57, %v8249_v62 }
 0x5c7   :  { %14761 = vmatmul.mubr.bf16.gmra.mrb[52].mxu1 %v8400_v54  ;;  %v22584_v54 = vld [vmem:[#allocation211_spill] sm:$0xff] }
 0x5c8   :  { %14764 = vmatprep.mubr.bf16.mxu1 %v8401_v9  ;;  %v7729_v25 = vsub.f32 %v22584_v54, %v19198_v42  ;;  %v7730_v9 = vsub.f32 %v22585_v11, %v19198_v42  ;;  %v8259_v54 = vadd.f32 %v19752_v8, %v7996_v50  ;;  %v22604_v50 = vld [vmem:[#allocation231_spill] sm:$0xff] }
 0x5ca   :  { %v7989_v41 = vmul.f32 %v19212_v51, %v7729_v25  ;;  %v7990_v15 = vmul.f32 %v19212_v51, %v7730_v9  ;;  %v8262_v9 = vadd.f32 %v19752_v8, %v7999_v37  ;;  %v22606_v37 = vld [vmem:[#allocation233_spill] sm:$0xff] }
 0x5cc   :  { %v8252_v22 = vadd.f32 %v19752_v8, %v7989_v41  ;;  %v8253_v49 = vadd.f32 %v19752_v8, %v7990_v15  ;;  %v7741_v41 = vsub.f32 %v22596_v24, %v19198_v42 }
 0x5ce   :  { %v8408_v18 = vpack.c.bf16 %v8252_v22, %v8251_v40  ;;  %v8409_v23 = vpack.c.bf16 %v8254_v39, %v8253_v49  ;;  %v8000_v40 = vmul.f32 %v19212_v51, %v7740_v16  ;;  %v8001_v22 = vmul.f32 %v19212_v51, %v7741_v41 }
 0x5cf   :  { %14765 = vmatmul.mubr.bf16.gmra.mrb[56].mxu1 %v8402_v31  ;;  %v22588_v31 = vld [vmem:[#allocation215_spill] sm:$0xff] }
 0x5d0   :  { %14768 = vmatprep.mubr.bf16.mxu1 %v8403_v4  ;;  %v7733_v13 = vsub.f32 %v22588_v31, %v19198_v42  ;;  %v7734_v4 = vsub.f32 %v22589_v26, %v19198_v42  ;;  %v8263_v31 = vadd.f32 %v19752_v8, %v8000_v40  ;;  %v22608_v40 = vld [vmem:[#allocation235_spill] sm:$0xff] }
 0x5d2   :  { %v7993_v59 = vmul.f32 %v19212_v51, %v7733_v13  ;;  %v7994_v58 = vmul.f32 %v19212_v51, %v7734_v4  ;;  %v8264_v13 = vadd.f32 %v19752_v8, %v8001_v22  ;;  %v7753_v22 = vsub.f32 %v22608_v40, %v19198_v42 }
 0x5d4   :  { %v8256_v55 = vadd.f32 %v19752_v8, %v7993_v59  ;;  %v8257_v5 = vadd.f32 %v19752_v8, %v7994_v58  ;;  %v7745_v59 = vsub.f32 %v22600_v20, %v19198_v42 }
 0x5d6   :  { %v8410_v62 = vpack.c.bf16 %v8256_v55, %v8255_v60  ;;  %v8411_v21 = vpack.c.bf16 %v8258_v17, %v8257_v5  ;;  %v8004_v60 = vmul.f32 %v19212_v51, %v7744_v14  ;;  %v8005_v55 = vmul.f32 %v19212_v51, %v7745_v59 }
 0x5d7   :  { %14769 = vmatmul.mubr.bf16.gmra.mrb[60].mxu1 %v8404_v47  ;;  %v22592_v47 = vld [vmem:[#allocation219_spill] sm:$0xff]  ;;  %v8414_v5 = vpack.c.bf16 %v8264_v13, %v8263_v31  ;;  %v8013_v13 = vmul.f32 %v19212_v51, %v7753_v22 }
 0x5d8   :  { %14788 = vmatprep.mubr.bf16.mxu1 %v8405_v30  ;;  %v7737_v33 = vsub.f32 %v22592_v47, %v19198_v42  ;;  %v7738_v30 = vsub.f32 %v22593_v7, %v19198_v42  ;;  %v8267_v47 = vadd.f32 %v19752_v8, %v8004_v60  ;;  %v22612_v60 = vld [vmem:[#allocation239_spill] sm:$0xff] }
 0x5d9   :  { %v8276_v59 = vadd.f32 %v19752_v8, %v8013_v13 }
 0x5da   :  { %v7997_v0 = vmul.f32 %v19212_v51, %v7737_v33  ;;  %v7998_v57 = vmul.f32 %v19212_v51, %v7738_v30  ;;  %v8268_v33 = vadd.f32 %v19752_v8, %v8005_v55  ;;  %v7757_v55 = vsub.f32 %v22612_v60, %v19198_v42 }
 0x5dc   :  { %v8260_v25 = vadd.f32 %v19752_v8, %v7997_v0  ;;  %v8261_v11 = vadd.f32 %v19752_v8, %v7998_v57  ;;  %v7749_v0 = vsub.f32 %v22604_v50, %v19198_v42 }
 0x5de   :  { %v8412_v49 = vpack.c.bf16 %v8260_v25, %v8259_v54  ;;  %v8413_v35 = vpack.c.bf16 %v8262_v9, %v8261_v11  ;;  %v8008_v54 = vmul.f32 %v19212_v51, %v7748_v34  ;;  %v8009_v25 = vmul.f32 %v19212_v51, %v7749_v0 }
 0x5df   :  { %14789 = vmatmul.mubr.bf16.vlgmr.msra.gmra.mrb[0].mxu1 %v8406_v1  ;;  %v22597_v1 = vld [vmem:[#allocation224_spill] sm:$0xff]  ;;  %v8416_v11 = vpack.c.bf16 %v8268_v33, %v8267_v47  ;;  %v8017_v33 = vmul.f32 %v19212_v51, %v7757_v55 }
 0x5e0   :  { %14792 = vmatprep.mubr.bf16.mxu1 %v8407_v38  ;;  %v7742_v15 = vsub.f32 %v22597_v1, %v19198_v42  ;;  %v7743_v38 = vsub.f32 %v22598_v43, %v19198_v42  ;;  %v8271_v24 = vadd.f32 %v19752_v8, %v8008_v54  ;;  %v8272_v41 = vadd.f32 %v19752_v8, %v8009_v25  ;;  %v22607_v43 = vld [vmem:[#allocation234_spill] sm:$0xff]  ;;  %v22616_v54 = vld [vmem:[#allocation243_spill] sm:$0xff] }
 0x5e1   :  { %v8280_v0 = vadd.f32 %v19752_v8, %v8017_v33  ;;  %v7761_v25 = vsub.f32 %v22616_v54, %v19198_v42 }
 0x5e2   :  { %v8002_v39 = vmul.f32 %v19212_v51, %v7742_v15  ;;  %v8003_v32 = vmul.f32 %v19212_v51, %v7743_v38  ;;  %v7752_v38 = vsub.f32 %v22607_v43, %v19198_v42 }
 0x5e4   :  { %v8265_v26 = vadd.f32 %v19752_v8, %v8002_v39  ;;  %v8266_v4 = vadd.f32 %v19752_v8, %v8003_v32  ;;  %v22610_v32 = vld [vmem:[#allocation237_spill] sm:$0xff]  ;;  %v8012_v31 = vmul.f32 %v19212_v51, %v7752_v38 }
 0x5e6   :  { %v8415_v6 = vpack.c.bf16 %v8266_v4, %v8265_v26  ;;  %v8418_v26 = vpack.c.bf16 %v8272_v41, %v8271_v24  ;;  %v8275_v20 = vadd.f32 %v19752_v8, %v8012_v31  ;;  %v8021_v41 = vmul.f32 %v19212_v51, %v7761_v25  ;;  %v22620_v31 = vld [vmem:[#allocation247_spill] sm:$0xff] }
 0x5e7   :  { %14793 = vmatmul.mubr.bf16.gmra.mrb[4].mxu1 %v8408_v18  ;;  %v22601_v18 = vld [vmem:[#allocation228_spill] sm:$0xff]  ;;  %v7765_v13 = vsub.f32 %v22620_v31, %v19198_v42  ;;  %v7775_v25 = vsub.f32 %v19123_v29, %v19198_v42 }
 0x5e8   :  { %14796 = vmatprep.mubr.bf16.mxu1 %v8409_v23  ;;  %v7746_v58 = vsub.f32 %v22601_v18, %v19198_v42  ;;  %v7747_v23 = vsub.f32 %v22602_v61, %v19198_v42  ;;  %v22611_v61 = vld [vmem:[#allocation238_spill] sm:$0xff]  ;;  %v8284_v22 = vadd.f32 %v19752_v8, %v8021_v41 }
 0x5ea   :  { %v8006_v17 = vmul.f32 %v19212_v51, %v7746_v58  ;;  %v8007_v45 = vmul.f32 %v19212_v51, %v7747_v23  ;;  %v7756_v23 = vsub.f32 %v22611_v61, %v19198_v42  ;;  %v20271_v61 = vld [vmem:[%s21894_s4] ss:$0 sm:$0xff] }
 0x5ec   :  { %v8269_v7 = vadd.f32 %v19752_v8, %v8006_v17  ;;  %v8270_v30 = vadd.f32 %v19752_v8, %v8007_v45  ;;  %v22614_v45 = vld [vmem:[#allocation241_spill] sm:$0xff]  ;;  %v8016_v47 = vmul.f32 %v19212_v51, %v7756_v23 }
 0x5ee   :  { %v8417_v16 = vpack.c.bf16 %v8270_v30, %v8269_v7  ;;  %v8420_v7 = vpack.c.bf16 %v8276_v59, %v8275_v20  ;;  %v8279_v50 = vadd.f32 %v19752_v8, %v8016_v47  ;;  %v8025_v20 = vmul.f32 %v19212_v51, %v7765_v13 }
 0x5ef   :  { %14797 = vmatmul.mubr.bf16.gmra.mrb[8].mxu1 %v8410_v62  ;;  %v22605_v62 = vld [vmem:[#allocation232_spill] sm:$0xff] }
 0x5f0   :  { %14800 = vmatprep.mubr.bf16.mxu1 %v8411_v21  ;;  %v7750_v57 = vsub.f32 %v22605_v62, %v19198_v42  ;;  %v7751_v21 = vsub.f32 %v22606_v37, %v19198_v42  ;;  %v22615_v37 = vld [vmem:[#allocation242_spill] sm:$0xff]  ;;  %v8288_v23 = vadd.f32 %v20271_v61, %v8025_v20  ;;  %v22627_v20 = vld [vmem:[#allocation255_spill] sm:$0xff] }
 0x5f2   :  { %v8010_v9 = vmul.f32 %v19212_v51, %v7750_v57  ;;  %v8011_v19 = vmul.f32 %v19212_v51, %v7751_v21  ;;  %v7760_v21 = vsub.f32 %v22615_v37, %v19198_v42  ;;  %v7773_v37 = vsub.f32 %v19111_v46, %v19198_v42 }
 0x5f4   :  { %v8273_v1 = vadd.f32 %v19752_v8, %v8010_v9  ;;  %v8274_v15 = vadd.f32 %v19752_v8, %v8011_v19  ;;  %v22618_v19 = vld [vmem:[#allocation245_spill] sm:$0xff]  ;;  %v8020_v24 = vmul.f32 %v19212_v51, %v7760_v21  ;;  %v22624_v21 = vld [vmem:[#allocation251_spill] sm:$0xff] }
 0x5f5   :  { %v7774_v54 = vsub.f32 %v22624_v21, %v19198_v42 }
 0x5f6   :  { %v8419_v14 = vpack.c.bf16 %v8274_v15, %v8273_v1  ;;  %v8422_v1 = vpack.c.bf16 %v8280_v0, %v8279_v50  ;;  %v8283_v40 = vadd.f32 %v19752_v8, %v8020_v24  ;;  %v8035_v24 = vmul.f32 %v19212_v51, %v7775_v25 }
 0x5f7   :  { %14801 = vmatmul.mubr.bf16.gmra.mrb[12].mxu1 %v8412_v49  ;;  %v22609_v49 = vld [vmem:[#allocation236_spill] sm:$0xff] }
 0x5f8   :  { %14804 = vmatprep.mubr.bf16.mxu1 %v8413_v35  ;;  %v7754_v39 = vsub.f32 %v22609_v49, %v19198_v42  ;;  %v7755_v35 = vsub.f32 %v22610_v32, %v19198_v42  ;;  %v22619_v32 = vld [vmem:[#allocation246_spill] sm:$0xff]  ;;  %v8424_v59 = vpack.c.bf16 %v8284_v22, %v8283_v40  ;;  %v8298_v29 = vadd.f32 %v20271_v61, %v8035_v24 }
 0x5f9   :  { %v7778_v40 = vsub.f32 %v19141_v44, %v19198_v42  ;;  %v7779_v22 = vsub.f32 %v19151_v36, %v19198_v42 }
 0x5fa   :  { %v8014_v4 = vmul.f32 %v19212_v51, %v7754_v39  ;;  %v8015_v27 = vmul.f32 %v19212_v51, %v7755_v35  ;;  %v7764_v35 = vsub.f32 %v22619_v32, %v19198_v42 }
 0x5fb   :  { %v8039_v31 = vmul.f32 %v19212_v51, %v7779_v22 }
 0x5fc   :  { %v8277_v18 = vadd.f32 %v19752_v8, %v8014_v4  ;;  %v8278_v58 = vadd.f32 %v19752_v8, %v8015_v27  ;;  %v22621_v4 = vld [vmem:[#allocation248_spill] sm:$0xff] }
 0x5fd   :  { %v7767_v27 = vsub.f32 %v22621_v4, %v19198_v42  ;;  %v8302_v36 = vadd.f32 %v20271_v61, %v8039_v31 }
 0x5fe   :  { %v8421_v34 = vpack.c.bf16 %v8278_v58, %v8277_v18 }
 0x5ff   :  { %14805 = vmatmul.mubr.bf16.gmra.mrb[16].mxu1 %v8414_v5  ;;  %v22613_v5 = vld [vmem:[#allocation240_spill] sm:$0xff] }
 0x600   :  { %14808 = vmatprep.mubr.bf16.mxu1 %v8415_v6  ;;  %v7758_v17 = vsub.f32 %v22613_v5, %v19198_v42  ;;  %v7759_v6 = vsub.f32 %v22614_v45, %v19198_v42  ;;  %v7768_v5 = vsub.f32 %v19059_v53, %v19198_v42  ;;  %v7770_v45 = vsub.f32 %v19073_v63, %v19198_v42 }
 0x602   :  { %v8018_v30 = vmul.f32 %v19212_v51, %v7758_v17  ;;  %v8019_v2 = vmul.f32 %v19212_v51, %v7759_v6  ;;  %v7769_v17 = vsub.f32 %v19071_v52, %v19198_v42  ;;  %v22622_v6 = vld [vmem:[#allocation249_spill] sm:$0xff]  ;;  %v8028_v33 = vmul.f32 %v19212_v51, %v7768_v5 }
 0x603   :  { %v7771_v47 = vsub.f32 %v22622_v6, %v19198_v42 }
 0x604   :  { %v8281_v62 = vadd.f32 %v19752_v8, %v8018_v30  ;;  %v8282_v57 = vadd.f32 %v19752_v8, %v8019_v2  ;;  %v8030_v2 = vmul.f32 %v19212_v51, %v7770_v45  ;;  %v8291_v53 = vadd.f32 %v20271_v61, %v8028_v33  ;;  %v22629_v33 = vld [vmem:[#allocation256_spill] sm:$0xff] }
 0x606   :  { %v8423_v38 = vpack.c.bf16 %v8282_v57, %v8281_v62  ;;  %v8293_v63 = vadd.f32 %v20271_v61, %v8030_v2  ;;  %v22623_v62 = vld [vmem:[#allocation250_spill] sm:$0xff] }
 0x607   :  { %14809 = vmatmul.mubr.bf16.gmra.mrb[20].mxu1 %v8416_v11  ;;  %v22617_v11 = vld [vmem:[#allocation244_spill] sm:$0xff]  ;;  %v7772_v57 = vsub.f32 %v22623_v62, %v19198_v42 }
 0x608   :  { %14812 = vmatprep.mubr.bf16.mxu1 %v8417_v16  ;;  %v7762_v9 = vsub.f32 %v22617_v11, %v19198_v42  ;;  %v7763_v16 = vsub.f32 %v22618_v19, %v19198_v42 }
 0x609   :  { %v8032_v11 = vmul.f32 %v19212_v51, %v7772_v57  ;;  %v15475_v57 = vld [vmem:[%s21899_s9 + $0x70] sm:$0xff]  }
 0x60a   :  { %v8022_v15 = vmul.f32 %v19212_v51, %v7762_v9  ;;  %v8023_v43 = vmul.f32 %v19212_v51, %v7763_v16  ;;  %v8033_v9 = vmul.f32 %v19212_v51, %v7773_v37  ;;  %v8034_v16 = vmul.f32 %v19212_v51, %v7774_v54  ;;  %14864 = vmatprep.subr.bf16.mxu0 %v15475_v57 }
 0x60b   :  { %v8295_v46 = vadd.f32 %v20271_v61, %v8032_v11  ;;  %14865 = vmatpush3.bf16.msra.mxu0 %v15475_v57 }
 0x60c   :  { %v8285_v49 = vadd.f32 %v19752_v8, %v8022_v15  ;;  %v8286_v39 = vadd.f32 %v19752_v8, %v8023_v43  ;;  %v8027_v8 = vmul.f32 %v19212_v51, %v7767_v27  ;;  %v8297_v15 = vadd.f32 %v20271_v61, %v8034_v16  ;;  %v22626_v27 = vld [vmem:[#allocation253_spill] sm:$0xff] }
 0x60d   :  { %v7776_v43 = vsub.f32 %v19130_v3, %v19198_v42 }
 0x60e   :  { %v8425_v58 = vpack.c.bf16 %v8286_v39, %v8285_v49  ;;  %v8290_v55 = vadd.f32 %v20271_v61, %v8027_v8  ;;  %v8431_v13 = vpack.c.bf16 %v8298_v29, %v8297_v15 }
 0x60f   :  { %14813 = vmatmul.mubr.bf16.gmra.mrb[24].mxu1 %v8418_v26  ;;  %v7766_v26 = vsub.f32 %v19030_v12, %v19198_v42  ;;  %v8036_v49 = vmul.f32 %v19212_v51, %v7776_v43 }
 0x610   :  { %14816 = vmatprep.mubr.bf16.mxu1 %v8419_v14  ;;  %v8024_v14 = vmul.f32 %v19212_v51, %v7764_v35  ;;  %v8038_v35 = vmul.f32 %v19212_v51, %v7778_v40 }
 0x611   :  { %v8026_v18 = vmul.f32 %v19212_v51, %v7766_v26  ;;  %v8299_v3 = vadd.f32 %v20271_v61, %v8036_v49  ;;  %v22625_v26 = vld [vmem:[#allocation252_spill] sm:$0xff] }
 0x612   :  { %v8287_v12 = vadd.f32 %v20271_v61, %v8024_v14  ;;  %v8301_v44 = vadd.f32 %v20271_v61, %v8038_v35  ;;  %v7780_v4 = vsub.f32 %v22625_v26, %v19198_v42  ;;  %v7781_v14 = vsub.f32 %v22626_v27, %v19198_v42 }
 0x613   :  { %v8289_v60 = vadd.f32 %v20271_v61, %v8026_v18  ;;  %v22628_v18 = vld [vmem:[#allocation254_spill] sm:$0xff] }
 0x614   :  { %v8426_v30 = vpack.c.bf16 %v8288_v23, %v8287_v12  ;;  %v7782_v8 = vsub.f32 %v22628_v18, %v19198_v42  ;;  %v8041_v12 = vmul.f32 %v19212_v51, %v7781_v14  ;;  %v8433_v5 = vpack.c.bf16 %v8302_v36, %v8301_v44 }
 0x615   :  { %v8427_v50 = vpack.c.bf16 %v8290_v55, %v8289_v60 }
 0x616   :  { %v8042_v55 = vmul.f32 %v19212_v51, %v7782_v8  ;;  %v8304_v45 = vadd.f32 %v20271_v61, %v8041_v12 }
 0x617   :  { %14817 = vmatmul.mubr.bf16.gmra.mrb[28].mxu1 %v8420_v7  ;;  %v8029_v7 = vmul.f32 %v19212_v51, %v7769_v17 }
 0x618   :  { %14820 = vmatprep.mubr.bf16.mxu1 %v8421_v34  ;;  %v8031_v34 = vmul.f32 %v19212_v51, %v7771_v47  ;;  %v8305_v6 = vadd.f32 %v20271_v61, %v8042_v55 }
 0x619   :  { %v8292_v52 = vadd.f32 %v20271_v61, %v8029_v7  ;;  %v7784_v7 = vsub.f32 %v22629_v33, %v19198_v42 }
 0x61a   :  { %v8294_v0 = vadd.f32 %v20271_v61, %v8031_v34 }
 0x61b   :  { %v8428_v19 = vpack.c.bf16 %v8292_v52, %v8291_v53  ;;  %v8044_v34 = vmul.f32 %v19212_v51, %v7784_v7 }
 0x61c   :  { %v8429_v41 = vpack.c.bf16 %v8294_v0, %v8293_v63 }
 0x61d   :  { %v8307_v63 = vadd.f32 %v20271_v61, %v8044_v34 }
 0x61f   :  { %14821 = vmatmul.mubr.bf16.gmra.mrb[32].mxu1 %v8422_v1  ;;  %v8296_v1 = vadd.f32 %v20271_v61, %v8033_v9 }
 0x620   :  { %14824 = vmatprep.mubr.bf16.mxu1 %v8423_v38  ;;  %v7777_v38 = vsub.f32 %v19139_v28, %v19198_v42 }
 0x621   :  { %v8430_v32 = vpack.c.bf16 %v8296_v1, %v8295_v46 }
 0x622   :  { %v8037_v39 = vmul.f32 %v19212_v51, %v7777_v38 }
 0x624   :  { %v8300_v28 = vadd.f32 %v20271_v61, %v8037_v39 }
 0x626   :  { %v8432_v23 = vpack.c.bf16 %v8300_v28, %v8299_v3 }
 0x627   :  { %14825 = vmatmul.mubr.bf16.gmra.mrb[36].mxu1 %v8424_v59  ;;  %v7783_v59 = vsub.f32 %v22627_v20, %v19198_v42 }
 0x628   :  { %14828 = vmatprep.mubr.bf16.mxu1 %v8425_v58  ;;  %v8040_v58 = vmul.f32 %v19212_v51, %v7780_v4 }
 0x629   :  { %v8043_v60 = vmul.f32 %v19212_v51, %v7783_v59 }
 0x62a   :  { %v8303_v17 = vadd.f32 %v20271_v61, %v8040_v58 }
 0x62b   :  { %v8306_v47 = vadd.f32 %v20271_v61, %v8043_v60 }
 0x62c   :  { %v8434_v53 = vpack.c.bf16 %v8304_v45, %v8303_v17 }
 0x62d   :  { %v8435_v52 = vpack.c.bf16 %v8306_v47, %v8305_v6 }
 0x62f   :  { %14829 = vmatmul.mubr.bf16.gmra.mrb[40].mxu1 %v8426_v30  ;;  %v22630_v30 = vld [vmem:[#allocation257_spill] sm:$0xff] }
 0x630   :  { %14832 = vmatprep.mubr.bf16.mxu1 %v8427_v50  ;;  %v7785_v2 = vsub.f32 %v22630_v30, %v19198_v42  ;;  %v15476_v42 = vld [vmem:[%s21899_s9 + $0x78] sm:$0xff]  }
 0x631   :  { %14866 = vmatprep.subr.bf16.mxu0 %v15476_v42 }
 0x632   :  { %v8045_v50 = vmul.f32 %v19212_v51, %v7785_v2  ;;  %14867 = vmatpush3.bf16.msra.mxu0 %v15476_v42  ;;  %v20358_v51 = vld [vmem:[%s21896_s6] ss:$0 sm:$0xff] }
 0x634   :  { %v8308_v0 = vadd.f32 %v20271_v61, %v8045_v50 }
 0x636   :  { %v8436_v62 = vpack.c.bf16 %v8308_v0, %v8307_v63 }
 0x637   :  { %14833 = vmatmul.mubr.bf16.gmra.mrb[44].mxu1 %v8428_v19 }
 0x638   :  { %14836 = vmatprep.mubr.bf16.mxu1 %v8429_v41 }
 0x63f   :  { %14837 = vmatmul.mubr.bf16.gmra.mrb[48].mxu1 %v8430_v32 }
 0x640   :  { %14840 = vmatprep.mubr.bf16.mxu1 %v8431_v13 }
 0x647   :  { %14841 = vmatmul.mubr.bf16.gmra.mrb[52].mxu1 %v8432_v23 }
 0x648   :  { %14844 = vmatprep.mubr.bf16.mxu1 %v8433_v5 }
 0x64f   :  { %14845 = vmatmul.mubr.bf16.gmra.mrb[56].mxu1 %v8434_v53 }
 0x650   :  { %14848 = vmatprep.mubr.bf16.mxu1 %v8435_v52 }
 0x657   :  { %14849 = vmatmul.mubr.bf16.gmra.mrb[60].mxu1 %v8436_v62 }
 0x6b2   :  { %v14790_v61 = vpop.f32.mrb[0].mxu1 }
 0x6b3   :  { %v9658_v37 = vpop.f32.mrb[1].mxu1  ;;  %v9986_v21 = vadd.f32 %v14790_v61, %v20358_v51 }
 0x6b4   :  { %v9984_v54 = vadd.f32 %v20358_v51, %v9658_v37  ;;  %v14791_v25 = vpop.f32.mrb[2].mxu1 }
 0x6b5   :  { %v9987_v11 = vadd.f32 %v14791_v25, %v20358_v51  ;;  %v9661_v9 = vpop.f32.mrb[3].mxu1  ;;  %v20366_v24 = vmax.f32 %v9986_v21, 0.0 }
 0x6b6   :  { %v20363_v19 = vmax.f32 %v9984_v54, 0.0  ;;  %v9985_v16 = vadd.f32 %v20358_v51, %v9661_v9 }
 0x6b7   :  { %v20370_v46 = vmax.f32 %v9987_v11, 0.0  ;;  %v10184_v22 = vmul.f32 %v20366_v24, %v20366_v24 }
 0x6b8   :  { %v20368_v41 = vmax.f32 %v9985_v16, 0.0  ;;  %v10182_v1 = vmul.f32 %v20363_v19, %v20363_v19 }
 0x6b9   :  { %v10185_v31 = vmul.f32 %v20370_v46, %v20370_v46 }
 0x6ba   :  { %v10112_v15 = vadd.f32 %v20368_v41, %v20363_v19  ;;  %v10183_v29 = vmul.f32 %v20368_v41, %v20368_v41  ;;  %v14794_v43 = vpop.f32.mrb[4].mxu1 }
 0x6bb   :  { %v9990_v38 = vadd.f32 %v14794_v43, %v20358_v51  ;;  %v9674_v40 = vpop.f32.mrb[5].mxu1 }
 0x6bc   :  { %v10113_v49 = vadd.f32 %v10112_v15, %v20366_v24  ;;  %v10246_v39 = vadd.f32 %v10183_v29, %v10182_v1  ;;  %v9988_v32 = vadd.f32 %v20358_v51, %v9674_v40  ;;  %v14795_v35 = vpop.f32.mrb[6].mxu1 }
 0x6bd   :  { %v9991_v13 = vadd.f32 %v14795_v35, %v20358_v51  ;;  %v9677_v3 = vpop.f32.mrb[7].mxu1  ;;  %v20390_v4 = vmax.f32 %v9990_v38, 0.0 }
 0x6be   :  { %v10247_v28 = vadd.f32 %v10246_v39, %v10184_v22  ;;  %v20386_v44 = vmax.f32 %v9988_v32, 0.0  ;;  %v10114_v36 = vadd.f32 %v10113_v49, %v20370_v46  ;;  %v9989_v26 = vadd.f32 %v20358_v51, %v9677_v3 }
 0x6bf   :  { %v20397_v18 = vmax.f32 %v9991_v13, 0.0  ;;  %v10188_v5 = vmul.f32 %v20390_v4, %v20390_v4 }
 0x6c0   :  { %v10115_v27 = vadd.f32 %v10114_v36, %v20386_v44  ;;  %v10186_v14 = vmul.f32 %v20386_v44, %v20386_v44  ;;  %v10248_v20 = vadd.f32 %v10247_v28, %v10185_v31  ;;  %v20395_v59 = vmax.f32 %v9989_v26, 0.0 }
 0x6c1   :  { %v10189_v33 = vmul.f32 %v20397_v18, %v20397_v18 }
 0x6c2   :  { %v10249_v8 = vadd.f32 %v10248_v20, %v10186_v14  ;;  %v10116_v58 = vadd.f32 %v10115_v27, %v20395_v59  ;;  %v10187_v12 = vmul.f32 %v20395_v59, %v20395_v59  ;;  %v14798_v23 = vpop.f32.mrb[8].mxu1 }
 0x6c3   :  { %v9994_v60 = vadd.f32 %v14798_v23, %v20358_v51  ;;  %v9690_v55 = vpop.f32.mrb[9].mxu1 }
 0x6c4   :  { %v10117_v17 = vadd.f32 %v10116_v58, %v20390_v4  ;;  %v10250_v45 = vadd.f32 %v10249_v8, %v10187_v12  ;;  %v9992_v6 = vadd.f32 %v20358_v51, %v9690_v55  ;;  %v14799_v47 = vpop.f32.mrb[10].mxu1 }
 0x6c5   :  { %v9995_v7 = vadd.f32 %v14799_v47, %v20358_v51  ;;  %v9693_v30 = vpop.f32.mrb[11].mxu1  ;;  %v20414_v52 = vmax.f32 %v9994_v60, 0.0 }
 0x6c6   :  { %v10251_v2 = vadd.f32 %v10250_v45, %v10188_v5  ;;  %v20410_v34 = vmax.f32 %v9992_v6, 0.0  ;;  %v10118_v50 = vadd.f32 %v10117_v17, %v20397_v18  ;;  %v9993_v53 = vadd.f32 %v20358_v51, %v9693_v30 }
 0x6c7   :  { %v20421_v42 = vmax.f32 %v9995_v7, 0.0  ;;  %v10192_v9 = vmul.f32 %v20414_v52, %v20414_v52 }
 0x6c8   :  { %v10119_v63 = vadd.f32 %v10118_v50, %v20410_v34  ;;  %v10190_v0 = vmul.f32 %v20410_v34, %v20410_v34  ;;  %v10252_v62 = vadd.f32 %v10251_v2, %v10189_v33  ;;  %v20419_v57 = vmax.f32 %v9993_v53, 0.0 }
 0x6c9   :  { %v10193_v43 = vmul.f32 %v20421_v42, %v20421_v42 }
 0x6ca   :  { %v10253_v61 = vadd.f32 %v10252_v62, %v10190_v0  ;;  %v10120_v37 = vadd.f32 %v10119_v63, %v20419_v57  ;;  %v10191_v21 = vmul.f32 %v20419_v57, %v20419_v57  ;;  %v14802_v54 = vpop.f32.mrb[12].mxu1 }
 0x6cb   :  { %v9998_v25 = vadd.f32 %v14802_v54, %v20358_v51  ;;  %v9706_v11 = vpop.f32.mrb[13].mxu1 }
 0x6cc   :  { %v10121_v16 = vadd.f32 %v10120_v37, %v20414_v52  ;;  %v10254_v1 = vadd.f32 %v10253_v61, %v10191_v21  ;;  %v9996_v15 = vadd.f32 %v20358_v51, %v9706_v11  ;;  %v14803_v29 = vpop.f32.mrb[14].mxu1 }
 0x6cd   :  { %v9999_v38 = vadd.f32 %v14803_v29, %v20358_v51  ;;  %v9709_v40 = vpop.f32.mrb[15].mxu1  ;;  %v20438_v35 = vmax.f32 %v9998_v25, 0.0 }
 0x6ce   :  { %v10255_v22 = vadd.f32 %v10254_v1, %v10192_v9  ;;  %v20434_v49 = vmax.f32 %v9996_v15, 0.0  ;;  %v10122_v39 = vadd.f32 %v10121_v16, %v20421_v42  ;;  %v9997_v32 = vadd.f32 %v20358_v51, %v9709_v40 }
 0x6cf   :  { %v20445_v36 = vmax.f32 %v9999_v38, 0.0  ;;  %v10196_v12 = vmul.f32 %v20438_v35, %v20438_v35 }
 0x6d0   :  { %v10123_v31 = vadd.f32 %v10122_v39, %v20434_v49  ;;  %v10194_v13 = vmul.f32 %v20434_v49, %v20434_v49  ;;  %v10256_v3 = vadd.f32 %v10255_v22, %v10193_v43  ;;  %v20443_v28 = vmax.f32 %v9997_v32, 0.0 }
 0x6d1   :  { %v10197_v17 = vmul.f32 %v20445_v36, %v20445_v36 }
 0x6d2   :  { %v10257_v26 = vadd.f32 %v10256_v3, %v10194_v13  ;;  %v10124_v27 = vadd.f32 %v10123_v31, %v20443_v28  ;;  %v10195_v14 = vmul.f32 %v20443_v28, %v20443_v28  ;;  %v14806_v20 = vpop.f32.mrb[16].mxu1 }
 0x6d3   :  { %v10002_v8 = vadd.f32 %v14806_v20, %v20358_v51  ;;  %v9722_v58 = vpop.f32.mrb[17].mxu1 }
 0x6d4   :  { %v10125_v23 = vadd.f32 %v10124_v27, %v20438_v35  ;;  %v10258_v60 = vadd.f32 %v10257_v26, %v10195_v14  ;;  %v10000_v55 = vadd.f32 %v20358_v51, %v9722_v58  ;;  %v14807_v5 = vpop.f32.mrb[18].mxu1 }
 0x6d5   :  { %v10003_v45 = vadd.f32 %v14807_v5, %v20358_v51  ;;  %v9725_v6 = vpop.f32.mrb[19].mxu1  ;;  %v20462_v2 = vmax.f32 %v10002_v8, 0.0 }
 0x6d6   :  { %v10259_v47 = vadd.f32 %v10258_v60, %v10196_v12  ;;  %v20458_v33 = vmax.f32 %v10000_v55, 0.0  ;;  %v10126_v7 = vadd.f32 %v10125_v23, %v20445_v36  ;;  %v10001_v30 = vadd.f32 %v20358_v51, %v9725_v6 }
 0x6d7   :  { %v20469_v62 = vmax.f32 %v10003_v45, 0.0  ;;  %v10200_v9 = vmul.f32 %v20462_v2, %v20462_v2 }
 0x6d8   :  { %v10127_v50 = vadd.f32 %v10126_v7, %v20458_v33  ;;  %v10198_v53 = vmul.f32 %v20458_v33, %v20458_v33  ;;  %v10260_v63 = vadd.f32 %v10259_v47, %v10197_v17  ;;  %v20467_v0 = vmax.f32 %v10001_v30, 0.0 }
 0x6d9   :  { %v10201_v43 = vmul.f32 %v20469_v62, %v20469_v62 }
 0x6da   :  { %v10261_v61 = vadd.f32 %v10260_v63, %v10198_v53  ;;  %v10128_v37 = vadd.f32 %v10127_v50, %v20467_v0  ;;  %v10199_v21 = vmul.f32 %v20467_v0, %v20467_v0  ;;  %v14810_v54 = vpop.f32.mrb[20].mxu1 }
 0x6db   :  { %v10006_v25 = vadd.f32 %v14810_v54, %v20358_v51  ;;  %v9738_v11 = vpop.f32.mrb[21].mxu1 }
 0x6dc   :  { %v10129_v16 = vadd.f32 %v10128_v37, %v20462_v2  ;;  %v10262_v1 = vadd.f32 %v10261_v61, %v10199_v21  ;;  %v10004_v15 = vadd.f32 %v20358_v51, %v9738_v11  ;;  %v14811_v29 = vpop.f32.mrb[22].mxu1 }
 0x6dd   :  { %v10007_v38 = vadd.f32 %v14811_v29, %v20358_v51  ;;  %v9741_v40 = vpop.f32.mrb[23].mxu1  ;;  %v20486_v13 = vmax.f32 %v10006_v25, 0.0 }
 0x6de   :  { %v10263_v22 = vadd.f32 %v10262_v1, %v10200_v9  ;;  %v20482_v39 = vmax.f32 %v10004_v15, 0.0  ;;  %v10130_v32 = vadd.f32 %v10129_v16, %v20469_v62  ;;  %v10005_v31 = vadd.f32 %v20358_v51, %v9741_v40 }
 0x6df   :  { %v20493_v20 = vmax.f32 %v10007_v38, 0.0  ;;  %v10204_v5 = vmul.f32 %v20486_v13, %v20486_v13 }
 0x6e0   :  { %v10131_v3 = vadd.f32 %v10130_v32, %v20482_v39  ;;  %v10202_v26 = vmul.f32 %v20482_v39, %v20482_v39  ;;  %v10264_v27 = vadd.f32 %v10263_v22, %v10201_v43  ;;  %v20491_v14 = vmax.f32 %v10005_v31, 0.0 }
 0x6e1   :  { %v10205_v7 = vmul.f32 %v20493_v20, %v20493_v20 }
 0x6e2   :  { %v10265_v8 = vadd.f32 %v10264_v27, %v10202_v26  ;;  %v10132_v58 = vadd.f32 %v10131_v3, %v20491_v14  ;;  %v10203_v12 = vmul.f32 %v20491_v14, %v20491_v14  ;;  %v14814_v23 = vpop.f32.mrb[24].mxu1 }
 0x6e3   :  { %v10010_v60 = vadd.f32 %v14814_v23, %v20358_v51  ;;  %v9754_v55 = vpop.f32.mrb[25].mxu1 }
 0x6e4   :  { %v10133_v17 = vadd.f32 %v10132_v58, %v20486_v13  ;;  %v10266_v45 = vadd.f32 %v10265_v8, %v10203_v12  ;;  %v10008_v6 = vadd.f32 %v20358_v51, %v9754_v55  ;;  %v14815_v47 = vpop.f32.mrb[26].mxu1 }
 0x6e5   :  { %v10011_v30 = vadd.f32 %v14815_v47, %v20358_v51  ;;  %v9757_v50 = vpop.f32.mrb[27].mxu1  ;;  %v20510_v21 = vmax.f32 %v10010_v60, 0.0 }
 0x6e6   :  { %v10267_v53 = vadd.f32 %v10266_v45, %v10204_v5  ;;  %v20506_v63 = vmax.f32 %v10008_v6, 0.0  ;;  %v10134_v61 = vadd.f32 %v10133_v17, %v20493_v20  ;;  %v10009_v37 = vadd.f32 %v20358_v51, %v9757_v50 }
 0x6e7   :  { %v20517_v16 = vmax.f32 %v10011_v30, 0.0  ;;  %v10208_v22 = vmul.f32 %v20510_v21, %v20510_v21 }
 0x6e8   :  { %v10135_v54 = vadd.f32 %v10134_v61, %v20506_v63  ;;  %v10206_v25 = vmul.f32 %v20506_v63, %v20506_v63  ;;  %v10268_v11 = vadd.f32 %v10267_v53, %v10205_v7  ;;  %v20515_v9 = vmax.f32 %v10009_v37, 0.0 }
 0x6e9   :  { %v10209_v27 = vmul.f32 %v20517_v16, %v20517_v16 }
 0x6ea   :  { %v10269_v1 = vadd.f32 %v10268_v11, %v10206_v25  ;;  %v10136_v15 = vadd.f32 %v10135_v54, %v20515_v9  ;;  %v10207_v29 = vmul.f32 %v20515_v9, %v20515_v9  ;;  %v14818_v43 = vpop.f32.mrb[28].mxu1 }
 0x6eb   :  { %v10014_v38 = vadd.f32 %v14818_v43, %v20358_v51  ;;  %v9770_v40 = vpop.f32.mrb[29].mxu1 }
 0x6ec   :  { %v10137_v32 = vadd.f32 %v10136_v15, %v20510_v21  ;;  %v10270_v31 = vadd.f32 %v10269_v1, %v10207_v29  ;;  %v10012_v3 = vadd.f32 %v20358_v51, %v9770_v40  ;;  %v14819_v26 = vpop.f32.mrb[30].mxu1 }
 0x6ed   :  { %v10015_v8 = vadd.f32 %v14819_v26, %v20358_v51  ;;  %v9773_v58 = vpop.f32.mrb[31].mxu1  ;;  %v20534_v5 = vmax.f32 %v10014_v38, 0.0 }
 0x6ee   :  { %v10271_v12 = vadd.f32 %v10270_v31, %v10208_v22  ;;  %v20530_v23 = vmax.f32 %v10012_v3, 0.0  ;;  %v10138_v60 = vadd.f32 %v10137_v32, %v20517_v16  ;;  %v10013_v55 = vadd.f32 %v20358_v51, %v9773_v58 }
 0x6ef   :  { %v20541_v7 = vmax.f32 %v10015_v8, 0.0  ;;  %v10212_v25 = vmul.f32 %v20534_v5, %v20534_v5 }
 0x6f0   :  { %v10139_v17 = vadd.f32 %v10138_v60, %v20530_v23  ;;  %v10210_v45 = vmul.f32 %v20530_v23, %v20530_v23  ;;  %v10272_v6 = vadd.f32 %v10271_v12, %v10209_v27  ;;  %v20539_v47 = vmax.f32 %v10013_v55, 0.0  ;;  %v20563_v27 = vld [vmem:[%s21899_s9] sm:$0xff]  }
 0x6f1   :  { %v10213_v43 = vmul.f32 %v20541_v7, %v20541_v7  ;;  %22632 = vst [vmem:[#allocation110_spill] sm:$0xff] %v20563_v27  ;;  %14884 = vmatprep.subr.bf16.mxu0 %v20563_v27 }
 0x6f2   :  { %v10273_v30 = vadd.f32 %v10272_v6, %v10210_v45  ;;  %v10140_v50 = vadd.f32 %v10139_v17, %v20539_v47  ;;  %v10211_v53 = vmul.f32 %v20539_v47, %v20539_v47  ;;  %v14822_v61 = vpop.f32.mrb[32].mxu1 }
 0x6f3   :  { %v10018_v37 = vadd.f32 %v14822_v61, %v20358_v51  ;;  %v9786_v54 = vpop.f32.mrb[33].mxu1 }
 0x6f4   :  { %v10141_v11 = vadd.f32 %v10140_v50, %v20534_v5  ;;  %v10274_v1 = vadd.f32 %v10273_v30, %v10211_v53  ;;  %v10016_v15 = vadd.f32 %v20358_v51, %v9786_v54  ;;  %v14823_v29 = vpop.f32.mrb[34].mxu1 }
 0x6f5   :  { %v10019_v38 = vadd.f32 %v14823_v29, %v20358_v51  ;;  %v9789_v40 = vpop.f32.mrb[35].mxu1  ;;  %v20558_v26 = vmax.f32 %v10018_v37, 0.0 }
 0x6f6   :  { %v10275_v22 = vadd.f32 %v10274_v1, %v10212_v25  ;;  %v20554_v32 = vmax.f32 %v10016_v15, 0.0  ;;  %v10142_v31 = vadd.f32 %v10141_v11, %v20541_v7  ;;  %v10017_v3 = vadd.f32 %v20358_v51, %v9789_v40 }
 0x6f7   :  { %22631 = vst [vmem:[#allocation108_spill] sm:$0xff] %v20558_v26  ;;  %v20570_v55 = vmax.f32 %v10019_v38, 0.0  ;;  %v10216_v61 = vmul.f32 %v20558_v26, %v20558_v26 }
 0x6f8   :  { %v10143_v8 = vadd.f32 %v10142_v31, %v20554_v32  ;;  %v10214_v58 = vmul.f32 %v20554_v32, %v20554_v32  ;;  %v10276_v12 = vadd.f32 %v10275_v22, %v10213_v43  ;;  %v20568_v60 = vmax.f32 %v10017_v3, 0.0 }
 0x6f9   :  { %22633 = vst [vmem:[#allocation109_spill] sm:$0xff] %v20570_v55  ;;  %v10217_v1 = vmul.f32 %v20570_v55, %v20570_v55 }
 0x6fa   :  { %v10277_v17 = vadd.f32 %v10276_v12, %v10214_v58  ;;  %v10144_v45 = vadd.f32 %v10143_v8, %v20568_v60  ;;  %v10215_v6 = vmul.f32 %v20568_v60, %v20568_v60  ;;  %v14826_v30 = vpop.f32.mrb[36].mxu1 }
 0x6fb   :  { %v10022_v50 = vadd.f32 %v14826_v30, %v20358_v51  ;;  %v9802_v53 = vpop.f32.mrb[37].mxu1 }
 0x6fc   :  { %v10145_v37 = vadd.f32 %v10144_v45, %v20558_v26  ;;  %v10278_v54 = vadd.f32 %v10277_v17, %v10215_v6  ;;  %v10020_v25 = vadd.f32 %v20358_v51, %v9802_v53  ;;  %v14827_v11 = vpop.f32.mrb[38].mxu1 }
 0x6fd   :  { %v10023_v15 = vadd.f32 %v14827_v11, %v20358_v51  ;;  %v9805_v29 = vpop.f32.mrb[39].mxu1  ;;  %v20588_v31 = vmax.f32 %v10022_v50, 0.0 }
 0x6fe   :  { %v10279_v43 = vadd.f32 %v10278_v54, %v10216_v61  ;;  %v20584_v38 = vmax.f32 %v10020_v25, 0.0  ;;  %v10146_v40 = vadd.f32 %v10145_v37, %v20570_v55  ;;  %v10021_v22 = vadd.f32 %v20358_v51, %v9805_v29 }
 0x6ff   :  { %22635 = vst [vmem:[#allocation112_spill] sm:$0xff] %v20588_v31  ;;  %v20595_v17 = vmax.f32 %v10023_v15, 0.0  ;;  %v10220_v37 = vmul.f32 %v20588_v31, %v20588_v31 }
 0x700   :  { %22634 = vst [vmem:[#allocation111_spill] sm:$0xff] %v20584_v38  ;;  %v10147_v3 = vadd.f32 %v10146_v40, %v20584_v38  ;;  %v10218_v8 = vmul.f32 %v20584_v38, %v20584_v38  ;;  %v10280_v58 = vadd.f32 %v10279_v43, %v10217_v1  ;;  %v20593_v12 = vmax.f32 %v10021_v22, 0.0 }
 0x701   :  { %22637 = vst [vmem:[#allocation113_spill] sm:$0xff] %v20595_v17  ;;  %v10221_v15 = vmul.f32 %v20595_v17, %v20595_v17 }
 0x702   :  { %22636 = vst [vmem:[#allocation114_spill] sm:$0xff] %v20593_v12  ;;  %v10281_v45 = vadd.f32 %v10280_v58, %v10218_v8  ;;  %v10148_v6 = vadd.f32 %v10147_v3, %v20593_v12  ;;  %v10219_v30 = vmul.f32 %v20593_v12, %v20593_v12  ;;  %v14830_v53 = vpop.f32.mrb[40].mxu1 }
 0x703   :  { %v10026_v50 = vadd.f32 %v14830_v53, %v20358_v51  ;;  %v9818_v61 = vpop.f32.mrb[41].mxu1 }
 0x704   :  { %v10149_v54 = vadd.f32 %v10148_v6, %v20588_v31  ;;  %v10282_v25 = vadd.f32 %v10281_v45, %v10219_v30  ;;  %v10024_v11 = vadd.f32 %v20358_v51, %v9818_v61  ;;  %v14831_v1 = vpop.f32.mrb[42].mxu1 }
 0x705   :  { %v10027_v29 = vadd.f32 %v14831_v1, %v20358_v51  ;;  %v9821_v43 = vpop.f32.mrb[43].mxu1  ;;  %v20612_v58 = vmax.f32 %v10026_v50, 0.0 }
 0x706   :  { %v10283_v40 = vadd.f32 %v10282_v25, %v10220_v37  ;;  %v20608_v22 = vmax.f32 %v10024_v11, 0.0  ;;  %v10150_v3 = vadd.f32 %v10149_v54, %v20595_v17  ;;  %v10025_v8 = vadd.f32 %v20358_v51, %v9821_v43 }
 0x707   :  { %22639 = vst [vmem:[#allocation116_spill] sm:$0xff] %v20612_v58  ;;  %v20619_v61 = vmax.f32 %v10027_v29, 0.0  ;;  %v10224_v43 = vmul.f32 %v20612_v58, %v20612_v58 }
 0x708   :  { %22638 = vst [vmem:[#allocation115_spill] sm:$0xff] %v20608_v22  ;;  %v10151_v45 = vadd.f32 %v10150_v3, %v20608_v22  ;;  %v10222_v6 = vmul.f32 %v20608_v22, %v20608_v22  ;;  %v10284_v30 = vadd.f32 %v10283_v40, %v10221_v15  ;;  %v20617_v53 = vmax.f32 %v10025_v8, 0.0 }
 0x709   :  { %22641 = vst [vmem:[#allocation117_spill] sm:$0xff] %v20619_v61  ;;  %v10225_v8 = vmul.f32 %v20619_v61, %v20619_v61 }
 0x70a   :  { %22640 = vst [vmem:[#allocation118_spill] sm:$0xff] %v20617_v53  ;;  %v10285_v1 = vadd.f32 %v10284_v30, %v10222_v6  ;;  %v10152_v37 = vadd.f32 %v10151_v45, %v20617_v53  ;;  %v10223_v54 = vmul.f32 %v20617_v53, %v20617_v53  ;;  %v14834_v25 = vpop.f32.mrb[44].mxu1 }
 0x70b   :  { %v10030_v50 = vadd.f32 %v14834_v25, %v20358_v51  ;;  %v9834_v11 = vpop.f32.mrb[45].mxu1 }
 0x70c   :  { %v10153_v3 = vadd.f32 %v10152_v37, %v20612_v58  ;;  %v10286_v15 = vadd.f32 %v10285_v1, %v10223_v54  ;;  %v10028_v40 = vadd.f32 %v20358_v51, %v9834_v11  ;;  %v14835_v29 = vpop.f32.mrb[46].mxu1 }
 0x70d   :  { %v10031_v45 = vadd.f32 %v14835_v29, %v20358_v51  ;;  %v9837_v6 = vpop.f32.mrb[47].mxu1  ;;  %v20636_v27 = vmax.f32 %v10030_v50, 0.0 }
 0x70e   :  { %v10287_v30 = vadd.f32 %v10286_v15, %v10224_v43  ;;  %v20632_v56 = vmax.f32 %v10028_v40, 0.0  ;;  %v10154_v25 = vadd.f32 %v10153_v3, %v20619_v61  ;;  %v10029_v48 = vadd.f32 %v20358_v51, %v9837_v6 }
 0x70f   :  { %22643 = vst [vmem:[#allocation120_spill] sm:$0xff] %v20636_v27  ;;  %v20643_v58 = vmax.f32 %v10031_v45, 0.0  ;;  %v10228_v6 = vmul.f32 %v20636_v27, %v20636_v27 }
 0x710   :  { %22642 = vst [vmem:[#allocation119_spill] sm:$0xff] %v20632_v56  ;;  %v10155_v1 = vadd.f32 %v10154_v25, %v20632_v56  ;;  %v10226_v37 = vmul.f32 %v20632_v56, %v20632_v56  ;;  %v10288_v54 = vadd.f32 %v10287_v30, %v10225_v8  ;;  %v20641_v11 = vmax.f32 %v10029_v48, 0.0 }
 0x711   :  { %22644 = vst [vmem:[#allocation122_spill] sm:$0xff] %v20643_v58  ;;  %v10229_v30 = vmul.f32 %v20643_v58, %v20643_v58 }
 0x712   :  { %v10289_v29 = vadd.f32 %v10288_v54, %v10226_v37  ;;  %v10156_v43 = vadd.f32 %v10155_v1, %v20641_v11  ;;  %v10227_v3 = vmul.f32 %v20641_v11, %v20641_v11  ;;  %v14838_v15 = vpop.f32.mrb[48].mxu1 }
 0x713   :  { %v10034_v50 = vadd.f32 %v14838_v15, %v20358_v51  ;;  %v9850_v40 = vpop.f32.mrb[49].mxu1 }
 0x714   :  { %v10157_v25 = vadd.f32 %v10156_v43, %v20636_v27  ;;  %v10290_v8 = vadd.f32 %v10289_v29, %v10227_v3  ;;  %v10032_v48 = vadd.f32 %v20358_v51, %v9850_v40  ;;  %v14839_v45 = vpop.f32.mrb[50].mxu1 }
 0x715   :  { %v10035_v1 = vadd.f32 %v14839_v45, %v20358_v51  ;;  %v9853_v37 = vpop.f32.mrb[51].mxu1  ;;  %v20660_v53 = vmax.f32 %v10034_v50, 0.0 }
 0x716   :  { %v10291_v54 = vadd.f32 %v10290_v8, %v10228_v6  ;;  %v20656_v56 = vmax.f32 %v10032_v48, 0.0  ;;  %v10158_v15 = vadd.f32 %v10157_v25, %v20643_v58  ;;  %v10033_v61 = vadd.f32 %v20358_v51, %v9853_v37 }
 0x717   :  { %v20667_v27 = vmax.f32 %v10035_v1, 0.0  ;;  %v10232_v37 = vmul.f32 %v20660_v53, %v20660_v53 }
 0x718   :  { %v10159_v29 = vadd.f32 %v10158_v15, %v20656_v56  ;;  %v10230_v43 = vmul.f32 %v20656_v56, %v20656_v56  ;;  %v10292_v3 = vadd.f32 %v10291_v54, %v10229_v30  ;;  %v20665_v40 = vmax.f32 %v10033_v61, 0.0 }
 0x719   :  { %v10233_v54 = vmul.f32 %v20667_v27, %v20667_v27 }
 0x71a   :  { %v10293_v45 = vadd.f32 %v10292_v3, %v10230_v43  ;;  %v10160_v6 = vadd.f32 %v10159_v29, %v20665_v40  ;;  %v10231_v25 = vmul.f32 %v20665_v40, %v20665_v40  ;;  %v14842_v8 = vpop.f32.mrb[52].mxu1 }
 0x71b   :  { %v10038_v50 = vadd.f32 %v14842_v8, %v20358_v51  ;;  %v9866_v48 = vpop.f32.mrb[53].mxu1 }
 0x71c   :  { %v10161_v15 = vadd.f32 %v10160_v6, %v20660_v53  ;;  %v10294_v30 = vadd.f32 %v10293_v45, %v10231_v25  ;;  %v10036_v61 = vadd.f32 %v20358_v51, %v9866_v48  ;;  %v14843_v1 = vpop.f32.mrb[54].mxu1 }
 0x71d   :  { %v10039_v29 = vadd.f32 %v14843_v1, %v20358_v51  ;;  %v9869_v43 = vpop.f32.mrb[55].mxu1  ;;  %v20684_v10 = vmax.f32 %v10038_v50, 0.0 }
 0x71e   :  { %v10295_v3 = vadd.f32 %v10294_v30, %v10232_v37  ;;  %v20680_v58 = vmax.f32 %v10036_v61, 0.0  ;;  %v10162_v8 = vadd.f32 %v10161_v15, %v20667_v27  ;;  %v10037_v22 = vadd.f32 %v20358_v51, %v9869_v43 }
 0x71f   :  { %22645 = vst [vmem:[#allocation121_spill] sm:$0xff] %v20684_v10  ;;  %v20691_v17 = vmax.f32 %v10039_v29, 0.0  ;;  %v10236_v43 = vmul.f32 %v20684_v10, %v20684_v10 }
 0x720   :  { %v10163_v45 = vadd.f32 %v10162_v8, %v20680_v58  ;;  %v10234_v6 = vmul.f32 %v20680_v58, %v20680_v58  ;;  %v10296_v25 = vadd.f32 %v10295_v3, %v10233_v54  ;;  %v20689_v48 = vmax.f32 %v10037_v22, 0.0 }
 0x721   :  { %22647 = vst [vmem:[#allocation124_spill] sm:$0xff] %v20691_v17  ;;  %v10237_v3 = vmul.f32 %v20691_v17, %v20691_v17 }
 0x722   :  { %22646 = vst [vmem:[#allocation123_spill] sm:$0xff] %v20689_v48  ;;  %v10297_v1 = vadd.f32 %v10296_v25, %v10234_v6  ;;  %v10164_v37 = vadd.f32 %v10163_v45, %v20689_v48  ;;  %v10235_v15 = vmul.f32 %v20689_v48, %v20689_v48  ;;  %v14846_v30 = vpop.f32.mrb[56].mxu1 }
 0x723   :  { %v10042_v50 = vadd.f32 %v14846_v30, %v20358_v51  ;;  %v9882_v61 = vpop.f32.mrb[57].mxu1 }
 0x724   :  { %v10165_v8 = vadd.f32 %v10164_v37, %v20684_v10  ;;  %v10298_v54 = vadd.f32 %v10297_v1, %v10235_v15  ;;  %v10040_v22 = vadd.f32 %v20358_v51, %v9882_v61  ;;  %v14847_v29 = vpop.f32.mrb[58].mxu1 }
 0x725   :  { %v10043_v45 = vadd.f32 %v14847_v29, %v20358_v51  ;;  %v9885_v6 = vpop.f32.mrb[59].mxu1  ;;  %v20708_v38 = vmax.f32 %v10042_v50, 0.0 }
 0x726   :  { %v10299_v25 = vadd.f32 %v10298_v54, %v10236_v43  ;;  %v20704_v31 = vmax.f32 %v10040_v22, 0.0  ;;  %v10166_v30 = vadd.f32 %v10165_v8, %v20691_v17  ;;  %v10041_v12 = vadd.f32 %v20358_v51, %v9885_v6 }
 0x727   :  { %22649 = vst [vmem:[#allocation125_spill] sm:$0xff] %v20708_v38  ;;  %v20715_v55 = vmax.f32 %v10043_v45, 0.0  ;;  %v10240_v6 = vmul.f32 %v20708_v38, %v20708_v38 }
 0x728   :  { %22648 = vst [vmem:[#allocation126_spill] sm:$0xff] %v20704_v31  ;;  %v10167_v1 = vadd.f32 %v10166_v30, %v20704_v31  ;;  %v10238_v37 = vmul.f32 %v20704_v31, %v20704_v31  ;;  %v10300_v15 = vadd.f32 %v10299_v25, %v10237_v3  ;;  %v20713_v61 = vmax.f32 %v10041_v12, 0.0 }
 0x729   :  { %22651 = vst [vmem:[#allocation128_spill] sm:$0xff] %v20715_v55  ;;  %v10241_v25 = vmul.f32 %v20715_v55, %v20715_v55 }
 0x72a   :  { %22650 = vst [vmem:[#allocation127_spill] sm:$0xff] %v20713_v61  ;;  %v10301_v29 = vadd.f32 %v10300_v15, %v10238_v37  ;;  %v10168_v43 = vadd.f32 %v10167_v1, %v20713_v61  ;;  %v10239_v8 = vmul.f32 %v20713_v61, %v20713_v61  ;;  %v14850_v54 = vpop.f32.mrb[60].mxu1 }
 0x72b   :  { %v10046_v50 = vadd.f32 %v14850_v54, %v20358_v51  ;;  %v9898_v22 = vpop.f32.mrb[61].mxu1 }
 0x72c   :  { %v10169_v30 = vadd.f32 %v10168_v43, %v20708_v38  ;;  %v10302_v3 = vadd.f32 %v10301_v29, %v10239_v8  ;;  %v10044_v12 = vadd.f32 %v20358_v51, %v9898_v22  ;;  %v14851_v45 = vpop.f32.mrb[62].mxu1 }
 0x72d   :  { %v10047_v1 = vadd.f32 %v14851_v45, %v20358_v51  ;;  %v9901_v37 = vpop.f32.mrb[63].mxu1  ;;  %v20732_v31 = vmax.f32 %v10046_v50, 0.0 }
 0x72e   :  { %v10303_v15 = vadd.f32 %v10302_v3, %v10240_v6  ;;  %v20728_v26 = vmax.f32 %v10044_v12, 0.0  ;;  %v10170_v54 = vadd.f32 %v10169_v30, %v20715_v55  ;;  %v10045_v61 = vadd.f32 %v20358_v51, %v9901_v37 }
 0x72f   :  { %22653 = vst [vmem:[#allocation129_spill] sm:$0xff] %v20732_v31  ;;  %v20739_v45 = vmax.f32 %v10047_v1, 0.0  ;;  %v10244_v51 = vmul.f32 %v20732_v31, %v20732_v31 }
 0x730   :  { %22652 = vst [vmem:[#allocation130_spill] sm:$0xff] %v20728_v26  ;;  %v10171_v29 = vadd.f32 %v10170_v54, %v20728_v26  ;;  %v10242_v43 = vmul.f32 %v20728_v26, %v20728_v26  ;;  %v10304_v8 = vadd.f32 %v10303_v15, %v10241_v25  ;;  %v20737_v22 = vmax.f32 %v10045_v61, 0.0 }
 0x731   :  { %22654 = vst [vmem:[#allocation131_spill] sm:$0xff] %v20739_v45  ;;  %v10245_v12 = vmul.f32 %v20739_v45, %v20739_v45 }
 0x732   :  { %v10305_v38 = vadd.f32 %v10304_v8, %v10242_v43  ;;  %v10172_v6 = vadd.f32 %v10171_v29, %v20737_v22  ;;  %v10243_v30 = vmul.f32 %v20737_v22, %v20737_v22 }
 0x734   :  { %v10173_v50 = vadd.f32 %v10172_v6, %v20732_v31  ;;  %v10306_v3 = vadd.f32 %v10305_v38, %v10243_v30 }
 0x736   :  { %v10174_v61 = vadd.f32 %v10173_v50, %v20739_v45  ;;  %v10307_v25 = vadd.f32 %v10306_v3, %v10244_v51  ;;  %v22671_v51 = vld [vmem:[#allocation118_spill] sm:$0xff] }
 0x738   :  { %v10175_v37 = vrot.slane %v10174_v61, 4  ;;  %v10308_v1 = vadd.f32 %v10307_v25, %v10245_v12 }
 0x73a   :  { %v10176_v15 = vadd.f32 %v10175_v37, %v10174_v61  ;;  %v10309_v54 = vrot.slane %v10308_v1, 4  ;;  %v22664_v61 = vld [vmem:[#allocation109_spill] sm:$0xff] }
 0x73c   :  { %v10177_v29 = vrot.slane %v10176_v15, 2  ;;  %v10310_v43 = vadd.f32 %v10309_v54, %v10308_v1  ;;  %v22669_v54 = vld [vmem:[#allocation259_spill] sm:$0xff] }
 0x73e   :  { %v10178_v8 = vadd.f32 %v10177_v29, %v10176_v15  ;;  %v10311_v26 = vrot.slane %v10310_v43, 2 }
 0x740   :  { %v10179_v55 = vrot.slane %v10178_v8, 1  ;;  %v10312_v17 = vadd.f32 %v10311_v26, %v10310_v43  ;;  %v22663_v26 = vld [vmem:[#allocation108_spill] sm:$0xff] }
 0x742   :  { %v10180_v10 = vadd.f32 %v10179_v55, %v10178_v8  ;;  %v10313_v48 = vrot.slane %v10312_v17, 1  ;;  %v22655_v8 = vld [vmem:[#allocation123_spill] sm:$0xff]  ;;  %v22666_v55 = vld [vmem:[#allocation114_spill] sm:$0xff] }
 0x744   :  { %v20750_v6 = vmul.f32 0.001953125, %v10180_v10  ;;  %v10314_v38 = vadd.f32 %v10313_v48, %v10312_v17  ;;  %v22665_v17 = vld [vmem:[#allocation111_spill] sm:$0xff]  ;;  %v22667_v10 = vld [vmem:[#allocation112_spill] sm:$0xff] }
 0x746   :  { %v10315_v30 = vmul.f32 0.001953125, %v10314_v38  ;;  %v10316_v50 = vmul.f32 %v20750_v6, %v20750_v6  ;;  %v10356_v37 = vsub.f32 %v22663_v26, %v20750_v6  ;;  %v10357_v25 = vsub.f32 %v22664_v61, %v20750_v6  ;;  %v22670_v61 = vld [vmem:[#allocation115_spill] sm:$0xff] }
 0x747   :  { %v10359_v43 = vsub.f32 %v22666_v55, %v20750_v6  ;;  %v10360_v29 = vsub.f32 %v22667_v10, %v20750_v6  ;;  %v10362_v31 = vsub.f32 %v22670_v61, %v20750_v6  ;;  %v10363_v45 = vsub.f32 %v22671_v51, %v20750_v6  ;;  %v22673_v55 = vld [vmem:[#allocation117_spill] sm:$0xff]  ;;  %v22674_v10 = vld [vmem:[#allocation119_spill] sm:$0xff] }
 0x748   :  { %v10317_v3 = vsub.f32 %v10315_v30, %v10316_v50  ;;  %v10320_v50 = vld [vmem:[%s21897_s7] sm:$0x1]  ;;  %v10365_v1 = vsub.f32 %v22673_v55, %v20750_v6  ;;  %v10366_v30 = vsub.f32 %v22674_v10, %v20750_v6  ;;  %v22677_v61 = vsub.f32 %v20737_v22, %v20750_v6 }
 0x749   :  { %v22680_v10 = vsub.f32 %v20368_v41, %v20750_v6  ;;  %v22684_v41 = vsub.f32 %v20395_v59, %v20750_v6  ;;  %v22688_v59 = vsub.f32 %v20419_v57, %v20750_v6  ;;  %v22692_v57 = vsub.f32 %v20443_v28, %v20750_v6 }
 0x74a   :  { %v10318_v12 = vadd.f32 1e-05, %v10317_v3  ;;  %v22696_v28 = vsub.f32 %v20467_v0, %v20750_v6  ;;  %v22700_v0 = vsub.f32 %v20491_v14, %v20750_v6  ;;  %v22704_v14 = vsub.f32 %v20515_v9, %v20750_v6 }
 0x74b   :  { %v22708_v9 = vsub.f32 %v20539_v47, %v20750_v6  ;;  %v22713_v47 = vsub.f32 %v20568_v60, %v20750_v6 }
 0x74c   :  { %15503 = vrsqrt.f32 %v10318_v12  ;;  %v10358_v12 = vsub.f32 %v22665_v17, %v20750_v6  ;;  %v22672_v17 = vld [vmem:[#allocation116_spill] sm:$0xff] }
 0x74d   :  { %v10364_v3 = vsub.f32 %v22672_v17, %v20750_v6  ;;  %v22679_v17 = vsub.f32 %v20363_v19, %v20750_v6  ;;  %v22683_v19 = vsub.f32 %v20386_v44, %v20750_v6  ;;  %v22687_v44 = vsub.f32 %v20410_v34, %v20750_v6 }
 0x74e   :  { %v22691_v34 = vsub.f32 %v20434_v49, %v20750_v6  ;;  %v22695_v49 = vsub.f32 %v20458_v33, %v20750_v6  ;;  %v22699_v33 = vsub.f32 %v20482_v39, %v20750_v6  ;;  %v22703_v39 = vsub.f32 %v20506_v63, %v20750_v6 }
 0x74f   :  { %v22707_v63 = vsub.f32 %v20530_v23, %v20750_v6  ;;  %v22711_v23 = vsub.f32 %v20554_v32, %v20750_v6 }
 0x756   :  { %v15504_v48 = vpop.eup %15503 }
 0x757   :  { %v10321_v15 = vmul.f32 %v15504_v48, %v10320_v50  ;;  %v22668_v48 = vld [vmem:[#allocation113_spill] sm:$0xff] }
 0x758   :  { %v10361_v50 = vsub.f32 %v22668_v48, %v20750_v6  ;;  %v22675_v48 = vld [vmem:[#allocation120_spill] sm:$0xff] }
 0x759   :  { %v20872_v26 = vrot.slane %v10321_v15, %v22669_v54  ;;  %v10368_v38 = vsub.f32 %v22675_v48, %v20750_v6  ;;  %v22676_v15 = vld [vmem:[#allocation122_spill] sm:$0xff] }
 0x75a   :  { %v10369_v54 = vsub.f32 %v22676_v15, %v20750_v6  ;;  %v22681_v15 = vsub.f32 %v20366_v24, %v20750_v6  ;;  %v22685_v24 = vsub.f32 %v20390_v4, %v20750_v6  ;;  %v22689_v4 = vsub.f32 %v20414_v52, %v20750_v6 }
 0x75b   :  { %v20892_v51 = vmul.f32 %v20872_v26, %v22677_v61  ;;  %v20898_v55 = vmul.f32 %v20872_v26, %v22679_v17  ;;  %v20904_v48 = vmul.f32 %v20872_v26, %v22680_v10  ;;  %v22682_v61 = vsub.f32 %v20370_v46, %v20750_v6 }
 0x75c   :  { %v10392_v22 = vmul.f32 %v20872_v26, %v22681_v15  ;;  %v20918_v17 = vmul.f32 %v20872_v26, %v22683_v19  ;;  %v20924_v10 = vmul.f32 %v20872_v26, %v22684_v41  ;;  %v10396_v15 = vmul.f32 %v20872_v26, %v22685_v24 }
 0x75d   :  { %22678 = vst [vmem:[#allocation132_spill] sm:$0xff] %v20892_v51  ;;  %v10393_v51 = vmul.f32 %v20872_v26, %v22682_v61  ;;  %v22686_v46 = vsub.f32 %v20397_v18, %v20750_v6  ;;  %v20938_v19 = vmul.f32 %v20872_v26, %v22687_v44  ;;  %v20944_v41 = vmul.f32 %v20872_v26, %v22688_v59 }
 0x75e   :  { %v10400_v24 = vmul.f32 %v20872_v26, %v22689_v4  ;;  %v22690_v18 = vsub.f32 %v20421_v42, %v20750_v6  ;;  %v20958_v44 = vmul.f32 %v20872_v26, %v22691_v34  ;;  %v20964_v59 = vmul.f32 %v20872_v26, %v22692_v57 }
 0x75f   :  { %v10397_v61 = vmul.f32 %v20872_v26, %v22686_v46  ;;  %v22693_v52 = vsub.f32 %v20438_v35, %v20750_v6  ;;  %v22694_v42 = vsub.f32 %v20445_v36, %v20750_v6  ;;  %v10406_v34 = vmul.f32 %v20872_v26, %v22695_v49 }
 0x760   :  { %v10401_v46 = vmul.f32 %v20872_v26, %v22690_v18  ;;  %v10407_v57 = vmul.f32 %v20872_v26, %v22696_v28  ;;  %v22697_v35 = vsub.f32 %v20462_v2, %v20750_v6  ;;  %v22698_v36 = vsub.f32 %v20469_v62, %v20750_v6 }
 0x761   :  { %v10404_v4 = vmul.f32 %v20872_v26, %v22693_v52  ;;  %v10405_v18 = vmul.f32 %v20872_v26, %v22694_v42  ;;  %v20994_v49 = vmul.f32 %v20872_v26, %v22699_v33  ;;  %v21000_v28 = vmul.f32 %v20872_v26, %v22700_v0 }
 0x762   :  { %v10408_v52 = vmul.f32 %v20872_v26, %v22697_v35  ;;  %v10409_v42 = vmul.f32 %v20872_v26, %v22698_v36  ;;  %v22701_v2 = vsub.f32 %v20486_v13, %v20750_v6  ;;  %v22702_v62 = vsub.f32 %v20493_v20, %v20750_v6 }
 0x763   :  { %v21014_v33 = vmul.f32 %v20872_v26, %v22703_v39  ;;  %v21020_v0 = vmul.f32 %v20872_v26, %v22704_v14  ;;  %v22705_v13 = vsub.f32 %v20510_v21, %v20750_v6  ;;  %v22706_v20 = vsub.f32 %v20517_v16, %v20750_v6 }
 0x764   :  { %v10412_v35 = vmul.f32 %v20872_v26, %v22701_v2  ;;  %v10413_v36 = vmul.f32 %v20872_v26, %v22702_v62  ;;  %v21034_v39 = vmul.f32 %v20872_v26, %v22707_v63  ;;  %v21040_v14 = vmul.f32 %v20872_v26, %v22708_v9 }
 0x765   :  { %v10416_v2 = vmul.f32 %v20872_v26, %v22705_v13  ;;  %v10417_v62 = vmul.f32 %v20872_v26, %v22706_v20  ;;  %v22709_v21 = vsub.f32 %v20534_v5, %v20750_v6  ;;  %v22710_v16 = vsub.f32 %v20541_v7, %v20750_v6 }
 0x766   :  { %v21054_v63 = vmul.f32 %v20872_v26, %v22711_v23  ;;  %v21060_v9 = vmul.f32 %v20872_v26, %v22713_v47  ;;  %v10424_v5 = vmul.f32 %v20872_v26, %v10356_v37  ;;  %v21065_v7 = vmul.f32 %v20872_v26, %v10358_v12 }
 0x767   :  { %v10420_v13 = vmul.f32 %v20872_v26, %v22709_v21  ;;  %v10421_v20 = vmul.f32 %v20872_v26, %v22710_v16  ;;  %v10425_v21 = vmul.f32 %v20872_v26, %v10357_v25  ;;  %v21068_v16 = vmul.f32 %v20872_v26, %v10359_v43 }
 0x768   :  { %22712 = vst [vmem:[#allocation134_spill] sm:$0xff] %v21054_v63  ;;  %v10428_v32 = vmul.f32 %v20872_v26, %v10360_v29  ;;  %v10429_v23 = vmul.f32 %v20872_v26, %v10361_v50  ;;  %v21073_v63 = vmul.f32 %v20872_v26, %v10362_v31  ;;  %v21076_v60 = vmul.f32 %v20872_v26, %v10363_v45 }
 0x769   :  { %v10432_v37 = vmul.f32 %v20872_v26, %v10364_v3  ;;  %v10433_v25 = vmul.f32 %v20872_v26, %v10365_v1  ;;  %v21081_v12 = vmul.f32 %v20872_v26, %v10366_v30  ;;  %v22716_v43 = vsub.f32 %v20641_v11, %v20750_v6 }
 0x76a   :  { %22714 = vst [vmem:[#allocation133_spill] sm:$0xff] %v21076_v60  ;;  %v10436_v50 = vmul.f32 %v20872_v26, %v10368_v38  ;;  %v10437_v31 = vmul.f32 %v20872_v26, %v10369_v54  ;;  %v22718_v45 = vsub.f32 %v20656_v56, %v20750_v6  ;;  %v22720_v1 = vsub.f32 %v20665_v40, %v20750_v6  ;;  %v21110_v54 = vld [vmem:[%s21898_s8] ss:$0 sm:$0xff] }
 0x76b   :  { %22715 = vst [vmem:[#allocation135_spill] sm:$0xff] %v21081_v12  ;;  %v21087_v29 = vmul.f32 %v20872_v26, %v22716_v43  ;;  %v22722_v11 = vsub.f32 %v20660_v53, %v20750_v6  ;;  %v22723_v56 = vsub.f32 %v20667_v27, %v20750_v6  ;;  %v22724_v40 = vsub.f32 %v20680_v58, %v20750_v6  ;;  %v22730_v27 = vld [vmem:[#allocation124_spill] sm:$0xff]  ;;  %v22732_v58 = vld [vmem:[#allocation126_spill] sm:$0xff]  ;;  %v22746_v60 = vld [vmem:[#allocation131_spill] sm:$0xff] }
 0x76c   :  { %v21095_v3 = vmul.f32 %v20872_v26, %v22718_v45  ;;  %v21101_v30 = vmul.f32 %v20872_v26, %v22720_v1  ;;  %v22726_v53 = vsub.f32 %v22655_v8, %v20750_v6  ;;  %v22728_v1 = vld [vmem:[#allocation121_spill] sm:$0xff]  ;;  %v22735_v8 = vld [vmem:[#allocation127_spill] sm:$0xff] }
 0x76d   :  { %22717 = vst [vmem:[#allocation136_spill] sm:$0xff] %v21087_v29  ;;  %v10440_v47 = vmul.f32 %v20872_v26, %v22722_v11  ;;  %v10441_v38 = vmul.f32 %v20872_v26, %v22723_v56  ;;  %v21120_v43 = vmul.f32 %v20872_v26, %v22724_v40  ;;  %v22729_v11 = vsub.f32 %v22728_v1, %v20750_v6  ;;  %v22738_v1 = vld [vmem:[#allocation125_spill] sm:$0xff] }
 0x76e   :  { %22719 = vst [vmem:[#allocation138_spill] sm:$0xff] %v21095_v3  ;;  %22721 = vst [vmem:[#allocation137_spill] sm:$0xff] %v21101_v30  ;;  %v21126_v45 = vmul.f32 %v20872_v26, %v22726_v53  ;;  %v22731_v56 = vsub.f32 %v22730_v27, %v20750_v6  ;;  %v22733_v40 = vsub.f32 %v22732_v58, %v20750_v6  ;;  %v22740_v27 = vld [vmem:[#allocation128_spill] sm:$0xff]  ;;  %v22742_v58 = vld [vmem:[#allocation130_spill] sm:$0xff] }
 0x76f   :  { %22725 = vst [vmem:[#allocation139_spill] sm:$0xff] %v21120_v43  ;;  %v10444_v30 = vmul.f32 %v20872_v26, %v22729_v11  ;;  %v22736_v53 = vsub.f32 %v22735_v8, %v20750_v6  ;;  %v22739_v11 = vsub.f32 %v22738_v1, %v20750_v6  ;;  %v22744_v8 = vld [vmem:[#allocation129_spill] sm:$0xff]  ;;  %v22747_v1 = vsub.f32 %v22746_v60, %v20750_v6 }
 0x770   :  { %22727 = vst [vmem:[#allocation44_spill] sm:$0xff] %v21126_v45  ;;  %v10445_v3 = vmul.f32 %v20872_v26, %v22731_v56  ;;  %v21140_v43 = vmul.f32 %v20872_v26, %v22733_v40  ;;  %v22741_v56 = vsub.f32 %v22740_v27, %v20750_v6  ;;  %v22743_v40 = vsub.f32 %v22742_v58, %v20750_v6 }
 0x771   :  { %v21146_v45 = vmul.f32 %v20872_v26, %v22736_v53  ;;  %v10448_v29 = vmul.f32 %v20872_v26, %v22739_v11  ;;  %v22745_v53 = vsub.f32 %v22744_v8, %v20750_v6  ;;  %v10453_v11 = vmul.f32 %v20872_v26, %v22747_v1 }
 0x772   :  { %22734 = vst [vmem:[#allocation46_spill] sm:$0xff] %v21140_v43  ;;  %v10449_v12 = vmul.f32 %v20872_v26, %v22741_v56  ;;  %v21160_v43 = vmul.f32 %v20872_v26, %v22743_v40  ;;  %v21171_v27 = vadd.f32 %v21110_v54, %v10392_v22  ;;  %v21174_v56 = vadd.f32 %v21110_v54, %v10393_v51 }
 0x773   :  { %22737 = vst [vmem:[#allocation45_spill] sm:$0xff] %v21146_v45  ;;  %v10452_v45 = vmul.f32 %v20872_v26, %v22745_v53  ;;  %v21177_v58 = vadd.f32 %v21110_v54, %v10396_v15  ;;  %v21180_v40 = vadd.f32 %v21110_v54, %v10397_v61  ;;  %v21183_v8 = vadd.f32 %v21110_v54, %v10400_v24 }
 0x774   :  { %v21186_v53 = vadd.f32 %v21110_v54, %v10401_v46  ;;  %v21189_v6 = vadd.f32 %v21110_v54, %v10404_v4  ;;  %v21192_v26 = vadd.f32 %v21110_v54, %v10405_v18  ;;  %v10477_v51 = vadd.f32 %v21110_v54, %v10406_v34 }
 0x775   :  { %v10478_v22 = vadd.f32 %v21110_v54, %v10407_v57  ;;  %v10479_v15 = vadd.f32 %v21110_v54, %v10408_v52  ;;  %v10480_v61 = vadd.f32 %v21110_v54, %v10409_v42  ;;  %v21199_v24 = vadd.f32 %v21110_v54, %v10412_v35 }
 0x776   :  { %v21202_v46 = vadd.f32 %v21110_v54, %v10413_v36  ;;  %v21205_v4 = vadd.f32 %v21110_v54, %v10416_v2  ;;  %v21208_v18 = vadd.f32 %v21110_v54, %v10417_v62  ;;  %v21211_v34 = vadd.f32 %v21110_v54, %v10420_v13 }
 0x777   :  { %v21214_v57 = vadd.f32 %v21110_v54, %v10421_v20  ;;  %v21217_v52 = vadd.f32 %v21110_v54, %v10424_v5  ;;  %v21220_v42 = vadd.f32 %v21110_v54, %v10425_v21  ;;  %v21223_v35 = vadd.f32 %v21110_v54, %v10428_v32 }
 0x778   :  { %v21226_v36 = vadd.f32 %v21110_v54, %v10429_v23  ;;  %v21229_v2 = vadd.f32 %v21110_v54, %v10432_v37  ;;  %v21232_v62 = vadd.f32 %v21110_v54, %v10433_v25  ;;  %v21235_v13 = vadd.f32 %v21110_v54, %v10436_v50 }
 0x779   :  { %v21238_v20 = vadd.f32 %v21110_v54, %v10437_v31  ;;  %v21241_v5 = vadd.f32 %v21110_v54, %v10440_v47  ;;  %v21244_v21 = vadd.f32 %v21110_v54, %v10441_v38  ;;  %v21247_v32 = vadd.f32 %v21110_v54, %v10444_v30 }
 0x77a   :  { %v21250_v23 = vadd.f32 %v21110_v54, %v10445_v3  ;;  %v21253_v60 = vadd.f32 %v21110_v54, %v10448_v29  ;;  %v21256_v37 = vadd.f32 %v21110_v54, %v10449_v12  ;;  %v21259_v25 = vadd.f32 %v21110_v54, %v10452_v45  ;;  %v15478_v3 = vld [vmem:[%s21899_s9 + $0x8] sm:$0xff]  }
 0x77b   :  { %v21262_v50 = vadd.f32 %v21110_v54, %v10453_v11  ;;  %v10533_v12 = vpack.c.bf16 %v10478_v22, %v10477_v51  ;;  %v10534_v47 = vpack.c.bf16 %v10480_v61, %v10479_v15  ;;  %v10536_v38 = vpack.c.bf16 %v21202_v46, %v21199_v24  ;;  %v22750_v51 = vld [vmem:[#allocation110_spill] sm:$0xff] }
 0x77c   :  { %22748 = vst [vmem:[#allocation47_spill] sm:$0xff] %v21259_v25  ;;  %v10481_v22 = vadd.f32 %v21110_v54, %v20994_v49  ;;  %v10482_v15 = vadd.f32 %v21110_v54, %v21000_v28  ;;  %v10486_v24 = vadd.f32 %v21110_v54, %v21020_v0  ;;  %v21308_v46 = vadd.f32 %v21110_v54, %v21034_v39  ;;  %v15479_v49 = vld [vmem:[%s21899_s9 + $0x10] sm:$0xff]  }
 0x77d   :  { %22749 = vst [vmem:[#allocation48_spill] sm:$0xff] %v21262_v50  ;;  %14868 = vmatprep.mubr.bf16.mxu0 %v10533_v12  ;;  %v10485_v12 = vadd.f32 %v21110_v54, %v21014_v33  ;;  %v21319_v28 = vadd.f32 %v21110_v54, %v20898_v55  ;;  %v21323_v33 = vadd.f32 %v21110_v54, %v20904_v48 }
 0x77e   :  { %14869 = vmatmul.mubr.bf16.vlgmr.msra.gmra.mrb[0].mxu0 %v10534_v47  ;;  %v21315_v47 = vadd.f32 %v21110_v54, %v21040_v14  ;;  %v21327_v0 = vadd.f32 %v21110_v54, %v20918_v17  ;;  %v10535_v39 = vpack.c.bf16 %v10482_v15, %v10481_v22  ;;  %v21331_v11 = vadd.f32 %v21110_v54, %v20924_v10  ;;  %v22751_v15 = vld [vmem:[#allocation134_spill] sm:$0xff] }
 0x77f   :  { %14885 = vmatpush3.bf16.msra.mxu0 %v22750_v51  ;;  %v10537_v51 = vpack.c.bf16 %v10486_v24, %v10485_v12  ;;  %v21335_v14 = vadd.f32 %v21110_v54, %v20938_v19  ;;  %v21343_v17 = vadd.f32 %v21110_v54, %v20944_v41  ;;  %v21347_v22 = vadd.f32 %v21110_v54, %v20958_v44  ;;  %v15480_v41 = vld [vmem:[%s21899_s9 + $0x18] sm:$0xff]  }
 0x780   :  { %14886 = vmatprep.subr.bf16.mxu0 %v15478_v3  ;;  %v10539_v55 = vpack.c.bf16 %v21315_v47, %v21308_v46  ;;  %14872 = vmatprep.mubr.bf16.mxu0 %v10535_v39  ;;  %v21353_v19 = vadd.f32 %v21110_v54, %v20964_v59  ;;  %v21357_v24 = vadd.f32 %v21110_v54, %v22751_v15  ;;  %v22752_v39 = vld [vmem:[#allocation133_spill] sm:$0xff]  ;;  %v22758_v10 = vld [vmem:[#allocation258_spill] sm:$0xff] }
 0x781   :  { %v21370_v59 = vadd.f32 %v21110_v54, %v21065_v7  ;;  %v21374_v46 = vadd.f32 %v21110_v54, %v21068_v16  ;;  %v21380_v47 = vadd.f32 %v21110_v54, %v21073_v63  ;;  %v21384_v15 = vadd.f32 %v21110_v54, %v22752_v39  ;;  %v22754_v63 = vld [vmem:[#allocation136_spill] sm:$0xff]  ;;  %v22755_v39 = vld [vmem:[#allocation138_spill] sm:$0xff]  ;;  %v22757_v16 = vld [vmem:[#allocation139_spill] sm:$0xff] }
 0x782   :  { %v22161_v7 = vmov 0.0   ;;  %v21397_v12 = vadd.f32 %v21110_v54, %v22754_v63  ;;  %v21401_v44 = vadd.f32 %v21110_v54, %v22755_v39  ;;  %v21411_v29 = vadd.f32 %v21110_v54, %v22757_v16  ;;  %v15481_v39 = vld [vmem:[%s21899_s9 + $0x20] sm:$0xff]   ;;  %v22761_v16 = vld [vmem:[#allocation45_spill] sm:$0xff] }
 0x783   :  { %14887 = vmatpush3.bf16.msra.mxu0 %v15478_v3  ;;  %v21366_v3 = vadd.f32 %v21110_v54, %v21060_v9  ;;  %v22753_v9 = vld [vmem:[#allocation135_spill] sm:$0xff]  ;;  %14980 = vmatprep.subr.bf16.mxu1 %v22161_v7  ;;  %v11407_v63 = vadd.s32 8, %v22758_v10  ;;  %v21429_v48 = vadd.f32 %v21110_v54, %v22761_v16  ;;  %v21435_v7 = vadd.f32 %v21110_v54, %v21160_v43 }
 0x784   :  { %14888 = vmatprep.subr.bf16.mxu0 %v15479_v49  ;;  %v21388_v61 = vadd.f32 %v21110_v54, %v22753_v9 }
 0x786   :  { %14873 = vmatmul.mubr.bf16.gmra.mrb[4].mxu0 %v10536_v38  ;;  %v22756_v38 = vld [vmem:[#allocation137_spill] sm:$0xff] }
 0x787   :  { %14889 = vmatpush3.bf16.msra.mxu0 %v15479_v49  ;;  %14876 = vmatprep.mubr.bf16.mxu0 %v10537_v51  ;;  %v21407_v30 = vadd.f32 %v21110_v54, %v22756_v38  ;;  %v22759_v51 = vld [vmem:[#allocation44_spill] sm:$0xff]  ;;  %v22760_v38 = vld [vmem:[#allocation46_spill] sm:$0xff] }
 0x788   :  { %14890 = vmatprep.subr.bf16.mxu0 %v15480_v41  ;;  %v21421_v9 = vadd.f32 %v21110_v54, %v22759_v51  ;;  %v21425_v31 = vadd.f32 %v21110_v54, %v22760_v38  ;;  %v22762_v49 = vld [vmem:[#allocation132_spill] sm:$0xff]  ;;  %v22763_v51 = vlaneseq }
 0x789   :  { %v21439_v45 = vadd.f32 %v21110_v54, %v22762_v49  ;;  %v15482_v54 = vld [vmem:[%s21899_s9 + $0x28] sm:$0xff]   ;;  %v22765_v49 = vmov 0.0  }
 0x78a   :  { %v11423_v25 = vand.u32 127, %v22763_v51  ;;  %v10551_v38 = vpack.c.bf16 %v21421_v9, %v21411_v29  ;;  %v10553_v16 = vpack.c.bf16 %v21429_v48, %v21425_v31  ;;  %v15486_v51 = vld [vmem:[%s21899_s9 + $0x88] sm:$0xff]   ;;  %14982 = vmatprep.mubr.msk.bf16.mxu1 %vm15550_vm3, %v22765_v49 }
 0x78b   :  { %14891 = vmatpush3.bf16.msra.mxu0 %v15480_v41  ;;  %v10555_v1 = vpack.c.bf16 %v21439_v45, %v21435_v7  ;;  %v22764_v41 = vpack.c.bf16 %v21208_v18, %v21205_v4  ;;  %v15484_v4 = vld [vmem:[%s21899_s9 + $0x38] sm:$0xff]   ;;  %v22766_v18 = vpack.c.bf16 %v21214_v57, %v21211_v34  ;;  %v22768_v34 = vpack.c.bf16 %v21174_v56, %v21171_v27 }
 0x78c   :  { %v21449_v50 = vsub.s32 %v11423_v25, %v22758_v10  ;;  %v21451_v43 = vsub.s32 %v11423_v25, %v11407_v63  ;;  %14892 = vmatprep.subr.bf16.mxu0 %v15481_v39  ;;  %v15483_v25 = vld [vmem:[%s21899_s9 + $0x30] sm:$0xff]   ;;  %v15549_v63 = vmov 1.0|1.0   ;;  %v22769_v57 = vpack.c.bf16 %v21331_v11, %v21327_v0  ;;  %v15489_v11 = vld [vmem:[%s21899_s9 + $0xa0] sm:$0xff]   ;;  %v15490_v0 = vld [vmem:[%s21899_s9 + $0xa8] sm:$0xff]  }
 0x78d   :  { %v22770_v27 = vpack.c.bf16 %v21180_v40, %v21177_v58  ;;  %v22771_v56 = vpack.c.bf16 %v21343_v17, %v21335_v14  ;;  %v22772_v58 = vpack.c.bf16 %v21186_v53, %v21183_v8  ;;  %v22773_v40 = vpack.c.bf16 %v21353_v19, %v21347_v22  ;;  %v15491_v14 = vld [vmem:[%s21899_s9 + $0xb0] sm:$0xff]   ;;  %v15492_v17 = vld [vmem:[%s21899_s9 + $0xb8] sm:$0xff]   ;;  %v15493_v22 = vld [vmem:[%s21899_s9 + $0xc0] sm:$0xff]  }
 0x78e   :  { %vm11528_vm0 = vcmp.eq.s32.totalorder %v21449_v50, 16  ;;  %vm11529_vm1 = vcmp.eq.s32.totalorder %v21451_v43, 16  ;;  %14877 = vmatmul.mubr.bf16.gmra.mrb[8].mxu0 %v22764_v41  ;;  %v22774_v8 = vpack.c.bf16 %v21192_v26, %v21189_v6  ;;  %v22775_v53 = vpack.c.bf16 %v21366_v3, %v21357_v24  ;;  %v15494_v19 = vld [vmem:[%s21899_s9 + $0xc8] sm:$0xff]   ;;  %v15495_v24 = vld [vmem:[%s21899_s9 + $0xd0] sm:$0xff]   ;;  %v15496_v3 = vld [vmem:[%s21899_s9 + $0xd8] sm:$0xff]  }
 0x78f   :  { %vm13805_vm2 = vmpackc.low %vm11529_vm1, %vm11528_vm0  ;;  %14893 = vmatpush3.bf16.msra.mxu0 %v15481_v39  ;;  %14880 = vmatprep.mubr.bf16.mxu0 %v10539_v55  ;;  %v22767_v55 = vpack.c.bf16 %v21323_v33, %v21319_v28  ;;  %v15485_v39 = vld [vmem:[%s21899_s9 + $0x80] sm:$0xff]   ;;  %v15487_v28 = vld [vmem:[%s21899_s9 + $0x90] sm:$0xff]   ;;  %v22776_v6 = vpack.c.bf16 %v21220_v42, %v21217_v52  ;;  %v22777_v26 = vpack.c.bf16 %v21374_v46, %v21370_v59  ;;  %vm11440_vm4 = vcmp.eq.s32.totalorder %v21449_v50, 0 }
 0x790   :  { %14894 = vmatprep.subr.bf16.mxu0 %v15482_v54  ;;  %14981 = vmatpush3.bf16.msk.msra.mxu1 %vm13805_vm2, %v15549_v63  ;;  %v15488_v33 = vld [vmem:[%s21899_s9 + $0x98] sm:$0xff]   ;;  %v22778_v52 = vpack.c.bf16 %v21226_v36, %v21223_v35  ;;  %v22779_v42 = vpack.c.bf16 %v21384_v15, %v21380_v47  ;;  %v15497_v59 = vld [vmem:[%s21899_s9 + $0xe0] sm:$0xff]   ;;  %v15498_v46 = vld [vmem:[%s21899_s9 + $0xe8] sm:$0xff]   ;;  %v22780_v35 = vpack.c.bf16 %v21232_v62, %v21229_v2  ;;  %vm11441_vm5 = vcmp.eq.s32.totalorder %v21451_v43, 0 }
 0x791   :  { %14986 = vmatprep.subr.bf16.mxu1 %v22765_v49  ;;  %v22781_v36 = vpack.c.bf16 %v21397_v12, %v21388_v61  ;;  %v15499_v47 = vld [vmem:[%s21899_s9 + $0xf0] sm:$0xff]   ;;  %v15500_v15 = vld [vmem:[%s21899_s9 + $0xf8] sm:$0xff]   ;;  %v22782_v2 = vpack.c.bf16 %v21238_v20, %v21235_v13  ;;  %v22783_v62 = vpack.c.bf16 %v21407_v30, %v21401_v44  ;;  %v22784_v61 = vpack.c.bf16 %v21244_v21, %v21241_v5  ;;  %v22787_v20 = vld [vmem:[#allocation48_spill] sm:$0xff] }
 0x792   :  { %v22785_v12 = vpack.c.bf16 %v21250_v23, %v21247_v32  ;;  %v22786_v13 = vpack.c.bf16 %v21256_v37, %v21253_v60  ;;  %v22788_v5 = vld [vmem:[#allocation47_spill] sm:$0xff]  ;;  %vm13807_vm6 = vmpackc.low %vm11441_vm5, %vm11440_vm4  ;;  %vm11682_vm7 = vcmp.eq.s32.totalorder %v21449_v50, 32  ;;  %vm11683_vm8 = vcmp.eq.s32.totalorder %v21451_v43, 32 }
 0x793   :  { %14895 = vmatpush3.bf16.msra.mxu0 %v15482_v54  ;;  %v22789_v21 = vpack.c.bf16 %v22787_v20, %v22788_v5  ;;  %v21597_v32 = vld [vmem:[%s21900_s10] ss:$0 sm:$0xff]  ;;  %vm13811_vm9 = vmpackc.low %vm11683_vm8, %vm11682_vm7  ;;  %vm11797_vm10 = vcmp.eq.s32.totalorder %v21449_v50, 48  ;;  %vm11798_vm11 = vcmp.eq.s32.totalorder %v21451_v43, 48  ;;  %vm11912_vm13 = vcmp.eq.s32.totalorder %v21449_v50, 64 }
 0x794   :  { %14896 = vmatprep.subr.bf16.mxu0 %v15483_v25  ;;  %vm13815_vm12 = vmpackc.low %vm11798_vm11, %vm11797_vm10  ;;  %vm11913_vm14 = vcmp.eq.s32.totalorder %v21451_v43, 64  ;;  %vm12027_vm0 = vcmp.eq.s32.totalorder %v21449_v50, 80  ;;  %vm12028_vm1 = vcmp.eq.s32.totalorder %v21451_v43, 80  ;;  %vm12142_vm4 = vcmp.eq.s32.totalorder %v21449_v50, 96 }
 0x795   :  { %vm13819_vm15 = vmpackc.low %vm11913_vm14, %vm11912_vm13  ;;  %vm12143_vm5 = vcmp.eq.s32.totalorder %v21451_v43, 96  ;;  %vm12257_vm7 = vcmp.eq.s32.totalorder %v21449_v50, 112  ;;  %vm12258_vm8 = vcmp.eq.s32.totalorder %v21451_v43, 112 }
 0x796   :  { %14881 = vmatmul.mubr.bf16.gmra.mrb[12].mxu0 %v22766_v18  ;;  %vm13823_vm2 = vmpackc.low %vm12028_vm1, %vm12027_vm0 }
 0x797   :  { %14897 = vmatpush3.bf16.msra.mxu0 %v15483_v25  ;;  %14900 = vmatprep.mubr.bf16.mxu0 %v22767_v55 }
 0x798   :  { %14898 = vmatprep.subr.bf16.mxu0 %v15484_v4 }
 0x79b   :  { %14899 = vmatpush3.bf16.msra.mxu0 %v15484_v4 }
 0x79c   :  { %14916 = vmatprep.subr.bf16.mxu0 %v15485_v39 }
 0x79e   :  { %14901 = vmatmul.mubr.bf16.vlgmr.msra.gmra.mrb[0].mxu0 %v22768_v34 }
 0x79f   :  { %14917 = vmatpush3.bf16.msra.mxu0 %v15485_v39  ;;  %14904 = vmatprep.mubr.bf16.mxu0 %v22769_v57 }
 0x7a0   :  { %14918 = vmatprep.subr.bf16.mxu0 %v15486_v51 }
 0x7a3   :  { %14919 = vmatpush3.bf16.msra.mxu0 %v15486_v51 }
 0x7a4   :  { %14920 = vmatprep.subr.bf16.mxu0 %v15487_v28 }
 0x7a6   :  { %14905 = vmatmul.mubr.bf16.gmra.mrb[4].mxu0 %v22770_v27 }
 0x7a7   :  { %14921 = vmatpush3.bf16.msra.mxu0 %v15487_v28  ;;  %14908 = vmatprep.mubr.bf16.mxu0 %v22771_v56 }
 0x7a8   :  { %14922 = vmatprep.subr.bf16.mxu0 %v15488_v33 }
 0x7ab   :  { %14923 = vmatpush3.bf16.msra.mxu0 %v15488_v33 }
 0x7ac   :  { %14924 = vmatprep.subr.bf16.mxu0 %v15489_v11 }
 0x7ae   :  { %14909 = vmatmul.mubr.bf16.gmra.mrb[8].mxu0 %v22772_v58 }
 0x7af   :  { %14925 = vmatpush3.bf16.msra.mxu0 %v15489_v11  ;;  %14912 = vmatprep.mubr.bf16.mxu0 %v22773_v40 }
 0x7b0   :  { %14926 = vmatprep.subr.bf16.mxu0 %v15490_v0 }
 0x7b3   :  { %14927 = vmatpush3.bf16.msra.mxu0 %v15490_v0 }
 0x7b4   :  { %14928 = vmatprep.subr.bf16.mxu0 %v15491_v14 }
 0x7b6   :  { %14913 = vmatmul.mubr.bf16.gmra.mrb[12].mxu0 %v22774_v8 }
 0x7b7   :  { %14929 = vmatpush3.bf16.msra.mxu0 %v15491_v14  ;;  %14932 = vmatprep.mubr.bf16.mxu0 %v22775_v53 }
 0x7b8   :  { %14930 = vmatprep.subr.bf16.mxu0 %v15492_v17 }
 0x7bb   :  { %14931 = vmatpush3.bf16.msra.mxu0 %v15492_v17 }
 0x7bc   :  { %14948 = vmatprep.subr.bf16.mxu0 %v15493_v22 }
 0x7be   :  { %14933 = vmatmul.mubr.bf16.vlgmr.msra.gmra.mrb[0].mxu0 %v22776_v6 }
 0x7bf   :  { %14949 = vmatpush3.bf16.msra.mxu0 %v15493_v22  ;;  %14936 = vmatprep.mubr.bf16.mxu0 %v22777_v26 }
 0x7c0   :  { %14950 = vmatprep.subr.bf16.mxu0 %v15494_v19 }
 0x7c3   :  { %14951 = vmatpush3.bf16.msra.mxu0 %v15494_v19 }
 0x7c4   :  { %14952 = vmatprep.subr.bf16.mxu0 %v15495_v24 }
 0x7c6   :  { %14937 = vmatmul.mubr.bf16.gmra.mrb[4].mxu0 %v22778_v52 }
 0x7c7   :  { %14953 = vmatpush3.bf16.msra.mxu0 %v15495_v24  ;;  %14940 = vmatprep.mubr.bf16.mxu0 %v22779_v42 }
 0x7c8   :  { %14954 = vmatprep.subr.bf16.mxu0 %v15496_v3 }
 0x7cb   :  { %14955 = vmatpush3.bf16.msra.mxu0 %v15496_v3 }
 0x7cc   :  { %14956 = vmatprep.subr.bf16.mxu0 %v15497_v59 }
 0x7ce   :  { %14941 = vmatmul.mubr.bf16.gmra.mrb[8].mxu0 %v22780_v35 }
 0x7cf   :  { %14957 = vmatpush3.bf16.msra.mxu0 %v15497_v59  ;;  %14944 = vmatprep.mubr.bf16.mxu0 %v22781_v36 }
 0x7d0   :  { %14958 = vmatprep.subr.bf16.mxu0 %v15498_v46 }
 0x7d3   :  { %14959 = vmatpush3.bf16.msra.mxu0 %v15498_v46 }
 0x7d4   :  { %14960 = vmatprep.subr.bf16.mxu0 %v15499_v47 }
 0x7d6   :  { %14945 = vmatmul.mubr.bf16.gmra.mrb[12].mxu0 %v22782_v2 }
 0x7d7   :  { %14961 = vmatpush3.bf16.msra.mxu0 %v15499_v47  ;;  %14964 = vmatprep.mubr.bf16.mxu0 %v22783_v62 }
 0x7d8   :  { %14962 = vmatprep.subr.bf16.mxu0 %v15500_v15 }
 0x7db   :  { %14963 = vmatpush3.bf16.msra.mxu0 %v15500_v15 }
 0x7de   :  { %14965 = vmatmul.mubr.bf16.vlgmr.msra.gmra.mrb[0].mxu0 %v22784_v61 }
 0x7df   :  { %14968 = vmatprep.mubr.bf16.mxu0 %v10551_v38 }
 0x7e6   :  { %14969 = vmatmul.mubr.bf16.gmra.mrb[4].mxu0 %v22785_v12 }
 0x7e7   :  { %14972 = vmatprep.mubr.bf16.mxu0 %v10553_v16 }
 0x7ee   :  { %14973 = vmatmul.mubr.bf16.gmra.mrb[8].mxu0 %v22786_v13 }
 0x7ef   :  { %14976 = vmatprep.mubr.bf16.mxu0 %v10555_v1 }
 0x7f6   :  { %14977 = vmatmul.mubr.bf16.gmra.mrb[12].mxu0 %v22789_v21 }
 0x8b1   :  { %v14966_v23 = vpop.f32.mrb[0].mxu0 }
 0x8b2   :  { %v11154_v60 = vpop.f32.mrb[1].mxu0  ;;  %v11242_v37 = vadd.f32 %v14966_v23, %v21597_v32 }
 0x8b3   :  { %v11240_v31 = vadd.f32 %v21597_v32, %v11154_v60  ;;  %v14967_v30 = vpop.f32.mrb[2].mxu0 }
 0x8b4   :  { %v11243_v29 = vadd.f32 %v14967_v30, %v21597_v32  ;;  %v11157_v45 = vpop.f32.mrb[3].mxu0  ;;  %v21605_v44 = vmax.f32 %v11242_v37, 0.0 }
 0x8b5   :  { %v21602_v1 = vmax.f32 %v11240_v31, 0.0  ;;  %v11241_v48 = vadd.f32 %v21597_v32, %v11157_v45 }
 0x8b6   :  { %v21609_v9 = vmax.f32 %v11243_v29, 0.0  ;;  %v11296_v18 = vmul.f32 %v21605_v44, %v21605_v44 }
 0x8b7   :  { %v21607_v7 = vmax.f32 %v11241_v48, 0.0  ;;  %v11294_v38 = vmul.f32 %v21602_v1, %v21602_v1 }
 0x8b8   :  { %v11297_v57 = vmul.f32 %v21609_v9, %v21609_v9 }
 0x8b9   :  { %v11272_v16 = vadd.f32 %v21607_v7, %v21602_v1  ;;  %v11295_v54 = vmul.f32 %v21607_v7, %v21607_v7  ;;  %v14970_v41 = vpop.f32.mrb[4].mxu0 }
 0x8ba   :  { %v11246_v25 = vadd.f32 %v14970_v41, %v21597_v32  ;;  %v11170_v4 = vpop.f32.mrb[5].mxu0 }
 0x8bb   :  { %v11273_v55 = vadd.f32 %v11272_v16, %v21605_v44  ;;  %v11310_v39 = vadd.f32 %v11295_v54, %v11294_v38  ;;  %v11244_v51 = vadd.f32 %v21597_v32, %v11170_v4  ;;  %v14971_v34 = vpop.f32.mrb[6].mxu0 }
 0x8bc   :  { %v11247_v28 = vadd.f32 %v14971_v34, %v21597_v32  ;;  %v11173_v33 = vpop.f32.mrb[7].mxu0  ;;  %v21629_v58 = vmax.f32 %v11246_v25, 0.0 }
 0x8bd   :  { %v11311_v27 = vadd.f32 %v11310_v39, %v11296_v18  ;;  %v21625_v56 = vmax.f32 %v11244_v51, 0.0  ;;  %v11274_v11 = vadd.f32 %v11273_v55, %v21609_v9  ;;  %v11245_v0 = vadd.f32 %v21597_v32, %v11173_v33 }
 0x8be   :  { %v21636_v53 = vmax.f32 %v11247_v28, 0.0  ;;  %v11300_v52 = vmul.f32 %v21629_v58, %v21629_v58 }
 0x8bf   :  { %v11275_v40 = vadd.f32 %v11274_v11, %v21625_v56  ;;  %v11298_v14 = vmul.f32 %v21625_v56, %v21625_v56  ;;  %v11312_v17 = vadd.f32 %v11311_v27, %v11297_v57  ;;  %v21634_v8 = vmax.f32 %v11245_v0, 0.0 }
 0x8c0   :  { %v11301_v36 = vmul.f32 %v21636_v53, %v21636_v53 }
 0x8c1   :  { %v11313_v22 = vadd.f32 %v11312_v17, %v11298_v14  ;;  %v11276_v19 = vadd.f32 %v11275_v40, %v21634_v8  ;;  %v11299_v6 = vmul.f32 %v21634_v8, %v21634_v8  ;;  %v14974_v26 = vpop.f32.mrb[8].mxu0 }
 0x8c2   :  { %v11250_v24 = vadd.f32 %v14974_v26, %v21597_v32  ;;  %v11186_v3 = vpop.f32.mrb[9].mxu0 }
 0x8c3   :  { %v11277_v42 = vadd.f32 %v11276_v19, %v21629_v58  ;;  %v11314_v59 = vadd.f32 %v11313_v22, %v11299_v6  ;;  %v11248_v46 = vadd.f32 %v21597_v32, %v11186_v3  ;;  %v14975_v35 = vpop.f32.mrb[10].mxu0 }
 0x8c4   :  { %v11251_v47 = vadd.f32 %v14975_v35, %v21597_v32  ;;  %v11189_v15 = vpop.f32.mrb[11].mxu0  ;;  %v21653_v13 = vmax.f32 %v11250_v24, 0.0 }
 0x8c5   :  { %v11315_v2 = vadd.f32 %v11314_v59, %v11300_v52  ;;  %v21649_v62 = vmax.f32 %v11248_v46, 0.0  ;;  %v11278_v61 = vadd.f32 %v11277_v42, %v21636_v53  ;;  %v11249_v12 = vadd.f32 %v21597_v32, %v11189_v15 }
 0x8c6   :  { %v21660_v60 = vmax.f32 %v11251_v47, 0.0  ;;  %v11304_v38 = vmul.f32 %v21653_v13, %v21653_v13 }
 0x8c7   :  { %v11279_v20 = vadd.f32 %v11278_v61, %v21649_v62  ;;  %v11302_v5 = vmul.f32 %v21649_v62, %v21649_v62  ;;  %v11316_v21 = vadd.f32 %v11315_v2, %v11301_v36  ;;  %v21658_v23 = vmax.f32 %v11249_v12, 0.0 }
 0x8c8   :  { %v11305_v4 = vmul.f32 %v21660_v60, %v21660_v60 }
 0x8c9   :  { %v11317_v37 = vadd.f32 %v11316_v21, %v11302_v5  ;;  %v11280_v31 = vadd.f32 %v11279_v20, %v21658_v23  ;;  %v11303_v30 = vmul.f32 %v21658_v23, %v21658_v23  ;;  %v14978_v29 = vpop.f32.mrb[12].mxu0 }
 0x8ca   :  { %v11254_v45 = vadd.f32 %v14978_v29, %v21597_v32  ;;  %v11202_v48 = vpop.f32.mrb[13].mxu0 }
 0x8cb   :  { %v11281_v16 = vadd.f32 %v11280_v31, %v21653_v13  ;;  %v11318_v54 = vadd.f32 %v11317_v37, %v11303_v30  ;;  %v11252_v41 = vadd.f32 %v21597_v32, %v11202_v48  ;;  %v14979_v25 = vpop.f32.mrb[14].mxu0 }
 0x8cc   :  { %v11255_v18 = vadd.f32 %v14979_v25, %v21597_v32  ;;  %v11205_v55 = vpop.f32.mrb[15].mxu0  ;;  %v21677_v28 = vmax.f32 %v11254_v45, 0.0 }
 0x8cd   :  { %v11319_v39 = vadd.f32 %v11318_v54, %v11304_v38  ;;  %v21673_v51 = vmax.f32 %v11252_v41, 0.0  ;;  %v11282_v34 = vadd.f32 %v11281_v16, %v21660_v60  ;;  %v11253_v57 = vadd.f32 %v21597_v32, %v11205_v55 }
 0x8ce   :  { %v21682_v14 = vmax.f32 %v11255_v18, 0.0  ;;  %v11308_v19 = vmul.f32 %v21677_v28, %v21677_v28  ;;  %v22790_v18 = vld [vmem:[#allocation259_spill] sm:$0xff] }
 0x8cf   :  { %v11283_v33 = vadd.f32 %v11282_v34, %v21673_v51  ;;  %v11306_v27 = vmul.f32 %v21673_v51, %v21673_v51  ;;  %v11320_v11 = vadd.f32 %v11319_v39, %v11305_v4  ;;  %v11269_v0 = vmax.f32 %v11253_v57, 0.0 }
 0x8d0   :  { %v11309_v26 = vmul.f32 %v21682_v14, %v21682_v14 }
 0x8d1   :  { %v11321_v40 = vadd.f32 %v11320_v11, %v11306_v27  ;;  %v11284_v17 = vadd.f32 %v11283_v33, %v11269_v0  ;;  %v11307_v22 = vmul.f32 %v11269_v0, %v11269_v0 }
 0x8d3   :  { %v11285_v6 = vadd.f32 %v11284_v17, %v21677_v28  ;;  %v11322_v32 = vadd.f32 %v11321_v40, %v11307_v22 }
 0x8d5   :  { %v11286_v24 = vadd.f32 %v11285_v6, %v21682_v14  ;;  %v11323_v3 = vadd.f32 %v11322_v32, %v11308_v19 }
 0x8d7   :  { %v11287_v52 = vrot.slane %v11286_v24, 4  ;;  %v11324_v42 = vadd.f32 %v11323_v3, %v11309_v26 }
 0x8d9   :  { %v11288_v59 = vadd.f32 %v11287_v52, %v11286_v24  ;;  %v11325_v46 = vrot.slane %v11324_v42, 4 }
 0x8db   :  { %v11289_v35 = vrot.slane %v11288_v59, 2  ;;  %v11326_v36 = vadd.f32 %v11325_v46, %v11324_v42 }
 0x8dd   :  { %v11290_v47 = vadd.f32 %v11289_v35, %v11288_v59  ;;  %v11327_v15 = vrot.slane %v11326_v36, 2 }
 0x8df   :  { %v11291_v2 = vrot.slane %v11290_v47, 1  ;;  %v11328_v61 = vadd.f32 %v11327_v15, %v11326_v36 }
 0x8e1   :  { %v11292_v12 = vadd.f32 %v11291_v2, %v11290_v47  ;;  %v11329_v20 = vrot.slane %v11328_v61, 1 }
 0x8e3   :  { %v21690_v5 = vmul.f32 0.0078125, %v11292_v12  ;;  %v11330_v21 = vadd.f32 %v11329_v20, %v11328_v61 }
 0x8e5   :  { %v11331_v37 = vmul.f32 0.0078125, %v11330_v21  ;;  %v11332_v31 = vmul.f32 %v21690_v5, %v21690_v5  ;;  %v11351_v30 = vsub.f32 %v11269_v0, %v21690_v5  ;;  %v11340_v29 = vsub.f32 %v21605_v44, %v21690_v5 }
 0x8e6   :  { %v11341_v45 = vsub.f32 %v21609_v9, %v21690_v5  ;;  %v11338_v48 = vsub.f32 %v21602_v1, %v21690_v5  ;;  %v11339_v38 = vsub.f32 %v21607_v7, %v21690_v5  ;;  %v11342_v16 = vsub.f32 %v21625_v56, %v21690_v5 }
 0x8e7   :  { %v11333_v54 = vsub.f32 %v11331_v37, %v11332_v31  ;;  %v11343_v41 = vsub.f32 %v21634_v8, %v21690_v5  ;;  %v11344_v25 = vsub.f32 %v21629_v58, %v21690_v5  ;;  %v11345_v44 = vsub.f32 %v21636_v53, %v21690_v5 }
 0x8e8   :  { %v11346_v9 = vsub.f32 %v21649_v62, %v21690_v5  ;;  %v11347_v1 = vsub.f32 %v21658_v23, %v21690_v5  ;;  %v11348_v7 = vsub.f32 %v21653_v13, %v21690_v5  ;;  %v11349_v56 = vsub.f32 %v21660_v60, %v21690_v5  ;;  %v11336_v62 = vld [vmem:[%s21901_s11] sm:$0x1] }
 0x8e9   :  { %v11334_v4 = vadd.f32 1e-05, %v11333_v54  ;;  %v11350_v8 = vsub.f32 %v21673_v51, %v21690_v5  ;;  %v11352_v58 = vsub.f32 %v21677_v28, %v21690_v5  ;;  %v11353_v53 = vsub.f32 %v21682_v14, %v21690_v5  ;;  %v13800_v60 = vld [vmem:[%s21902_s12] ss:$0 sm:$0xff] }
 0x8eb   :  { %15505 = vrsqrt.f32 %v11334_v4 }
 0x8f5   :  { %v15506_v23 = vpop.eup %15505 }
 0x8f6   :  { %v11337_v13 = vmul.f32 %v15506_v23, %v11336_v62 }
 0x8f8   :  { %v11357_v55 = vrot.slane %v11337_v13, %v22790_v18 }
 0x8fa   :  { %v11371_v39 = vmul.f32 %v11357_v55, %v11351_v30  ;;  %v11360_v51 = vmul.f32 %v11357_v55, %v11340_v29  ;;  %v11361_v34 = vmul.f32 %v11357_v55, %v11341_v45  ;;  %v11358_v57 = vmul.f32 %v11357_v55, %v11338_v48 }
 0x8fb   :  { %v11359_v28 = vmul.f32 %v11357_v55, %v11339_v38  ;;  %v11362_v33 = vmul.f32 %v11357_v55, %v11342_v16  ;;  %v11363_v27 = vmul.f32 %v11357_v55, %v11343_v41  ;;  %v11364_v11 = vmul.f32 %v11357_v55, %v11344_v25 }
 0x8fc   :  { %v11383_v0 = vadd.f32 %v13800_v60, %v11360_v51  ;;  %v11384_v40 = vadd.f32 %v13800_v60, %v11361_v34  ;;  %v11381_v14 = vadd.f32 %v13800_v60, %v11358_v57  ;;  %v11365_v17 = vmul.f32 %v11357_v55, %v11345_v44 }
 0x8fd   :  { %v11382_v22 = vadd.f32 %v13800_v60, %v11359_v28  ;;  %v11385_v19 = vadd.f32 %v13800_v60, %v11362_v33  ;;  %v11386_v6 = vadd.f32 %v13800_v60, %v11363_v27  ;;  %v11387_v32 = vadd.f32 %v13800_v60, %v11364_v11 }
 0x8fe   :  { %v11398_v26 = vpack.c.bf16 %v11384_v40, %v11383_v0  ;;  %v11388_v24 = vadd.f32 %v13800_v60, %v11365_v17  ;;  %v11366_v3 = vmul.f32 %v11357_v55, %v11346_v9  ;;  %v11367_v52 = vmul.f32 %v11357_v55, %v11347_v1 }
 0x8ff   :  { %v11397_v42 = vpack.c.bf16 %v11382_v22, %v11381_v14  ;;  %v11399_v59 = vpack.c.bf16 %v11386_v6, %v11385_v19  ;;  %v11368_v46 = vmul.f32 %v11357_v55, %v11348_v7  ;;  %v11369_v35 = vmul.f32 %v11357_v55, %v11349_v56 }
 0x900   :  { %14983 = vmatmul.mubr.bf16.vlgmr.msra.gmra.mrb[64].mxu1 %v11398_v26  ;;  %v11400_v36 = vpack.c.bf16 %v11388_v24, %v11387_v32  ;;  %v11389_v47 = vadd.f32 %v13800_v60, %v11366_v3  ;;  %v11390_v15 = vadd.f32 %v13800_v60, %v11367_v52  ;;  %v11370_v2 = vmul.f32 %v11357_v55, %v11350_v8 }
 0x901   :  { %14987 = vmatpush3.bf16.msk.msra.mxu1 %vm13807_vm6, %v15549_v63  ;;  %14988 = vmatprep.mubr.msk.bf16.mxu1 %vm15550_vm3, %v22765_v49  ;;  %v11391_v61 = vadd.f32 %v13800_v60, %v11368_v46  ;;  %v11392_v12 = vadd.f32 %v13800_v60, %v11369_v35  ;;  %v11394_v20 = vadd.f32 %v13800_v60, %v11371_v39  ;;  %vm13827_vm6 = vmpackc.low %vm12143_vm5, %vm12142_vm4 }
 0x902   :  { %14992 = vmatprep.subr.bf16.mxu1 %v22765_v49  ;;  %v11401_v5 = vpack.c.bf16 %v11390_v15, %v11389_v47  ;;  %v11393_v21 = vadd.f32 %v13800_v60, %v11370_v2  ;;  %v11372_v37 = vmul.f32 %v11357_v55, %v11352_v58  ;;  %v11373_v31 = vmul.f32 %v11357_v55, %v11353_v53 }
 0x903   :  { %v11402_v30 = vpack.c.bf16 %v11392_v12, %v11391_v61 }
 0x904   :  { %v11403_v29 = vpack.c.bf16 %v11394_v20, %v11393_v21  ;;  %v11395_v45 = vadd.f32 %v13800_v60, %v11372_v37  ;;  %v11396_v48 = vadd.f32 %v13800_v60, %v11373_v31 }
 0x906   :  { %v11404_v38 = vpack.c.bf16 %v11396_v48, %v11395_v45 }
 0x90c   :  { %14989 = vmatmul.mubr.bf16.vlgmr.msra.gmra.mrb[64].mxu1 %v11397_v42 }
 0x90d   :  { %14993 = vmatpush3.bf16.msk.msra.mxu1 %vm13811_vm9, %v15549_v63  ;;  %14994 = vmatprep.mubr.msk.bf16.mxu1 %vm15550_vm3, %v22765_v49  ;;  %vm13831_vm9 = vmpackc.low %vm12258_vm8, %vm12257_vm7 }
 0x90e   :  { %14998 = vmatprep.subr.bf16.mxu1 %v22765_v49 }
 0x918   :  { %14995 = vmatmul.mubr.bf16.vlgmr.msra.gmra.mrb[64].mxu1 %v11399_v59 }
 0x919   :  { %14999 = vmatpush3.bf16.msk.msra.mxu1 %vm13815_vm12, %v15549_v63  ;;  %15000 = vmatprep.mubr.msk.bf16.mxu1 %vm15550_vm3, %v22765_v49 }
 0x91a   :  { %15004 = vmatprep.subr.bf16.mxu1 %v22765_v49 }
 0x924   :  { %15001 = vmatmul.mubr.bf16.vlgmr.msra.gmra.mrb[64].mxu1 %v11400_v36 }
 0x925   :  { %15005 = vmatpush3.bf16.msk.msra.mxu1 %vm13819_vm15, %v15549_v63  ;;  %15006 = vmatprep.mubr.msk.bf16.mxu1 %vm15550_vm3, %v22765_v49 }
 0x926   :  { %15010 = vmatprep.subr.bf16.mxu1 %v22765_v49 }
 0x930   :  { %15007 = vmatmul.mubr.bf16.vlgmr.msra.gmra.mrb[64].mxu1 %v11401_v5 }
 0x931   :  { %15011 = vmatpush3.bf16.msk.msra.mxu1 %vm13823_vm2, %v15549_v63  ;;  %15012 = vmatprep.mubr.msk.bf16.mxu1 %vm15550_vm3, %v22765_v49 }
 0x932   :  { %15016 = vmatprep.subr.bf16.mxu1 %v22765_v49 }
 0x93c   :  { %15013 = vmatmul.mubr.bf16.vlgmr.msra.gmra.mrb[64].mxu1 %v11402_v30 }
 0x93d   :  { %15017 = vmatpush3.bf16.msk.msra.mxu1 %vm13827_vm6, %v15549_v63  ;;  %15018 = vmatprep.mubr.msk.bf16.mxu1 %vm15550_vm3, %v22765_v49 }
 0x93e   :  { %15022 = vmatprep.subr.bf16.mxu1 %v22765_v49 }
 0x948   :  { %15019 = vmatmul.mubr.bf16.vlgmr.msra.gmra.mrb[64].mxu1 %v11403_v29 }
 0x949   :  { %15023 = vmatpush3.bf16.msk.msra.mxu1 %vm13831_vm9, %v15549_v63  ;;  %15024 = vmatprep.mubr.msk.bf16.mxu1 %vm15550_vm3, %v22765_v49 }
 0x954   :  { %15025 = vmatmul.mubr.bf16.vlgmr.msra.gmra.mrb[64].mxu1 %v11404_v38 }
 0xa27   :  { %v12363_v16 = vpop.f32.mrb[64].mxu1 }
 0xa28   :  { %v15026_v54 = vpop.f32.mrb[65].mxu1 }
 0xa29   :  { %v12366_v41 = vpop.f32.mrb[66].mxu1 }
 0xa2a   :  { %v21777_v25 = vpack.c.bf16 %v12366_v41, %v12363_v16  ;;  %v15027_v44 = vpop.f32.mrb[67].mxu1 }
 0xa2b   :  { %15542 = dma.done.wait [#allocation4], 32768 }
 0xa2c   :  { %15543 = vsyncadd [#allocation4], 4294934528  ;;  %v15551_v9 = vmov 0   ;;  %v12410_v50 = vld [vmem:[#allocation2 + $0x108] sm:$0xff]  ;;  %v12409_v63 = vld [vmem:[#allocation2 + $0x100] sm:$0xff]  ;;  %v12442_v3 = vrot.slane %v21777_v25, 1 }
 0xa2d   :  { %12476 = vmatprep.mubr.bf16.mxu1 %v15551_v9  ;;  %12558 = vmatprep.mubr.bf16.mxu0 %v15551_v9  ;;  %v12378_v43 = vld [vmem:[#allocation2 + $0x8] sm:$0xff]  ;;  %v12377_v49 = vld [vmem:[#allocation2] sm:$0xff]  ;;  %v12412_v26 = vld [vmem:[#allocation2 + $0x118] sm:$0xff] }
 0xa2e   :  { %12444 = vmatprep.subr.bf16.mxu1 %v12410_v50  ;;  %12526 = vmatprep.subr.bf16.mxu0 %v12378_v43  ;;  %v12414_v1 = vld [vmem:[#allocation2 + $0x128] sm:$0xff]  ;;  %v12413_v56 = vld [vmem:[#allocation2 + $0x120] sm:$0xff]  ;;  %v12411_v52 = vld [vmem:[#allocation2 + $0x110] sm:$0xff] }
 0xa2f   :  { %v12382_v7 = vld [vmem:[#allocation2 + $0x28] sm:$0xff]  ;;  %12445 = vmatpush1.bf16.msra.mxu1 %v12409_v63  ;;  %12527 = vmatpush1.bf16.msra.mxu0 %v12377_v49  ;;  %v12381_v4 = vld [vmem:[#allocation2 + $0x20] sm:$0xff]  ;;  %v12416_v59 = vld [vmem:[#allocation2 + $0x138] sm:$0xff] }
 0xa30   :  { %12446 = vmatprep.subr.bf16.mxu1 %v12414_v1  ;;  %12528 = vmatprep.subr.bf16.mxu0 %v12382_v7  ;;  %v12418_v8 = vld [vmem:[#allocation2 + $0x148] sm:$0xff]  ;;  %v12417_v53 = vld [vmem:[#allocation2 + $0x140] sm:$0xff]  ;;  %v12415_v35 = vld [vmem:[#allocation2 + $0x130] sm:$0xff] }
 0xa31   :  { %v12386_v58 = vld [vmem:[#allocation2 + $0x48] sm:$0xff]  ;;  %v12385_v62 = vld [vmem:[#allocation2 + $0x40] sm:$0xff]  ;;  %v12420_v47 = vld [vmem:[#allocation2 + $0x158] sm:$0xff] }
 0xa32   :  { %v12422_v23 = vld [vmem:[#allocation2 + $0x168] sm:$0xff]  ;;  %v12421_v55 = vld [vmem:[#allocation2 + $0x160] sm:$0xff]  ;;  %v12419_v2 = vld [vmem:[#allocation2 + $0x150] sm:$0xff] }
 0xa33   :  { %12447 = vmatpush1.bf16.msra.mxu1 %v12413_v56  ;;  %12529 = vmatpush1.bf16.msra.mxu0 %v12381_v4  ;;  %v12390_v13 = vld [vmem:[#allocation2 + $0x68] sm:$0xff]  ;;  %v12389_v60 = vld [vmem:[#allocation2 + $0x60] sm:$0xff]  ;;  %v12424_v12 = vld [vmem:[#allocation2 + $0x178] sm:$0xff]  ;;  %v12640_v4 = vrot.slane %v21777_v25, 2 }
 0xa34   :  { %12448 = vmatprep.subr.bf16.mxu1 %v12418_v8  ;;  %12530 = vmatprep.subr.bf16.mxu0 %v12386_v58  ;;  %v12426_v39 = vld [vmem:[#allocation2 + $0x188] sm:$0xff]  ;;  %v12425_v34 = vld [vmem:[#allocation2 + $0x180] sm:$0xff]  ;;  %v12423_v5 = vld [vmem:[#allocation2 + $0x170] sm:$0xff] }
 0xa35   :  { %v12394_v51 = vld [vmem:[#allocation2 + $0x88] sm:$0xff]  ;;  %v12393_v57 = vld [vmem:[#allocation2 + $0x80] sm:$0xff]  ;;  %v12428_v37 = vld [vmem:[#allocation2 + $0x198] sm:$0xff] }
 0xa36   :  { %v12430_v28 = vld [vmem:[#allocation2 + $0x1a8] sm:$0xff]  ;;  %v12429_v27 = vld [vmem:[#allocation2 + $0x1a0] sm:$0xff]  ;;  %v12427_v30 = vld [vmem:[#allocation2 + $0x190] sm:$0xff] }
 0xa37   :  { %12449 = vmatpush1.bf16.msra.mxu1 %v12417_v53  ;;  %12531 = vmatpush1.bf16.msra.mxu0 %v12385_v62  ;;  %v12398_v33 = vld [vmem:[#allocation2 + $0xa8] sm:$0xff]  ;;  %v12397_v11 = vld [vmem:[#allocation2 + $0xa0] sm:$0xff]  ;;  %v12432_v45 = vld [vmem:[#allocation2 + $0x1b8] sm:$0xff] }
 0xa38   :  { %12450 = vmatprep.subr.bf16.mxu1 %v12422_v23  ;;  %12532 = vmatprep.subr.bf16.mxu0 %v12390_v13  ;;  %v12434_v0 = vld [vmem:[#allocation2 + $0x1c8] sm:$0xff]  ;;  %v12433_v14 = vld [vmem:[#allocation2 + $0x1c0] sm:$0xff]  ;;  %v12431_v38 = vld [vmem:[#allocation2 + $0x1b0] sm:$0xff] }
 0xa39   :  { %v12402_v40 = vld [vmem:[#allocation2 + $0xc8] sm:$0xff]  ;;  %v12401_v17 = vld [vmem:[#allocation2 + $0xc0] sm:$0xff]  ;;  %v12436_v54 = vld [vmem:[#allocation2 + $0x1d8] sm:$0xff] }
 0xa3a   :  { %v12438_v22 = vld [vmem:[#allocation2 + $0x1e8] sm:$0xff]  ;;  %v12437_v6 = vld [vmem:[#allocation2 + $0x1e0] sm:$0xff]  ;;  %v12435_v44 = vld [vmem:[#allocation2 + $0x1d0] sm:$0xff] }
 0xa3b   :  { %12451 = vmatpush1.bf16.msra.mxu1 %v12421_v55  ;;  %12533 = vmatpush1.bf16.msra.mxu0 %v12389_v60  ;;  %v12406_v19 = vld [vmem:[#allocation2 + $0xe8] sm:$0xff]  ;;  %v12405_v32 = vld [vmem:[#allocation2 + $0xe0] sm:$0xff]  ;;  %v12440_v43 = vld [vmem:[#allocation2 + $0x1f8] sm:$0xff] }
 0xa3c   :  { %12452 = vmatprep.subr.bf16.mxu1 %v12426_v39  ;;  %12534 = vmatprep.subr.bf16.mxu0 %v12394_v51  ;;  %v12609_v24 = vld [vmem:[#allocation2 + $0x208] sm:$0xff]  ;;  %v12608_v42 = vld [vmem:[#allocation2 + $0x200] sm:$0xff]  ;;  %v12439_v49 = vld [vmem:[#allocation2 + $0x1f0] sm:$0xff] }
 0xa3d   :  { %v12613_v46 = vld [vmem:[#allocation2 + $0x228] sm:$0xff]  ;;  %v12612_v36 = vld [vmem:[#allocation2 + $0x220] sm:$0xff]  ;;  %v12380_v7 = vld [vmem:[#allocation2 + $0x18] sm:$0xff] }
 0xa3e   :  { %v12617_v15 = vld [vmem:[#allocation2 + $0x248] sm:$0xff]  ;;  %v12616_v61 = vld [vmem:[#allocation2 + $0x240] sm:$0xff]  ;;  %v12379_v8 = vld [vmem:[#allocation2 + $0x10] sm:$0xff] }
 0xa3f   :  { %12453 = vmatpush1.bf16.msra.mxu1 %v12425_v34  ;;  %12535 = vmatpush1.bf16.msra.mxu0 %v12393_v57  ;;  %v12621_v20 = vld [vmem:[#allocation2 + $0x268] sm:$0xff]  ;;  %v12620_v21 = vld [vmem:[#allocation2 + $0x260] sm:$0xff]  ;;  %v12384_v53 = vld [vmem:[#allocation2 + $0x38] sm:$0xff] }
 0xa40   :  { %12454 = vmatprep.subr.bf16.mxu1 %v12430_v28  ;;  %12536 = vmatprep.subr.bf16.mxu0 %v12398_v33  ;;  %v12625_v31 = vld [vmem:[#allocation2 + $0x288] sm:$0xff]  ;;  %v12624_v29 = vld [vmem:[#allocation2 + $0x280] sm:$0xff]  ;;  %v12383_v23 = vld [vmem:[#allocation2 + $0x30] sm:$0xff] }
 0xa41   :  { %v12629_v48 = vld [vmem:[#allocation2 + $0x2a8] sm:$0xff]  ;;  %v12628_v16 = vld [vmem:[#allocation2 + $0x2a0] sm:$0xff]  ;;  %v12388_v55 = vld [vmem:[#allocation2 + $0x58] sm:$0xff] }
 0xa42   :  { %v12633_v41 = vld [vmem:[#allocation2 + $0x2c8] sm:$0xff]  ;;  %v12632_v50 = vld [vmem:[#allocation2 + $0x2c0] sm:$0xff]  ;;  %v12387_v39 = vld [vmem:[#allocation2 + $0x50] sm:$0xff] }
 0xa43   :  { %12455 = vmatpush1.bf16.msra.mxu1 %v12429_v27  ;;  %12537 = vmatpush1.bf16.msra.mxu0 %v12397_v11  ;;  %v12637_v63 = vld [vmem:[#allocation2 + $0x2e8] sm:$0xff]  ;;  %v12636_v1 = vld [vmem:[#allocation2 + $0x2e0] sm:$0xff]  ;;  %v12392_v34 = vld [vmem:[#allocation2 + $0x78] sm:$0xff] }
 0xa44   :  { %12456 = vmatprep.subr.bf16.mxu1 %v12434_v0  ;;  %12538 = vmatprep.subr.bf16.mxu0 %v12402_v40  ;;  %v12729_v56 = vld [vmem:[#allocation2 + $0x308] sm:$0xff]  ;;  %v12728_v58 = vld [vmem:[#allocation2 + $0x300] sm:$0xff]  ;;  %v12391_v28 = vld [vmem:[#allocation2 + $0x70] sm:$0xff] }
 0xa45   :  { %v12733_v62 = vld [vmem:[#allocation2 + $0x328] sm:$0xff]  ;;  %v12732_v13 = vld [vmem:[#allocation2 + $0x320] sm:$0xff]  ;;  %v12396_v27 = vld [vmem:[#allocation2 + $0x98] sm:$0xff] }
 0xa46   :  { %v12737_v60 = vld [vmem:[#allocation2 + $0x348] sm:$0xff]  ;;  %v12736_v51 = vld [vmem:[#allocation2 + $0x340] sm:$0xff]  ;;  %v12395_v0 = vld [vmem:[#allocation2 + $0x90] sm:$0xff] }
 0xa47   :  { %12457 = vmatpush1.bf16.msra.mxu1 %v12433_v14  ;;  %12539 = vmatpush1.bf16.msra.mxu0 %v12401_v17  ;;  %v12741_v57 = vld [vmem:[#allocation2 + $0x368] sm:$0xff]  ;;  %v12740_v33 = vld [vmem:[#allocation2 + $0x360] sm:$0xff]  ;;  %v12400_v14 = vld [vmem:[#allocation2 + $0xb8] sm:$0xff] }
 0xa48   :  { %12458 = vmatprep.subr.bf16.mxu1 %v12438_v22  ;;  %12540 = vmatprep.subr.bf16.mxu0 %v12406_v19  ;;  %v12745_v11 = vld [vmem:[#allocation2 + $0x388] sm:$0xff]  ;;  %v12744_v40 = vld [vmem:[#allocation2 + $0x380] sm:$0xff]  ;;  %v12399_v22 = vld [vmem:[#allocation2 + $0xb0] sm:$0xff] }
 0xa49   :  { %v12749_v17 = vld [vmem:[#allocation2 + $0x3a8] sm:$0xff]  ;;  %v12748_v19 = vld [vmem:[#allocation2 + $0x3a0] sm:$0xff] }
 0xa4b   :  { %12459 = vmatpush1.bf16.msra.mxu1 %v12437_v6  ;;  %12541 = vmatpush1.bf16.msra.mxu0 %v12405_v32  ;;  %v12404_v6 = vld [vmem:[#allocation2 + $0xd8] sm:$0xff]  ;;  %v12753_v32 = vld [vmem:[#allocation2 + $0x3c8] sm:$0xff] }
 0xa4c   :  { %12485 = vmatprep.subr.bf16.mxu1 %v12412_v26  ;;  %12642 = vmatprep.subr.bf16.mxu0 %v12609_v24  ;;  %v12403_v26 = vld [vmem:[#allocation2 + $0xd0] sm:$0xff]  ;;  %v12752_v24 = vld [vmem:[#allocation2 + $0x3c0] sm:$0xff] }
 0xa4e   :  { %12477 = vmatmul.mubr.bf16.vlgmr.msra.gmra.mrb[68].mxu1 %v12442_v3  ;;  %12559 = vmatmul.mubr.bf16.vlgmr.msra.gmra.mrb[16].mxu0 %v21777_v25 }
 0xa4f   :  { %12486 = vmatpush1.bf16.msra.mxu1 %v12411_v52  ;;  %12643 = vmatpush1.bf16.msra.mxu0 %v12608_v42  ;;  %v12757_v52 = vld [vmem:[#allocation2 + $0x3e8] sm:$0xff]  ;;  %v12407_v42 = vld [vmem:[#allocation2 + $0xf0] sm:$0xff] }
 0xa50   :  { %12487 = vmatprep.subr.bf16.mxu1 %v12416_v59  ;;  %12644 = vmatprep.subr.bf16.mxu0 %v12613_v46  ;;  %v12756_v59 = vld [vmem:[#allocation2 + $0x3e0] sm:$0xff]  ;;  %v12611_v46 = vld [vmem:[#allocation2 + $0x218] sm:$0xff] }
 0xa51   :  { %12517 = vmatprep.mubr.bf16.mxu1 %v15551_v9  ;;  %12674 = vmatprep.mubr.bf16.mxu0 %v15551_v9 }
 0xa53   :  { %12488 = vmatpush1.bf16.msra.mxu1 %v12415_v35  ;;  %12645 = vmatpush1.bf16.msra.mxu0 %v12612_v36  ;;  %v12849_v35 = vld [vmem:[#allocation2 + $0x408] sm:$0xff]  ;;  %v12760_v36 = vrot.slane %v21777_v25, 3 }
 0xa54   :  { %12489 = vmatprep.subr.bf16.mxu1 %v12420_v47  ;;  %12646 = vmatprep.subr.bf16.mxu0 %v12617_v15  ;;  %v12610_v47 = vld [vmem:[#allocation2 + $0x210] sm:$0xff]  ;;  %v12848_v15 = vld [vmem:[#allocation2 + $0x400] sm:$0xff] }
 0xa57   :  { %12490 = vmatpush1.bf16.msra.mxu1 %v12419_v2  ;;  %12647 = vmatpush1.bf16.msra.mxu0 %v12616_v61  ;;  %v12615_v2 = vld [vmem:[#allocation2 + $0x238] sm:$0xff]  ;;  %v12853_v61 = vld [vmem:[#allocation2 + $0x428] sm:$0xff] }
 0xa58   :  { %12491 = vmatprep.subr.bf16.mxu1 %v12424_v12  ;;  %12648 = vmatprep.subr.bf16.mxu0 %v12621_v20  ;;  %v12614_v12 = vld [vmem:[#allocation2 + $0x230] sm:$0xff]  ;;  %v12852_v20 = vld [vmem:[#allocation2 + $0x420] sm:$0xff] }
 0xa5b   :  { %12492 = vmatpush1.bf16.msra.mxu1 %v12423_v5  ;;  %12649 = vmatpush1.bf16.msra.mxu0 %v12620_v21  ;;  %v12619_v5 = vld [vmem:[#allocation2 + $0x258] sm:$0xff]  ;;  %v12857_v21 = vld [vmem:[#allocation2 + $0x448] sm:$0xff] }
 0xa5c   :  { %12493 = vmatprep.subr.bf16.mxu1 %v12428_v37  ;;  %12650 = vmatprep.subr.bf16.mxu0 %v12625_v31  ;;  %v12618_v37 = vld [vmem:[#allocation2 + $0x250] sm:$0xff]  ;;  %v12856_v31 = vld [vmem:[#allocation2 + $0x440] sm:$0xff] }
 0xa5f   :  { %12494 = vmatpush1.bf16.msra.mxu1 %v12427_v30  ;;  %12651 = vmatpush1.bf16.msra.mxu0 %v12624_v29  ;;  %v12623_v30 = vld [vmem:[#allocation2 + $0x278] sm:$0xff]  ;;  %v12861_v29 = vld [vmem:[#allocation2 + $0x468] sm:$0xff] }
 0xa60   :  { %12495 = vmatprep.subr.bf16.mxu1 %v12432_v45  ;;  %12652 = vmatprep.subr.bf16.mxu0 %v12629_v48  ;;  %v12622_v45 = vld [vmem:[#allocation2 + $0x270] sm:$0xff]  ;;  %v12860_v48 = vld [vmem:[#allocation2 + $0x460] sm:$0xff] }
 0xa63   :  { %12496 = vmatpush1.bf16.msra.mxu1 %v12431_v38  ;;  %12653 = vmatpush1.bf16.msra.mxu0 %v12628_v16  ;;  %v12627_v38 = vld [vmem:[#allocation2 + $0x298] sm:$0xff]  ;;  %v12865_v16 = vld [vmem:[#allocation2 + $0x488] sm:$0xff] }
 0xa64   :  { %12497 = vmatprep.subr.bf16.mxu1 %v12436_v54  ;;  %12654 = vmatprep.subr.bf16.mxu0 %v12633_v41  ;;  %v12626_v54 = vld [vmem:[#allocation2 + $0x290] sm:$0xff]  ;;  %v12864_v41 = vld [vmem:[#allocation2 + $0x480] sm:$0xff] }
 0xa67   :  { %12498 = vmatpush1.bf16.msra.mxu1 %v12435_v44  ;;  %12655 = vmatpush1.bf16.msra.mxu0 %v12632_v50  ;;  %v12631_v44 = vld [vmem:[#allocation2 + $0x2b8] sm:$0xff]  ;;  %v12869_v50 = vld [vmem:[#allocation2 + $0x4a8] sm:$0xff] }
 0xa68   :  { %12499 = vmatprep.subr.bf16.mxu1 %v12440_v43  ;;  %12656 = vmatprep.subr.bf16.mxu0 %v12637_v63  ;;  %v12630_v43 = vld [vmem:[#allocation2 + $0x2b0] sm:$0xff]  ;;  %v12868_v63 = vld [vmem:[#allocation2 + $0x4a0] sm:$0xff] }
 0xa6b   :  { %12500 = vmatpush1.bf16.msra.mxu1 %v12439_v49  ;;  %12657 = vmatpush1.bf16.msra.mxu0 %v12636_v1  ;;  %v12635_v49 = vld [vmem:[#allocation2 + $0x2d8] sm:$0xff]  ;;  %v12873_v1 = vld [vmem:[#allocation2 + $0x4c8] sm:$0xff] }
 0xa6c   :  { %12567 = vmatprep.subr.bf16.mxu1 %v12380_v7  ;;  %12762 = vmatprep.subr.bf16.mxu0 %v12729_v56  ;;  %v12634_v7 = vld [vmem:[#allocation2 + $0x2d0] sm:$0xff]  ;;  %v12872_v56 = vld [vmem:[#allocation2 + $0x4c0] sm:$0xff] }
 0xa6e   :  { %12518 = vmatmul.mubr.bf16.vlgmr.msra.gmra.mrb[72].mxu1 %v12442_v3  ;;  %12675 = vmatmul.mubr.bf16.vlgmr.msra.gmra.mrb[20].mxu0 %v12640_v4  ;;  %v12408_v3 = vld [vmem:[#allocation2 + $0xf8] sm:$0xff] }
 0xa6f   :  { %12568 = vmatpush1.bf16.msra.mxu1 %v12379_v8  ;;  %12763 = vmatpush1.bf16.msra.mxu0 %v12728_v58  ;;  %v12639_v8 = vld [vmem:[#allocation2 + $0x2f8] sm:$0xff]  ;;  %v12877_v58 = vld [vmem:[#allocation2 + $0x4e8] sm:$0xff] }
 0xa70   :  { %12569 = vmatprep.subr.bf16.mxu1 %v12384_v53  ;;  %12764 = vmatprep.subr.bf16.mxu0 %v12733_v62  ;;  %v12638_v53 = vld [vmem:[#allocation2 + $0x2f0] sm:$0xff]  ;;  %v12876_v62 = vld [vmem:[#allocation2 + $0x4e0] sm:$0xff] }
 0xa71   :  { %12599 = vmatprep.mubr.bf16.mxu1 %v15551_v9  ;;  %12794 = vmatprep.mubr.bf16.mxu0 %v15551_v9 }
 0xa73   :  { %12570 = vmatpush1.bf16.msra.mxu1 %v12383_v23  ;;  %12765 = vmatpush1.bf16.msra.mxu0 %v12732_v13  ;;  %v12731_v23 = vld [vmem:[#allocation2 + $0x318] sm:$0xff]  ;;  %v12969_v13 = vld [vmem:[#allocation2 + $0x508] sm:$0xff] }
 0xa74   :  { %12571 = vmatprep.subr.bf16.mxu1 %v12388_v55  ;;  %12766 = vmatprep.subr.bf16.mxu0 %v12737_v60  ;;  %v12880_v55 = vrot.slane %v21777_v25, 4  ;;  %v12730_v60 = vld [vmem:[#allocation2 + $0x310] sm:$0xff] }
 0xa77   :  { %12572 = vmatpush1.bf16.msra.mxu1 %v12387_v39  ;;  %12767 = vmatpush1.bf16.msra.mxu0 %v12736_v51  ;;  %v12968_v39 = vld [vmem:[#allocation2 + $0x500] sm:$0xff]  ;;  %v12735_v51 = vld [vmem:[#allocation2 + $0x338] sm:$0xff] }
 0xa78   :  { %12573 = vmatprep.subr.bf16.mxu1 %v12392_v34  ;;  %12768 = vmatprep.subr.bf16.mxu0 %v12741_v57  ;;  %v12973_v34 = vld [vmem:[#allocation2 + $0x528] sm:$0xff]  ;;  %v12734_v57 = vld [vmem:[#allocation2 + $0x330] sm:$0xff] }
 0xa7b   :  { %12574 = vmatpush1.bf16.msra.mxu1 %v12391_v28  ;;  %12769 = vmatpush1.bf16.msra.mxu0 %v12740_v33  ;;  %v12972_v28 = vld [vmem:[#allocation2 + $0x520] sm:$0xff]  ;;  %v12739_v33 = vld [vmem:[#allocation2 + $0x358] sm:$0xff] }
 0xa7c   :  { %12575 = vmatprep.subr.bf16.mxu1 %v12396_v27  ;;  %12770 = vmatprep.subr.bf16.mxu0 %v12745_v11  ;;  %v12977_v27 = vld [vmem:[#allocation2 + $0x548] sm:$0xff]  ;;  %v12976_v11 = vld [vmem:[#allocation2 + $0x540] sm:$0xff] }
 0xa7f   :  { %12576 = vmatpush1.bf16.msra.mxu1 %v12395_v0  ;;  %12771 = vmatpush1.bf16.msra.mxu0 %v12744_v40  ;;  %v12743_v0 = vld [vmem:[#allocation2 + $0x378] sm:$0xff]  ;;  %v12981_v40 = vld [vmem:[#allocation2 + $0x568] sm:$0xff] }
 0xa80   :  { %12577 = vmatprep.subr.bf16.mxu1 %v12400_v14  ;;  %12772 = vmatprep.subr.bf16.mxu0 %v12749_v17  ;;  %v12742_v14 = vld [vmem:[#allocation2 + $0x370] sm:$0xff]  ;;  %v12980_v17 = vld [vmem:[#allocation2 + $0x560] sm:$0xff] }
 0xa83   :  { %12578 = vmatpush1.bf16.msra.mxu1 %v12399_v22  ;;  %12773 = vmatpush1.bf16.msra.mxu0 %v12748_v19  ;;  %v12747_v22 = vld [vmem:[#allocation2 + $0x398] sm:$0xff]  ;;  %v12985_v19 = vld [vmem:[#allocation2 + $0x588] sm:$0xff] }
 0xa84   :  { %12579 = vmatprep.subr.bf16.mxu1 %v12404_v6  ;;  %12774 = vmatprep.subr.bf16.mxu0 %v12753_v32  ;;  %v12746_v6 = vld [vmem:[#allocation2 + $0x390] sm:$0xff]  ;;  %v12984_v32 = vld [vmem:[#allocation2 + $0x580] sm:$0xff] }
 0xa87   :  { %12580 = vmatpush1.bf16.msra.mxu1 %v12403_v26  ;;  %12775 = vmatpush1.bf16.msra.mxu0 %v12752_v24  ;;  %v12751_v26 = vld [vmem:[#allocation2 + $0x3b8] sm:$0xff]  ;;  %v12989_v24 = vld [vmem:[#allocation2 + $0x5a8] sm:$0xff] }
 0xa88   :  { %12581 = vmatprep.subr.bf16.mxu1 %v12408_v3  ;;  %12776 = vmatprep.subr.bf16.mxu0 %v12757_v52  ;;  %v12750_v3 = vld [vmem:[#allocation2 + $0x3b0] sm:$0xff]  ;;  %v12988_v52 = vld [vmem:[#allocation2 + $0x5a0] sm:$0xff] }
 0xa8b   :  { %12582 = vmatpush1.bf16.msra.mxu1 %v12407_v42  ;;  %12777 = vmatpush1.bf16.msra.mxu0 %v12756_v59  ;;  %v12755_v42 = vld [vmem:[#allocation2 + $0x3d8] sm:$0xff]  ;;  %v12993_v59 = vld [vmem:[#allocation2 + $0x5c8] sm:$0xff] }
 0xa8c   :  { %12683 = vmatprep.subr.bf16.mxu1 %v12611_v46  ;;  %12882 = vmatprep.subr.bf16.mxu0 %v12849_v35  ;;  %v12754_v46 = vld [vmem:[#allocation2 + $0x3d0] sm:$0xff]  ;;  %v12992_v35 = vld [vmem:[#allocation2 + $0x5c0] sm:$0xff] }
 0xa8e   :  { %12600 = vmatmul.mubr.bf16.vlgmr.msra.gmra.mrb[76].mxu1 %v21777_v25  ;;  %12795 = vmatmul.mubr.bf16.vlgmr.msra.gmra.mrb[24].mxu0 %v12760_v36 }
 0xa8f   :  { %12684 = vmatpush1.bf16.msra.mxu1 %v12610_v47  ;;  %12883 = vmatpush1.bf16.msra.mxu0 %v12848_v15  ;;  %v12759_v47 = vld [vmem:[#allocation2 + $0x3f8] sm:$0xff]  ;;  %v12997_v15 = vld [vmem:[#allocation2 + $0x5e8] sm:$0xff] }
 0xa90   :  { %12685 = vmatprep.subr.bf16.mxu1 %v12615_v2  ;;  %12884 = vmatprep.subr.bf16.mxu0 %v12853_v61  ;;  %v12758_v2 = vld [vmem:[#allocation2 + $0x3f0] sm:$0xff]  ;;  %v12996_v61 = vld [vmem:[#allocation2 + $0x5e0] sm:$0xff] }
 0xa91   :  { %12715 = vmatprep.mubr.bf16.mxu1 %v15551_v9  ;;  %12914 = vmatprep.mubr.bf16.mxu0 %v15551_v9 }
 0xa93   :  { %12686 = vmatpush1.bf16.msra.mxu1 %v12614_v12  ;;  %12885 = vmatpush1.bf16.msra.mxu0 %v12852_v20  ;;  %v12851_v12 = vld [vmem:[#allocation2 + $0x418] sm:$0xff]  ;;  %v13089_v20 = vld [vmem:[#allocation2 + $0x608] sm:$0xff] }
 0xa94   :  { %12687 = vmatprep.subr.bf16.mxu1 %v12619_v5  ;;  %12886 = vmatprep.subr.bf16.mxu0 %v12857_v21  ;;  %v13000_v5 = vrot.slane %v21777_v25, 5  ;;  %v12850_v21 = vld [vmem:[#allocation2 + $0x410] sm:$0xff] }
 0xa97   :  { %12688 = vmatpush1.bf16.msra.mxu1 %v12618_v37  ;;  %12887 = vmatpush1.bf16.msra.mxu0 %v12856_v31  ;;  %v13088_v37 = vld [vmem:[#allocation2 + $0x600] sm:$0xff]  ;;  %v12855_v31 = vld [vmem:[#allocation2 + $0x438] sm:$0xff] }
 0xa98   :  { %12689 = vmatprep.subr.bf16.mxu1 %v12623_v30  ;;  %12888 = vmatprep.subr.bf16.mxu0 %v12861_v29  ;;  %v13093_v30 = vld [vmem:[#allocation2 + $0x628] sm:$0xff]  ;;  %v12854_v29 = vld [vmem:[#allocation2 + $0x430] sm:$0xff] }
 0xa9b   :  { %12690 = vmatpush1.bf16.msra.mxu1 %v12622_v45  ;;  %12889 = vmatpush1.bf16.msra.mxu0 %v12860_v48  ;;  %v13092_v45 = vld [vmem:[#allocation2 + $0x620] sm:$0xff]  ;;  %v12859_v48 = vld [vmem:[#allocation2 + $0x458] sm:$0xff] }
 0xa9c   :  { %12691 = vmatprep.subr.bf16.mxu1 %v12627_v38  ;;  %12890 = vmatprep.subr.bf16.mxu0 %v12865_v16  ;;  %v13097_v38 = vld [vmem:[#allocation2 + $0x648] sm:$0xff]  ;;  %v13096_v16 = vld [vmem:[#allocation2 + $0x640] sm:$0xff] }
 0xa9f   :  { %12692 = vmatpush1.bf16.msra.mxu1 %v12626_v54  ;;  %12891 = vmatpush1.bf16.msra.mxu0 %v12864_v41  ;;  %v12863_v54 = vld [vmem:[#allocation2 + $0x478] sm:$0xff]  ;;  %v13101_v41 = vld [vmem:[#allocation2 + $0x668] sm:$0xff] }
 0xaa0   :  { %12693 = vmatprep.subr.bf16.mxu1 %v12631_v44  ;;  %12892 = vmatprep.subr.bf16.mxu0 %v12869_v50  ;;  %v12862_v44 = vld [vmem:[#allocation2 + $0x470] sm:$0xff]  ;;  %v13100_v50 = vld [vmem:[#allocation2 + $0x660] sm:$0xff] }
 0xaa3   :  { %12694 = vmatpush1.bf16.msra.mxu1 %v12630_v43  ;;  %12893 = vmatpush1.bf16.msra.mxu0 %v12868_v63  ;;  %v12867_v43 = vld [vmem:[#allocation2 + $0x498] sm:$0xff]  ;;  %v13105_v63 = vld [vmem:[#allocation2 + $0x688] sm:$0xff] }
 0xaa4   :  { %12695 = vmatprep.subr.bf16.mxu1 %v12635_v49  ;;  %12894 = vmatprep.subr.bf16.mxu0 %v12873_v1  ;;  %v12866_v49 = vld [vmem:[#allocation2 + $0x490] sm:$0xff]  ;;  %v13104_v1 = vld [vmem:[#allocation2 + $0x680] sm:$0xff] }
 0xaa7   :  { %12696 = vmatpush1.bf16.msra.mxu1 %v12634_v7  ;;  %12895 = vmatpush1.bf16.msra.mxu0 %v12872_v56  ;;  %v12871_v7 = vld [vmem:[#allocation2 + $0x4b8] sm:$0xff]  ;;  %v13109_v56 = vld [vmem:[#allocation2 + $0x6a8] sm:$0xff] }
 0xaa8   :  { %12697 = vmatprep.subr.bf16.mxu1 %v12639_v8  ;;  %12896 = vmatprep.subr.bf16.mxu0 %v12877_v58  ;;  %v12870_v8 = vld [vmem:[#allocation2 + $0x4b0] sm:$0xff]  ;;  %v13108_v58 = vld [vmem:[#allocation2 + $0x6a0] sm:$0xff] }
 0xaab   :  { %12698 = vmatpush1.bf16.msra.mxu1 %v12638_v53  ;;  %12897 = vmatpush1.bf16.msra.mxu0 %v12876_v62  ;;  %v12875_v53 = vld [vmem:[#allocation2 + $0x4d8] sm:$0xff]  ;;  %v13113_v62 = vld [vmem:[#allocation2 + $0x6c8] sm:$0xff] }
 0xaac   :  { %12803 = vmatprep.subr.bf16.mxu1 %v12731_v23  ;;  %13002 = vmatprep.subr.bf16.mxu0 %v12969_v13  ;;  %v12874_v23 = vld [vmem:[#allocation2 + $0x4d0] sm:$0xff]  ;;  %v13112_v13 = vld [vmem:[#allocation2 + $0x6c0] sm:$0xff] }
 0xaae   :  { %12716 = vmatmul.mubr.bf16.vlgmr.msra.gmra.mrb[80].mxu1 %v12640_v4  ;;  %12915 = vmatmul.mubr.bf16.vlgmr.msra.gmra.mrb[28].mxu0 %v12880_v55  ;;  %v12738_v4 = vld [vmem:[#allocation2 + $0x350] sm:$0xff] }
 0xaaf   :  { %12804 = vmatpush1.bf16.msra.mxu1 %v12730_v60  ;;  %13003 = vmatpush1.bf16.msra.mxu0 %v12968_v39  ;;  %v12879_v60 = vld [vmem:[#allocation2 + $0x4f8] sm:$0xff]  ;;  %v13117_v39 = vld [vmem:[#allocation2 + $0x6e8] sm:$0xff] }
 0xab0   :  { %12805 = vmatprep.subr.bf16.mxu1 %v12735_v51  ;;  %13004 = vmatprep.subr.bf16.mxu0 %v12973_v34  ;;  %v12878_v51 = vld [vmem:[#allocation2 + $0x4f0] sm:$0xff]  ;;  %v13116_v34 = vld [vmem:[#allocation2 + $0x6e0] sm:$0xff] }
 0xab1   :  { %12835 = vmatprep.mubr.bf16.mxu1 %v15551_v9  ;;  %13034 = vmatprep.mubr.bf16.mxu0 %v15551_v9 }
 0xab3   :  { %12806 = vmatpush1.bf16.msra.mxu1 %v12734_v57  ;;  %13005 = vmatpush1.bf16.msra.mxu0 %v12972_v28  ;;  %v12971_v57 = vld [vmem:[#allocation2 + $0x518] sm:$0xff]  ;;  %v13209_v28 = vld [vmem:[#allocation2 + $0x708] sm:$0xff] }
 0xab4   :  { %12807 = vmatprep.subr.bf16.mxu1 %v12739_v33  ;;  %13006 = vmatprep.subr.bf16.mxu0 %v12977_v27  ;;  %v13120_v33 = vrot.slane %v21777_v25, 6  ;;  %v12970_v27 = vld [vmem:[#allocation2 + $0x510] sm:$0xff] }
 0xab7   :  { %12808 = vmatpush1.bf16.msra.mxu1 %v12738_v4  ;;  %13007 = vmatpush1.bf16.msra.mxu0 %v12976_v11  ;;  %v13208_v4 = vld [vmem:[#allocation2 + $0x700] sm:$0xff]  ;;  %v12975_v11 = vld [vmem:[#allocation2 + $0x538] sm:$0xff] }
 0xab8   :  { %12809 = vmatprep.subr.bf16.mxu1 %v12743_v0  ;;  %13008 = vmatprep.subr.bf16.mxu0 %v12981_v40  ;;  %v13213_v0 = vld [vmem:[#allocation2 + $0x728] sm:$0xff]  ;;  %v12974_v40 = vld [vmem:[#allocation2 + $0x530] sm:$0xff] }
 0xabb   :  { %12810 = vmatpush1.bf16.msra.mxu1 %v12742_v14  ;;  %13009 = vmatpush1.bf16.msra.mxu0 %v12980_v17  ;;  %v13212_v14 = vld [vmem:[#allocation2 + $0x720] sm:$0xff]  ;;  %v12979_v17 = vld [vmem:[#allocation2 + $0x558] sm:$0xff] }
 0xabc   :  { %12811 = vmatprep.subr.bf16.mxu1 %v12747_v22  ;;  %13010 = vmatprep.subr.bf16.mxu0 %v12985_v19  ;;  %v13217_v22 = vld [vmem:[#allocation2 + $0x748] sm:$0xff]  ;;  %v13216_v19 = vld [vmem:[#allocation2 + $0x740] sm:$0xff] }
 0xabf   :  { %12812 = vmatpush1.bf16.msra.mxu1 %v12746_v6  ;;  %13011 = vmatpush1.bf16.msra.mxu0 %v12984_v32  ;;  %v12983_v6 = vld [vmem:[#allocation2 + $0x578] sm:$0xff]  ;;  %v13221_v32 = vld [vmem:[#allocation2 + $0x768] sm:$0xff] }
 0xac0   :  { %12813 = vmatprep.subr.bf16.mxu1 %v12751_v26  ;;  %13012 = vmatprep.subr.bf16.mxu0 %v12989_v24  ;;  %v12982_v26 = vld [vmem:[#allocation2 + $0x570] sm:$0xff]  ;;  %v13220_v24 = vld [vmem:[#allocation2 + $0x760] sm:$0xff] }
 0xac3   :  { %12814 = vmatpush1.bf16.msra.mxu1 %v12750_v3  ;;  %13013 = vmatpush1.bf16.msra.mxu0 %v12988_v52  ;;  %v12987_v3 = vld [vmem:[#allocation2 + $0x598] sm:$0xff]  ;;  %v13225_v52 = vld [vmem:[#allocation2 + $0x788] sm:$0xff] }
 0xac4   :  { %12815 = vmatprep.subr.bf16.mxu1 %v12755_v42  ;;  %13014 = vmatprep.subr.bf16.mxu0 %v12993_v59  ;;  %v12986_v42 = vld [vmem:[#allocation2 + $0x590] sm:$0xff]  ;;  %v13224_v59 = vld [vmem:[#allocation2 + $0x780] sm:$0xff] }
 0xac7   :  { %12816 = vmatpush1.bf16.msra.mxu1 %v12754_v46  ;;  %13015 = vmatpush1.bf16.msra.mxu0 %v12992_v35  ;;  %v12991_v46 = vld [vmem:[#allocation2 + $0x5b8] sm:$0xff]  ;;  %v13229_v35 = vld [vmem:[#allocation2 + $0x7a8] sm:$0xff] }
 0xac8   :  { %12817 = vmatprep.subr.bf16.mxu1 %v12759_v47  ;;  %13016 = vmatprep.subr.bf16.mxu0 %v12997_v15  ;;  %v12990_v47 = vld [vmem:[#allocation2 + $0x5b0] sm:$0xff]  ;;  %v13228_v15 = vld [vmem:[#allocation2 + $0x7a0] sm:$0xff] }
 0xacb   :  { %12818 = vmatpush1.bf16.msra.mxu1 %v12758_v2  ;;  %13017 = vmatpush1.bf16.msra.mxu0 %v12996_v61  ;;  %v12995_v2 = vld [vmem:[#allocation2 + $0x5d8] sm:$0xff]  ;;  %v13233_v61 = vld [vmem:[#allocation2 + $0x7c8] sm:$0xff] }
 0xacc   :  { %12923 = vmatprep.subr.bf16.mxu1 %v12851_v12  ;;  %13122 = vmatprep.subr.bf16.mxu0 %v13089_v20  ;;  %v12994_v12 = vld [vmem:[#allocation2 + $0x5d0] sm:$0xff]  ;;  %v13232_v20 = vld [vmem:[#allocation2 + $0x7c0] sm:$0xff] }
 0xace   :  { %12836 = vmatmul.mubr.bf16.vlgmr.msra.gmra.mrb[84].mxu1 %v12760_v36  ;;  %13035 = vmatmul.mubr.bf16.vlgmr.msra.gmra.mrb[32].mxu0 %v13000_v5  ;;  %v12858_v36 = vld [vmem:[#allocation2 + $0x450] sm:$0xff] }
 0xacf   :  { %12924 = vmatpush1.bf16.msra.mxu1 %v12850_v21  ;;  %13123 = vmatpush1.bf16.msra.mxu0 %v13088_v37  ;;  %v12999_v21 = vld [vmem:[#allocation2 + $0x5f8] sm:$0xff]  ;;  %v13237_v37 = vld [vmem:[#allocation2 + $0x7e8] sm:$0xff] }
 0xad0   :  { %12925 = vmatprep.subr.bf16.mxu1 %v12855_v31  ;;  %13124 = vmatprep.subr.bf16.mxu0 %v13093_v30  ;;  %v12998_v31 = vld [vmem:[#allocation2 + $0x5f0] sm:$0xff]  ;;  %v13236_v30 = vld [vmem:[#allocation2 + $0x7e0] sm:$0xff] }
 0xad1   :  { %12955 = vmatprep.mubr.bf16.mxu1 %v15551_v9  ;;  %13154 = vmatprep.mubr.bf16.mxu0 %v15551_v9 }
 0xad3   :  { %12926 = vmatpush1.bf16.msra.mxu1 %v12854_v29  ;;  %13125 = vmatpush1.bf16.msra.mxu0 %v13092_v45  ;;  %v13091_v29 = vld [vmem:[#allocation2 + $0x618] sm:$0xff]  ;;  %v13240_v45 = vrot.slane %v21777_v25, 7 }
 0xad4   :  { %12927 = vmatprep.subr.bf16.mxu1 %v12859_v48  ;;  %13126 = vmatprep.subr.bf16.mxu0 %v13097_v38  ;;  %v13090_v48 = vld [vmem:[#allocation2 + $0x610] sm:$0xff]  ;;  %v13095_v38 = vld [vmem:[#allocation2 + $0x638] sm:$0xff] }
 0xad7   :  { %12928 = vmatpush1.bf16.msra.mxu1 %v12858_v36  ;;  %13127 = vmatpush1.bf16.msra.mxu0 %v13096_v16  ;;  %v13094_v36 = vld [vmem:[#allocation2 + $0x630] sm:$0xff]  ;;  %v13099_v16 = vld [vmem:[#allocation2 + $0x658] sm:$0xff] }
 0xad8   :  { %12929 = vmatprep.subr.bf16.mxu1 %v12863_v54  ;;  %13128 = vmatprep.subr.bf16.mxu0 %v13101_v41  ;;  %v13098_v54 = vld [vmem:[#allocation2 + $0x650] sm:$0xff]  ;;  %v13103_v41 = vld [vmem:[#allocation2 + $0x678] sm:$0xff] }
 0xadb   :  { %12930 = vmatpush1.bf16.msra.mxu1 %v12862_v44  ;;  %13129 = vmatpush1.bf16.msra.mxu0 %v13100_v50  ;;  %v13102_v44 = vld [vmem:[#allocation2 + $0x670] sm:$0xff]  ;;  %v13107_v50 = vld [vmem:[#allocation2 + $0x698] sm:$0xff] }
 0xadc   :  { %12931 = vmatprep.subr.bf16.mxu1 %v12867_v43  ;;  %13130 = vmatprep.subr.bf16.mxu0 %v13105_v63  ;;  %v13111_v43 = vld [vmem:[#allocation2 + $0x6b8] sm:$0xff]  ;;  %v13110_v63 = vld [vmem:[#allocation2 + $0x6b0] sm:$0xff] }
 0xadf   :  { %12932 = vmatpush1.bf16.msra.mxu1 %v12866_v49  ;;  %13131 = vmatpush1.bf16.msra.mxu0 %v13104_v1 }
 0xae0   :  { %12933 = vmatprep.subr.bf16.mxu1 %v12871_v7  ;;  %13132 = vmatprep.subr.bf16.mxu0 %v13109_v56  ;;  %v13115_v7 = vld [vmem:[#allocation2 + $0x6d8] sm:$0xff] }
 0xae3   :  { %12934 = vmatpush1.bf16.msra.mxu1 %v12870_v8  ;;  %13133 = vmatpush1.bf16.msra.mxu0 %v13108_v58 }
 0xae4   :  { %12935 = vmatprep.subr.bf16.mxu1 %v12875_v53  ;;  %13134 = vmatprep.subr.bf16.mxu0 %v13113_v62 }
 0xae7   :  { %12936 = vmatpush1.bf16.msra.mxu1 %v12874_v23  ;;  %13135 = vmatpush1.bf16.msra.mxu0 %v13112_v13 }
 0xae8   :  { %12937 = vmatprep.subr.bf16.mxu1 %v12879_v60  ;;  %13136 = vmatprep.subr.bf16.mxu0 %v13117_v39  ;;  %v13114_v60 = vld [vmem:[#allocation2 + $0x6d0] sm:$0xff] }
 0xaeb   :  { %12938 = vmatpush1.bf16.msra.mxu1 %v12878_v51  ;;  %13137 = vmatpush1.bf16.msra.mxu0 %v13116_v34  ;;  %v13119_v51 = vld [vmem:[#allocation2 + $0x6f8] sm:$0xff]  ;;  %v13118_v34 = vld [vmem:[#allocation2 + $0x6f0] sm:$0xff] }
 0xaec   :  { %13043 = vmatprep.subr.bf16.mxu1 %v12971_v57  ;;  %13242 = vmatprep.subr.bf16.mxu0 %v13209_v28  ;;  %v13211_v57 = vld [vmem:[#allocation2 + $0x718] sm:$0xff]  ;;  %v13210_v28 = vld [vmem:[#allocation2 + $0x710] sm:$0xff] }
 0xaee   :  { %12956 = vmatmul.mubr.bf16.vlgmr.msra.gmra.mrb[88].mxu1 %v12880_v55  ;;  %13155 = vmatmul.mubr.bf16.vlgmr.msra.gmra.mrb[36].mxu0 %v13120_v33  ;;  %v12978_v55 = vld [vmem:[#allocation2 + $0x550] sm:$0xff] }
 0xaef   :  { %13044 = vmatpush1.bf16.msra.mxu1 %v12970_v27  ;;  %13243 = vmatpush1.bf16.msra.mxu0 %v13208_v4  ;;  %v13215_v27 = vld [vmem:[#allocation2 + $0x738] sm:$0xff]  ;;  %v13214_v4 = vld [vmem:[#allocation2 + $0x730] sm:$0xff] }
 0xaf0   :  { %13045 = vmatprep.subr.bf16.mxu1 %v12975_v11  ;;  %13244 = vmatprep.subr.bf16.mxu0 %v13213_v0  ;;  %v13219_v11 = vld [vmem:[#allocation2 + $0x758] sm:$0xff]  ;;  %v13218_v0 = vld [vmem:[#allocation2 + $0x750] sm:$0xff] }
 0xaf1   :  { %13075 = vmatprep.mubr.bf16.mxu1 %v15551_v9  ;;  %13274 = vmatprep.mubr.bf16.mxu0 %v15551_v9 }
 0xaf3   :  { %13046 = vmatpush1.bf16.msra.mxu1 %v12974_v40  ;;  %13245 = vmatpush1.bf16.msra.mxu0 %v13212_v14  ;;  %v13223_v40 = vld [vmem:[#allocation2 + $0x778] sm:$0xff]  ;;  %v13222_v14 = vld [vmem:[#allocation2 + $0x770] sm:$0xff] }
 0xaf4   :  { %13047 = vmatprep.subr.bf16.mxu1 %v12979_v17  ;;  %13246 = vmatprep.subr.bf16.mxu0 %v13217_v22  ;;  %v13227_v17 = vld [vmem:[#allocation2 + $0x798] sm:$0xff]  ;;  %v13226_v22 = vld [vmem:[#allocation2 + $0x790] sm:$0xff] }
 0xaf7   :  { %13048 = vmatpush1.bf16.msra.mxu1 %v12978_v55  ;;  %13247 = vmatpush1.bf16.msra.mxu0 %v13216_v19  ;;  %v13231_v55 = vld [vmem:[#allocation2 + $0x7b8] sm:$0xff] }
 0xaf8   :  { %13049 = vmatprep.subr.bf16.mxu1 %v12983_v6  ;;  %13248 = vmatprep.subr.bf16.mxu0 %v13221_v32  ;;  %v13235_v6 = vld [vmem:[#allocation2 + $0x7d8] sm:$0xff] }
 0xafb   :  { %13050 = vmatpush1.bf16.msra.mxu1 %v12982_v26  ;;  %13249 = vmatpush1.bf16.msra.mxu0 %v13220_v24 }
 0xafc   :  { %13051 = vmatprep.subr.bf16.mxu1 %v12987_v3  ;;  %13250 = vmatprep.subr.bf16.mxu0 %v13225_v52 }
 0xaff   :  { %13052 = vmatpush1.bf16.msra.mxu1 %v12986_v42  ;;  %13251 = vmatpush1.bf16.msra.mxu0 %v13224_v59 }
 0xb00   :  { %13053 = vmatprep.subr.bf16.mxu1 %v12991_v46  ;;  %13252 = vmatprep.subr.bf16.mxu0 %v13229_v35  ;;  %v13234_v46 = vld [vmem:[#allocation2 + $0x7d0] sm:$0xff] }
 0xb03   :  { %13054 = vmatpush1.bf16.msra.mxu1 %v12990_v47  ;;  %13253 = vmatpush1.bf16.msra.mxu0 %v13228_v15  ;;  %v13239_v47 = vld [vmem:[#allocation2 + $0x7f8] sm:$0xff]  ;;  %v13238_v15 = vld [vmem:[#allocation2 + $0x7f0] sm:$0xff] }
 0xb04   :  { %13055 = vmatprep.subr.bf16.mxu1 %v12995_v2  ;;  %13254 = vmatprep.subr.bf16.mxu0 %v13233_v61 }
 0xb07   :  { %13056 = vmatpush1.bf16.msra.mxu1 %v12994_v12  ;;  %13255 = vmatpush1.bf16.msra.mxu0 %v13232_v20 }
 0xb08   :  { %13057 = vmatprep.subr.bf16.mxu1 %v12999_v21  ;;  %13256 = vmatprep.subr.bf16.mxu0 %v13237_v37 }
 0xb0b   :  { %13058 = vmatpush1.bf16.msra.mxu1 %v12998_v31  ;;  %13257 = vmatpush1.bf16.msra.mxu0 %v13236_v30 }
 0xb0c   :  { %13163 = vmatprep.subr.bf16.mxu1 %v13091_v29 }
 0xb0e   :  { %13076 = vmatmul.mubr.bf16.vlgmr.msra.gmra.mrb[92].mxu1 %v13000_v5  ;;  %13275 = vmatmul.mubr.bf16.vlgmr.msra.gmra.mrb[40].mxu0 %v13240_v45  ;;  %v13106_v5 = vld [vmem:[#allocation2 + $0x690] sm:$0xff] }
 0xb0f   :  { %13164 = vmatpush1.bf16.msra.mxu1 %v13090_v48  ;;  %13195 = vmatprep.mubr.bf16.mxu1 %v15551_v9 }
 0xb10   :  { %13165 = vmatprep.subr.bf16.mxu1 %v13095_v38 }
 0xb13   :  { %13166 = vmatpush1.bf16.msra.mxu1 %v13094_v36 }
 0xb14   :  { %13167 = vmatprep.subr.bf16.mxu1 %v13099_v16 }
 0xb17   :  { %13168 = vmatpush1.bf16.msra.mxu1 %v13098_v54 }
 0xb18   :  { %13169 = vmatprep.subr.bf16.mxu1 %v13103_v41 }
 0xb1b   :  { %13170 = vmatpush1.bf16.msra.mxu1 %v13102_v44 }
 0xb1c   :  { %13171 = vmatprep.subr.bf16.mxu1 %v13107_v50 }
 0xb1f   :  { %13172 = vmatpush1.bf16.msra.mxu1 %v13106_v5 }
 0xb20   :  { %13173 = vmatprep.subr.bf16.mxu1 %v13111_v43 }
 0xb21   :  { %v12478_v49 = vpop.f32.mrb[68].mxu1  ;;  %v12560_v1 = vpop.f32.mrb[16].mxu0 }
 0xb22   :  { %v12561_v56 = vadd.f32 %v12560_v1, %v12478_v49  ;;  %v12480_v8 = vpop.f32.mrb[69].mxu1  ;;  %v12562_v58 = vpop.f32.mrb[17].mxu0 }
 0xb23   :  { %v12563_v53 = vadd.f32 %v12562_v58, %v12480_v8  ;;  %v12482_v62 = vpop.f32.mrb[70].mxu1  ;;  %13174 = vmatpush1.bf16.msra.mxu1 %v13110_v63  ;;  %v12564_v23 = vpop.f32.mrb[18].mxu0 }
 0xb24   :  { %v12483_v13 = vpop.f32.mrb[71].mxu1  ;;  %13175 = vmatprep.subr.bf16.mxu1 %v13115_v7  ;;  %v12565_v39 = vpop.f32.mrb[19].mxu0 }
 0xb27   :  { %13176 = vmatpush1.bf16.msra.mxu1 %v13114_v60 }
 0xb28   :  { %13177 = vmatprep.subr.bf16.mxu1 %v13119_v51 }
 0xb2b   :  { %13178 = vmatpush1.bf16.msra.mxu1 %v13118_v34 }
 0xb2c   :  { %13283 = vmatprep.subr.bf16.mxu1 %v13211_v57 }
 0xb2e   :  { %13196 = vmatmul.mubr.bf16.vlgmr.msra.gmra.mrb[96].mxu1 %v13120_v33  ;;  %v13230_v33 = vld [vmem:[#allocation2 + $0x7b0] sm:$0xff] }
 0xb2f   :  { %13284 = vmatpush1.bf16.msra.mxu1 %v13210_v28  ;;  %13315 = vmatprep.mubr.bf16.mxu1 %v15551_v9 }
 0xb30   :  { %13285 = vmatprep.subr.bf16.mxu1 %v13215_v27 }
 0xb33   :  { %13286 = vmatpush1.bf16.msra.mxu1 %v13214_v4 }
 0xb34   :  { %13287 = vmatprep.subr.bf16.mxu1 %v13219_v11 }
 0xb37   :  { %13288 = vmatpush1.bf16.msra.mxu1 %v13218_v0 }
 0xb38   :  { %13289 = vmatprep.subr.bf16.mxu1 %v13223_v40 }
 0xb3b   :  { %13290 = vmatpush1.bf16.msra.mxu1 %v13222_v14 }
 0xb3c   :  { %13291 = vmatprep.subr.bf16.mxu1 %v13227_v17 }
 0xb3f   :  { %13292 = vmatpush1.bf16.msra.mxu1 %v13226_v22 }
 0xb40   :  { %13293 = vmatprep.subr.bf16.mxu1 %v13231_v55 }
 0xb41   :  { %v12519_v19 = vpop.f32.mrb[72].mxu1  ;;  %v12676_v9 = vpop.f32.mrb[20].mxu0 }
 0xb42   :  { %v12724_v32 = vadd.f32 %v12676_v9, %v12561_v56  ;;  %v12521_v26 = vpop.f32.mrb[73].mxu1  ;;  %v12678_v24 = vpop.f32.mrb[21].mxu0  ;;  %v13336_v9 = vsub.s32 1, %v22758_v10 }
 0xb43   :  { %v12725_v3 = vadd.f32 %v12678_v24, %v12563_v53  ;;  %v12523_v52 = vpop.f32.mrb[74].mxu1  ;;  %13294 = vmatpush1.bf16.msra.mxu1 %v13230_v33  ;;  %v12680_v42 = vpop.f32.mrb[22].mxu0 }
 0xb44   :  { %v12524_v59 = vpop.f32.mrb[75].mxu1  ;;  %13295 = vmatprep.subr.bf16.mxu1 %v13235_v6  ;;  %v12681_v35 = vpop.f32.mrb[23].mxu0 }
 0xb47   :  { %13296 = vmatpush1.bf16.msra.mxu1 %v13234_v46 }
 0xb48   :  { %13297 = vmatprep.subr.bf16.mxu1 %v13239_v47 }
 0xb4b   :  { %13298 = vmatpush1.bf16.msra.mxu1 %v13238_v15 }
 0xb4e   :  { %13316 = vmatmul.mubr.bf16.vlgmr.msra.gmra.mrb[100].mxu1 %v13240_v45 }
 0xb61   :  { %v12601_v2 = vpop.f32.mrb[76].mxu1  ;;  %v12796_v61 = vpop.f32.mrb[24].mxu0 }
 0xb62   :  { %v12602_v12 = vadd.f32 %v12601_v2, %v12519_v19  ;;  %v12844_v20 = vadd.f32 %v12796_v61, %v12724_v32  ;;  %v12603_v21 = vpop.f32.mrb[77].mxu1  ;;  %v12798_v37 = vpop.f32.mrb[25].mxu0  ;;  %v13328_v19 = vld [vmem:[%s21904_s14] sm:$0xf] }
 0xb63   :  { %v12604_v31 = vadd.f32 %v12603_v21, %v12521_v26  ;;  %v12845_v30 = vadd.f32 %v12798_v37, %v12725_v3  ;;  %v12605_v29 = vpop.f32.mrb[78].mxu1  ;;  %v12800_v48 = vpop.f32.mrb[26].mxu0  ;;  %v13333_v6 = vrot.slane %v13328_v19, %v22790_v18  ;;  %v13337_v24 = vrot.slane %v13328_v19, %v13336_v9 }
 0xb64   :  { %v12606_v38 = vpop.f32.mrb[79].mxu1  ;;  %v12801_v36 = vpop.f32.mrb[27].mxu0 }
 0xb81   :  { %v12717_v16 = vpop.f32.mrb[80].mxu1  ;;  %v12916_v54 = vpop.f32.mrb[28].mxu0 }
 0xb82   :  { %v12726_v41 = vadd.f32 %v12717_v16, %v12602_v12  ;;  %v12964_v44 = vadd.f32 %v12916_v54, %v12844_v20  ;;  %v12719_v50 = vpop.f32.mrb[81].mxu1  ;;  %v12918_v5 = vpop.f32.mrb[29].mxu0 }
 0xb83   :  { %v12727_v25 = vadd.f32 %v12719_v50, %v12604_v31  ;;  %v12965_v45 = vadd.f32 %v12918_v5, %v12845_v30  ;;  %v12721_v43 = vpop.f32.mrb[82].mxu1  ;;  %v12920_v63 = vpop.f32.mrb[30].mxu0 }
 0xb84   :  { %v12722_v49 = vpop.f32.mrb[83].mxu1  ;;  %v12921_v1 = vpop.f32.mrb[31].mxu0  ;;  %v13340_v63 = vsub.s32 2, %v22758_v10 }
 0xb85   :  { %v13344_v49 = vsub.s32 3, %v22758_v10 }
 0xb86   :  { %v13341_v1 = vrot.slane %v13328_v19, %v13340_v63 }
 0xba1   :  { %v12837_v7 = vpop.f32.mrb[84].mxu1  ;;  %v13036_v56 = vpop.f32.mrb[32].mxu0 }
 0xba2   :  { %v12846_v8 = vadd.f32 %v12837_v7, %v12726_v41  ;;  %v13084_v58 = vadd.f32 %v13036_v56, %v12964_v44  ;;  %v12839_v53 = vpop.f32.mrb[85].mxu1  ;;  %v13038_v62 = vpop.f32.mrb[33].mxu0  ;;  %v13345_v56 = vrot.slane %v13328_v19, %v13344_v49 }
 0xba3   :  { %v12847_v23 = vadd.f32 %v12839_v53, %v12727_v25  ;;  %v13085_v13 = vadd.f32 %v13038_v62, %v12965_v45  ;;  %v12841_v60 = vpop.f32.mrb[86].mxu1  ;;  %v13040_v39 = vpop.f32.mrb[34].mxu0 }
 0xba4   :  { %v12842_v51 = vpop.f32.mrb[87].mxu1  ;;  %v13041_v34 = vpop.f32.mrb[35].mxu0 }
 0xbc1   :  { %v12957_v57 = vpop.f32.mrb[88].mxu1  ;;  %v13156_v28 = vpop.f32.mrb[36].mxu0 }
 0xbc2   :  { %v12966_v27 = vadd.f32 %v12957_v57, %v12846_v8  ;;  %v13204_v4 = vadd.f32 %v13156_v28, %v13084_v58  ;;  %v12959_v11 = vpop.f32.mrb[89].mxu1  ;;  %v13158_v0 = vpop.f32.mrb[37].mxu0 }
 0xbc3   :  { %v12967_v40 = vadd.f32 %v12959_v11, %v12847_v23  ;;  %v13205_v14 = vadd.f32 %v13158_v0, %v13085_v13  ;;  %v12961_v17 = vpop.f32.mrb[90].mxu1  ;;  %v13160_v22 = vpop.f32.mrb[38].mxu0 }
 0xbc4   :  { %v12962_v55 = vpop.f32.mrb[91].mxu1  ;;  %v13161_v33 = vpop.f32.mrb[39].mxu0  ;;  %v22791_v17 = vld [vmem:[#allocation20_spill] sm:$0xff] }
 0xbc5   :  { %14216 = vmatprep.subr.bf16.mxu0 %v22791_v17  ;;  %v22792_v22 = vld [vmem:[#allocation36_spill] sm:$0xff] }
 0xbc6   :  { %14238 = vmatprep.subr.bf16.mxu1 %v22792_v22 }
 0xbe1   :  { %v13077_v32 = vpop.f32.mrb[92].mxu1  ;;  %v13276_v26 = vpop.f32.mrb[40].mxu0 }
 0xbe2   :  { %v13086_v3 = vadd.f32 %v13077_v32, %v12966_v27  ;;  %v13324_v52 = vadd.f32 %v13276_v26, %v13204_v4  ;;  %v13079_v42 = vpop.f32.mrb[93].mxu1  ;;  %v13278_v59 = vpop.f32.mrb[41].mxu0 }
 0xbe3   :  { %v13087_v46 = vadd.f32 %v13079_v42, %v12967_v40  ;;  %v13325_v35 = vadd.f32 %v13278_v59, %v13205_v14  ;;  %v13081_v47 = vpop.f32.mrb[94].mxu1  ;;  %v13280_v15 = vpop.f32.mrb[42].mxu0 }
 0xbe4   :  { %v13350_v2 = vadd.f32 %v13333_v6, %v13324_v52  ;;  %v13082_v61 = vpop.f32.mrb[95].mxu1  ;;  %v13281_v12 = vpop.f32.mrb[43].mxu0 }
 0xbe5   :  { %v13351_v20 = vadd.f32 %v13337_v24, %v13325_v35 }
 0xbe6   :  { %v13358_v21 = vmul.f32 1.442695, %v13350_v2  ;;  %vm13354_vm3 = vcmp.gt.f32.partialorder %v13350_v2, 0.0 }
 0xbe7   :  { %v13360_v37 = vmul.f32 1.442695, %v13351_v20  ;;  %vm13355_vm10 = vcmp.gt.f32.partialorder %v13351_v20, 0.0 }
 0xbe8   :  { %15512 = vpow2.f32 %v13358_v21 }
 0xbe9   :  { %15514 = vpow2.f32 %v13360_v37 }
 0xbf2   :  { %v15513_v18 = vpop.eup %15512 }
 0xbf3   :  { %v15515_v31 = vpop.eup %15514  ;;  %v13833_v30 = vadd.f32 -1.0, %v15513_v18 }
 0xbf4   :  { %v13834_v29 = vadd.f32 -1.0, %v15515_v31 }
 0xbf5   :  { %v13370_v48 = vmul.f32 1.6732632, %v13833_v30 }
 0xbf6   :  { %v13371_v38 = vmul.f32 1.6732632, %v13834_v29 }
 0xbf7   :  { %v13374_v36 = vsel %vm13354_vm3, %v13350_v2, %v13370_v48 }
 0xbf8   :  { %v21837_v16 = vmul.f32 1.050701, %v13374_v36  ;;  %v13375_v54 = vsel %vm13355_vm10, %v13351_v20, %v13371_v38 }
 0xbf9   :  { %v13379_v41 = vmul.f32 1.050701, %v13375_v54 }
 0xbfb   :  { %v13387_v55 = vpack.c.bf16 %v13379_v41, %v13379_v41 }
 0xc01   :  { %v13197_v44 = vpop.f32.mrb[96].mxu1 }
 0xc02   :  { %v13206_v50 = vadd.f32 %v13197_v44, %v13086_v3  ;;  %v13199_v5 = vpop.f32.mrb[97].mxu1 }
 0xc03   :  { %v13207_v25 = vadd.f32 %v13199_v5, %v13087_v46  ;;  %v13201_v45 = vpop.f32.mrb[98].mxu1 }
 0xc04   :  { %v13202_v43 = vpop.f32.mrb[99].mxu1 }
 0xc21   :  { %v13317_v7 = vpop.f32.mrb[100].mxu1 }
 0xc22   :  { %v13326_v8 = vadd.f32 %v13317_v7, %v13206_v50  ;;  %v13319_v58 = vpop.f32.mrb[101].mxu1 }
 0xc23   :  { %v13327_v53 = vadd.f32 %v13319_v58, %v13207_v25  ;;  %v13321_v62 = vpop.f32.mrb[102].mxu1 }
 0xc24   :  { %v13352_v23 = vadd.f32 %v13341_v1, %v13326_v8  ;;  %v13322_v13 = vpop.f32.mrb[103].mxu1 }
 0xc25   :  { %v13353_v60 = vadd.f32 %v13345_v56, %v13327_v53 }
 0xc26   :  { %v13362_v39 = vmul.f32 1.442695, %v13352_v23  ;;  %vm13356_vm11 = vcmp.gt.f32.partialorder %v13352_v23, 0.0 }
 0xc27   :  { %v13364_v51 = vmul.f32 1.442695, %v13353_v60  ;;  %vm13357_vm12 = vcmp.gt.f32.partialorder %v13353_v60, 0.0 }
 0xc28   :  { %15516 = vpow2.f32 %v13362_v39 }
 0xc29   :  { %15518 = vpow2.f32 %v13364_v51 }
 0xc32   :  { %v15517_v34 = vpop.eup %15516 }
 0xc33   :  { %v15519_v57 = vpop.eup %15518  ;;  %v13835_v28 = vadd.f32 -1.0, %v15517_v34 }
 0xc34   :  { %v13836_v27 = vadd.f32 -1.0, %v15519_v57 }
 0xc35   :  { %v13372_v4 = vmul.f32 1.6732632, %v13835_v28 }
 0xc36   :  { %v13373_v10 = vmul.f32 1.6732632, %v13836_v27 }
 0xc37   :  { %v13376_v11 = vsel %vm13356_vm11, %v13352_v23, %v13372_v4 }
 0xc38   :  { %v13380_v0 = vmul.f32 1.050701, %v13376_v11  ;;  %v13377_v40 = vsel %vm13357_vm12, %v13353_v60, %v13373_v10 }
 0xc39   :  { %v13381_v14 = vmul.f32 1.050701, %v13377_v40 }
 0xc3b   :  { %v13389_v33 = vpack.c.bf16 %v13381_v14, %v13381_v14 }
 0xc3c   :  { %15544 = dma.done.wait [#allocation4 + $0x1], 4096 }
 0xc3d   :  { %15545 = vsyncadd [#allocation4 + $0x1], 4294963200  ;;  %v22793_v19 = vld [vmem:[#allocation12_spill] sm:$0xff]  ;;  %v22795_v6 = vld [vmem:[#allocation21_spill] sm:$0xff]  ;;  %13461 = vmatprep.mubr.bf16.mxu0 %v13387_v55  ;;  %13501 = vmatprep.mubr.bf16.mxu1 %v13389_v33  ;;  %v13386_v41 = vpack.c.bf16 %v21837_v16, %v21837_v16  ;;  %v13388_v44 = vpack.c.bf16 %v13380_v0, %v13380_v0  ;;  %s15552_s2 = smov [#allocation5]  }
 0xc3e   :  { %14217 = vmatpush3.bf16.msra.mxu0 %v22793_v19  ;;  %v22794_v9 = vld [vmem:[#allocation28_spill] sm:$0xff]  ;;  %v22796_v32 = vld [vmem:[#allocation37_spill] sm:$0xff]  ;;  %v22799_v3 = vld [vmem:[#allocation22_spill] sm:$0xff]  ;;  %s13516_s5 = sshll.u32 %s15552_s2, 4  ;;  %s13517_s5 = int_to_ptr.vmem [resolvable:$true] %s13516_s5 }
 0xc3f   :  { %14239 = vmatpush3.bf16.msra.mxu1 %v22794_v9  ;;  %14218 = vmatprep.subr.bf16.mxu0 %v22795_v6  ;;  %v22797_v26 = vld [vmem:[#allocation13_spill] sm:$0xff]  ;;  %v22800_v52 = vld [vmem:[#allocation38_spill] sm:$0xff]  ;;  %v22803_v46 = vld [vmem:[#allocation23_spill] sm:$0xff]  ;;  %s15520_s29 = scalar_lea.vmem %s13517_s5, 32  ;;  %p15525_p1 = scmp.lt.s32.totalorder %s13517_s5, %s13517_s5 }
 0xc40   :  { %14240 = vmatprep.subr.bf16.mxu1 %v22796_v32  ;;  %v22798_v24 = vld [vmem:[#allocation29_spill] sm:$0xff]  ;;  %v22801_v42 = vld [vmem:[#allocation14_spill] sm:$0xff]  ;;  %v22804_v35 = vld [vmem:[#allocation39_spill] sm:$0xff]  ;;  %p15521_p0 = scmp.ne.s32.totalorder %s13517_s5, %s15520_s29  ;;  %p15526_p2 = scmp.lt.s32.totalorder %s15520_s29, %s15520_s29 }
 0xc41   :  { %v22802_v59 = vld [vmem:[#allocation30_spill] sm:$0xff]  ;;  %v22805_v47 = vld [vmem:[#allocation15_spill] sm:$0xff]  ;;  %v22807_v2 = vld [vmem:[#allocation24_spill] sm:$0xff] }
 0xc42   :  { %14219 = vmatpush3.bf16.msra.mxu0 %v22797_v26  ;;  %v22806_v15 = vld [vmem:[#allocation31_spill] sm:$0xff]  ;;  %v22808_v61 = vld [vmem:[#allocation40_spill] sm:$0xff]  ;;  %v22811_v21 = vld [vmem:[#allocation25_spill] sm:$0xff]  ;;  %p15527_p3 = por %p15526_p2, %p15525_p1 }
 0xc43   :  { %14241 = vmatpush3.bf16.msra.mxu1 %v22798_v24  ;;  %14220 = vmatprep.subr.bf16.mxu0 %v22799_v3  ;;  %v22809_v12 = vld [vmem:[#allocation16_spill] sm:$0xff]  ;;  %v22812_v37 = vld [vmem:[#allocation41_spill] sm:$0xff]  ;;  %v22815_v30 = vld [vmem:[#allocation26_spill] sm:$0xff] }
 0xc44   :  { %14242 = vmatprep.subr.bf16.mxu1 %v22800_v52  ;;  %v22810_v20 = vld [vmem:[#allocation32_spill] sm:$0xff]  ;;  %v22813_v18 = vld [vmem:[#allocation17_spill] sm:$0xff]  ;;  %v22816_v29 = vld [vmem:[#allocation42_spill] sm:$0xff]  ;;  %p15528_p4 = pnand %p15527_p3, %p15521_p0 }
 0xc45   :  { %v22814_v31 = vld [vmem:[#allocation33_spill] sm:$0xff]  ;;  %v22817_v48 = vld [vmem:[#allocation18_spill] sm:$0xff]  ;;  %v22819_v36 = vld [vmem:[#allocation27_spill] sm:$0xff] }
 0xc46   :  { %14221 = vmatpush3.bf16.msra.mxu0 %v22801_v42  ;;  %v22818_v38 = vld [vmem:[#allocation34_spill] sm:$0xff]  ;;  %v22820_v54 = vld [vmem:[#allocation43_spill] sm:$0xff] }
 0xc47   :  { %14243 = vmatpush3.bf16.msra.mxu1 %v22802_v59  ;;  %14222 = vmatprep.subr.bf16.mxu0 %v22803_v46  ;;  %v22821_v50 = vld [vmem:[#allocation19_spill] sm:$0xff] }
 0xc48   :  { %14244 = vmatprep.subr.bf16.mxu1 %v22804_v35  ;;  %v22822_v5 = vld [vmem:[#allocation35_spill] sm:$0xff] }
 0xc49   :  { %v13837_v43 = vld [vmem:[%s21906_s16] ss:$0 sm:$0xff] }
 0xc4a   :  { %14223 = vmatpush3.bf16.msra.mxu0 %v22805_v47 }
 0xc4b   :  { %14245 = vmatpush3.bf16.msra.mxu1 %v22806_v15  ;;  %14224 = vmatprep.subr.bf16.mxu0 %v22807_v2 }
 0xc4c   :  { %14246 = vmatprep.subr.bf16.mxu1 %v22808_v61 }
 0xc4e   :  { %14225 = vmatpush3.bf16.msra.mxu0 %v22809_v12 }
 0xc4f   :  { %14247 = vmatpush3.bf16.msra.mxu1 %v22810_v20  ;;  %14226 = vmatprep.subr.bf16.mxu0 %v22811_v21 }
 0xc50   :  { %14248 = vmatprep.subr.bf16.mxu1 %v22812_v37 }
 0xc52   :  { %14227 = vmatpush3.bf16.msra.mxu0 %v22813_v18 }
 0xc53   :  { %14249 = vmatpush3.bf16.msra.mxu1 %v22814_v31  ;;  %14228 = vmatprep.subr.bf16.mxu0 %v22815_v30 }
 0xc54   :  { %14250 = vmatprep.subr.bf16.mxu1 %v22816_v29 }
 0xc56   :  { %14229 = vmatpush3.bf16.msra.mxu0 %v22817_v48 }
 0xc57   :  { %14251 = vmatpush3.bf16.msra.mxu1 %v22818_v38  ;;  %14230 = vmatprep.subr.bf16.mxu0 %v22819_v36 }
 0xc58   :  { %14252 = vmatprep.subr.bf16.mxu1 %v22820_v54 }
 0xc5a   :  { %14231 = vmatpush3.bf16.msra.mxu0 %v22821_v50 }
 0xc5b   :  { %14253 = vmatpush3.bf16.msra.mxu1 %v22822_v5 }
 0xc5d   :  { %13462 = vmatmul.mubr.bf16.vlgmr.msra.gmra.mrb[44].mxu0 %v13386_v41 }
 0xc5e   :  { %13502 = vmatmul.mubr.bf16.vlgmr.msra.gmra.mrb[104].mxu1 %v13388_v44 }
 0xd30   :  { %v14232_v25 = vpop.f32.mrb[44].mxu0 }
 0xd31   :  { %v14254_v45 = vpop.f32.mrb[104].mxu1  ;;  %v14233_v63 = vpop.f32.mrb[45].mxu0 }
 0xd32   :  { %v14255_v49 = vpop.f32.mrb[105].mxu1  ;;  %v14234_v1 = vadd.f32 %v14233_v63, %v14232_v25  ;;  %v14235_v56 = vpop.f32.mrb[46].mxu0 }
 0xd33   :  { %v14256_v7 = vadd.f32 %v14255_v49, %v14254_v45  ;;  %v14257_v8 = vpop.f32.mrb[106].mxu1  ;;  %v14236_v16 = vpop.f32.mrb[47].mxu0 }
 0xd34   :  { %v14258_v58 = vpop.f32.mrb[107].mxu1  ;;  %v13464_v53 = vadd.f32 %v14234_v1, %v13837_v43 }
 0xd36   :  { %v13504_v62 = vadd.f32 %v14256_v7, %v13464_v53 }
 0xd38   :  { %13509 = vst [vmem:[#allocation5] sm:$0x3] %v13504_v62 }
 0xd39   :  { %15531 = shalt.err (!%p15528_p4)
}
 0xd3a   :  { %s15532_s0 = scalar_lea.hbm %s21907_s17, 32 }
 0xd3b   :  { %p15533_p5 = scmp.ne.s32.totalorder %s21907_s17, %s15532_s0  ;;  %p15536_p6 = scmp.lt.u32.totalorder %s15532_s0, %s21907_s17 }
 0xd3d   :  { %p15538_p7 = pnand %p15536_p6, %p15533_p5 }
 0xd3f   :  { %15541 = shalt.err (!%p15538_p7)
}
 0xd40   :  { %13519 = dma.vmem_to_hbm [thread:$0]  %s13517_s5, 32, %s21907_s17, [#allocation6]  }
 0xd41   :  { %15546 = dma.done.wait [#allocation6], 32  }
 0xd42   :  { %15547 = vsyncadd [#allocation6], 4294967264 }
 0xd43   :  { %13523 = vsyncpa [#allocation6], 1 }
 0xd44   :  { %13524 = vsyncmov [#allocation4] }
 0xd47   :  { %s13525_s21 = vpop.sfrf %13524 }
 0xd48   :  { %p13838_p8 = scmp.ne.s32.totalorder %s13525_s21, 0 }
 0xd4a   :  { %13529 = shalt.err (%p13838_p8)  }
 0xd4b   :  { %13531 = vsyncmov [#allocation4 + $0x1] }
 0xd4e   :  { %s13532_s22 = vpop.sfrf %13531 }
 0xd4f   :  { %p13839_p9 = scmp.ne.s32.totalorder %s13532_s22, 0 }
 0xd51   :  { %13536 = shalt.err (%p13839_p9)  }

</bundles_post_ra>
